<compile_context>
chip_gen: v6e
topology: v6e:2x2x1
jax: 0.10.0
libtpu: 0.0.40
codegen_flags: <defaults>
</compile_context>

<pallas_src>
import math
import jax
import jax.numpy as jnp
from jax.experimental import pallas as pl
from jax.experimental.pallas import tpu as pltpu


# ----------------------------- in-kernel helpers -----------------------------

def _gelu(x):
    # TODO(synk): torch nn.GELU defaults to the exact erf formulation; tanh approx
    # used here (EUP-friendly) -> ~1e-3 divergence.
    c = math.sqrt(2.0 / math.pi)
    return 0.5 * x * (1.0 + jnp.tanh(c * (x + 0.044715 * x * x * x)))


def _layernorm(x, gamma, beta, eps=1e-5):
    mu = jnp.mean(x, axis=-1, keepdims=True)
    var = jnp.mean((x - mu) ** 2, axis=-1, keepdims=True)
    return (x - mu) * jax.lax.rsqrt(var + eps) * gamma + beta


def _round_up(a, b):
    return ((a + b - 1) // b) * b


# --------------- fused per-block kernel (modulation + MLP, 1 call) -----------

def make_block_kernel(H, W, C, focal_level, kernel_sizes, *, gelu_bf16):
    HW = H * W
    NG = focal_level + 1
    Cpad = _round_up(C, 128)                  # lane-aligned segment stride in f
    p_max = max(kernel_sizes) // 2
    w_off = _round_up(max(p_max, 1), 8)       # sublane-aligned W-axis padding
    Hp = H + 2 * p_max
    Wp = W + 2 * w_off
    TL = HW if (HW <= 1024 or HW % 8 != 0) else 1024   # token tile for MLP half
    bf16 = jnp.bfloat16
    f32 = jnp.float32

    def kernel(*refs):
        (x_ref, g1_ref, b1_ref, wf_ref, bf_ref) = refs[:5]
        dw_refs = refs[5:5 + focal_level]
        (wh_ref, bh_ref, wp_ref, bp_ref, g2_ref, b2_ref,
         w1_ref, b1m_ref, w2_ref, b2m_ref, out_ref, pad_ref) = refs[5 + focal_level:]

        # activations travel HBM<->VMEM in bf16; internal math is f32 unless noted
        x = x_ref[0].astype(f32)                                  # (HW, C)

        # ----------------- norm1 + fused, lane-aligned f projection ----------
        xn = _layernorm(x, g1_ref[...], b1_ref[...])
        f = jnp.dot(xn.astype(bf16), wf_ref[...],
                    preferred_element_type=f32) + bf_ref[...]     # (HW, (2+NG)*Cpad)
        # every segment starts on a 128-lane boundary -> free vreg picks
        q = f[:, :C]
        ctx = f[:, Cpad:Cpad + C]
        gate = [f[:, (2 + l) * Cpad:(2 + l) * Cpad + C]           # (HW, C), replicated
                for l in range(NG)]

        # ----------------- focal modulation -----------------------------------
        # Zero only the halo border; the interior is fully overwritten every level
        # and every tap's read window stays inside the buffer, so a zero border is
        # the only invariant needed.  Re-zeroing it every grid step keeps this
        # correct under "parallel" batch sharding (per-core scratch instances).
        pad_ref[pl.ds(0, p_max), :, :] = jnp.zeros((p_max, Wp, C), f32)
        pad_ref[pl.ds(Hp - p_max, p_max), :, :] = jnp.zeros((p_max, Wp, C), f32)
        pad_ref[:, pl.ds(0, w_off), :] = jnp.zeros((Hp, w_off, C), f32)
        pad_ref[:, pl.ds(w_off + W, w_off), :] = jnp.zeros((Hp, w_off, C), f32)

        ctx_hw = ctx.reshape(H, W, C)
        ctx_all = jnp.zeros((HW, C), f32)

        for l in range(focal_level):
            k = kernel_sizes[l]
            p = k // 2
            # interior store is sublane-aligned (w_off % 8 == 0) and unmasked
            pad_ref[pl.ds(p_max, H), pl.ds(w_off, W), :] = ctx_hw
            dw = dw_refs[l][...]                                  # (k, k, C)
            acc = jnp.zeros((H, W, C), f32)
            # W-axis (sublane) shift hoisted out of the dy loop: k column reads per
            # level; the dy shifts below are free leading-axis slices of the slab.
            for dx in range(k):
                slab = pad_ref[pl.ds(0, Hp), pl.ds(w_off - p + dx, W), :]   # (Hp, W, C)
                for dy in range(k):
                    r = p_max - p + dy
                    acc = acc + slab[r:r + H] * dw[dy:dy + 1, dx:dx + 1]
            ctx_hw = _gelu(acc)                                   # focal_layers[l]
            ctx_all = ctx_all + ctx_hw.reshape(HW, C) * gate[l]   # aligned elementwise

        # global context: per-channel mean of the last ctx over all positions
        ctx_global = _gelu(jnp.mean(ctx_hw.reshape(HW, C), axis=0, keepdims=True))  # (1, C)
        ctx_all = ctx_all + gate[focal_level] * ctx_global

        # h (1x1 conv == per-pixel linear), modulate with q, then proj
        modulator = jnp.dot(ctx_all.astype(bf16), wh_ref[...],
                            preferred_element_type=f32) + bh_ref[...]
        x_mod = q * modulator
        x_mod = jnp.dot(x_mod.astype(bf16), wp_ref[...],
                        preferred_element_type=f32) + bp_ref[...]
        x1 = x + x_mod                                            # shortcut + gamma_1 * mod(x)

        # ----------------- norm2 + MLP + residual, tiled over tokens ----------
        # token tiling bounds the (TL, hidden) intermediate (v7x 64 MiB VMEM).
        for r0 in range(0, HW, TL):
            rows = min(TL, HW - r0)
            xc = x1[r0:r0 + rows]
            xn2 = _layernorm(xc, g2_ref[...], b2_ref[...])
            h = jnp.dot(xn2.astype(bf16), w1_ref[...],
                        preferred_element_type=f32) + b1m_ref[...]
            if gelu_bf16:
                h = _gelu(h.astype(bf16))          # bf16 VALU/EUP on v6e/v7x
            else:
                h = _gelu(h).astype(bf16)          # f32 path (v5e: no bf16 VALU/EUP)
            y = jnp.dot(h, w2_ref[...], preferred_element_type=f32) + b2m_ref[...]
            out_ref[0, r0:r0 + rows, :] = (xc + y).astype(out_ref.dtype)

    return kernel, (Hp, Wp)


# ------------------------------- host wrappers --------------------------------

def _full_spec(a):
    zeros = (0,) * a.ndim
    return pl.BlockSpec(a.shape, lambda b: zeros)


def _device_tuning():
    kind = ""
    try:
        kind = jax.devices()[0].device_kind.lower()
    except Exception:
        pass
    is_v5e = ("v5 lite" in kind) or ("v5e" in kind)
    is_v6 = "v6" in kind
    is_v7 = "v7" in kind
    if is_v5e or is_v6:
        vmem_limit = 100 * 1024 * 1024     # 128 MiB physical VMEM: use the headroom
    elif is_v7:
        vmem_limit = 48 * 1024 * 1024      # 64 MiB physical per TC: stay below
    else:
        vmem_limit = None                  # unknown part: keep compiler default (safe)
    gelu_bf16 = is_v6 or is_v7             # v5e has no bf16 VALU/EUP -> f32 there
    return vmem_limit, gelu_bf16


def run_block(x, H, W, params, focal_level, kernel_sizes):
    B, L, C = x.shape
    vmem_limit, gelu_bf16 = _device_tuning()
    kernel, (Hp, Wp) = make_block_kernel(H, W, C, focal_level, kernel_sizes,
                                         gelu_bf16=gelu_bf16)
    operands = [params['g1'], params['b1'], params['wf'], params['bf'],
                *params['dw'], params['wh'], params['bh'], params['wp'],
                params['bp'], params['g2'], params['b2'], params['w1'],
                params['b1m'], params['w2'], params['b2m']]
    in_specs = [pl.BlockSpec((1, L, C), lambda b: (b, 0, 0))] + \
               [_full_spec(a) for a in operands]
    cp_kwargs = dict(dimension_semantics=("parallel",))
    if vmem_limit is not None:
        cp_kwargs["vmem_limit_bytes"] = vmem_limit
    return pl.pallas_call(
        kernel,
        out_shape=jax.ShapeDtypeStruct((B, L, C), jnp.bfloat16),
        grid=(B,),
        in_specs=in_specs,
        out_specs=pl.BlockSpec((1, L, C), lambda b: (b, 0, 0)),
        scratch_shapes=[pltpu.VMEM((Hp, Wp, C), jnp.float32)],
        compiler_params=pltpu.CompilerParams(**cp_kwargs),
    )(x, *operands)


def basic_layer_forward(x, H, W, blocks, focal_level, kernel_sizes):
    # inter-block activation travels in bf16 (halves activation HBM traffic)
    x = x.astype(jnp.bfloat16)
    for params in blocks:
        x = run_block(x, H, W, params, focal_level, kernel_sizes)
    # downsample is None -> Ho, Wo = H, W
    return x, H, W


# ------------------------------ parameter setup --------------------------------

def init_block_params(key, C, hidden, focal_level, kernel_sizes):
    keys = jax.random.split(key, 24)
    s = 0.02
    n = lambda i, shape: s * jax.random.normal(keys[i], shape, jnp.float32)
    NG = focal_level + 1
    Cpad = _round_up(C, 128)
    bf16 = jnp.bfloat16

    # fused f = Linear(C, 2C + NG): [q | ctx | gates] laid out so every segment
    # starts on a 128-lane boundary; each gate column replicated C-wide so the
    # in-kernel gate multiply is a plain aligned elementwise op.
    wq, wc, wg = n(0, (C, C)), n(1, (C, C)), n(2, (C, NG))
    bq, bc, bg = n(3, (1, C)), n(4, (1, C)), n(5, (1, NG))
    Wtot = (2 + NG) * Cpad
    wf = jnp.zeros((C, Wtot), jnp.float32)
    bf = jnp.zeros((1, Wtot), jnp.float32)
    wf = wf.at[:, 0:C].set(wq)
    bf = bf.at[:, 0:C].set(bq)
    wf = wf.at[:, Cpad:Cpad + C].set(wc)
    bf = bf.at[:, Cpad:Cpad + C].set(bc)
    for l in range(NG):
        o = (2 + l) * Cpad
        wf = wf.at[:, o:o + C].set(jnp.tile(wg[:, l:l + 1], (1, C)))
        bf = bf.at[:, o:o + C].set(jnp.tile(bg[:, l:l + 1], (1, C)))

    p = {
        # norm1 / norm2 (f32)
        'g1': jnp.ones((1, C), jnp.float32), 'b1': jnp.zeros((1, C), jnp.float32),
        'g2': jnp.ones((1, C), jnp.float32), 'b2': jnp.zeros((1, C), jnp.float32),
        # fused, lane-aligned f projection (bf16 weights, f32 bias)
        'wf': wf.astype(bf16), 'bf': bf,
        # depthwise focal conv taps, (k, k, C) per level, bias=False (f32 VPU work)
        'dw': [n(6 + l, (kernel_sizes[l], kernel_sizes[l], C))
               for l in range(focal_level)],
        # h: 1x1 conv stored as (C_in, C_out); proj: Linear(C, C)
        'wh': n(12, (C, C)).astype(bf16), 'bh': n(13, (1, C)),
        'wp': n(14, (C, C)).astype(bf16), 'bp': n(15, (1, C)),
        # Mlp
        'w1': n(16, (C, hidden)).astype(bf16), 'b1m': n(17, (1, hidden)),
        'w2': n(18, (hidden, C)).astype(bf16), 'b2m': n(19, (1, C)),
    }
    return p


# ------------------------------------ main --------------------------------------

if __name__ == "__main__":
    B, H, W, C = 2, 16, 16, 32
    depth = 2
    focal_level, focal_window, focal_factor = 1, 3, 2
    mlp_ratio = 4.0
    kernel_sizes = [focal_factor * k + focal_window for k in range(focal_level)]
    hidden = int(C * mlp_ratio)

    key = jax.random.PRNGKey(0)
    kx, *bkeys = jax.random.split(key, depth + 1)
    x = jax.random.normal(kx, (B, H * W, C), jnp.float32)   # (B, L, C)

    blocks = [init_block_params(bkeys[i], C, hidden, focal_level, kernel_sizes)
              for i in range(depth)]

    out, Ho, Wo = basic_layer_forward(x, H, W, blocks, focal_level, kernel_sizes)
    out = jax.block_until_ready(out)
    assert out.shape == (B, H * W, C) and (Ho, Wo) == (H, W)
    print("KERNEL_OK")
</pallas_src>

<mosaic_0001>
module attributes {stable_mosaic.version = 11 : i64} {
  func.func @kernel(%arg0: i32, %arg1: memref<1x256x32xbf16, #tpu.memory_space<vmem>>, %arg2: memref<1x32xf32, #tpu.memory_space<vmem>>, %arg3: memref<1x32xf32, #tpu.memory_space<vmem>>, %arg4: memref<32x512xbf16, #tpu.memory_space<vmem>>, %arg5: memref<1x512xf32, #tpu.memory_space<vmem>>, %arg6: memref<3x3x32xf32, #tpu.memory_space<vmem>>, %arg7: memref<32x32xbf16, #tpu.memory_space<vmem>>, %arg8: memref<1x32xf32, #tpu.memory_space<vmem>>, %arg9: memref<32x32xbf16, #tpu.memory_space<vmem>>, %arg10: memref<1x32xf32, #tpu.memory_space<vmem>>, %arg11: memref<1x32xf32, #tpu.memory_space<vmem>>, %arg12: memref<1x32xf32, #tpu.memory_space<vmem>>, %arg13: memref<32x128xbf16, #tpu.memory_space<vmem>>, %arg14: memref<1x128xf32, #tpu.memory_space<vmem>>, %arg15: memref<128x32xbf16, #tpu.memory_space<vmem>>, %arg16: memref<1x32xf32, #tpu.memory_space<vmem>>, %arg17: memref<1x256x32xbf16, #tpu.memory_space<vmem>>, %arg18: memref<18x32x32xf32, #tpu.memory_space<vmem>>) attributes {dimension_semantics = [#tpu.dimension_semantics<parallel>], iteration_bounds = array<i64: 2>, scalar_prefetch = 0 : i64, scratch_operands = 1 : i64, tpu.core_type = #tpu.core_type<tc>, window_params = [{transform_indices = @transform_0, window_bounds = array<i64: 1, 256, 32>}, {pipeline_mode = #tpu.pipeline_mode<synchronous>, transform_indices = @transform_1, window_bounds = array<i64: 1, 32>}, {pipeline_mode = #tpu.pipeline_mode<synchronous>, transform_indices = @transform_2, window_bounds = array<i64: 1, 32>}, {pipeline_mode = #tpu.pipeline_mode<synchronous>, transform_indices = @transform_3, window_bounds = array<i64: 32, 512>}, {pipeline_mode = #tpu.pipeline_mode<synchronous>, transform_indices = @transform_4, window_bounds = array<i64: 1, 512>}, {pipeline_mode = #tpu.pipeline_mode<synchronous>, transform_indices = @transform_5, window_bounds = array<i64: 3, 3, 32>}, {pipeline_mode = #tpu.pipeline_mode<synchronous>, transform_indices = @transform_6, window_bounds = array<i64: 32, 32>}, {pipeline_mode = #tpu.pipeline_mode<synchronous>, transform_indices = @transform_7, window_bounds = array<i64: 1, 32>}, {pipeline_mode = #tpu.pipeline_mode<synchronous>, transform_indices = @transform_8, window_bounds = array<i64: 32, 32>}, {pipeline_mode = #tpu.pipeline_mode<synchronous>, transform_indices = @transform_9, window_bounds = array<i64: 1, 32>}, {pipeline_mode = #tpu.pipeline_mode<synchronous>, transform_indices = @transform_10, window_bounds = array<i64: 1, 32>}, {pipeline_mode = #tpu.pipeline_mode<synchronous>, transform_indices = @transform_11, window_bounds = array<i64: 1, 32>}, {pipeline_mode = #tpu.pipeline_mode<synchronous>, transform_indices = @transform_12, window_bounds = array<i64: 32, 128>}, {pipeline_mode = #tpu.pipeline_mode<synchronous>, transform_indices = @transform_13, window_bounds = array<i64: 1, 128>}, {pipeline_mode = #tpu.pipeline_mode<synchronous>, transform_indices = @transform_14, window_bounds = array<i64: 128, 32>}, {pipeline_mode = #tpu.pipeline_mode<synchronous>, transform_indices = @transform_15, window_bounds = array<i64: 1, 32>}, {transform_indices = @transform_16, window_bounds = array<i64: 1, 256, 32>}]} {
    %c0 = arith.constant 0 : index
    %c0_0 = arith.constant 0 : index
    %c0_1 = arith.constant 0 : index
    %0 = vector.load %arg1[%c0, %c0_0, %c0_1] : memref<1x256x32xbf16, #tpu.memory_space<vmem>>, vector<1x256x32xbf16>
    %1 = vector.shape_cast %0 : vector<1x256x32xbf16> to vector<256x32xbf16>
    %2 = arith.extf %1 : vector<256x32xbf16> to vector<256x32xf32>
    %c0_2 = arith.constant 0 : index
    %c0_3 = arith.constant 0 : index
    %3 = vector.load %arg2[%c0_2, %c0_3] : memref<1x32xf32, #tpu.memory_space<vmem>>, vector<1x32xf32>
    %c0_4 = arith.constant 0 : index
    %c0_5 = arith.constant 0 : index
    %4 = vector.load %arg3[%c0_4, %c0_5] : memref<1x32xf32, #tpu.memory_space<vmem>>, vector<1x32xf32>
    %cst = arith.constant dense<0.000000e+00> : vector<256xf32>
    %5 = vector.multi_reduction <add>, %2, %cst [1] : vector<256x32xf32> to vector<256xf32>
    %6 = vector.shape_cast %5 : vector<256xf32> to vector<256x1xf32>
    %cst_6 = arith.constant 3.200000e+01 : f32
    %7 = vector.broadcast %cst_6 : f32 to vector<256x1xf32>
    %8 = arith.divf %6, %7 : vector<256x1xf32>
    %9 = vector.broadcast %8 : vector<256x1xf32> to vector<256x32xf32>
    %10 = arith.subf %2, %9 : vector<256x32xf32>
    %11 = arith.mulf %10, %10 : vector<256x32xf32>
    %cst_7 = arith.constant dense<0.000000e+00> : vector<256xf32>
    %12 = vector.multi_reduction <add>, %11, %cst_7 [1] : vector<256x32xf32> to vector<256xf32>
    %13 = vector.shape_cast %12 : vector<256xf32> to vector<256x1xf32>
    %cst_8 = arith.constant 3.200000e+01 : f32
    %14 = vector.broadcast %cst_8 : f32 to vector<256x1xf32>
    %15 = arith.divf %13, %14 : vector<256x1xf32>
    %16 = vector.broadcast %8 : vector<256x1xf32> to vector<256x32xf32>
    %17 = arith.subf %2, %16 : vector<256x32xf32>
    %cst_9 = arith.constant 9.99999974E-6 : f32
    %18 = vector.broadcast %cst_9 : f32 to vector<256x1xf32>
    %19 = arith.addf %15, %18 : vector<256x1xf32>
    %20 = math.rsqrt %19 : vector<256x1xf32>
    %21 = vector.broadcast %20 : vector<256x1xf32> to vector<256x32xf32>
    %22 = arith.mulf %17, %21 : vector<256x32xf32>
    %23 = vector.broadcast %3 : vector<1x32xf32> to vector<256x32xf32>
    %24 = arith.mulf %22, %23 : vector<256x32xf32>
    %25 = vector.broadcast %4 : vector<1x32xf32> to vector<256x32xf32>
    %26 = arith.addf %24, %25 : vector<256x32xf32>
    %27 = arith.truncf %26 : vector<256x32xf32> to vector<256x32xbf16>
    %c0_10 = arith.constant 0 : index
    %c0_11 = arith.constant 0 : index
    %28 = vector.load %arg4[%c0_10, %c0_11] : memref<32x512xbf16, #tpu.memory_space<vmem>>, vector<32x512xbf16>
    %cst_12 = arith.constant dense<0.000000e+00> : vector<256x512xf32>
    %29 = tpu.matmul %27, %28, %cst_12 {dimension_numbers = #tpu.dot_dimension_numbers<[1], [0], [0], [1], [0, 0, 1, 1], [], []>} : vector<256x32xbf16>, vector<32x512xbf16>, vector<256x512xf32> -> vector<256x512xf32>
    %c0_13 = arith.constant 0 : index
    %c0_14 = arith.constant 0 : index
    %30 = vector.load %arg5[%c0_13, %c0_14] : memref<1x512xf32, #tpu.memory_space<vmem>>, vector<1x512xf32>
    %31 = vector.broadcast %30 : vector<1x512xf32> to vector<256x512xf32>
    %32 = arith.addf %29, %31 : vector<256x512xf32>
    %33 = vector.extract_strided_slice %32 {offsets = [0, 0], sizes = [256, 32], strides = [1, 1]} : vector<256x512xf32> to vector<256x32xf32>
    %34 = vector.extract_strided_slice %32 {offsets = [0, 128], sizes = [256, 32], strides = [1, 1]} : vector<256x512xf32> to vector<256x32xf32>
    %35 = vector.extract_strided_slice %32 {offsets = [0, 256], sizes = [256, 32], strides = [1, 1]} : vector<256x512xf32> to vector<256x32xf32>
    %36 = vector.extract_strided_slice %32 {offsets = [0, 384], sizes = [256, 32], strides = [1, 1]} : vector<256x512xf32> to vector<256x32xf32>
    %cst_15 = arith.constant 0.000000e+00 : f32
    %37 = vector.broadcast %cst_15 : f32 to vector<1x32x32xf32>
    %c0_16 = arith.constant 0 : index
    %c0_17 = arith.constant 0 : index
    %c0_18 = arith.constant 0 : index
    %38 = vector.load %arg18[%c0_16, %c0_17, %c0_18] : memref<18x32x32xf32, #tpu.memory_space<vmem>>, vector<1x32x32xf32>
    tpu.vector_store %arg18[%c0_16, %c0_17, %c0_18], %37 {strides = array<i32>} : memref<18x32x32xf32, #tpu.memory_space<vmem>>, vector<1x32x32xf32>,
    %cst_19 = arith.constant 0.000000e+00 : f32
    %39 = vector.broadcast %cst_19 : f32 to vector<1x32x32xf32>
    %c17 = arith.constant 17 : index
    %c0_20 = arith.constant 0 : index
    %c0_21 = arith.constant 0 : index
    %40 = vector.load %arg18[%c17, %c0_20, %c0_21] : memref<18x32x32xf32, #tpu.memory_space<vmem>>, vector<1x32x32xf32>
    tpu.vector_store %arg18[%c17, %c0_20, %c0_21], %39 {strides = array<i32>} : memref<18x32x32xf32, #tpu.memory_space<vmem>>, vector<1x32x32xf32>,
    %cst_22 = arith.constant 0.000000e+00 : f32
    %41 = vector.broadcast %cst_22 : f32 to vector<18x8x32xf32>
    %c0_23 = arith.constant 0 : index
    %c0_24 = arith.constant 0 : index
    %c0_25 = arith.constant 0 : index
    %42 = vector.load %arg18[%c0_23, %c0_24, %c0_25] : memref<18x32x32xf32, #tpu.memory_space<vmem>>, vector<18x8x32xf32>
    tpu.vector_store %arg18[%c0_23, %c0_24, %c0_25], %41 {strides = array<i32>} : memref<18x32x32xf32, #tpu.memory_space<vmem>>, vector<18x8x32xf32>,
    %cst_26 = arith.constant 0.000000e+00 : f32
    %43 = vector.broadcast %cst_26 : f32 to vector<18x8x32xf32>
    %c0_27 = arith.constant 0 : index
    %c24 = arith.constant 24 : index
    %c0_28 = arith.constant 0 : index
    %44 = vector.load %arg18[%c0_27, %c24, %c0_28] : memref<18x32x32xf32, #tpu.memory_space<vmem>>, vector<18x8x32xf32>
    tpu.vector_store %arg18[%c0_27, %c24, %c0_28], %43 {strides = array<i32>} : memref<18x32x32xf32, #tpu.memory_space<vmem>>, vector<18x8x32xf32>,
    %45 = vector.shape_cast %34 : vector<256x32xf32> to vector<16x16x32xf32>
    %cst_29 = arith.constant 0.000000e+00 : f32
    %46 = vector.broadcast %cst_29 : f32 to vector<256x32xf32>
    %c1 = arith.constant 1 : index
    %c8 = arith.constant 8 : index
    %c0_30 = arith.constant 0 : index
    %47 = vector.load %arg18[%c1, %c8, %c0_30] : memref<18x32x32xf32, #tpu.memory_space<vmem>>, vector<16x16x32xf32>
    tpu.vector_store %arg18[%c1, %c8, %c0_30], %45 {strides = array<i32>} : memref<18x32x32xf32, #tpu.memory_space<vmem>>, vector<16x16x32xf32>,
    %c0_31 = arith.constant 0 : index
    %c0_32 = arith.constant 0 : index
    %c0_33 = arith.constant 0 : index
    %48 = vector.load %arg6[%c0_31, %c0_32, %c0_33] : memref<3x3x32xf32, #tpu.memory_space<vmem>>, vector<3x3x32xf32>
    %cst_34 = arith.constant 0.000000e+00 : f32
    %49 = vector.broadcast %cst_34 : f32 to vector<16x16x32xf32>
    %c0_35 = arith.constant 0 : index
    %c7 = arith.constant 7 : index
    %c0_36 = arith.constant 0 : index
    %50 = vector.load %arg18[%c0_35, %c7, %c0_36] : memref<18x32x32xf32, #tpu.memory_space<vmem>>, vector<18x16x32xf32>
    %51 = vector.extract_strided_slice %50 {offsets = [0, 0, 0], sizes = [16, 16, 32], strides = [1, 1, 1]} : vector<18x16x32xf32> to vector<16x16x32xf32>
    %52 = vector.extract_strided_slice %48 {offsets = [0, 0, 0], sizes = [1, 1, 32], strides = [1, 1, 1]} : vector<3x3x32xf32> to vector<1x1x32xf32>
    %53 = vector.broadcast %52 : vector<1x1x32xf32> to vector<16x16x32xf32>
    %54 = arith.mulf %51, %53 : vector<16x16x32xf32>
    %55 = arith.addf %49, %54 : vector<16x16x32xf32>
    %56 = vector.extract_strided_slice %50 {offsets = [1, 0, 0], sizes = [16, 16, 32], strides = [1, 1, 1]} : vector<18x16x32xf32> to vector<16x16x32xf32>
    %57 = vector.extract_strided_slice %48 {offsets = [1, 0, 0], sizes = [1, 1, 32], strides = [1, 1, 1]} : vector<3x3x32xf32> to vector<1x1x32xf32>
    %58 = vector.broadcast %57 : vector<1x1x32xf32> to vector<16x16x32xf32>
    %59 = arith.mulf %56, %58 : vector<16x16x32xf32>
    %60 = arith.addf %55, %59 : vector<16x16x32xf32>
    %61 = vector.extract_strided_slice %50 {offsets = [2, 0, 0], sizes = [16, 16, 32], strides = [1, 1, 1]} : vector<18x16x32xf32> to vector<16x16x32xf32>
    %62 = vector.extract_strided_slice %48 {offsets = [2, 0, 0], sizes = [1, 1, 32], strides = [1, 1, 1]} : vector<3x3x32xf32> to vector<1x1x32xf32>
    %63 = vector.broadcast %62 : vector<1x1x32xf32> to vector<16x16x32xf32>
    %64 = arith.mulf %61, %63 : vector<16x16x32xf32>
    %65 = arith.addf %60, %64 : vector<16x16x32xf32>
    %c0_37 = arith.constant 0 : index
    %c8_38 = arith.constant 8 : index
    %c0_39 = arith.constant 0 : index
    %66 = vector.load %arg18[%c0_37, %c8_38, %c0_39] : memref<18x32x32xf32, #tpu.memory_space<vmem>>, vector<18x16x32xf32>
    %67 = vector.extract_strided_slice %66 {offsets = [0, 0, 0], sizes = [16, 16, 32], strides = [1, 1, 1]} : vector<18x16x32xf32> to vector<16x16x32xf32>
    %68 = vector.extract_strided_slice %48 {offsets = [0, 1, 0], sizes = [1, 1, 32], strides = [1, 1, 1]} : vector<3x3x32xf32> to vector<1x1x32xf32>
    %69 = vector.broadcast %68 : vector<1x1x32xf32> to vector<16x16x32xf32>
    %70 = arith.mulf %67, %69 : vector<16x16x32xf32>
    %71 = arith.addf %65, %70 : vector<16x16x32xf32>
    %72 = vector.extract_strided_slice %66 {offsets = [1, 0, 0], sizes = [16, 16, 32], strides = [1, 1, 1]} : vector<18x16x32xf32> to vector<16x16x32xf32>
    %73 = vector.extract_strided_slice %48 {offsets = [1, 1, 0], sizes = [1, 1, 32], strides = [1, 1, 1]} : vector<3x3x32xf32> to vector<1x1x32xf32>
    %74 = vector.broadcast %73 : vector<1x1x32xf32> to vector<16x16x32xf32>
    %75 = arith.mulf %72, %74 : vector<16x16x32xf32>
    %76 = arith.addf %71, %75 : vector<16x16x32xf32>
    %77 = vector.extract_strided_slice %66 {offsets = [2, 0, 0], sizes = [16, 16, 32], strides = [1, 1, 1]} : vector<18x16x32xf32> to vector<16x16x32xf32>
    %78 = vector.extract_strided_slice %48 {offsets = [2, 1, 0], sizes = [1, 1, 32], strides = [1, 1, 1]} : vector<3x3x32xf32> to vector<1x1x32xf32>
    %79 = vector.broadcast %78 : vector<1x1x32xf32> to vector<16x16x32xf32>
    %80 = arith.mulf %77, %79 : vector<16x16x32xf32>
    %81 = arith.addf %76, %80 : vector<16x16x32xf32>
    %c0_40 = arith.constant 0 : index
    %c9 = arith.constant 9 : index
    %c0_41 = arith.constant 0 : index
    %82 = vector.load %arg18[%c0_40, %c9, %c0_41] : memref<18x32x32xf32, #tpu.memory_space<vmem>>, vector<18x16x32xf32>
    %83 = vector.extract_strided_slice %82 {offsets = [0, 0, 0], sizes = [16, 16, 32], strides = [1, 1, 1]} : vector<18x16x32xf32> to vector<16x16x32xf32>
    %84 = vector.extract_strided_slice %48 {offsets = [0, 2, 0], sizes = [1, 1, 32], strides = [1, 1, 1]} : vector<3x3x32xf32> to vector<1x1x32xf32>
    %85 = vector.broadcast %84 : vector<1x1x32xf32> to vector<16x16x32xf32>
    %86 = arith.mulf %83, %85 : vector<16x16x32xf32>
    %87 = arith.addf %81, %86 : vector<16x16x32xf32>
    %88 = vector.extract_strided_slice %82 {offsets = [1, 0, 0], sizes = [16, 16, 32], strides = [1, 1, 1]} : vector<18x16x32xf32> to vector<16x16x32xf32>
    %89 = vector.extract_strided_slice %48 {offsets = [1, 2, 0], sizes = [1, 1, 32], strides = [1, 1, 1]} : vector<3x3x32xf32> to vector<1x1x32xf32>
    %90 = vector.broadcast %89 : vector<1x1x32xf32> to vector<16x16x32xf32>
    %91 = arith.mulf %88, %90 : vector<16x16x32xf32>
    %92 = arith.addf %87, %91 : vector<16x16x32xf32>
    %93 = vector.extract_strided_slice %82 {offsets = [2, 0, 0], sizes = [16, 16, 32], strides = [1, 1, 1]} : vector<18x16x32xf32> to vector<16x16x32xf32>
    %94 = vector.extract_strided_slice %48 {offsets = [2, 2, 0], sizes = [1, 1, 32], strides = [1, 1, 1]} : vector<3x3x32xf32> to vector<1x1x32xf32>
    %95 = vector.broadcast %94 : vector<1x1x32xf32> to vector<16x16x32xf32>
    %96 = arith.mulf %93, %95 : vector<16x16x32xf32>
    %97 = arith.addf %92, %96 : vector<16x16x32xf32>
    %cst_42 = arith.constant 5.000000e-01 : f32
    %98 = vector.broadcast %cst_42 : f32 to vector<16x16x32xf32>
    %99 = arith.mulf %98, %97 : vector<16x16x32xf32>
    %cst_43 = arith.constant 4.471500e-02 : f32
    %100 = vector.broadcast %cst_43 : f32 to vector<16x16x32xf32>
    %101 = arith.mulf %100, %97 : vector<16x16x32xf32>
    %102 = arith.mulf %101, %97 : vector<16x16x32xf32>
    %103 = arith.mulf %102, %97 : vector<16x16x32xf32>
    %104 = arith.addf %97, %103 : vector<16x16x32xf32>
    %cst_44 = arith.constant 0.797884583 : f32
    %105 = vector.broadcast %cst_44 : f32 to vector<16x16x32xf32>
    %106 = arith.mulf %105, %104 : vector<16x16x32xf32>
    %107 = math.tanh %106 : vector<16x16x32xf32>
    %cst_45 = arith.constant 1.000000e+00 : f32
    %108 = vector.broadcast %cst_45 : f32 to vector<16x16x32xf32>
    %109 = arith.addf %108, %107 : vector<16x16x32xf32>
    %110 = arith.mulf %99, %109 : vector<16x16x32xf32>
    %111 = vector.shape_cast %110 : vector<16x16x32xf32> to vector<256x32xf32>
    %112 = arith.mulf %111, %35 : vector<256x32xf32>
    %113 = arith.addf %46, %112 : vector<256x32xf32>
    %114 = vector.shape_cast %110 : vector<16x16x32xf32> to vector<256x32xf32>
    %cst_46 = arith.constant dense<0.000000e+00> : vector<32xf32>
    %115 = vector.multi_reduction <add>, %114, %cst_46 [0] : vector<256x32xf32> to vector<32xf32>
    %116 = vector.shape_cast %115 : vector<32xf32> to vector<1x32xf32>
    %cst_47 = arith.constant 2.560000e+02 : f32
    %117 = vector.broadcast %cst_47 : f32 to vector<1x32xf32>
    %118 = arith.divf %116, %117 : vector<1x32xf32>
    %cst_48 = arith.constant 5.000000e-01 : f32
    %119 = vector.broadcast %cst_48 : f32 to vector<1x32xf32>
    %120 = arith.mulf %119, %118 : vector<1x32xf32>
    %cst_49 = arith.constant 4.471500e-02 : f32
    %121 = vector.broadcast %cst_49 : f32 to vector<1x32xf32>
    %122 = arith.mulf %121, %118 : vector<1x32xf32>
    %123 = arith.mulf %122, %118 : vector<1x32xf32>
    %124 = arith.mulf %123, %118 : vector<1x32xf32>
    %125 = arith.addf %118, %124 : vector<1x32xf32>
    %cst_50 = arith.constant 0.797884583 : f32
    %126 = vector.broadcast %cst_50 : f32 to vector<1x32xf32>
    %127 = arith.mulf %126, %125 : vector<1x32xf32>
    %128 = math.tanh %127 : vector<1x32xf32>
    %cst_51 = arith.constant 1.000000e+00 : f32
    %129 = vector.broadcast %cst_51 : f32 to vector<1x32xf32>
    %130 = arith.addf %129, %128 : vector<1x32xf32>
    %131 = arith.mulf %120, %130 : vector<1x32xf32>
    %132 = vector.broadcast %131 : vector<1x32xf32> to vector<256x32xf32>
    %133 = arith.mulf %36, %132 : vector<256x32xf32>
    %134 = arith.addf %113, %133 : vector<256x32xf32>
    %135 = arith.truncf %134 : vector<256x32xf32> to vector<256x32xbf16>
    %c0_52 = arith.constant 0 : index
    %c0_53 = arith.constant 0 : index
    %136 = vector.load %arg7[%c0_52, %c0_53] : memref<32x32xbf16, #tpu.memory_space<vmem>>, vector<32x32xbf16>
    %cst_54 = arith.constant dense<0.000000e+00> : vector<256x32xf32>
    %137 = tpu.matmul %135, %136, %cst_54 {dimension_numbers = #tpu.dot_dimension_numbers<[1], [0], [0], [1], [0, 0, 1, 1], [], []>} : vector<256x32xbf16>, vector<32x32xbf16>, vector<256x32xf32> -> vector<256x32xf32>
    %c0_55 = arith.constant 0 : index
    %c0_56 = arith.constant 0 : index
    %138 = vector.load %arg8[%c0_55, %c0_56] : memref<1x32xf32, #tpu.memory_space<vmem>>, vector<1x32xf32>
    %139 = vector.broadcast %138 : vector<1x32xf32> to vector<256x32xf32>
    %140 = arith.addf %137, %139 : vector<256x32xf32>
    %141 = arith.mulf %33, %140 : vector<256x32xf32>
    %142 = arith.truncf %141 : vector<256x32xf32> to vector<256x32xbf16>
    %c0_57 = arith.constant 0 : index
    %c0_58 = arith.constant 0 : index
    %143 = vector.load %arg9[%c0_57, %c0_58] : memref<32x32xbf16, #tpu.memory_space<vmem>>, vector<32x32xbf16>
    %cst_59 = arith.constant dense<0.000000e+00> : vector<256x32xf32>
    %144 = tpu.matmul %142, %143, %cst_59 {dimension_numbers = #tpu.dot_dimension_numbers<[1], [0], [0], [1], [0, 0, 1, 1], [], []>} : vector<256x32xbf16>, vector<32x32xbf16>, vector<256x32xf32> -> vector<256x32xf32>
    %c0_60 = arith.constant 0 : index
    %c0_61 = arith.constant 0 : index
    %145 = vector.load %arg10[%c0_60, %c0_61] : memref<1x32xf32, #tpu.memory_space<vmem>>, vector<1x32xf32>
    %146 = vector.broadcast %145 : vector<1x32xf32> to vector<256x32xf32>
    %147 = arith.addf %144, %146 : vector<256x32xf32>
    %148 = arith.addf %2, %147 : vector<256x32xf32>
    %c0_62 = arith.constant 0 : index
    %c0_63 = arith.constant 0 : index
    %149 = vector.load %arg11[%c0_62, %c0_63] : memref<1x32xf32, #tpu.memory_space<vmem>>, vector<1x32xf32>
    %c0_64 = arith.constant 0 : index
    %c0_65 = arith.constant 0 : index
    %150 = vector.load %arg12[%c0_64, %c0_65] : memref<1x32xf32, #tpu.memory_space<vmem>>, vector<1x32xf32>
    %cst_66 = arith.constant dense<0.000000e+00> : vector<256xf32>
    %151 = vector.multi_reduction <add>, %148, %cst_66 [1] : vector<256x32xf32> to vector<256xf32>
    %152 = vector.shape_cast %151 : vector<256xf32> to vector<256x1xf32>
    %cst_67 = arith.constant 3.200000e+01 : f32
    %153 = vector.broadcast %cst_67 : f32 to vector<256x1xf32>
    %154 = arith.divf %152, %153 : vector<256x1xf32>
    %155 = vector.broadcast %154 : vector<256x1xf32> to vector<256x32xf32>
    %156 = arith.subf %148, %155 : vector<256x32xf32>
    %157 = arith.mulf %156, %156 : vector<256x32xf32>
    %cst_68 = arith.constant dense<0.000000e+00> : vector<256xf32>
    %158 = vector.multi_reduction <add>, %157, %cst_68 [1] : vector<256x32xf32> to vector<256xf32>
    %159 = vector.shape_cast %158 : vector<256xf32> to vector<256x1xf32>
    %cst_69 = arith.constant 3.200000e+01 : f32
    %160 = vector.broadcast %cst_69 : f32 to vector<256x1xf32>
    %161 = arith.divf %159, %160 : vector<256x1xf32>
    %162 = vector.broadcast %154 : vector<256x1xf32> to vector<256x32xf32>
    %163 = arith.subf %148, %162 : vector<256x32xf32>
    %cst_70 = arith.constant 9.99999974E-6 : f32
    %164 = vector.broadcast %cst_70 : f32 to vector<256x1xf32>
    %165 = arith.addf %161, %164 : vector<256x1xf32>
    %166 = math.rsqrt %165 : vector<256x1xf32>
    %167 = vector.broadcast %166 : vector<256x1xf32> to vector<256x32xf32>
    %168 = arith.mulf %163, %167 : vector<256x32xf32>
    %169 = vector.broadcast %149 : vector<1x32xf32> to vector<256x32xf32>
    %170 = arith.mulf %168, %169 : vector<256x32xf32>
    %171 = vector.broadcast %150 : vector<1x32xf32> to vector<256x32xf32>
    %172 = arith.addf %170, %171 : vector<256x32xf32>
    %173 = arith.truncf %172 : vector<256x32xf32> to vector<256x32xbf16>
    %c0_71 = arith.constant 0 : index
    %c0_72 = arith.constant 0 : index
    %174 = vector.load %arg13[%c0_71, %c0_72] : memref<32x128xbf16, #tpu.memory_space<vmem>>, vector<32x128xbf16>
    %cst_73 = arith.constant dense<0.000000e+00> : vector<256x128xf32>
    %175 = tpu.matmul %173, %174, %cst_73 {dimension_numbers = #tpu.dot_dimension_numbers<[1], [0], [0], [1], [0, 0, 1, 1], [], []>} : vector<256x32xbf16>, vector<32x128xbf16>, vector<256x128xf32> -> vector<256x128xf32>
    %c0_74 = arith.constant 0 : index
    %c0_75 = arith.constant 0 : index
    %176 = vector.load %arg14[%c0_74, %c0_75] : memref<1x128xf32, #tpu.memory_space<vmem>>, vector<1x128xf32>
    %177 = vector.broadcast %176 : vector<1x128xf32> to vector<256x128xf32>
    %178 = arith.addf %175, %177 : vector<256x128xf32>
    %cst_76 = arith.constant 5.000000e-01 : f32
    %179 = vector.broadcast %cst_76 : f32 to vector<256x128xf32>
    %180 = arith.mulf %179, %178 : vector<256x128xf32>
    %cst_77 = arith.constant 4.471500e-02 : f32
    %181 = vector.broadcast %cst_77 : f32 to vector<256x128xf32>
    %182 = arith.mulf %181, %178 : vector<256x128xf32>
    %183 = arith.mulf %182, %178 : vector<256x128xf32>
    %184 = arith.mulf %183, %178 : vector<256x128xf32>
    %185 = arith.addf %178, %184 : vector<256x128xf32>
    %cst_78 = arith.constant 0.797884583 : f32
    %186 = vector.broadcast %cst_78 : f32 to vector<256x128xf32>
    %187 = arith.mulf %186, %185 : vector<256x128xf32>
    %188 = math.tanh %187 : vector<256x128xf32>
    %cst_79 = arith.constant 1.000000e+00 : f32
    %189 = vector.broadcast %cst_79 : f32 to vector<256x128xf32>
    %190 = arith.addf %189, %188 : vector<256x128xf32>
    %191 = arith.mulf %180, %190 : vector<256x128xf32>
    %192 = arith.truncf %191 : vector<256x128xf32> to vector<256x128xbf16>
    %c0_80 = arith.constant 0 : index
    %c0_81 = arith.constant 0 : index
    %193 = vector.load %arg15[%c0_80, %c0_81] : memref<128x32xbf16, #tpu.memory_space<vmem>>, vector<128x32xbf16>
    %cst_82 = arith.constant dense<0.000000e+00> : vector<256x32xf32>
    %194 = tpu.matmul %192, %193, %cst_82 {dimension_numbers = #tpu.dot_dimension_numbers<[1], [0], [0], [1], [0, 0, 1, 1], [], []>} : vector<256x128xbf16>, vector<128x32xbf16>, vector<256x32xf32> -> vector<256x32xf32>
    %c0_83 = arith.constant 0 : index
    %c0_84 = arith.constant 0 : index
    %195 = vector.load %arg16[%c0_83, %c0_84] : memref<1x32xf32, #tpu.memory_space<vmem>>, vector<1x32xf32>
    %196 = vector.broadcast %195 : vector<1x32xf32> to vector<256x32xf32>
    %197 = arith.addf %194, %196 : vector<256x32xf32>
    %198 = arith.addf %148, %197 : vector<256x32xf32>
    %199 = arith.truncf %198 : vector<256x32xf32> to vector<256x32xbf16>
    %c0_85 = arith.constant 0 : index
    %c0_86 = arith.constant 0 : index
    %c0_87 = arith.constant 0 : index
    %200 = vector.load %arg17[%c0_85, %c0_86, %c0_87] : memref<1x256x32xbf16, #tpu.memory_space<vmem>>, vector<1x256x32xbf16>
    %201 = vector.shape_cast %200 : vector<1x256x32xbf16> to vector<256x32xbf16>
    %202 = vector.shape_cast %199 : vector<256x32xbf16> to vector<1x256x32xbf16>
    tpu.vector_store %arg17[%c0_85, %c0_86, %c0_87], %202 {strides = array<i32>} : memref<1x256x32xbf16, #tpu.memory_space<vmem>>, vector<1x256x32xbf16>,
    return
  }
  func.func @transform_0(%arg0: i32) -> (i32, i32, i32) {
    %c0_i32 = arith.constant 0 : i32
    %c0_i32_0 = arith.constant 0 : i32
    %c0_i32_1 = arith.constant 0 : i32
    return %arg0, %c0_i32, %c0_i32_0 : i32, i32, i32
  }
  func.func @transform_1(%arg0: i32) -> (i32, i32) {
    %c0_i32 = arith.constant 0 : i32
    %c0_i32_0 = arith.constant 0 : i32
    %c0_i32_1 = arith.constant 0 : i32
    return %c0_i32, %c0_i32_0 : i32, i32
  }
  func.func @transform_2(%arg0: i32) -> (i32, i32) {
    %c0_i32 = arith.constant 0 : i32
    %c0_i32_0 = arith.constant 0 : i32
    %c0_i32_1 = arith.constant 0 : i32
    return %c0_i32, %c0_i32_0 : i32, i32
  }
  func.func @transform_3(%arg0: i32) -> (i32, i32) {
    %c0_i32 = arith.constant 0 : i32
    %c0_i32_0 = arith.constant 0 : i32
    %c0_i32_1 = arith.constant 0 : i32
    return %c0_i32, %c0_i32_0 : i32, i32
  }
  func.func @transform_4(%arg0: i32) -> (i32, i32) {
    %c0_i32 = arith.constant 0 : i32
    %c0_i32_0 = arith.constant 0 : i32
    %c0_i32_1 = arith.constant 0 : i32
    return %c0_i32, %c0_i32_0 : i32, i32
  }
  func.func @transform_5(%arg0: i32) -> (i32, i32, i32) {
    %c0_i32 = arith.constant 0 : i32
    %c0_i32_0 = arith.constant 0 : i32
    %c0_i32_1 = arith.constant 0 : i32
    %c0_i32_2 = arith.constant 0 : i32
    return %c0_i32, %c0_i32_0, %c0_i32_1 : i32, i32, i32
  }
  func.func @transform_6(%arg0: i32) -> (i32, i32) {
    %c0_i32 = arith.constant 0 : i32
    %c0_i32_0 = arith.constant 0 : i32
    %c0_i32_1 = arith.constant 0 : i32
    return %c0_i32, %c0_i32_0 : i32, i32
  }
  func.func @transform_7(%arg0: i32) -> (i32, i32) {
    %c0_i32 = arith.constant 0 : i32
    %c0_i32_0 = arith.constant 0 : i32
    %c0_i32_1 = arith.constant 0 : i32
    return %c0_i32, %c0_i32_0 : i32, i32
  }
  func.func @transform_8(%arg0: i32) -> (i32, i32) {
    %c0_i32 = arith.constant 0 : i32
    %c0_i32_0 = arith.constant 0 : i32
    %c0_i32_1 = arith.constant 0 : i32
    return %c0_i32, %c0_i32_0 : i32, i32
  }
  func.func @transform_9(%arg0: i32) -> (i32, i32) {
    %c0_i32 = arith.constant 0 : i32
    %c0_i32_0 = arith.constant 0 : i32
    %c0_i32_1 = arith.constant 0 : i32
    return %c0_i32, %c0_i32_0 : i32, i32
  }
  func.func @transform_10(%arg0: i32) -> (i32, i32) {
    %c0_i32 = arith.constant 0 : i32
    %c0_i32_0 = arith.constant 0 : i32
    %c0_i32_1 = arith.constant 0 : i32
    return %c0_i32, %c0_i32_0 : i32, i32
  }
  func.func @transform_11(%arg0: i32) -> (i32, i32) {
    %c0_i32 = arith.constant 0 : i32
    %c0_i32_0 = arith.constant 0 : i32
    %c0_i32_1 = arith.constant 0 : i32
    return %c0_i32, %c0_i32_0 : i32, i32
  }
  func.func @transform_12(%arg0: i32) -> (i32, i32) {
    %c0_i32 = arith.constant 0 : i32
    %c0_i32_0 = arith.constant 0 : i32
    %c0_i32_1 = arith.constant 0 : i32
    return %c0_i32, %c0_i32_0 : i32, i32
  }
  func.func @transform_13(%arg0: i32) -> (i32, i32) {
    %c0_i32 = arith.constant 0 : i32
    %c0_i32_0 = arith.constant 0 : i32
    %c0_i32_1 = arith.constant 0 : i32
    return %c0_i32, %c0_i32_0 : i32, i32
  }
  func.func @transform_14(%arg0: i32) -> (i32, i32) {
    %c0_i32 = arith.constant 0 : i32
    %c0_i32_0 = arith.constant 0 : i32
    %c0_i32_1 = arith.constant 0 : i32
    return %c0_i32, %c0_i32_0 : i32, i32
  }
  func.func @transform_15(%arg0: i32) -> (i32, i32) {
    %c0_i32 = arith.constant 0 : i32
    %c0_i32_0 = arith.constant 0 : i32
    %c0_i32_1 = arith.constant 0 : i32
    return %c0_i32, %c0_i32_0 : i32, i32
  }
  func.func @transform_16(%arg0: i32) -> (i32, i32, i32) {
    %c0_i32 = arith.constant 0 : i32
    %c0_i32_0 = arith.constant 0 : i32
    %c0_i32_1 = arith.constant 0 : i32
    return %arg0, %c0_i32, %c0_i32_0 : i32, i32, i32
  }
}

</mosaic_0001>

<bundles_post_ra>
// kernel: tpu_custom_call.1
= control target key start
LH: loop header
LB: loop body
LE: loop exit
PB: predicated region body
PF: predicated region fallthrough
CT: control target
= control target key end

     0   :  { %s5875_s21 = smov 0   ;;  %s9325_s0 = inlined_call_operand.vmem [shape: bf16[2,256,32], index: 0, kind: input, shape index: {}]   ;;  %s9326_s1 = inlined_call_operand.vmem [shape: f32[1,32], index: 1, kind: input, shape index: {}]   ;;  %s9327_s2 = inlined_call_operand.vmem [shape: f32[1,32], index: 2, kind: input, shape index: {}]   ;;  %s9328_s3 = inlined_call_operand.vmem [shape: bf16[32,512], index: 3, kind: input, shape index: {}]   ;;  %s9329_s4 = inlined_call_operand.vmem [shape: f32[1,512], index: 4, kind: input, shape index: {}]   ;;  %s9330_s5 = inlined_call_operand.vmem [shape: f32[3,3,32], index: 5, kind: input, shape index: {}]   ;;  %s9331_s6 = inlined_call_operand.vmem [shape: bf16[32,32], index: 6, kind: input, shape index: {}]   ;;  %s9332_s7 = inlined_call_operand.vmem [shape: f32[1,32], index: 7, kind: input, shape index: {}]   ;;  %s9333_s8 = inlined_call_operand.vmem [shape: bf16[32,32], index: 8, kind: input, shape index: {}]   ;;  %s9334_s9 = inlined_call_operand.vmem [shape: f32[1,32], index: 9, kind: input, shape index: {}]   ;;  %s9335_s10 = inlined_call_operand.vmem [shape: f32[1,32], index: 10, kind: input, shape index: {}]   ;;  %s9336_s11 = inlined_call_operand.vmem [shape: f32[1,32], index: 11, kind: input, shape index: {}]   ;;  %s9337_s12 = inlined_call_operand.vmem [shape: bf16[32,128], index: 12, kind: input, shape index: {}]   ;;  %s9338_s13 = inlined_call_operand.vmem [shape: f32[1,128], index: 13, kind: input, shape index: {}]   ;;  %s9339_s14 = inlined_call_operand.vmem [shape: bf16[128,32], index: 14, kind: input, shape index: {}]   ;;  %s9340_s15 = inlined_call_operand.vmem [shape: f32[1,32], index: 15, kind: input, shape index: {}]   ;;  %s9341_s16 = inlined_call_operand.vmem [shape: bf16[2,256,32], index: 16, kind: output, shape index: {}]  }
   0x1   :  { %9407 = sst [smem:[#allocation131_spill]] %s9325_s0 }
   0x2 LB: > { %s4986_s22 = sadd.s32 4294967295, %s5786_s21   ;;  %p4990_p0 = scmp.ge.s32.totalorder %s5786_s21, 1  ;;  %s5786_s21 = sphi %s5875_s21, %s26_s21  }
   0x3   : > { %p462_p1 = scmp.lt.s32.totalorder %s5786_s21, 3 }
   0x5   : > { %p463_p2 = pnand %p4990_p0, %p462_p1 }
   0x7   : > { %466 = sbr.rel (%p463_p2) target bundleno = 2114 (0x842), region = 84 }
   0xc   : > { %p512_p3 = scmp.lt.s32.totalorder %s4986_s22, 1  ;;  %s9408_s26 = sld [smem:[#allocation131_spill]]  ;;  %vm589_vm0 = vcmask 261120   ;;  %vm4898_vm1 = vcmask 257024  }
   0xe   : > { %s9739_s22 = smov (!%p512_p3, %s4986_s22), 1 }
   0xf   : > { %s5139_s23 = sshll.u32 %s9739_s22, 7 }
  0x12   : > { %s5891_s27 = scalar_lea.vmem %s9408_s26, %s5139_s23  ;;  %s9195_s26 = scalar_lea.vmem %s9341_s16, %s5139_s23 }
  0x13   : > { %v5174_v0 = vld [vmem:[%s5891_s27] sm:$0xff]   ;;  %v5237_v1 = vld [vmem:[%s5891_s27 + $0x8] sm:$0xff]   ;;  %v5238_v6 = vld [vmem:[%s5891_s27 + $0x10] sm:$0xff]  }
  0x14   : > { %v5895_v2 = vunpack.c.l.bf16 %v5174_v0  ;;  %v5897_v3 = vunpack.c.h.bf16 %v5174_v0  ;;  %v5899_v4 = vunpack.c.l.bf16 %v5237_v1  ;;  %v5901_v5 = vunpack.c.h.bf16 %v5237_v1  ;;  %v5239_v13 = vld [vmem:[%s5891_s27 + $0x18] sm:$0xff]   ;;  %v5240_v16 = vld [vmem:[%s5891_s27 + $0x20] sm:$0xff]   ;;  %v5241_v23 = vld [vmem:[%s5891_s27 + $0x28] sm:$0xff]  }
  0x15   : > { %v5912_v11 = vunpack.c.l.bf16 %v5238_v6  ;;  %v5914_v12 = vunpack.c.h.bf16 %v5238_v6  ;;  %v5922_v17 = vunpack.c.l.bf16 %v5239_v13  ;;  %v5924_v18 = vunpack.c.h.bf16 %v5239_v13  ;;  %v5242_v28 = vld [vmem:[%s5891_s27 + $0x30] sm:$0xff]   ;;  %v5243_v33 = vld [vmem:[%s5891_s27 + $0x38] sm:$0xff]   ;;  %v5244_v38 = vld [vmem:[%s5891_s27 + $0x40] sm:$0xff]  }
  0x16   : > { %9409 = vst [vmem:[#allocation3_spill] sm:$0xff] %v5895_v2  ;;  %9410 = vst [vmem:[#allocation4_spill] sm:$0xff] %v5897_v3  ;;  %v590_v7 = vsel %vm589_vm0, %v5895_v2, 0.0  ;;  %v596_v8 = vsel %vm589_vm0, %v5899_v4, 0.0  ;;  %v593_v9 = vsel %vm589_vm0, %v5897_v3, 0.0  ;;  %v599_v10 = vsel %vm589_vm0, %v5901_v5, 0.0 }
  0x17   : > { %9411 = vst [vmem:[#allocation5_spill] sm:$0xff] %v5899_v4  ;;  %9412 = vst [vmem:[#allocation6_spill] sm:$0xff] %v5901_v5  ;;  %591 = vadd.xlane.f32.xlu0 %v590_v7  ;;  %597 = vadd.xlane.f32.xlu1 %v596_v8  ;;  %v602_v14 = vsel %vm589_vm0, %v5912_v11, 0.0  ;;  %v605_v15 = vsel %vm589_vm0, %v5914_v12, 0.0  ;;  %v608_v19 = vsel %vm589_vm0, %v5922_v17, 0.0  ;;  %v611_v20 = vsel %vm589_vm0, %v5924_v18, 0.0 }
  0x18   : > { %9413 = vst [vmem:[#allocation7_spill] sm:$0xff] %v5912_v11  ;;  %9414 = vst [vmem:[#allocation8_spill] sm:$0xff] %v5914_v12  ;;  %v5930_v21 = vunpack.c.l.bf16 %v5240_v16  ;;  %v5932_v22 = vunpack.c.h.bf16 %v5240_v16  ;;  %v5939_v26 = vunpack.c.l.bf16 %v5241_v23  ;;  %v5941_v27 = vunpack.c.h.bf16 %v5241_v23  ;;  %v5245_v43 = vld [vmem:[%s5891_s27 + $0x48] sm:$0xff]   ;;  %v5246_v54 = vld [vmem:[%s5891_s27 + $0x50] sm:$0xff]  }
  0x19   : > { %9415 = vst [vmem:[#allocation9_spill] sm:$0xff] %v5922_v17  ;;  %9416 = vst [vmem:[#allocation10_spill] sm:$0xff] %v5924_v18  ;;  %v5948_v31 = vunpack.c.l.bf16 %v5242_v28  ;;  %v5950_v32 = vunpack.c.h.bf16 %v5242_v28  ;;  %v5957_v36 = vunpack.c.l.bf16 %v5243_v33  ;;  %v5959_v37 = vunpack.c.h.bf16 %v5243_v33 }
  0x1a   : > { %9417 = vst [vmem:[#allocation11_spill] sm:$0xff] %v5930_v21  ;;  %9418 = vst [vmem:[#allocation12_spill] sm:$0xff] %v5932_v22  ;;  %v614_v24 = vsel %vm589_vm0, %v5930_v21, 0.0  ;;  %v617_v25 = vsel %vm589_vm0, %v5932_v22, 0.0  ;;  %v620_v29 = vsel %vm589_vm0, %v5939_v26, 0.0  ;;  %v623_v30 = vsel %vm589_vm0, %v5941_v27, 0.0 }
  0x1b   : > { %594 = vadd.xlane.f32.xlu0 %v593_v9  ;;  %600 = vadd.xlane.f32.xlu1 %v599_v10  ;;  %9419 = vst [vmem:[#allocation13_spill] sm:$0xff] %v5939_v26  ;;  %9420 = vst [vmem:[#allocation14_spill] sm:$0xff] %v5941_v27  ;;  %v626_v34 = vsel %vm589_vm0, %v5948_v31, 0.0  ;;  %v629_v35 = vsel %vm589_vm0, %v5950_v32, 0.0  ;;  %v632_v39 = vsel %vm589_vm0, %v5957_v36, 0.0  ;;  %v635_v40 = vsel %vm589_vm0, %v5959_v37, 0.0 }
  0x1c   : > { %9421 = vst [vmem:[#allocation15_spill] sm:$0xff] %v5948_v31  ;;  %9422 = vst [vmem:[#allocation16_spill] sm:$0xff] %v5950_v32  ;;  %v5966_v41 = vunpack.c.l.bf16 %v5244_v38  ;;  %v5968_v42 = vunpack.c.h.bf16 %v5244_v38  ;;  %v5975_v46 = vunpack.c.l.bf16 %v5245_v43  ;;  %v5977_v47 = vunpack.c.h.bf16 %v5245_v43 }
  0x1d   : > { %9423 = vst [vmem:[#allocation17_spill] sm:$0xff] %v5957_v36  ;;  %9424 = vst [vmem:[#allocation18_spill] sm:$0xff] %v5959_v37  ;;  %v5987_v58 = vunpack.c.l.bf16 %v5246_v54  ;;  %v6000_v6 = vunpack.c.h.bf16 %v5246_v54 }
  0x1e   : > { %9425 = vst [vmem:[#allocation19_spill] sm:$0xff] %v5966_v41  ;;  %9426 = vst [vmem:[#allocation20_spill] sm:$0xff] %v5968_v42  ;;  %v638_v44 = vsel %vm589_vm0, %v5966_v41, 0.0  ;;  %v641_v45 = vsel %vm589_vm0, %v5968_v42, 0.0  ;;  %v644_v48 = vsel %vm589_vm0, %v5975_v46, 0.0  ;;  %v647_v49 = vsel %vm589_vm0, %v5977_v47, 0.0 }
  0x1f   : > { %603 = vadd.xlane.f32.xlu0 %v602_v14  ;;  %606 = vadd.xlane.f32.xlu1 %v605_v15  ;;  %9427 = vst [vmem:[#allocation21_spill] sm:$0xff] %v5975_v46  ;;  %9428 = vst [vmem:[#allocation22_spill] sm:$0xff] %v5977_v47  ;;  %v650_v1 = vsel %vm589_vm0, %v5987_v58, 0.0  ;;  %v5247_v14 = vld [vmem:[%s5891_s27 + $0x58] sm:$0xff]  }
  0x20   : > { %9429 = vst [vmem:[#allocation23_spill] sm:$0xff] %v5987_v58  ;;  %9430 = vst [vmem:[#allocation24_spill] sm:$0xff] %v6000_v6  ;;  %v6023_v33 = vunpack.c.h.bf16 %v5247_v14 }
  0x22   : > { %9432 = vst [vmem:[#allocation26_spill] sm:$0xff] %v6023_v33 }
  0x23   : > { %609 = vadd.xlane.f32.xlu0 %v608_v19  ;;  %612 = vadd.xlane.f32.xlu1 %v611_v20  ;;  %v653_v19 = vsel %vm589_vm0, %v6000_v6, 0.0  ;;  %v6013_v20 = vunpack.c.l.bf16 %v5247_v14 }
  0x25   : > { %9431 = vst [vmem:[#allocation25_spill] sm:$0xff] %v6013_v20 }
  0x27   : > { %615 = vadd.xlane.f32.xlu0 %v614_v24  ;;  %618 = vadd.xlane.f32.xlu1 %v617_v25 }
  0x2b   : > { %621 = vadd.xlane.f32.xlu0 %v620_v29  ;;  %624 = vadd.xlane.f32.xlu1 %v623_v30  ;;  %v656_v30 = vsel %vm589_vm0, %v6013_v20, 0.0 }
  0x2f   : > { %627 = vadd.xlane.f32.xlu0 %v626_v34  ;;  %630 = vadd.xlane.f32.xlu1 %v629_v35 }
  0x33   : > { %633 = vadd.xlane.f32.xlu0 %v632_v39  ;;  %636 = vadd.xlane.f32.xlu1 %v635_v40  ;;  %v5248_v40 = vld [vmem:[%s5891_s27 + $0x60] sm:$0xff]  }
  0x34   : > { %v6044_v54 = vunpack.c.h.bf16 %v5248_v40 }
  0x36   : > { %9434 = vst [vmem:[#allocation28_spill] sm:$0xff] %v6044_v54 }
  0x37   : > { %639 = vadd.xlane.f32.xlu0 %v638_v44  ;;  %642 = vadd.xlane.f32.xlu1 %v641_v45  ;;  %v659_v44 = vsel %vm589_vm0, %v6023_v33, 0.0  ;;  %v6034_v45 = vunpack.c.l.bf16 %v5248_v40 }
  0x39   : > { %9433 = vst [vmem:[#allocation27_spill] sm:$0xff] %v6034_v45 }
  0x3b   : > { %645 = vadd.xlane.f32.xlu0 %v644_v48  ;;  %648 = vadd.xlane.f32.xlu1 %v647_v49 }
  0xa0   : > { %v592_v50 = vpop.xlane.xlu0 %591  ;;  %v598_v51 = vpop.xlane.xlu1 %597 }
  0xa1   : > { %v687_v52 = vmul.f32 0.03125, %v592_v50  ;;  %v689_v53 = vmul.f32 0.03125, %v598_v51 }
  0xa3   : > { %v5985_v55 = vsub.f32 %v5895_v2, %v687_v52  ;;  %v5990_v60 = vsub.f32 %v5899_v4, %v689_v53  ;;  %v662_v53 = vsel %vm589_vm0, %v6034_v45, 0.0 }
  0xa4   : > { %v595_v56 = vpop.xlane.xlu0 %594  ;;  %v601_v57 = vpop.xlane.xlu1 %600 }
  0xa5   : > { %v688_v59 = vmul.f32 0.03125, %v595_v56  ;;  %v751_v61 = vmul.f32 %v5985_v55, %v5985_v55  ;;  %v690_v62 = vmul.f32 0.03125, %v601_v57  ;;  %v753_v10 = vmul.f32 %v5990_v60, %v5990_v60 }
  0xa7   : > { %v5995_v63 = vsub.f32 %v5897_v3, %v688_v59  ;;  %v783_v0 = vsel %vm589_vm0, %v751_v61, 0.0  ;;  %v6003_v8 = vsub.f32 %v5901_v5, %v690_v62  ;;  %v789_v23 = vsel %vm589_vm0, %v753_v10, 0.0  ;;  %v5249_v62 = vld [vmem:[%s5891_s27 + $0x68] sm:$0xff]  }
  0xa8   : > { %784 = vadd.xlane.f32.xlu0 %v783_v0  ;;  %v604_v7 = vpop.xlane.xlu0 %603  ;;  %v607_v15 = vpop.xlane.xlu1 %606 }
  0xa9   : > { %v752_v9 = vmul.f32 %v5995_v63, %v5995_v63  ;;  %v691_v13 = vmul.f32 0.03125, %v604_v7  ;;  %v692_v25 = vmul.f32 0.03125, %v607_v15  ;;  %v754_v28 = vmul.f32 %v6003_v8, %v6003_v8 }
  0xaa   : > { %v6055_v7 = vunpack.c.l.bf16 %v5249_v62 }
  0xab   : > { %v786_v16 = vsel %vm589_vm0, %v752_v9, 0.0  ;;  %v6017_v24 = vsub.f32 %v5912_v11, %v691_v13  ;;  %v6026_v34 = vsub.f32 %v5914_v12, %v692_v25  ;;  %v792_v35 = vsel %vm589_vm0, %v754_v28, 0.0 }
  0xac   : > { %651 = vadd.xlane.f32.xlu0 %v650_v1  ;;  %787 = vadd.xlane.f32.xlu1 %v786_v16  ;;  %v610_v29 = vpop.xlane.xlu0 %609  ;;  %v613_v43 = vpop.xlane.xlu1 %612  ;;  %v665_v1 = vsel %vm589_vm0, %v6044_v54, 0.0  ;;  %9435 = vst [vmem:[#allocation29_spill] sm:$0xff] %v6055_v7  ;;  %v668_v16 = vsel %vm589_vm0, %v6055_v7, 0.0 }
  0xad   : > { %v755_v38 = vmul.f32 %v6017_v24, %v6017_v24  ;;  %v693_v39 = vmul.f32 0.03125, %v610_v29  ;;  %v694_v50 = vmul.f32 0.03125, %v613_v43  ;;  %v756_v51 = vmul.f32 %v6026_v34, %v6026_v34 }
  0xaf   : > { %v795_v48 = vsel %vm589_vm0, %v755_v38, 0.0  ;;  %v6038_v49 = vsub.f32 %v5922_v17, %v693_v39  ;;  %v6047_v56 = vsub.f32 %v5924_v18, %v694_v50  ;;  %v798_v57 = vsel %vm589_vm0, %v756_v51, 0.0  ;;  %v5250_v38 = vld [vmem:[%s5891_s27 + $0x70] sm:$0xff]  }
  0xb0   : > { %790 = vadd.xlane.f32.xlu0 %v789_v23  ;;  %654 = vadd.xlane.f32.xlu1 %v653_v19  ;;  %v616_v52 = vpop.xlane.xlu0 %615  ;;  %v619_v0 = vpop.xlane.xlu1 %618  ;;  %v6065_v19 = vunpack.c.h.bf16 %v5249_v62  ;;  %v6076_v40 = vunpack.c.l.bf16 %v5250_v38 }
  0xb1   : > { %v757_v59 = vmul.f32 %v6038_v49, %v6038_v49  ;;  %v695_v61 = vmul.f32 0.03125, %v616_v52  ;;  %v696_v14 = vmul.f32 0.03125, %v619_v0  ;;  %v758_v15 = vmul.f32 %v6047_v56, %v6047_v56 }
  0xb2   : > { %9436 = vst [vmem:[#allocation30_spill] sm:$0xff] %v6065_v19  ;;  %v671_v39 = vsel %vm589_vm0, %v6065_v19, 0.0  ;;  %9437 = vst [vmem:[#allocation31_spill] sm:$0xff] %v6076_v40  ;;  %v674_v62 = vsel %vm589_vm0, %v6076_v40, 0.0  ;;  %v6098_v0 = vunpack.c.h.bf16 %v5250_v38 }
  0xb3   : > { %v801_v10 = vsel %vm589_vm0, %v757_v59, 0.0  ;;  %v6059_v13 = vsub.f32 %v5930_v21, %v695_v61  ;;  %v6068_v28 = vsub.f32 %v5932_v22, %v696_v14  ;;  %v804_v29 = vsel %vm589_vm0, %v758_v15, 0.0  ;;  %v5500_v59 = vld [vmem:[%s9328_s3 + $0x20] ss:$16 sps:$4 sm:$0xff]   ;;  %v5501_v61 = vld [vmem:[%s9328_s3 + $0x28] ss:$16 sps:$4 sm:$0xff]  }
  0xb4   : > { %657 = vadd.xlane.f32.xlu0 %v656_v30  ;;  %793 = vadd.xlane.f32.xlu1 %v792_v35  ;;  %v622_v9 = vpop.xlane.xlu0 %621  ;;  %v625_v23 = vpop.xlane.xlu1 %624  ;;  %9438 = vst [vmem:[#allocation32_spill] sm:$0xff] %v6098_v0  ;;  %v5251_v15 = vld [vmem:[%s5891_s27 + $0x78] sm:$0xff]  }
  0xb5   : > { %v759_v30 = vmul.f32 %v6059_v13, %v6059_v13  ;;  %v697_v35 = vmul.f32 0.03125, %v622_v9  ;;  %v698_v50 = vmul.f32 0.03125, %v625_v23  ;;  %v760_v51 = vmul.f32 %v6068_v28, %v6068_v28  ;;  %v5502_v23 = vld [vmem:[%s9328_s3 + $0x4] ss:$16 sps:$4 sm:$0xff]  }
  0xb7   : > { %v810_v9 = vsel %vm589_vm0, %v760_v51, 0.0 }
  0xb8   : > { %660 = vadd.xlane.f32.xlu1 %v659_v44  ;;  %796 = vadd.xlane.f32.xlu0 %v795_v48  ;;  %v628_v25 = vpop.xlane.xlu0 %627  ;;  %v631_v43 = vpop.xlane.xlu1 %630  ;;  %v807_v44 = vsel %vm589_vm0, %v759_v30, 0.0  ;;  %v6080_v48 = vsub.f32 %v5939_v26, %v697_v35  ;;  %v5506_v30 = vld [vmem:[%s9328_s3] ss:$16 sps:$4 sm:$0xff]   ;;  %v677_v35 = vsel %vm589_vm0, %v6098_v0, 0.0 }
  0xb9   : > { %v699_v14 = vmul.f32 0.03125, %v628_v25  ;;  %v5507_v25 = vld [vmem:[%s9328_s3 + $0x8] ss:$16 sps:$4 sm:$0xff]   ;;  %v700_v38 = vmul.f32 0.03125, %v631_v43 }
  0xbb   : > { %v6125_v51 = vsub.f32 %v5948_v31, %v699_v14  ;;  %v6132_v43 = vsub.f32 %v5950_v32, %v700_v38 }
  0xbc   : > { %799 = vadd.xlane.f32.xlu1 %v798_v57  ;;  %663 = vadd.xlane.f32.xlu0 %v662_v53  ;;  %v634_v52 = vpop.xlane.xlu0 %633  ;;  %v5496_v53 = vld [vmem:[%s9328_s3 + $0x24] ss:$16 sps:$4 sm:$0xff]   ;;  %v5498_v57 = vld [vmem:[%s9328_s3 + $0x2c] ss:$16 sps:$4 sm:$0xff]  }
  0xbd   : > { %1229 = vmatprep.subr.bf16.mxu0 %v5496_v53  ;;  %1422 = vmatprep.subr.bf16.mxu1 %v5498_v57  ;;  %v701_v57 = vmul.f32 0.03125, %v634_v52 }
  0xbe   : > { %1230 = vmatpush1.bf16.msra.mxu0 %v5500_v59  ;;  %1423 = vmatpush1.bf16.msra.mxu1 %v5501_v61  ;;  %v9342_v59 = vmov 0  }
  0xbf   : > { %1231 = vmatprep.subr.bf16.mxu0 %v5502_v23  ;;  %1249 = vmatprep.mubr.bf16.mxu0 %v9342_v59  ;;  %v6140_v14 = vsub.f32 %v5957_v36, %v701_v57  ;;  %v763_v23 = vmul.f32 %v6125_v51, %v6125_v51 }
  0xc0   : > { %666 = vadd.xlane.f32.xlu1 %v665_v1  ;;  %802 = vadd.xlane.f32.xlu0 %v801_v10  ;;  %v6101_v1 = vsub.f32 %v5941_v27, %v698_v50  ;;  %v761_v10 = vmul.f32 %v6080_v48, %v6080_v48 }
  0xc1   : > { %1442 = vmatprep.mubr.bf16.mxu1 %v9342_v59  ;;  %v819_v38 = vsel %vm589_vm0, %v763_v23, 0.0 }
  0xc2   : > { %v813_v50 = vsel %vm589_vm0, %v761_v10, 0.0  ;;  %v762_v53 = vmul.f32 %v6101_v1, %v6101_v1  ;;  %1232 = vmatpush1.bf16.msra.mxu0 %v5506_v30 }
  0xc4   : > { %805 = vadd.xlane.f32.xlu1 %v804_v29  ;;  %669 = vadd.xlane.f32.xlu0 %v668_v16  ;;  %v637_v16 = vpop.xlane.xlu1 %636  ;;  %v5504_v29 = vld [vmem:[%s9328_s3 + $0xc] ss:$16 sps:$4 sm:$0xff]   ;;  %v816_v10 = vsel %vm589_vm0, %v762_v53, 0.0 }
  0xc5   : > { %1424 = vmatprep.subr.bf16.mxu1 %v5504_v29 }
  0xc6   : > { %1425 = vmatpush1.bf16.msra.mxu1 %v5507_v25 }
  0xc8   : > { %672 = vadd.xlane.f32.xlu1 %v671_v39  ;;  %808 = vadd.xlane.f32.xlu0 %v807_v44  ;;  %v6121_v39 = vunpack.c.l.bf16 %v5251_v15  ;;  %v640_v44 = vpop.xlane.xlu0 %639  ;;  %v643_v52 = vpop.xlane.xlu1 %642 }
  0xc9   : > { %v703_v29 = vmul.f32 0.03125, %v640_v44  ;;  %v765_v44 = vmul.f32 %v6140_v14, %v6140_v14 }
  0xca   : > { %9439 = vst [vmem:[#allocation33_spill] sm:$0xff] %v6121_v39  ;;  %v680_v61 = vsel %vm589_vm0, %v6121_v39, 0.0 }
  0xcc   : > { %811 = vadd.xlane.f32.xlu1 %v810_v9  ;;  %675 = vadd.xlane.f32.xlu0 %v674_v62  ;;  %v702_v62 = vmul.f32 0.03125, %v637_v16  ;;  %v6136_v9 = vunpack.c.h.bf16 %v5251_v15  ;;  %v646_v30 = vpop.xlane.xlu0 %645  ;;  %v704_v16 = vmul.f32 0.03125, %v643_v52  ;;  %v649_v57 = vpop.xlane.xlu1 %648 }
  0xcd   : > { %v705_v53 = vmul.f32 0.03125, %v646_v30 }
  0xce   : > { %9440 = vst [vmem:[#allocation34_spill] sm:$0xff] %v6136_v9  ;;  %v6145_v25 = vsub.f32 %v5959_v37, %v702_v62  ;;  %v683_v15 = vsel %vm589_vm0, %v6136_v9, 0.0 }
  0xcf   : > { %v6165_v23 = vsub.f32 %v5975_v46, %v705_v53 }
  0xd0   : > { %678 = vadd.xlane.f32.xlu1 %v677_v35  ;;  %814 = vadd.xlane.f32.xlu0 %v813_v50  ;;  %v764_v35 = vmul.f32 %v6132_v43, %v6132_v43  ;;  %v6153_v50 = vsub.f32 %v5966_v41, %v703_v29  ;;  %v766_v52 = vmul.f32 %v6145_v25, %v6145_v25  ;;  %v706_v29 = vmul.f32 0.03125, %v649_v57 }
  0xd2   : > { %v822_v62 = vsel %vm589_vm0, %v764_v35, 0.0  ;;  %v767_v30 = vmul.f32 %v6153_v50, %v6153_v50 }
  0xd4   : > { %817 = vadd.xlane.f32.xlu1 %v816_v10  ;;  %681 = vadd.xlane.f32.xlu0 %v680_v61  ;;  %v6158_v61 = vsub.f32 %v5968_v42, %v704_v16  ;;  %v825_v10 = vsel %vm589_vm0, %v765_v44, 0.0  ;;  %v6171_v16 = vsub.f32 %v5977_v47, %v706_v29  ;;  %v831_v35 = vsel %vm589_vm0, %v767_v30, 0.0 }
  0xd5   : > { %v769_v44 = vmul.f32 %v6165_v23, %v6165_v23 }
  0xd7   : > { %v837_v57 = vsel %vm589_vm0, %v769_v44, 0.0 }
  0xd8   : > { %684 = vadd.xlane.f32.xlu1 %v683_v15  ;;  %820 = vadd.xlane.f32.xlu0 %v819_v38  ;;  %v828_v15 = vsel %vm589_vm0, %v766_v52, 0.0  ;;  %v768_v38 = vmul.f32 %v6158_v61, %v6158_v61 }
  0xda   : > { %v834_v53 = vsel %vm589_vm0, %v768_v38, 0.0 }
  0xdc   : > { %823 = vadd.xlane.f32.xlu1 %v822_v62  ;;  %826 = vadd.xlane.f32.xlu0 %v825_v10  ;;  %v770_v62 = vmul.f32 %v6171_v16, %v6171_v16 }
  0xde   : > { %v840_v52 = vsel %vm589_vm0, %v770_v62, 0.0 }
  0xe0   : > { %829 = vadd.xlane.f32.xlu1 %v828_v15  ;;  %832 = vadd.xlane.f32.xlu0 %v831_v35 }
  0xe4   : > { %835 = vadd.xlane.f32.xlu1 %v834_v53  ;;  %838 = vadd.xlane.f32.xlu0 %v837_v57 }
  0xe8   : > { %841 = vadd.xlane.f32.xlu1 %v840_v52 }
 0x131   : > { %v785_v10 = vpop.xlane.xlu0 %784 }
 0x132   : > { %v879_v29 = vmul.f32 0.03125, %v785_v10 }
 0x134   : > { %v911_v30 = vadd.f32 1e-05, %v879_v29 }
 0x135   : > { %v788_v59 = vpop.xlane.xlu1 %787  ;;  %v652_v47 = vpop.xlane.xlu0 %651 }
 0x136   : > { %5522 = vrsqrt.f32 %v911_v30  ;;  %v880_v15 = vmul.f32 0.03125, %v788_v59  ;;  %v707_v35 = vmul.f32 0.03125, %v652_v47 }
 0x138   : > { %v912_v42 = vadd.f32 1e-05, %v880_v15  ;;  %v6184_v38 = vsub.f32 %v5987_v58, %v707_v35 }
 0x139   : > { %v655_v44 = vpop.xlane.xlu1 %654  ;;  %v791_v46 = vpop.xlane.xlu0 %790 }
 0x13a   : > { %5524 = vrsqrt.f32 %v912_v42  ;;  %v708_v53 = vmul.f32 0.03125, %v655_v44  ;;  %v881_v57 = vmul.f32 0.03125, %v791_v46  ;;  %v771_v62 = vmul.f32 %v6184_v38, %v6184_v38 }
 0x13c   : > { %v6189_v52 = vsub.f32 %v6000_v6, %v708_v53  ;;  %v913_v10 = vadd.f32 1e-05, %v881_v57  ;;  %v843_v29 = vsel %vm589_vm0, %v771_v62, 0.0 }
 0x13d   : > { %v794_v59 = vpop.xlane.xlu1 %793  ;;  %844 = vadd.xlane.f32.xlu0 %v843_v29  ;;  %v658_v47 = vpop.xlane.xlu0 %657 }
 0x13e   : > { %5526 = vrsqrt.f32 %v913_v10  ;;  %v882_v30 = vmul.f32 0.03125, %v794_v59  ;;  %v709_v15 = vmul.f32 0.03125, %v658_v47  ;;  %v772_v42 = vmul.f32 %v6189_v52, %v6189_v52 }
 0x140   : > { %v914_v35 = vadd.f32 1e-05, %v882_v30  ;;  %v6195_v46 = vsub.f32 %v6013_v20, %v709_v15  ;;  %v846_v44 = vsel %vm589_vm0, %v772_v42, 0.0 }
 0x141   : > { %847 = vadd.xlane.f32.xlu1 %v846_v44  ;;  %v661_v53 = vpop.xlane.xlu1 %660  ;;  %v797_v57 = vpop.xlane.xlu0 %796 }
 0x142   : > { %5528 = vrsqrt.f32 %v914_v35  ;;  %v710_v62 = vmul.f32 0.03125, %v661_v53  ;;  %v883_v6 = vmul.f32 0.03125, %v797_v57  ;;  %v773_v10 = vmul.f32 %v6195_v46, %v6195_v46  ;;  %v6210_v57 = vld [vmem:[%s9326_s1] ss:$0 sm:$0xff] }
 0x143   : > { %v5523_v29 = vpop.eup %5522 }
 0x144   : > { %v6201_v59 = vsub.f32 %v6023_v33, %v710_v62  ;;  %v915_v47 = vadd.f32 1e-05, %v883_v6  ;;  %v849_v30 = vsel %vm589_vm0, %v773_v10, 0.0  ;;  %v975_v42 = vmul.f32 %v5523_v29, %v5985_v55 }
 0x145   : > { %v800_v15 = vpop.xlane.xlu1 %799  ;;  %850 = vadd.xlane.f32.xlu0 %v849_v30  ;;  %v664_v20 = vpop.xlane.xlu0 %663 }
 0x146   : > { %5530 = vrsqrt.f32 %v915_v47  ;;  %v884_v44 = vmul.f32 0.03125, %v800_v15  ;;  %v711_v35 = vmul.f32 0.03125, %v664_v20  ;;  %v774_v53 = vmul.f32 %v6201_v59, %v6201_v59 }
 0x147   : > { %v5525_v62 = vpop.eup %5524  ;;  %v1013_v47 = vmul.f32 %v6210_v57, %v975_v42 }
 0x148   : > { %v916_v6 = vadd.f32 1e-05, %v884_v44  ;;  %v6213_v10 = vsub.f32 %v6034_v45, %v711_v35  ;;  %v852_v30 = vsel %vm589_vm0, %v774_v53, 0.0  ;;  %v976_v55 = vmul.f32 %v5525_v62, %v5995_v63  ;;  %v6223_v44 = vld [vmem:[%s9327_s2] ss:$0 sm:$0xff] }
 0x149   : > { %853 = vadd.xlane.f32.xlu1 %v852_v30  ;;  %v667_v29 = vpop.xlane.xlu1 %666  ;;  %v803_v20 = vpop.xlane.xlu0 %802 }
 0x14a   : > { %5532 = vrsqrt.f32 %v916_v6  ;;  %v712_v15 = vmul.f32 0.03125, %v667_v29  ;;  %v885_v33 = vmul.f32 0.03125, %v803_v20  ;;  %v775_v58 = vmul.f32 %v6213_v10, %v6213_v10 }
 0x14b   : > { %v5527_v35 = vpop.eup %5526  ;;  %v1014_v53 = vmul.f32 %v6210_v57, %v976_v55  ;;  %v1051_v29 = vadd.f32 %v6223_v44, %v1013_v47 }
 0x14c   : > { %v6227_v63 = vsub.f32 %v6044_v54, %v712_v15  ;;  %v917_v62 = vadd.f32 1e-05, %v885_v33  ;;  %v855_v42 = vsel %vm589_vm0, %v775_v58, 0.0  ;;  %v977_v45 = vmul.f32 %v5527_v35, %v5990_v60 }
 0x14d   : > { %v806_v6 = vpop.xlane.xlu1 %805  ;;  %856 = vadd.xlane.f32.xlu0 %v855_v42  ;;  %v670_v30 = vpop.xlane.xlu0 %669  ;;  %v1052_v20 = vadd.f32 %v6223_v44, %v1014_v53 }
 0x14e   : > { %5534 = vrsqrt.f32 %v917_v62  ;;  %v886_v41 = vmul.f32 0.03125, %v806_v6  ;;  %v713_v37 = vmul.f32 0.03125, %v670_v30  ;;  %v776_v55 = vmul.f32 %v6227_v63, %v6227_v63 }
 0x14f   : > { %v5529_v15 = vpop.eup %5528  ;;  %v1083_v54 = vpack.c.bf16 %v1052_v20, %v1051_v29  ;;  %v1015_v53 = vmul.f32 %v6210_v57, %v977_v45 }
 0x150   : > { %v918_v33 = vadd.f32 1e-05, %v886_v41  ;;  %v6236_v58 = vsub.f32 %v6055_v7, %v713_v37  ;;  %v858_v42 = vsel %vm589_vm0, %v776_v55, 0.0  ;;  %v978_v47 = vmul.f32 %v5529_v15, %v6003_v8 }
 0x151   : > { %5005 = vmatmul.mubr.msk.bf16.vlgmr.msra.gmra.mxu0 %vm589_vm0, %v1083_v54  ;;  %5021 = vmatmul.mubr.msk.bf16.vlgmr.msra.gmra.mxu1 %vm589_vm0, %v1083_v54  ;;  %v673_v60 = vpop.xlane.xlu1 %672  ;;  %v809_v35 = vpop.xlane.xlu0 %808  ;;  %v9441_v41 = vmov 0   ;;  %v1053_v15 = vadd.f32 %v6223_v44, %v1015_v53 }
 0x152   : > { %5536 = vrsqrt.f32 %v918_v33  ;;  %859 = vadd.xlane.f32.xlu1 %v858_v42  ;;  %v714_v62 = vmul.f32 0.03125, %v673_v60  ;;  %v887_v6 = vmul.f32 0.03125, %v809_v35  ;;  %v777_v37 = vmul.f32 %v6236_v58, %v6236_v58  ;;  %1259 = vmatprep.mubr.bf16.mxu0 %v9441_v41 }
 0x153   : > { %v5531_v30 = vpop.eup %5530  ;;  %1452 = vmatprep.mubr.bf16.mxu1 %v9441_v41  ;;  %v1016_v8 = vmul.f32 %v6210_v57, %v978_v47 }
 0x154   : > { %v6249_v54 = vsub.f32 %v6065_v19, %v714_v62  ;;  %v919_v29 = vadd.f32 1e-05, %v887_v6  ;;  %v861_v45 = vsel %vm589_vm0, %v777_v37, 0.0  ;;  %v979_v42 = vmul.f32 %v5531_v30, %v6017_v24 }
 0x155   : > { %v812_v20 = vpop.xlane.xlu1 %811  ;;  %862 = vadd.xlane.f32.xlu0 %v861_v45  ;;  %v676_v55 = vpop.xlane.xlu0 %675  ;;  %v1054_v33 = vadd.f32 %v6223_v44, %v1016_v8 }
 0x156   : > { %5538 = vrsqrt.f32 %v919_v29  ;;  %v888_v60 = vmul.f32 0.03125, %v812_v20  ;;  %v715_v35 = vmul.f32 0.03125, %v676_v55  ;;  %v778_v47 = vmul.f32 %v6249_v54, %v6249_v54 }
 0x157   : > { %v5533_v62 = vpop.eup %5532  ;;  %v1084_v19 = vpack.c.bf16 %v1054_v33, %v1053_v15  ;;  %v1017_v8 = vmul.f32 %v6210_v57, %v979_v42 }
 0x158   : > { %v920_v6 = vadd.f32 1e-05, %v888_v60  ;;  %v6258_v37 = vsub.f32 %v6076_v40, %v715_v35  ;;  %v864_v45 = vsel %vm589_vm0, %v778_v47, 0.0  ;;  %v980_v53 = vmul.f32 %v5533_v62, %v6026_v34 }
 0x159   : > { %5006 = vmatmul.mubr.msk.bf16.gmra.mxu0 %vm589_vm0, %v1084_v19  ;;  %5022 = vmatmul.mubr.msk.bf16.gmra.mxu1 %vm589_vm0, %v1084_v19  ;;  %v679_v24 = vpop.xlane.xlu1 %678  ;;  %v815_v30 = vpop.xlane.xlu0 %814  ;;  %v1055_v47 = vadd.f32 %v6223_v44, %v1017_v8 }
 0x15a   : > { %5540 = vrsqrt.f32 %v920_v6  ;;  %865 = vadd.xlane.f32.xlu1 %v864_v45  ;;  %v716_v29 = vmul.f32 0.03125, %v679_v24  ;;  %v889_v20 = vmul.f32 0.03125, %v815_v30  ;;  %v779_v55 = vmul.f32 %v6258_v37, %v6258_v37  ;;  %1269 = vmatprep.mubr.bf16.mxu0 %v9441_v41 }
 0x15b   : > { %v5535_v15 = vpop.eup %5534  ;;  %1462 = vmatprep.mubr.bf16.mxu1 %v9441_v41  ;;  %v1018_v34 = vmul.f32 %v6210_v57, %v980_v53 }
 0x15c   : > { %v6271_v19 = vsub.f32 %v6098_v0, %v716_v29  ;;  %v921_v33 = vadd.f32 1e-05, %v889_v20  ;;  %v867_v42 = vsel %vm589_vm0, %v779_v55, 0.0  ;;  %v981_v6 = vmul.f32 %v5535_v15, %v6038_v49 }
 0x15d   : > { %v818_v60 = vpop.xlane.xlu1 %817  ;;  %868 = vadd.xlane.f32.xlu0 %v867_v42  ;;  %v682_v35 = vpop.xlane.xlu0 %681  ;;  %v1056_v62 = vadd.f32 %v6223_v44, %v1018_v34 }
 0x15e   : > { %5542 = vrsqrt.f32 %v921_v33  ;;  %v890_v45 = vmul.f32 0.03125, %v818_v60  ;;  %v717_v24 = vmul.f32 0.03125, %v682_v35  ;;  %v780_v53 = vmul.f32 %v6271_v19, %v6271_v19 }
 0x15f   : > { %v5537_v30 = vpop.eup %5536  ;;  %v1085_v29 = vpack.c.bf16 %v1056_v62, %v1055_v47  ;;  %v1019_v34 = vmul.f32 %v6210_v57, %v981_v6 }
 0x160   : > { %v922_v20 = vadd.f32 1e-05, %v890_v45  ;;  %v6280_v55 = vsub.f32 %v6121_v39, %v717_v24  ;;  %v870_v42 = vsel %vm589_vm0, %v780_v53, 0.0  ;;  %v982_v8 = vmul.f32 %v5537_v30, %v6047_v56 }
 0x161   : > { %5007 = vmatmul.mubr.msk.bf16.gmra.mxu0 %vm589_vm0, %v1085_v29  ;;  %5023 = vmatmul.mubr.msk.bf16.gmra.mxu1 %vm589_vm0, %v1085_v29  ;;  %v685_v49 = vpop.xlane.xlu1 %684  ;;  %v821_v15 = vpop.xlane.xlu0 %820  ;;  %v1057_v29 = vadd.f32 %v6223_v44, %v1019_v34 }
 0x162   : > { %5544 = vrsqrt.f32 %v922_v20  ;;  %871 = vadd.xlane.f32.xlu1 %v870_v42  ;;  %v718_v33 = vmul.f32 0.03125, %v685_v49  ;;  %v891_v60 = vmul.f32 0.03125, %v821_v15  ;;  %v781_v35 = vmul.f32 %v6280_v55, %v6280_v55  ;;  %1279 = vmatprep.mubr.bf16.mxu0 %v9441_v41 }
 0x163   : > { %v5539_v47 = vpop.eup %5538  ;;  %1472 = vmatprep.mubr.bf16.mxu1 %v9441_v41  ;;  %v1020_v56 = vmul.f32 %v6210_v57, %v982_v8 }
 0x164   : > { %v6293_v62 = vsub.f32 %v6136_v9, %v718_v33  ;;  %v923_v45 = vadd.f32 1e-05, %v891_v60  ;;  %v873_v6 = vsel %vm589_vm0, %v781_v35, 0.0  ;;  %v983_v24 = vmul.f32 %v5539_v47, %v6059_v13 }
 0x165   : > { %v824_v53 = vpop.xlane.xlu1 %823  ;;  %874 = vadd.xlane.f32.xlu0 %v873_v6  ;;  %v827_v30 = vpop.xlane.xlu0 %826  ;;  %v1058_v20 = vadd.f32 %v6223_v44, %v1020_v56 }
 0x166   : > { %5546 = vrsqrt.f32 %v923_v45  ;;  %v892_v42 = vmul.f32 0.03125, %v824_v53  ;;  %v893_v49 = vmul.f32 0.03125, %v827_v30  ;;  %v782_v8 = vmul.f32 %v6293_v62, %v6293_v62 }
 0x167   : > { %v5541_v15 = vpop.eup %5540  ;;  %v1086_v33 = vpack.c.bf16 %v1058_v20, %v1057_v29  ;;  %v1021_v47 = vmul.f32 %v6210_v57, %v983_v24 }
 0x168   : > { %v924_v60 = vadd.f32 1e-05, %v892_v42  ;;  %v876_v35 = vsel %vm589_vm0, %v782_v8, 0.0  ;;  %v984_v13 = vmul.f32 %v5541_v15, %v6068_v28  ;;  %v925_v6 = vadd.f32 1e-05, %v893_v49 }
 0x169   : > { %5008 = vmatmul.mubr.msk.bf16.gmra.mxu0 %vm589_vm0, %v1086_v33  ;;  %5024 = vmatmul.mubr.msk.bf16.gmra.mxu1 %vm589_vm0, %v1086_v33  ;;  %v830_v34 = vpop.xlane.xlu1 %829  ;;  %v833_v45 = vpop.xlane.xlu0 %832  ;;  %v1059_v24 = vadd.f32 %v6223_v44, %v1021_v47 }
 0x16a   : > { %5548 = vrsqrt.f32 %v924_v60  ;;  %877 = vadd.xlane.f32.xlu1 %v876_v35  ;;  %v894_v56 = vmul.f32 0.03125, %v830_v34  ;;  %1289 = vmatprep.mubr.bf16.mxu0 %v9441_v41  ;;  %v1022_v53 = vmul.f32 %v6210_v57, %v984_v13  ;;  %v895_v42 = vmul.f32 0.03125, %v833_v45 }
 0x16b   : > { %v5543_v30 = vpop.eup %5542  ;;  %1482 = vmatprep.mubr.bf16.mxu1 %v9441_v41  ;;  %5550 = vrsqrt.f32 %v925_v6 }
 0x16c   : > { %v926_v28 = vadd.f32 1e-05, %v894_v56  ;;  %v1060_v29 = vadd.f32 %v6223_v44, %v1022_v53  ;;  %v985_v20 = vmul.f32 %v5543_v30, %v6080_v48  ;;  %v927_v34 = vadd.f32 1e-05, %v895_v42 }
 0x16d   : > { %v836_v49 = vpop.xlane.xlu1 %835  ;;  %v839_v56 = vpop.xlane.xlu0 %838 }
 0x16e   : > { %5552 = vrsqrt.f32 %v926_v28  ;;  %v896_v8 = vmul.f32 0.03125, %v836_v49  ;;  %v1087_v15 = vpack.c.bf16 %v1060_v29, %v1059_v24  ;;  %v1023_v13 = vmul.f32 %v6210_v57, %v985_v20 }
 0x16f   : > { %v5545_v33 = vpop.eup %5544  ;;  %v897_v28 = vmul.f32 0.03125, %v839_v56 }
 0x170   : > { %v928_v60 = vadd.f32 1e-05, %v896_v8  ;;  %v986_v35 = vmul.f32 %v5545_v33, %v6101_v1  ;;  %v1061_v1 = vadd.f32 %v6223_v44, %v1023_v13 }
 0x171   : > { %5009 = vmatmul.mubr.msk.bf16.gmra.mxu0 %vm589_vm0, %v1087_v15  ;;  %5025 = vmatmul.mubr.msk.bf16.gmra.mxu1 %vm589_vm0, %v1087_v15  ;;  %v842_v47 = vpop.xlane.xlu1 %841  ;;  %v929_v8 = vadd.f32 1e-05, %v897_v28 }
 0x172   : > { %1299 = vmatprep.mubr.bf16.mxu0 %v9441_v41  ;;  %1492 = vmatprep.mubr.bf16.mxu1 %v9441_v41  ;;  %v1024_v48 = vmul.f32 %v6210_v57, %v986_v35  ;;  %5554 = vrsqrt.f32 %v928_v60  ;;  %v898_v45 = vmul.f32 0.03125, %v842_v47 }
 0x173   : > { %v5547_v6 = vpop.eup %5546  ;;  %5556 = vrsqrt.f32 %v927_v34 }
 0x174   : > { %v1062_v53 = vadd.f32 %v6223_v44, %v1024_v48  ;;  %v987_v30 = vmul.f32 %v5547_v6, %v6125_v51  ;;  %v930_v20 = vadd.f32 1e-05, %v898_v45 }
 0x176   : > { %v1088_v24 = vpack.c.bf16 %v1062_v53, %v1061_v1  ;;  %v1025_v49 = vmul.f32 %v6210_v57, %v987_v30  ;;  %5558 = vrsqrt.f32 %v930_v20 }
 0x177   : > { %v5549_v29 = vpop.eup %5548  ;;  %5560 = vrsqrt.f32 %v929_v8 }
 0x178   : > { %v988_v42 = vmul.f32 %v5549_v29, %v6132_v43  ;;  %v5551_v15 = vpop.eup %5550  ;;  %v1063_v60 = vadd.f32 %v6223_v44, %v1025_v49 }
 0x179   : > { %5010 = vmatmul.mubr.msk.bf16.gmra.mxu0 %vm589_vm0, %v1088_v24  ;;  %5026 = vmatmul.mubr.msk.bf16.gmra.mxu1 %vm589_vm0, %v1088_v24  ;;  %v989_v13 = vmul.f32 %v5551_v15, %v6140_v14  ;;  %v6358_v15 = vld [vmem:[%s9329_s4] sm:$0xf] }
 0x17a   : > { %1309 = vmatprep.mubr.bf16.mxu0 %v9441_v41  ;;  %1502 = vmatprep.mubr.bf16.mxu1 %v9441_v41  ;;  %v1026_v51 = vmul.f32 %v6210_v57, %v988_v42 }
 0x17b   : > { %v5553_v33 = vpop.eup %5552  ;;  %v1027_v48 = vmul.f32 %v6210_v57, %v989_v13 }
 0x17c   : > { %v1064_v43 = vadd.f32 %v6223_v44, %v1026_v51  ;;  %v990_v35 = vmul.f32 %v5553_v33, %v6145_v25 }
 0x17d   : > { %v1065_v14 = vadd.f32 %v6223_v44, %v1027_v48  ;;  %v5789_v48 = vmov 0.0  }
 0x17e   : > { %v1089_v34 = vpack.c.bf16 %v1064_v43, %v1063_v60  ;;  %v1028_v47 = vmul.f32 %v6210_v57, %v990_v35  ;;  %1603 = vst.msk [vmem:[#allocation2] sm:$0xff] %vm589_vm0, %v5789_v48  ;;  %1604 = vst.msk [vmem:[#allocation2 + $0x8] sm:$0xff] %vm589_vm0, %v5789_v48 }
 0x17f   : > { %v5555_v56 = vpop.eup %5554  ;;  %1613 = vst.msk [vmem:[#allocation2 + $0x20] sm:$0xff] %vm589_vm0, %v5789_v48  ;;  %1605 = vst.msk [vmem:[#allocation2 + $0x10] sm:$0xff] %vm589_vm0, %v5789_v48 }
 0x180   : > { %v5557_v6 = vpop.eup %5556  ;;  %v1066_v25 = vadd.f32 %v6223_v44, %v1028_v47  ;;  %v992_v45 = vmul.f32 %v5555_v56, %v6158_v61  ;;  %v1109_v61 = vlaneseq  ;;  %1606 = vst.msk [vmem:[#allocation2 + $0x18] sm:$0xff] %vm589_vm0, %v5789_v48  ;;  %1608 = vst.msk [vmem:[#allocation2 + $0x220] sm:$0xff] %vm589_vm0, %v5789_v48 }
 0x181   : > { %5011 = vmatmul.mubr.msk.bf16.gmra.mxu0 %vm589_vm0, %v1089_v34  ;;  %5027 = vmatmul.mubr.msk.bf16.gmra.mxu1 %vm589_vm0, %v1089_v34  ;;  %v991_v1 = vmul.f32 %v5557_v6, %v6153_v50  ;;  %1609 = vst.msk [vmem:[#allocation2 + $0x228] sm:$0xff] %vm589_vm0, %v5789_v48  ;;  %1610 = vst.msk [vmem:[#allocation2 + $0x230] sm:$0xff] %vm589_vm0, %v5789_v48 }
 0x182   : > { %1319 = vmatprep.mubr.bf16.mxu0 %v9441_v41  ;;  %1512 = vmatprep.mubr.bf16.mxu1 %v9441_v41  ;;  %v1090_v53 = vpack.c.bf16 %v1066_v25, %v1065_v14  ;;  %v1030_v30 = vmul.f32 %v6210_v57, %v992_v45  ;;  %v6351_v42 = vshrl.u32 %v1109_v61, 7  ;;  %1611 = vst.msk [vmem:[#allocation2 + $0x238] sm:$0xff] %vm589_vm0, %v5789_v48  ;;  %1614 = vst.msk [vmem:[#allocation2 + $0x40] sm:$0xff] %vm589_vm0, %v5789_v48 }
 0x183   : > { %v5559_v28 = vpop.eup %5558  ;;  %v1029_v24 = vmul.f32 %v6210_v57, %v991_v1  ;;  %1615 = vst.msk [vmem:[#allocation2 + $0x60] sm:$0xff] %vm589_vm0, %v5789_v48  ;;  %1616 = vst.msk [vmem:[#allocation2 + $0x80] sm:$0xff] %vm589_vm0, %v5789_v48 }
 0x184   : > { %v5561_v29 = vpop.eup %5560  ;;  %v1068_v20 = vadd.f32 %v6223_v44, %v1030_v30  ;;  %v994_v50 = vmul.f32 %v5559_v28, %v6171_v16  ;;  %v6361_v51 = vsub.s32 0, %v6351_v42  ;;  %v6364_v33 = vsub.s32 2, %v6351_v42  ;;  %1617 = vst.msk [vmem:[#allocation2 + $0xa0] sm:$0xff] %vm589_vm0, %v5789_v48  ;;  %1618 = vst.msk [vmem:[#allocation2 + $0xc0] sm:$0xff] %vm589_vm0, %v5789_v48 }
 0x185   : > { %v1067_v49 = vadd.f32 %v6223_v44, %v1029_v24  ;;  %v993_v8 = vmul.f32 %v5561_v29, %v6165_v23  ;;  %v1123_v35 = vsub.s32 3, %v6351_v42  ;;  %1619 = vst.msk [vmem:[#allocation2 + $0xe0] sm:$0xff] %vm589_vm0, %v5789_v48  ;;  %1620 = vst.msk [vmem:[#allocation2 + $0x100] sm:$0xff] %vm589_vm0, %v5789_v48 }
 0x186   : > { %v1032_v16 = vmul.f32 %v6210_v57, %v994_v50  ;;  %v6369_v43 = vrot.slane %v6358_v15, %v6361_v51  ;;  %v6373_v23 = vrot.slane %v6358_v15, %v6364_v33  ;;  %1621 = vst.msk [vmem:[#allocation2 + $0x120] sm:$0xff] %vm589_vm0, %v5789_v48  ;;  %1622 = vst.msk [vmem:[#allocation2 + $0x140] sm:$0xff] %vm589_vm0, %v5789_v48 }
 0x187   : > { %v1091_v60 = vpack.c.bf16 %v1068_v20, %v1067_v49  ;;  %v1031_v13 = vmul.f32 %v6210_v57, %v993_v8  ;;  %v6382_v34 = vrot.slane %v6358_v15, %v1123_v35  ;;  %1623 = vst.msk [vmem:[#allocation2 + $0x160] sm:$0xff] %vm589_vm0, %v5789_v48  ;;  %1624 = vst.msk [vmem:[#allocation2 + $0x180] sm:$0xff] %vm589_vm0, %v5789_v48 }
 0x188   : > { %9442 = vst [vmem:[#allocation35_spill] sm:$0xff] %v6373_v23  ;;  %v1070_v47 = vadd.f32 %v6223_v44, %v1032_v16  ;;  %1625 = vst.msk [vmem:[#allocation2 + $0x1a0] sm:$0xff] %vm589_vm0, %v5789_v48 }
 0x189   : > { %5012 = vmatmul.mubr.msk.bf16.gmra.mxu0 %vm589_vm0, %v1090_v53  ;;  %5028 = vmatmul.mubr.msk.bf16.gmra.mxu1 %vm589_vm0, %v1090_v53  ;;  %9443 = vst [vmem:[#allocation36_spill] sm:$0xff] %v6382_v34  ;;  %v1069_v56 = vadd.f32 %v6223_v44, %v1031_v13  ;;  %1626 = vst.msk [vmem:[#allocation2 + $0x1c0] sm:$0xff] %vm589_vm0, %v5789_v48 }
 0x18a   : > { %1329 = vmatprep.mubr.bf16.mxu0 %v9441_v41  ;;  %1522 = vmatprep.mubr.bf16.mxu1 %v9441_v41  ;;  %1627 = vst.msk [vmem:[#allocation2 + $0x1e0] sm:$0xff] %vm589_vm0, %v5789_v48  ;;  %1628 = vst.msk [vmem:[#allocation2 + $0x200] sm:$0xff] %vm589_vm0, %v5789_v48 }
 0x18b   : > { %1631 = vst.msk [vmem:[#allocation2 + $0x38] sm:$0xff] %vm589_vm0, %v5789_v48  ;;  %1632 = vst.msk [vmem:[#allocation2 + $0x58] sm:$0xff] %vm589_vm0, %v5789_v48  ;;  %v1092_v6 = vpack.c.bf16 %v1070_v47, %v1069_v56 }
 0x18c   : > { %1633 = vst.msk [vmem:[#allocation2 + $0x78] sm:$0xff] %vm589_vm0, %v5789_v48  ;;  %1634 = vst.msk [vmem:[#allocation2 + $0x98] sm:$0xff] %vm589_vm0, %v5789_v48 }
 0x18d   : > { %1635 = vst.msk [vmem:[#allocation2 + $0xb8] sm:$0xff] %vm589_vm0, %v5789_v48  ;;  %1636 = vst.msk [vmem:[#allocation2 + $0xd8] sm:$0xff] %vm589_vm0, %v5789_v48 }
 0x18e   : > { %1637 = vst.msk [vmem:[#allocation2 + $0xf8] sm:$0xff] %vm589_vm0, %v5789_v48  ;;  %1638 = vst.msk [vmem:[#allocation2 + $0x118] sm:$0xff] %vm589_vm0, %v5789_v48 }
 0x18f   : > { %1639 = vst.msk [vmem:[#allocation2 + $0x138] sm:$0xff] %vm589_vm0, %v5789_v48  ;;  %1640 = vst.msk [vmem:[#allocation2 + $0x158] sm:$0xff] %vm589_vm0, %v5789_v48 }
 0x190   : > { %1641 = vst.msk [vmem:[#allocation2 + $0x178] sm:$0xff] %vm589_vm0, %v5789_v48  ;;  %1642 = vst.msk [vmem:[#allocation2 + $0x198] sm:$0xff] %vm589_vm0, %v5789_v48 }
 0x191   : > { %5013 = vmatmul.mubr.msk.bf16.gmra.mxu0 %vm589_vm0, %v1091_v60  ;;  %5029 = vmatmul.mubr.msk.bf16.gmra.mxu1 %vm589_vm0, %v1091_v60  ;;  %1643 = vst.msk [vmem:[#allocation2 + $0x1b8] sm:$0xff] %vm589_vm0, %v5789_v48  ;;  %1644 = vst.msk [vmem:[#allocation2 + $0x1d8] sm:$0xff] %vm589_vm0, %v5789_v48 }
 0x192   : > { %1339 = vmatprep.mubr.bf16.mxu0 %v9441_v41  ;;  %1532 = vmatprep.mubr.bf16.mxu1 %v9441_v41  ;;  %1645 = vst.msk [vmem:[#allocation2 + $0x1f8] sm:$0xff] %vm589_vm0, %v5789_v48  ;;  %1646 = vst.msk [vmem:[#allocation2 + $0x218] sm:$0xff] %vm589_vm0, %v5789_v48 }
 0x193   : > { %1612 = vst.msk [vmem:[#allocation2] sm:$0xff] %vm589_vm0, %v5789_v48  ;;  %1629 = vst.msk [vmem:[#allocation2 + $0x220] sm:$0xff] %vm589_vm0, %v5789_v48 }
 0x194   : > { %1630 = vst.msk [vmem:[#allocation2 + $0x18] sm:$0xff] %vm589_vm0, %v5789_v48  ;;  %1647 = vst.msk [vmem:[#allocation2 + $0x238] sm:$0xff] %vm589_vm0, %v5789_v48 }
 0x199   : > { %5014 = vmatmul.mubr.msk.bf16.gmra.mxu0 %vm589_vm0, %v1092_v6  ;;  %5030 = vmatmul.mubr.msk.bf16.gmra.mxu1 %vm589_vm0, %v1092_v6 }
 0x19a   : > { %1349 = vmatprep.mubr.bf16.mxu0 %v9441_v41  ;;  %1542 = vmatprep.mubr.bf16.mxu1 %v9441_v41 }
 0x1c6   : > { %v845_v25 = vpop.xlane.xlu0 %844 }
 0x1c7   : > { %v899_v45 = vmul.f32 0.03125, %v845_v25 }
 0x1c9   : > { %v931_v14 = vadd.f32 1e-05, %v899_v45 }
 0x1ca   : > { %v848_v1 = vpop.xlane.xlu1 %847 }
 0x1cb   : > { %5562 = vrsqrt.f32 %v931_v14  ;;  %v900_v53 = vmul.f32 0.03125, %v848_v1 }
 0x1cd   : > { %v932_v30 = vadd.f32 1e-05, %v900_v53 }
 0x1ce   : > { %v851_v28 = vpop.xlane.xlu0 %850 }
 0x1cf   : > { %5564 = vrsqrt.f32 %v932_v30  ;;  %v901_v24 = vmul.f32 0.03125, %v851_v28 }
 0x1d1   : > { %v933_v29 = vadd.f32 1e-05, %v901_v24 }
 0x1d2   : > { %v854_v61 = vpop.xlane.xlu1 %853 }
 0x1d3   : > { %5566 = vrsqrt.f32 %v933_v29  ;;  %v902_v20 = vmul.f32 0.03125, %v854_v61 }
 0x1d5   : > { %v934_v50 = vadd.f32 1e-05, %v902_v20 }
 0x1d6   : > { %v857_v49 = vpop.xlane.xlu0 %856 }
 0x1d7   : > { %5568 = vrsqrt.f32 %v934_v50  ;;  %v903_v8 = vmul.f32 0.03125, %v857_v49 }
 0x1d8   : > { %v5563_v60 = vpop.eup %5562 }
 0x1d9   : > { %v935_v16 = vadd.f32 1e-05, %v903_v8  ;;  %v995_v35 = vmul.f32 %v5563_v60, %v6184_v38 }
 0x1db   : > { %5570 = vrsqrt.f32 %v935_v16  ;;  %v860_v13 = vpop.xlane.xlu1 %859  ;;  %v1033_v6 = vmul.f32 %v6210_v57, %v995_v35 }
 0x1dc   : > { %v5565_v47 = vpop.eup %5564  ;;  %v904_v56 = vmul.f32 0.03125, %v860_v13 }
 0x1dd   : > { %v996_v48 = vmul.f32 %v5565_v47, %v6189_v52  ;;  %v1071_v28 = vadd.f32 %v6223_v44, %v1033_v6 }
 0x1de   : > { %v936_v25 = vadd.f32 1e-05, %v904_v56  ;;  %v863_v45 = vpop.xlane.xlu0 %862 }
 0x1df   : > { %v905_v14 = vmul.f32 0.03125, %v863_v45  ;;  %v1034_v1 = vmul.f32 %v6210_v57, %v996_v48 }
 0x1e0   : > { %v5567_v53 = vpop.eup %5566  ;;  %5572 = vrsqrt.f32 %v936_v25 }
 0x1e1   : > { %v937_v30 = vadd.f32 1e-05, %v905_v14  ;;  %v1072_v38 = vadd.f32 %v6223_v44, %v1034_v1  ;;  %v997_v24 = vmul.f32 %v5567_v53, %v6195_v46 }
 0x1e3   : > { %5574 = vrsqrt.f32 %v937_v30  ;;  %v866_v29 = vpop.xlane.xlu1 %865  ;;  %v1093_v61 = vpack.c.bf16 %v1072_v38, %v1071_v28  ;;  %v1035_v49 = vmul.f32 %v6210_v57, %v997_v24 }
 0x1e4   : > { %v5569_v52 = vpop.eup %5568  ;;  %v906_v20 = vmul.f32 0.03125, %v866_v29 }
 0x1e5   : > { %5015 = vmatmul.mubr.msk.bf16.gmra.mxu0 %vm589_vm0, %v1093_v61  ;;  %5031 = vmatmul.mubr.msk.bf16.gmra.mxu1 %vm589_vm0, %v1093_v61  ;;  %v998_v50 = vmul.f32 %v5569_v52, %v6201_v59  ;;  %v1073_v47 = vadd.f32 %v6223_v44, %v1035_v49 }
 0x1e6   : > { %v938_v8 = vadd.f32 1e-05, %v906_v20  ;;  %v869_v60 = vpop.xlane.xlu0 %868  ;;  %1359 = vmatprep.mubr.bf16.mxu0 %v9441_v41  ;;  %1552 = vmatprep.mubr.bf16.mxu1 %v9441_v41 }
 0x1e7   : > { %v907_v46 = vmul.f32 0.03125, %v869_v60  ;;  %v1036_v16 = vmul.f32 %v6210_v57, %v998_v50 }
 0x1e8   : > { %v5571_v35 = vpop.eup %5570  ;;  %5576 = vrsqrt.f32 %v938_v8 }
 0x1e9   : > { %v939_v13 = vadd.f32 1e-05, %v907_v46  ;;  %v1074_v56 = vadd.f32 %v6223_v44, %v1036_v16  ;;  %v999_v59 = vmul.f32 %v5571_v35, %v6213_v10 }
 0x1eb   : > { %5578 = vrsqrt.f32 %v939_v13  ;;  %v872_v48 = vpop.xlane.xlu1 %871  ;;  %v1094_v6 = vpack.c.bf16 %v1074_v56, %v1073_v47  ;;  %v1037_v30 = vmul.f32 %v6210_v57, %v999_v59 }
 0x1ec   : > { %v908_v25 = vmul.f32 0.03125, %v872_v48 }
 0x1ed   : > { %v5573_v45 = vpop.eup %5572  ;;  %5016 = vmatmul.mubr.msk.bf16.gmra.mxu0 %vm589_vm0, %v1094_v6  ;;  %5032 = vmatmul.mubr.msk.bf16.gmra.mxu1 %vm589_vm0, %v1094_v6  ;;  %v1075_v29 = vadd.f32 %v6223_v44, %v1037_v30 }
 0x1ee   : > { %v940_v14 = vadd.f32 1e-05, %v908_v25  ;;  %v875_v1 = vpop.xlane.xlu0 %874  ;;  %1369 = vmatprep.mubr.bf16.mxu0 %v9441_v41  ;;  %1562 = vmatprep.mubr.bf16.mxu1 %v9441_v41  ;;  %v1000_v53 = vmul.f32 %v5573_v45, %v6227_v63 }
 0x1ef   : > { %v909_v10 = vmul.f32 0.03125, %v875_v1 }
 0x1f0   : > { %v5575_v28 = vpop.eup %5574  ;;  %5580 = vrsqrt.f32 %v940_v14  ;;  %v1038_v38 = vmul.f32 %v6210_v57, %v1000_v53 }
 0x1f1   : > { %v941_v24 = vadd.f32 1e-05, %v909_v10  ;;  %v1001_v52 = vmul.f32 %v5575_v28, %v6236_v58 }
 0x1f2   : > { %v1076_v61 = vadd.f32 %v6223_v44, %v1038_v38 }
 0x1f3   : > { %5582 = vrsqrt.f32 %v941_v24  ;;  %v878_v20 = vpop.xlane.xlu1 %877  ;;  %v1039_v46 = vmul.f32 %v6210_v57, %v1001_v52  ;;  %v6491_v24 = vsub.s32 1, %v6351_v42 }
 0x1f4   : > { %v910_v50 = vmul.f32 0.03125, %v878_v20  ;;  %v1095_v49 = vpack.c.bf16 %v1076_v61, %v1075_v29 }
 0x1f5   : > { %v5577_v8 = vpop.eup %5576  ;;  %v1077_v35 = vadd.f32 %v6223_v44, %v1039_v46 }
 0x1f6   : > { %v942_v63 = vadd.f32 1e-05, %v910_v50  ;;  %5017 = vmatmul.mubr.msk.bf16.gmra.mxu0 %vm589_vm0, %v1095_v49  ;;  %5033 = vmatmul.mubr.msk.bf16.gmra.mxu1 %vm589_vm0, %v1095_v49  ;;  %v1002_v60 = vmul.f32 %v5577_v8, %v6249_v54 }
 0x1f7   : > { %1379 = vmatprep.mubr.bf16.mxu0 %v9441_v41  ;;  %1572 = vmatprep.mubr.bf16.mxu1 %v9441_v41 }
 0x1f8   : > { %v5579_v16 = vpop.eup %5578  ;;  %5584 = vrsqrt.f32 %v942_v63  ;;  %v1040_v58 = vmul.f32 %v6210_v57, %v1002_v60 }
 0x1f9   : > { %v1003_v47 = vmul.f32 %v5579_v16, %v6258_v37 }
 0x1fa   : > { %v1078_v13 = vadd.f32 %v6223_v44, %v1040_v58  ;;  %v1681_v58 = vld [vmem:[%s9330_s5] sm:$0x7] }
 0x1fb   : > { %v1041_v48 = vmul.f32 %v6210_v57, %v1003_v47 }
 0x1fc   : > { %v1096_v56 = vpack.c.bf16 %v1078_v13, %v1077_v35  ;;  %v1682_v35 = vld [vmem:[%s9330_s5 + $0x4] sm:$0x7] }
 0x1fd   : > { %v5581_v59 = vpop.eup %5580  ;;  %v1079_v45 = vadd.f32 %v6223_v44, %v1041_v48  ;;  %v1684_v48 = vld [vmem:[#allocation2 + $0x7] sm:$0xff] }
 0x1fe   : > { %5018 = vmatmul.mubr.msk.bf16.gmra.mxu0 %vm589_vm0, %v1096_v56  ;;  %5034 = vmatmul.mubr.msk.bf16.gmra.mxu1 %vm589_vm0, %v1096_v56  ;;  %v1004_v54 = vmul.f32 %v5581_v59, %v6271_v19  ;;  %v6529_v59 = vrot.slane %v1681_v58, %v6361_v51 }
 0x1ff   : > { %1389 = vmatprep.mubr.bf16.mxu0 %v9441_v41  ;;  %1582 = vmatprep.mubr.bf16.mxu1 %v9441_v41 }
 0x200   : > { %v5583_v6 = vpop.eup %5582  ;;  %v1042_v25 = vmul.f32 %v6210_v57, %v1004_v54  ;;  %v6532_v54 = vrot.slane %v1682_v35, %v6361_v51 }
 0x201   : > { %v1005_v14 = vmul.f32 %v5583_v6, %v6280_v55 }
 0x202   : > { %v1080_v37 = vadd.f32 %v6223_v44, %v1042_v25  ;;  %v1683_v25 = vld [vmem:[%s9330_s5 + $0x8] sm:$0x7] }
 0x203   : > { %v1043_v30 = vmul.f32 %v6210_v57, %v1005_v14 }
 0x204   : > { %v1097_v1 = vpack.c.bf16 %v1080_v37, %v1079_v45 }
 0x205   : > { %v5585_v53 = vpop.eup %5584  ;;  %v1081_v28 = vadd.f32 %v6223_v44, %v1043_v30  ;;  %v1685_v30 = vld [vmem:[#allocation2 + $0xf] sm:$0xff] }
 0x206   : > { %5019 = vmatmul.mubr.msk.bf16.gmra.mxu0 %vm589_vm0, %v1097_v1  ;;  %5035 = vmatmul.mubr.msk.bf16.gmra.mxu1 %vm589_vm0, %v1097_v1  ;;  %v1006_v19 = vmul.f32 %v5585_v53, %v6293_v62  ;;  %v6497_v62 = vrot.slane %v6358_v15, %v6491_v24  ;;  %v1724_v53 = vmul.f32 %v6529_v59, %v1684_v48 }
 0x207   : > { %1399 = vmatprep.mubr.bf16.mxu0 %v9441_v41  ;;  %1592 = vmatprep.mubr.bf16.mxu1 %v9441_v41 }
 0x208   : > { %v1044_v10 = vmul.f32 %v6210_v57, %v1006_v19 }
 0x20a   : > { %v1082_v55 = vadd.f32 %v6223_v44, %v1044_v10  ;;  %v6545_v10 = vrot.slane %v1683_v25, %v6361_v51  ;;  %v1725_v51 = vmul.f32 %v6529_v59, %v1685_v30 }
 0x20c   : > { %v1098_v38 = vpack.c.bf16 %v1082_v55, %v1081_v28  ;;  %v1924_v55 = vld [vmem:[#allocation2 + $0x8] sm:$0xff] }
 0x20e   : > { %5020 = vmatmul.mubr.msk.bf16.gmra.mxu0 %vm589_vm0, %v1098_v38  ;;  %5036 = vmatmul.mubr.msk.bf16.gmra.mxu1 %vm589_vm0, %v1098_v38 }
 0x211   : > { %v1251_v29 = vpop.f32.mrf.mxu0  ;;  %v1444_v41 = vpop.f32.mrf.mxu1 }
 0x212   : > { %v6500_v57 = vadd.f32 %v1251_v29, %v6369_v43  ;;  %v6503_v61 = vadd.f32 %v1444_v41, %v6373_v23  ;;  %v6551_v29 = vrot.slane %v1681_v58, %v6491_v24 }
 0x213   : > { %v1253_v44 = vpop.f32.mrf.mxu0  ;;  %v1446_v52 = vpop.f32.mrf.mxu1 }
 0x214   : > { %9444 = vst [vmem:[#allocation37_spill] sm:$0xff] %v6500_v57  ;;  %9445 = vst [vmem:[#allocation38_spill] sm:$0xff] %v6503_v61  ;;  %v1254_v42 = vadd.f32 %v1253_v44, %v6497_v62  ;;  %v6507_v20 = vadd.f32 %v1446_v52, %v6382_v34  ;;  %v6558_v52 = vrot.slane %v1682_v35, %v6491_v24 }
 0x215   : > { %v1255_v50 = vpop.f32.mrf.mxu0  ;;  %v1448_v49 = vpop.f32.mrf.mxu1 }
 0x216   : > { %9446 = vst [vmem:[#allocation39_spill] sm:$0xff] %v6507_v20  ;;  %1649 = vst.msk [vmem:[#allocation2 + $0x28] sm:$0xff] %vm589_vm0, %v1254_v42  ;;  %v6511_v15 = vadd.f32 %v1255_v50, %v6369_v43  ;;  %v6514_v8 = vadd.f32 %v1448_v49, %v6373_v23 }
 0x217   : > { %v1257_v63 = vpop.f32.mrf.mxu0 }
 0x218   : > { %9447 = vst [vmem:[#allocation40_spill] sm:$0xff] %v6511_v15  ;;  %9448 = vst [vmem:[#allocation41_spill] sm:$0xff] %v6514_v8  ;;  %v1258_v60 = vadd.f32 %v1257_v63, %v6497_v62 }
 0x219   : > { %v1261_v46 = vpop.f32.mrf.mxu0 }
 0x21a   : > { %1650 = vst.msk [vmem:[#allocation2 + $0x30] sm:$0xff] %vm589_vm0, %v1258_v60  ;;  %v6519_v16 = vadd.f32 %v1261_v46, %v6369_v43  ;;  %v1964_v46 = vmul.f32 %v6551_v29, %v1924_v55  ;;  %v2164_v55 = vld [vmem:[#allocation2 + $0x9] sm:$0xff] }
 0x21b   : > { %v1263_v13 = vpop.f32.mrf.mxu0 }
 0x21c   : > { %9449 = vst [vmem:[#allocation42_spill] sm:$0xff] %v6519_v16  ;;  %v1264_v47 = vadd.f32 %v1263_v13, %v6497_v62  ;;  %v1925_v13 = vld [vmem:[#allocation2 + $0x10] sm:$0xff] }
 0x21d   : > { %v1265_v56 = vpop.f32.mrf.mxu0  ;;  %v1686_v6 = vld [vmem:[#allocation2 + $0x27] sm:$0xff] }
 0x21e   : > { %1651 = vst.msk [vmem:[#allocation2 + $0x48] sm:$0xff] %vm589_vm0, %v1264_v47  ;;  %v6539_v45 = vadd.f32 %v1265_v56, %v6369_v43  ;;  %v1792_v19 = vmul.f32 %v6532_v54, %v1686_v6  ;;  %v1926_v47 = vld [vmem:[#allocation2 + $0x28] sm:$0xff]  ;;  %v6569_v56 = vpop.f32.mrf.mxu1 }
 0x21f   : > { %v1267_v37 = vpop.f32.mrf.mxu0  ;;  %9452 = vst [vmem:[#allocation45_spill] sm:$0xff] %v6569_v56 }
 0x220   : > { %9450 = vst [vmem:[#allocation43_spill] sm:$0xff] %v6539_v45  ;;  %v1268_v14 = vadd.f32 %v1267_v37, %v6497_v62  ;;  %v1824_v49 = vadd.f32 %v1792_v19, %v1724_v53  ;;  %v6579_v19 = vrot.slane %v1681_v58, %v6364_v33  ;;  %v6591_v58 = vrot.slane %v1682_v35, %v6364_v33 }
 0x221   : > { %v1271_v1 = vpop.f32.mrf.mxu0  ;;  %v6548_v28 = vld [vmem:[#allocation2 + $0x2f] sm:$0xff]  ;;  %v6604_v35 = vrot.slane %v1683_v25, %v6364_v33 }
 0x222   : > { %1652 = vst.msk [vmem:[#allocation2 + $0x50] sm:$0xff] %vm589_vm0, %v1268_v14  ;;  %v6554_v41 = vadd.f32 %v1271_v1, %v6369_v43  ;;  %v1793_v63 = vmul.f32 %v6532_v54, %v6548_v28  ;;  %v6575_v1 = vrot.slane %v1683_v25, %v6491_v24  ;;  %v2166_v7 = vld [vmem:[#allocation2 + $0x29] sm:$0xff] }
 0x223   : > { %v1273_v38 = vpop.f32.mrf.mxu0  ;;  %v2272_v26 = vmul.f32 %v6591_v58, %v2166_v7 }
 0x224   : > { %9451 = vst [vmem:[#allocation44_spill] sm:$0xff] %v6554_v41  ;;  %v1274_v44 = vadd.f32 %v1273_v38, %v6497_v62  ;;  %v1825_v0 = vadd.f32 %v1793_v63, %v1725_v51  ;;  %v2204_v63 = vmul.f32 %v6579_v19, %v2164_v55 }
 0x225   : > { %v6561_v42 = vld [vmem:[#allocation2 + $0x47] sm:$0xff]  ;;  %v1275_v50 = vpop.f32.mrf.mxu0 }
 0x226   : > { %v1860_v60 = vmul.f32 %v6545_v10, %v6561_v42  ;;  %1653 = vst.msk [vmem:[#allocation2 + $0x68] sm:$0xff] %vm589_vm0, %v1274_v44  ;;  %v6572_v48 = vadd.f32 %v1275_v50, %v6369_v43  ;;  %v6581_v30 = vld [vmem:[#allocation2 + $0x48] sm:$0xff]  ;;  %v1965_v44 = vmul.f32 %v6551_v29, %v1925_v13  ;;  %v2032_v50 = vmul.f32 %v6558_v52, %v1926_v47  ;;  %v2165_v13 = vld [vmem:[#allocation2 + $0x11] sm:$0xff] }
 0x227   : > { %v1277_v37 = vpop.f32.mrf.mxu0  ;;  %v1794_v39 = vmul.f32 %v6532_v54, %v6561_v42  ;;  %v2100_v51 = vmul.f32 %v6575_v1, %v6581_v30 }
 0x228   : > { %9453 = vst [vmem:[#allocation46_spill] sm:$0xff] %v6572_v48  ;;  %v1892_v14 = vadd.f32 %v1860_v60, %v1824_v49  ;;  %v1278_v53 = vadd.f32 %v1277_v37, %v6497_v62  ;;  %v1927_v60 = vld [vmem:[#allocation2 + $0x30] sm:$0xff]  ;;  %v6593_v37 = vpop.f32.mrf.mxu1 }
 0x229   : > { %v6583_v38 = vld [vmem:[#allocation2 + $0x4f] sm:$0xff]  ;;  %v1281_v9 = vpop.f32.mrf.mxu0  ;;  %9454 = vst [vmem:[#allocation47_spill] sm:$0xff] %v6593_v37  ;;  %v2033_v27 = vmul.f32 %v6558_v52, %v1927_v60  ;;  %v1967_v11 = vmul.f32 %v6551_v29, %v1927_v60 }
 0x22a   : > { %v1996_v49 = vadd.f32 %v1964_v46, %v1892_v14  ;;  %v1861_v24 = vmul.f32 %v6545_v10, %v6583_v38  ;;  %1654 = vst.msk [vmem:[#allocation2 + $0x70] sm:$0xff] %vm589_vm0, %v1278_v53  ;;  %v1726_v14 = vmul.f32 %v6529_v59, %v1686_v6  ;;  %v6601_v53 = vld [vmem:[#allocation2 + $0x50] sm:$0xff]  ;;  %v1795_v6 = vmul.f32 %v6532_v54, %v6583_v38 }
 0x22b   : > { %v1283_v40 = vpop.f32.mrf.mxu0  ;;  %v2035_v60 = vmul.f32 %v6558_v52, %v6601_v53 }
 0x22c   : > { %v2064_v32 = vadd.f32 %v2032_v50, %v1996_v49  ;;  %v1893_v46 = vadd.f32 %v1861_v24, %v1825_v0  ;;  %v2205_v49 = vmul.f32 %v6579_v19, %v2165_v13  ;;  %v1826_v55 = vadd.f32 %v1794_v39, %v1726_v14  ;;  %v6611_v0 = vpop.f32.mrf.mxu1  ;;  %v6615_v24 = vld [vmem:[#allocation2 + $0x49] sm:$0xff] }
 0x22d   : > { %v6606_v36 = vld [vmem:[#allocation2 + $0x67] sm:$0xff]  ;;  %v1285_v31 = vpop.f32.mrf.mxu0  ;;  %9455 = vst [vmem:[#allocation48_spill] sm:$0xff] %v6611_v0  ;;  %v1966_v39 = vmul.f32 %v6551_v29, %v1926_v47  ;;  %v1727_v13 = vmul.f32 %v6529_v59, %v6548_v28  ;;  %v1284_v12 = vadd.f32 %v1283_v40, %v6497_v62  ;;  %v2034_v47 = vmul.f32 %v6558_v52, %v6581_v30 }
 0x22e   : > { %v2132_v22 = vadd.f32 %v2100_v51, %v2064_v32  ;;  %v1997_v50 = vadd.f32 %v1965_v44, %v1893_v46  ;;  %v1862_v33 = vmul.f32 %v6545_v10, %v6606_v36  ;;  %v2101_v32 = vmul.f32 %v6575_v1, %v6601_v53  ;;  %v2167_v51 = vld [vmem:[#allocation2 + $0x31] sm:$0xff] }
 0x22f   : > { %v1287_v25 = vpop.f32.mrf.mxu0  ;;  %v6622_v44 = vadd.f32 %v1281_v9, %v6369_v43  ;;  %v6634_v9 = vld [vmem:[#allocation2 + $0x68] sm:$0xff]  ;;  %v1827_v28 = vadd.f32 %v1795_v6, %v1727_v13  ;;  %1655 = vst.msk [vmem:[#allocation2 + $0x88] sm:$0xff] %vm589_vm0, %v1284_v12 }
 0x230   : > { %v2236_v21 = vadd.f32 %v2204_v63, %v2132_v22  ;;  %v2065_v18 = vadd.f32 %v2033_v27, %v1997_v50  ;;  %v1894_v46 = vadd.f32 %v1862_v33, %v1826_v55  ;;  %v2340_v63 = vmul.f32 %v6604_v35, %v6615_v24  ;;  %v6638_v50 = vpop.f32.mrf.mxu1  ;;  %v6640_v55 = vld [vmem:[#allocation2 + $0x51] sm:$0xff] }
 0x231   : > { %9456 = vst [vmem:[#allocation49_spill] sm:$0xff] %v6622_v44  ;;  %v6627_v14 = vld [vmem:[#allocation2 + $0x6f] sm:$0xff]  ;;  %v6630_v17 = vpop.f32.mrf.mxu0  ;;  %9457 = vst [vmem:[#allocation50_spill] sm:$0xff] %v6638_v50  ;;  %v2102_v6 = vmul.f32 %v6575_v1, %v6634_v9  ;;  %v2341_v12 = vmul.f32 %v6604_v35, %v6640_v55 }
 0x232   : > { %v2304_v22 = vadd.f32 %v2272_v26, %v2236_v21  ;;  %v2133_v27 = vadd.f32 %v2101_v32, %v2065_v18  ;;  %v1998_v33 = vadd.f32 %v1966_v39, %v1894_v46  ;;  %v1863_v40 = vmul.f32 %v6545_v10, %v6627_v14 }
 0x233   : > { %v6645_v18 = vpop.f32.mrf.mxu0  ;;  %v2273_v21 = vmul.f32 %v6591_v58, %v2167_v51  ;;  %v2206_v46 = vmul.f32 %v6579_v19, %v2166_v7 }
 0x234   : > { %v2237_v26 = vadd.f32 %v2205_v49, %v2133_v27  ;;  %v6648_v32 = vadd.f32 %v2340_v63, %v2304_v22  ;;  %v2066_v5 = vadd.f32 %v2034_v47, %v1998_v33  ;;  %v1895_v13 = vadd.f32 %v1863_v40, %v1827_v28  ;;  %v6659_v49 = vld [vmem:[#allocation2 + $0x70] sm:$0xff]  ;;  %v6665_v27 = vpop.f32.mrf.mxu1 }
 0x235   : > { %v6653_v39 = vpop.f32.mrf.mxu0  ;;  %v2274_v22 = vmul.f32 %v6591_v58, %v6615_v24  ;;  %9458 = vst [vmem:[#allocation51_spill] sm:$0xff] %v6665_v27  ;;  %v1796_v40 = vmul.f32 %v6532_v54, %v6606_v36 }
 0x236   : > { %v2305_v3 = vadd.f32 %v2273_v21, %v2237_v26  ;;  %v2436_v4 = vmul.f32 0.044715, %v6648_v32  ;;  %v2134_v63 = vadd.f32 %v2102_v6, %v2066_v5  ;;  %v1999_v47 = vadd.f32 %v1967_v11, %v1895_v13  ;;  %v6674_v21 = vld [vmem:[#allocation2 + $0x69] sm:$0xff] }
 0x237   : > { %v6667_v28 = vpop.f32.mrf.mxu0  ;;  %v6677_v26 = vadd.f32 %v1285_v31, %v6369_v43  ;;  %v2103_v5 = vmul.f32 %v6575_v1, %v6659_v49  ;;  %v1288_v11 = vadd.f32 %v1287_v25, %v6497_v62  ;;  %v6687_v13 = vld [vmem:[#allocation2 + $0x87] sm:$0xff]  ;;  %v6690_v31 = vpop.f32.mrf.mxu1  ;;  %v2276_v16 = vmul.f32 %v6591_v58, %v6674_v21 }
 0x238   : > { %v6669_v7 = vadd.f32 %v2341_v12, %v2305_v3  ;;  %v2468_v33 = vmul.f32 %v2436_v4, %v6648_v32  ;;  %v2238_v2 = vadd.f32 %v2206_v46, %v2134_v63  ;;  %v2067_v48 = vadd.f32 %v2035_v60, %v1999_v47  ;;  %v6717_v57 = vld [vmem:[#allocation2 + $0x88] sm:$0xff] }
 0x239   : > { %9459 = vst [vmem:[#allocation52_spill] sm:$0xff] %v6677_v26  ;;  %v6682_v6 = vpop.f32.mrf.mxu0  ;;  %v1728_v3 = vmul.f32 %v6529_v59, %v6561_v42  ;;  %v2207_v12 = vmul.f32 %v6579_v19, %v2167_v51  ;;  %v2342_v63 = vmul.f32 %v6604_v35, %v6674_v21  ;;  %1656 = vst.msk [vmem:[#allocation2 + $0x90] sm:$0xff] %vm589_vm0, %v1288_v11  ;;  %v6699_v26 = vld [vmem:[#allocation2 + $0x71] sm:$0xff] }
 0x23a   : > { %v2437_v4 = vmul.f32 0.044715, %v6669_v7  ;;  %v2135_v46 = vadd.f32 %v2103_v5, %v2067_v48  ;;  %v2306_v60 = vadd.f32 %v2274_v22, %v2238_v2  ;;  %v2500_v42 = vmul.f32 %v2468_v33, %v6648_v32 }
 0x23b   : > { %v6695_v25 = vpop.f32.mrf.mxu0  ;;  %v1828_v41 = vadd.f32 %v1796_v40, %v1728_v3  ;;  %v1864_v51 = vmul.f32 %v6545_v10, %v6687_v13  ;;  %v2275_v2 = vmul.f32 %v6591_v58, %v6640_v55  ;;  %v1968_v11 = vmul.f32 %v6551_v29, %v6581_v30  ;;  %v6712_v40 = vpop.f32.mrf.mxu1 }
 0x23c   : > { %v2469_v47 = vmul.f32 %v2437_v4, %v6669_v7  ;;  %v2239_v48 = vadd.f32 %v2207_v12, %v2135_v46  ;;  %v6705_v22 = vadd.f32 %v2342_v63, %v2306_v60  ;;  %9460 = vst [vmem:[#allocation53_spill] sm:$0xff] %v6712_v40  ;;  %v2343_v44 = vmul.f32 %v6604_v35, %v6699_v26 }
 0x23d   : > { %v6707_v5 = vpop.f32.mrf.mxu0  ;;  %v1896_v33 = vadd.f32 %v1864_v51, %v1828_v41  ;;  %v6721_v12 = vadd.f32 %v6630_v17, %v6369_v43  ;;  %v2532_v46 = vadd.f32 %v2500_v42, %v6648_v32  ;;  %v2036_v30 = vmul.f32 %v6558_v52, %v6634_v9 }
 0x23e   : > { %v2501_v4 = vmul.f32 %v2469_v47, %v6669_v7  ;;  %v2307_v3 = vadd.f32 %v2275_v2, %v2239_v48  ;;  %v2438_v15 = vmul.f32 0.044715, %v6705_v22  ;;  %v1797_v41 = vmul.f32 %v6532_v54, %v6627_v14 }
 0x23f   : > { %9461 = vst [vmem:[#allocation54_spill] sm:$0xff] %v6721_v12  ;;  %v2000_v60 = vadd.f32 %v1968_v11, %v1896_v33  ;;  %v1294_v2 = vadd.f32 %v6645_v18, %v6497_v62  ;;  %v6734_v17 = vpop.f32.mrf.mxu0  ;;  %v1729_v42 = vmul.f32 %v6529_v59, %v6583_v38  ;;  %v2104_v12 = vmul.f32 %v6575_v1, %v6717_v57  ;;  %v6748_v11 = vpop.f32.mrf.mxu1 }
 0x240   : > { %v2533_v63 = vadd.f32 %v2501_v4, %v6669_v7  ;;  %v6729_v47 = vadd.f32 %v2343_v44, %v2307_v3  ;;  %v2470_v51 = vmul.f32 %v2438_v15, %v6705_v22  ;;  %v6740_v45 = vld [vmem:[#allocation2 + $0x8f] sm:$0xff]  ;;  %v6744_v44 = vadd.f32 %v6653_v39, %v6369_v43 }
 0x241   : > { %v2068_v48 = vadd.f32 %v2036_v30, %v2000_v60  ;;  %v2208_v15 = vmul.f32 %v6579_v19, %v6615_v24  ;;  %1657 = vst.msk [vmem:[#allocation2 + $0xa8] sm:$0xff] %vm589_vm0, %v1294_v2  ;;  %v2564_v38 = vmul.f32 0.7978846, %v2532_v46  ;;  %v1829_v33 = vadd.f32 %v1797_v41, %v1729_v42  ;;  %v6762_v2 = vld [vmem:[#allocation2 + $0x89] sm:$0xff]  ;;  %v6795_v8 = vld [vmem:[#allocation2 + $0x91] sm:$0xff] }
 0x242   : > { %9462 = vst [vmem:[#allocation55_spill] sm:$0xff] %v6744_v44  ;;  %v2439_v18 = vmul.f32 0.044715, %v6729_v47  ;;  %v2502_v4 = vmul.f32 %v2470_v51, %v6705_v22  ;;  %v1865_v30 = vmul.f32 %v6545_v10, %v6740_v45  ;;  %v2565_v60 = vmul.f32 0.7978846, %v2533_v63  ;;  %v6756_v44 = vpop.f32.mrf.mxu0  ;;  %v6768_v63 = vpop.f32.mrf.mxu1  ;;  %v6770_v42 = vld [vmem:[#allocation2 + $0x90] sm:$0xff] }
 0x243   : > { %v2136_v3 = vadd.f32 %v2104_v12, %v2068_v48  ;;  %v1969_v24 = vmul.f32 %v6551_v29, %v6601_v53  ;;  %v2037_v12 = vmul.f32 %v6558_v52, %v6659_v49  ;;  %9463 = vst [vmem:[#allocation56_spill] sm:$0xff] %v6768_v63  ;;  %5586 = vtanh.f32 %v2564_v38 }
 0x244   : > { %v2471_v39 = vmul.f32 %v2439_v18, %v6729_v47  ;;  %v1897_v20 = vadd.f32 %v1865_v30, %v1829_v33  ;;  %v2534_v41 = vadd.f32 %v2502_v4, %v6705_v22  ;;  %v1798_v53 = vmul.f32 %v6532_v54, %v6687_v13  ;;  %v1313_v4 = vpop.f32.mrf.mxu0 }
 0x245   : > { %v2240_v51 = vadd.f32 %v2208_v15, %v2136_v3  ;;  %5588 = vtanh.f32 %v2565_v60  ;;  %v1730_v18 = vmul.f32 %v6529_v59, %v6606_v36  ;;  %v2344_v3 = vmul.f32 %v6604_v35, %v6762_v2 }
 0x246   : > { %v2503_v46 = vmul.f32 %v2471_v39, %v6729_v47  ;;  %v2001_v48 = vadd.f32 %v1969_v24, %v1897_v20  ;;  %v2105_v39 = vmul.f32 %v6575_v1, %v6770_v42  ;;  %v1298_v20 = vadd.f32 %v6667_v28, %v6497_v62  ;;  %v6791_v24 = vpop.f32.mrf.mxu1 }
 0x247   : > { %v2308_v15 = vadd.f32 %v2276_v16, %v2240_v51  ;;  %v6787_v16 = vadd.f32 %v6682_v6, %v6369_v43  ;;  %v2209_v36 = vmul.f32 %v6579_v19, %v6640_v55  ;;  %v2566_v60 = vmul.f32 0.7978846, %v2534_v41  ;;  %v6803_v41 = vpop.f32.mrf.mxu0 }
 0x248   : > { %v2535_v33 = vadd.f32 %v2503_v46, %v6729_v47  ;;  %v2069_v30 = vadd.f32 %v2037_v12, %v2001_v48  ;;  %v6781_v38 = vld [vmem:[#allocation2 + $0xa7] sm:$0xff]  ;;  %v1830_v46 = vadd.f32 %v1798_v53, %v1730_v18  ;;  %1658 = vst.msk [vmem:[#allocation2 + $0xb0] sm:$0xff] %vm589_vm0, %v1298_v20  ;;  %v1970_v6 = vmul.f32 %v6551_v29, %v6634_v9 }
 0x249   : > { %9464 = vst [vmem:[#allocation57_spill] sm:$0xff] %v6787_v16  ;;  %v6793_v51 = vadd.f32 %v2344_v3, %v2308_v15  ;;  %v1866_v28 = vmul.f32 %v6545_v10, %v6781_v38  ;;  %v2277_v15 = vmul.f32 %v6591_v58, %v6699_v26  ;;  %v2038_v53 = vmul.f32 %v6558_v52, %v6717_v57  ;;  %v6809_v3 = vpop.f32.mrf.mxu1 }
 0x24a   : > { %v2567_v12 = vmul.f32 0.7978846, %v2535_v33  ;;  %v2137_v48 = vadd.f32 %v2105_v39, %v2069_v30  ;;  %5590 = vtanh.f32 %v2566_v60  ;;  %9465 = vst [vmem:[#allocation58_spill] sm:$0xff] %v6809_v3  ;;  %v2345_v30 = vmul.f32 %v6604_v35, %v6795_v8  ;;  %v6814_v39 = vld [vmem:[#allocation2 + $0xa8] sm:$0xff] }
 0x24b   : > { %v2440_v55 = vmul.f32 0.044715, %v6793_v51  ;;  %v1898_v33 = vadd.f32 %v1866_v28, %v1830_v46  ;;  %v1304_v20 = vadd.f32 %v6695_v25, %v6497_v62  ;;  %v1731_v60 = vmul.f32 %v6529_v59, %v6627_v14  ;;  %v6828_v28 = vpop.f32.mrf.mxu0 }
 0x24c   : > { %v2241_v18 = vadd.f32 %v2209_v36, %v2137_v48  ;;  %5592 = vtanh.f32 %v2567_v12  ;;  %v6820_v36 = vadd.f32 %v6707_v5, %v6369_v43  ;;  %v1308_v48 = vadd.f32 %v6734_v17, %v6497_v62 }
 0x24d   : > { %v2472_v9 = vmul.f32 %v2440_v55, %v6793_v51  ;;  %v2002_v61 = vadd.f32 %v1970_v6, %v1898_v33  ;;  %1659 = vst.msk [vmem:[#allocation2 + $0xc8] sm:$0xff] %vm589_vm0, %v1304_v20  ;;  %v1799_v25 = vmul.f32 %v6532_v54, %v6740_v45  ;;  %v2106_v5 = vmul.f32 %v6575_v1, %v6814_v39  ;;  %v6838_v55 = vpop.f32.mrf.mxu1 }
 0x24e   : > { %v2309_v16 = vadd.f32 %v2277_v15, %v2241_v18  ;;  %9466 = vst [vmem:[#allocation59_spill] sm:$0xff] %v6820_v36  ;;  %v1971_v14 = vmul.f32 %v6551_v29, %v6659_v49  ;;  %1660 = vst.msk [vmem:[#allocation2 + $0xd0] sm:$0xff] %vm589_vm0, %v1308_v48  ;;  %v6846_v17 = vadd.f32 %v6756_v44, %v6369_v43  ;;  %v2405_v20 = vmul.f32 0.5, %v6669_v7 }
 0x24f   : > { %v2504_v46 = vmul.f32 %v2472_v9, %v6793_v51  ;;  %v2070_v6 = vadd.f32 %v2038_v53, %v2002_v61  ;;  %v6841_v18 = vld [vmem:[#allocation2 + $0xaf] sm:$0xff]  ;;  %v1314_v61 = vadd.f32 %v1313_v4, %v6497_v62  ;;  %v6853_v49 = vmul.f32 %v6579_v19, %v6699_v26  ;;  %v6861_v4 = vpop.f32.mrf.mxu0 }
 0x250   : > { %v6832_v12 = vadd.f32 %v2345_v30, %v2309_v16  ;;  %9467 = vst [vmem:[#allocation60_spill] sm:$0xff] %v6846_v17  ;;  %v2210_v16 = vmul.f32 %v6579_v19, %v6674_v21  ;;  %v5587_v30 = vpop.eup %5586  ;;  %v2404_v9 = vmul.f32 0.5, %v6648_v32  ;;  %v1867_v44 = vmul.f32 %v6545_v10, %v6841_v18 }
 0x251   : > { %v2536_v15 = vadd.f32 %v2504_v46, %v6793_v51  ;;  %v2138_v33 = vadd.f32 %v2106_v5, %v2070_v6  ;;  %1661 = vst.msk [vmem:[#allocation2 + $0xe8] sm:$0xff] %vm589_vm0, %v1314_v61  ;;  %v1732_v26 = vmul.f32 %v6529_v59, %v6687_v13  ;;  %v1831_v48 = vadd.f32 %v1799_v25, %v1731_v60  ;;  %v6874_v61 = vpop.f32.mrf.mxu1 }
 0x252   : > { %v2441_v53 = vmul.f32 0.044715, %v6832_v12  ;;  %v5589_v21 = vpop.eup %5588  ;;  %v6867_v32 = vmul.f32 0.5, %v6705_v22  ;;  %v6870_v7 = vmul.f32 0.5, %v6729_v47  ;;  %9468 = vst [vmem:[#allocation61_spill] sm:$0xff] %v6874_v61  ;;  %v1733_v17 = vmul.f32 %v6529_v59, %v6740_v45  ;;  %v6881_v22 = vld [vmem:[#allocation2 + $0xa9] sm:$0xff] }
 0x253   : > { %v2568_v46 = vmul.f32 0.7978846, %v2536_v15  ;;  %v2242_v5 = vadd.f32 %v2210_v16, %v2138_v33  ;;  %v1972_v15 = vmul.f32 %v6551_v29, %v6717_v57  ;;  %v2278_v13 = vmul.f32 %v6591_v58, %v6762_v2  ;;  %v6891_v45 = vld [vmem:[#allocation2 + $0xb0] sm:$0xff]  ;;  %v6893_v33 = vpop.f32.mrf.mxu0  ;;  %v6908_v3 = vpop.f32.mrf.mxu1 }
 0x254   : > { %v2473_v6 = vmul.f32 %v2441_v53, %v6832_v12  ;;  %v1899_v25 = vadd.f32 %v1867_v44, %v1831_v48  ;;  %v2628_v16 = vadd.f32 1.0, %v5587_v30  ;;  %v6885_v47 = vmul.f32 %v6551_v29, %v6770_v42  ;;  %v6896_v30 = vld [vmem:[#allocation2 + $0xc7] sm:$0xff]  ;;  %9469 = vst [vmem:[#allocation62_spill] sm:$0xff] %v6908_v3 }
 0x255   : > { %5594 = vtanh.f32 %v2568_v46  ;;  %v2039_v57 = vmul.f32 %v6558_v52, %v6770_v42  ;;  %v1800_v53 = vmul.f32 %v6532_v54, %v6781_v38  ;;  %v2629_v46 = vadd.f32 1.0, %v5589_v21  ;;  %v6992_v34 = vld [vmem:[#allocation2 + $0xc9] sm:$0xff] }
 0x256   : > { %v2505_v60 = vmul.f32 %v2473_v6, %v6832_v12  ;;  %v2003_v48 = vadd.f32 %v1971_v14, %v1899_v25  ;;  %v2310_v6 = vadd.f32 %v2278_v13, %v2242_v5  ;;  %v6900_v36 = vmul.f32 %v6579_v19, %v6762_v2 }
 0x257   : > { %v6904_v42 = vmul.f32 %v6579_v19, %v6795_v8  ;;  %v2279_v61 = vmul.f32 %v6591_v58, %v6795_v8  ;;  %v2346_v21 = vmul.f32 %v6604_v35, %v6881_v22  ;;  %v5591_v14 = vpop.eup %5590  ;;  %v6914_v13 = vmul.f32 %v6529_v59, %v6781_v38 }
 0x258   : > { %v2537_v44 = vadd.f32 %v2505_v60, %v6832_v12  ;;  %v2071_v2 = vadd.f32 %v2039_v57, %v2003_v48  ;;  %v2107_v60 = vmul.f32 %v6575_v1, %v6891_v45  ;;  %v6918_v63 = vmul.f32 %v2628_v16, %v2404_v9  ;;  %v6930_v48 = vld [vmem:[#allocation2 + $0xcf] sm:$0xff] }
 0x259   : > { %v5593_v25 = vpop.eup %5592  ;;  %v1801_v8 = vmul.f32 %v6532_v54, %v6841_v18  ;;  %v6922_v40 = vadd.f32 %v2346_v21, %v2310_v6  ;;  %v1868_v27 = vmul.f32 %v6545_v10, %v6896_v30  ;;  %v6928_v50 = vmul.f32 %v2629_v46, %v2405_v20  ;;  %v6938_v6 = vpop.f32.mrf.mxu1  ;;  %v6940_v21 = vld [vmem:[#allocation2 + $0xb1] sm:$0xff] }
 0x25a   : > { %v2569_v5 = vmul.f32 0.7978846, %v2537_v44  ;;  %9470 = vst [vmem:[#allocation63_spill] sm:$0xff] %v6918_v63  ;;  %v6926_v44 = vpop.f32.mrf.mxu0  ;;  %v1832_v38 = vadd.f32 %v1800_v53, %v1732_v26  ;;  %v2139_v57 = vadd.f32 %v2107_v60, %v2071_v2  ;;  %v2630_v0 = vadd.f32 1.0, %v5591_v14  ;;  %9472 = vst [vmem:[#allocation65_spill] sm:$0xff] %v6938_v6  ;;  %v5508_v14 = vld [vmem:[%s9331_s6 + $0x8] sm:$0xff]  }
 0x25b   : > { %9471 = vst [vmem:[#allocation64_spill] sm:$0xff] %v6928_v50  ;;  %v6934_v9 = vmul.f32 %v6551_v29, %v6814_v39  ;;  %v2040_v16 = vmul.f32 %v6558_v52, %v6814_v39  ;;  %v2442_v20 = vmul.f32 0.044715, %v6922_v40  ;;  %v2631_v46 = vadd.f32 1.0, %v5593_v25  ;;  %v6951_v6 = vld [vmem:[#allocation2 + $0xc8] sm:$0xff]  ;;  %5330 = vmatprep.subr.bf16.mxu0 %v5508_v14 }
 0x25c   : > { %5596 = vtanh.f32 %v2569_v5  ;;  %v2408_v26 = vmul.f32 0.5, %v6793_v51  ;;  %v2243_v53 = vadd.f32 %v6853_v49, %v2139_v57  ;;  %v1900_v5 = vadd.f32 %v1868_v27, %v1832_v38  ;;  %v6955_v37 = vpop.f32.mrf.mxu0  ;;  %5331 = vmatpush3.bf16.msra.mxu0 %v5508_v14 }
 0x25d   : > { %v2756_v2 = vsel %vm589_vm0, %v6918_v63, 0.0  ;;  %v1833_v39 = vadd.f32 %v1801_v8, %v1733_v17  ;;  %v2474_v60 = vmul.f32 %v2442_v20, %v6922_v40  ;;  %v1869_v25 = vmul.f32 %v6545_v10, %v6930_v48  ;;  %v6964_v8 = vpop.f32.mrf.mxu1 }
 0x25e   : > { %v2757_v27 = vsel %vm589_vm0, %v6928_v50, 0.0  ;;  %v2311_v51 = vadd.f32 %v2279_v61, %v2243_v53  ;;  %v2347_v49 = vmul.f32 %v6604_v35, %v6940_v21  ;;  %v2004_v38 = vadd.f32 %v1972_v15, %v1900_v5  ;;  %9474 = vst [vmem:[#allocation67_spill] sm:$0xff] %v6964_v8 }
 0x25f   : > { %v6962_v17 = vmul.f32 %v2630_v0, %v6867_v32  ;;  %v2041_v57 = vmul.f32 %v6558_v52, %v6891_v45  ;;  %v2506_v20 = vmul.f32 %v2474_v60, %v6922_v40  ;;  %v1901_v63 = vadd.f32 %v1869_v25, %v1833_v39  ;;  %v6976_v32 = vld [vmem:[#allocation2 + $0xd0] sm:$0xff]  ;;  %v6982_v39 = vpop.f32.mrf.mxu0 }
 0x260   : > { %v6970_v61 = vmul.f32 %v2631_v46, %v6870_v7  ;;  %v6972_v53 = vadd.f32 %v2347_v49, %v2311_v51  ;;  %v2072_v15 = vadd.f32 %v2040_v16, %v2004_v38  ;;  %v2108_v0 = vmul.f32 %v6575_v1, %v6951_v6  ;;  %v6988_v38 = vpop.f32.mrf.mxu1 }
 0x261   : > { %9473 = vst [vmem:[#allocation66_spill] sm:$0xff] %v6962_v17  ;;  %v2538_v50 = vadd.f32 %v2506_v20, %v6922_v40  ;;  %v1802_v60 = vmul.f32 %v6532_v54, %v6896_v30  ;;  %v2005_v14 = vadd.f32 %v6885_v47, %v1901_v63  ;;  %v2758_v7 = vadd.f32 %v2757_v27, %v2756_v2  ;;  %v6994_v63 = vld [vmem:[#allocation2 + $0xe7] sm:$0xff] }
 0x262   : > { %v5595_v56 = vpop.eup %5594  ;;  %9475 = vst [vmem:[#allocation68_spill] sm:$0xff] %v6970_v61  ;;  %v2409_v46 = vmul.f32 0.5, %v6832_v12  ;;  %v2443_v16 = vmul.f32 0.044715, %v6972_v53  ;;  %v2140_v25 = vadd.f32 %v2108_v0, %v2072_v15  ;;  %9476 = vst [vmem:[#allocation69_spill] sm:$0xff] %v6988_v38  ;;  %v2109_v20 = vmul.f32 %v6575_v1, %v6976_v32  ;;  %v1333_v15 = vpop.f32.mrf.mxu0 }
 0x263   : > { %v2632_v5 = vadd.f32 1.0, %v5595_v56  ;;  %v2570_v49 = vmul.f32 0.7978846, %v2538_v50  ;;  %v2073_v56 = vadd.f32 %v2041_v57, %v2005_v14  ;;  %v2759_v47 = vsel %vm589_vm0, %v6962_v17, 0.0 }
 0x264   : > { %v2280_v12 = vmul.f32 %v6591_v58, %v6881_v22  ;;  %v2244_v50 = vadd.f32 %v6900_v36, %v2140_v25  ;;  %v2761_v2 = vsel %vm589_vm0, %v6970_v61, 0.0  ;;  %v1834_v27 = vadd.f32 %v1802_v60, %v6914_v13  ;;  %v7016_v60 = vpop.f32.mrf.mxu1  ;;  %v1335_v8 = vpop.f32.mrf.mxu0 }
 0x265   : > { %v6986_v51 = vmul.f32 %v2632_v5, %v2408_v26  ;;  %v2475_v26 = vmul.f32 %v2443_v16, %v6972_v53  ;;  %5598 = vtanh.f32 %v2570_v49  ;;  %v2141_v57 = vadd.f32 %v2109_v20, %v2073_v56  ;;  %v7006_v5 = vld [vmem:[#allocation2 + $0xd1] sm:$0xff]  ;;  %9477 = vst [vmem:[#allocation70_spill] sm:$0xff] %v7016_v60 }
 0x266   : > { %v2312_v14 = vadd.f32 %v2280_v12, %v2244_v50  ;;  %v2348_v17 = vmul.f32 %v6604_v35, %v6992_v34  ;;  %v1870_v16 = vmul.f32 %v6545_v10, %v6994_v63  ;;  %v2760_v25 = vadd.f32 %v2759_v47, %v2758_v7 }
 0x267   : > { %v2507_v0 = vmul.f32 %v2475_v26, %v6972_v53  ;;  %v2763_v49 = vsel %vm589_vm0, %v6986_v51, 0.0  ;;  %v2281_v13 = vmul.f32 %v6591_v58, %v6940_v21  ;;  %v2245_v56 = vadd.f32 %v6904_v42, %v2141_v57  ;;  %v7033_v57 = vld [vmem:[#allocation2 + $0xe8] sm:$0xff] }
 0x268   : > { %v7020_v26 = vadd.f32 %v2348_v17, %v2312_v14  ;;  %v1902_v50 = vadd.f32 %v1870_v16, %v1834_v27  ;;  %v2762_v61 = vadd.f32 %v2761_v2, %v2760_v25  ;;  %v2349_v7 = vmul.f32 %v6604_v35, %v7006_v5  ;;  %v7035_v27 = vpop.f32.mrf.mxu1 }
 0x269   : > { %v5597_v36 = vpop.eup %5596  ;;  %v2539_v12 = vadd.f32 %v2507_v0, %v6972_v53  ;;  %v2313_v38 = vadd.f32 %v2281_v13, %v2245_v56  ;;  %v7026_v47 = vadd.f32 %v6803_v41, %v6369_v43  ;;  %v2042_v42 = vmul.f32 %v6558_v52, %v6951_v6  ;;  %9479 = vst [vmem:[#allocation72_spill] sm:$0xff] %v7035_v27 }
 0x26a   : > { %v2633_v20 = vadd.f32 1.0, %v5597_v36  ;;  %v2444_v17 = vmul.f32 0.044715, %v7020_v26  ;;  %v2764_v2 = vadd.f32 %v2763_v49, %v2762_v61  ;;  %v2006_v14 = vadd.f32 %v6934_v9, %v1902_v50  ;;  %v7058_v56 = vpop.f32.mrf.mxu1 }
 0x26b   : > { %9478 = vst [vmem:[#allocation71_spill] sm:$0xff] %v7026_v47  ;;  %v2571_v60 = vmul.f32 0.7978846, %v2539_v12  ;;  %v7037_v0 = vadd.f32 %v2349_v7, %v2313_v38  ;;  %v1318_v41 = vadd.f32 %v6828_v28, %v6497_v62  ;;  %v2110_v61 = vmul.f32 %v6575_v1, %v7033_v57  ;;  %v1337_v38 = vpop.f32.mrf.mxu0  ;;  %9481 = vst [vmem:[#allocation74_spill] sm:$0xff] %v7058_v56 }
 0x26c   : > { %v7028_v3 = vmul.f32 %v2633_v20, %v2409_v46  ;;  %v2476_v16 = vmul.f32 %v2444_v17, %v7020_v26  ;;  %v2074_v13 = vadd.f32 %v2042_v42, %v2006_v14  ;;  %v7052_v28 = vadd.f32 %v6861_v4, %v6369_v43 }
 0x26d   : > { %5600 = vtanh.f32 %v2571_v60  ;;  %v2445_v25 = vmul.f32 0.044715, %v7037_v0  ;;  %1662 = vst.msk [vmem:[#allocation2 + $0xf0] sm:$0xff] %vm589_vm0, %v1318_v41  ;;  %v1324_v49 = vadd.f32 %v6893_v33, %v6497_v62  ;;  %v2214_v60 = vmul.f32 %v6579_v19, %v6881_v22  ;;  %v1341_v17 = vpop.f32.mrf.mxu0 }
 0x26e   : > { %v2765_v46 = vsel %vm589_vm0, %v7028_v3, 0.0  ;;  %v2508_v9 = vmul.f32 %v2476_v16, %v7020_v26  ;;  %9480 = vst [vmem:[#allocation73_spill] sm:$0xff] %v7052_v28  ;;  %v2142_v12 = vadd.f32 %v2110_v61, %v2074_v13  ;;  %v7063_v50 = vadd.f32 %v6926_v44, %v6369_v43 }
 0x26f   : > { %v2766_v36 = vadd.f32 %v2765_v46, %v2764_v2  ;;  %v2477_v20 = vmul.f32 %v2445_v25, %v7037_v0  ;;  %1663 = vst.msk [vmem:[#allocation2 + $0x108] sm:$0xff] %vm589_vm0, %v1324_v49  ;;  %v1328_v4 = vadd.f32 %v6955_v37, %v6497_v62  ;;  %v2282_v33 = vmul.f32 %v6591_v58, %v6992_v34 }
 0x270   : > { %9482 = vst [vmem:[#allocation75_spill] sm:$0xff] %v7063_v50  ;;  %v2540_v7 = vadd.f32 %v2508_v9, %v7020_v26  ;;  %v2246_v22 = vadd.f32 %v2214_v60, %v2142_v12  ;;  %v7073_v42 = vadd.f32 %v6982_v39, %v6369_v43  ;;  %v1803_v44 = vmul.f32 %v6532_v54, %v6930_v48  ;;  %v7084_v39 = vpop.f32.mrf.mxu1 }
 0x271   : > { %1664 = vst.msk [vmem:[#allocation2 + $0x110] sm:$0xff] %vm589_vm0, %v1328_v4  ;;  %v1334_v41 = vadd.f32 %v1333_v15, %v6497_v62  ;;  %v7080_v37 = vadd.f32 %v1335_v8, %v6369_v43  ;;  %v2410_v46 = vmul.f32 0.5, %v6922_v40  ;;  %v2509_v25 = vmul.f32 %v2477_v20, %v7037_v0  ;;  %9485 = vst [vmem:[#allocation78_spill] sm:$0xff] %v7084_v39 }
 0x272   : > { %9483 = vst [vmem:[#allocation76_spill] sm:$0xff] %v7073_v42  ;;  %v5599_v2 = vpop.eup %5598  ;;  %v2572_v14 = vmul.f32 0.7978846, %v2540_v7  ;;  %v2314_v13 = vadd.f32 %v2282_v33, %v2246_v22  ;;  %v1735_v61 = vmul.f32 %v6529_v59, %v6841_v18  ;;  %v1338_v15 = vadd.f32 %v1337_v38, %v6497_v62  ;;  %v7111_v33 = vpop.f32.mrf.mxu1 }
 0x273   : > { %9484 = vst [vmem:[#allocation77_spill] sm:$0xff] %v7080_v37  ;;  %v2634_v16 = vadd.f32 1.0, %v5599_v2  ;;  %1665 = vst.msk [vmem:[#allocation2 + $0x128] sm:$0xff] %vm589_vm0, %v1334_v41  ;;  %v7093_v8 = vadd.f32 %v1341_v17, %v6369_v43  ;;  %v1804_v60 = vmul.f32 %v6532_v54, %v6994_v63  ;;  %v1975_v12 = vmul.f32 %v6551_v29, %v6891_v45 }
 0x274   : > { %5602 = vtanh.f32 %v2572_v14  ;;  %v7088_v9 = vld [vmem:[#allocation2 + $0xef] sm:$0xff]  ;;  %v1835_v49 = vadd.f32 %v1803_v44, %v1735_v61  ;;  %1666 = vst.msk [vmem:[#allocation2 + $0x130] sm:$0xff] %vm589_vm0, %v1338_v15  ;;  %v2215_v38 = vmul.f32 %v6579_v19, %v6940_v21  ;;  %v2541_v4 = vadd.f32 %v2509_v25, %v7037_v0  ;;  %9487 = vst [vmem:[#allocation80_spill] sm:$0xff] %v7111_v33 }
 0x275   : > { %9486 = vst [vmem:[#allocation79_spill] sm:$0xff] %v7093_v8  ;;  %v7095_v40 = vmul.f32 %v2634_v16, %v2410_v46  ;;  %v1871_v20 = vmul.f32 %v6545_v10, %v7088_v9  ;;  %v7101_v18 = vld [vmem:[#allocation2 + $0xe9] sm:$0xff]  ;;  %v1736_v2 = vmul.f32 %v6529_v59, %v6896_v30  ;;  %v1976_v44 = vmul.f32 %v6551_v29, %v6951_v6 }
 0x276   : > { %v7113_v22 = vld [vmem:[#allocation2 + $0x107] sm:$0xff]  ;;  %v2411_v21 = vmul.f32 0.5, %v6972_v53  ;;  %v2043_v41 = vmul.f32 %v6558_v52, %v6976_v32  ;;  %v1805_v46 = vmul.f32 %v6532_v54, %v7088_v9  ;;  %v7124_v16 = vld [vmem:[#allocation2 + $0xf0] sm:$0xff]  ;;  %v1737_v53 = vmul.f32 %v6529_v59, %v6930_v48 }
 0x277   : > { %v2767_v7 = vsel %vm589_vm0, %v7095_v40, 0.0  ;;  %v1903_v45 = vadd.f32 %v1871_v20, %v1835_v49  ;;  %v1836_v30 = vadd.f32 %v1804_v60, %v1736_v2  ;;  %v1872_v6 = vmul.f32 %v6545_v10, %v7113_v22  ;;  %v7134_v20 = vpop.f32.mrf.mxu1 }
 0x278   : > { %v2768_v17 = vadd.f32 %v2767_v7, %v2766_v36  ;;  %v2350_v36 = vmul.f32 %v6604_v35, %v7101_v18  ;;  %v1977_v15 = vmul.f32 %v6551_v29, %v6976_v32  ;;  %v2573_v49 = vmul.f32 0.7978846, %v2541_v4  ;;  %9488 = vst [vmem:[#allocation81_spill] sm:$0xff] %v7134_v20  ;;  %v7138_v37 = vld [vmem:[#allocation2 + $0x10f] sm:$0xff] }
 0x279   : > { %v2007_v61 = vadd.f32 %v1975_v12, %v1903_v45  ;;  %v2111_v12 = vmul.f32 %v6575_v1, %v7124_v16  ;;  %v1904_v2 = vadd.f32 %v1872_v6, %v1836_v30  ;;  %v2216_v48 = vmul.f32 %v6579_v19, %v6992_v34  ;;  %v7164_v8 = vld [vmem:[#allocation2 + $0x110] sm:$0xff] }
 0x27a   : > { %v5601_v14 = vpop.eup %5600  ;;  %v7136_v7 = vadd.f32 %v2350_v36, %v2314_v13  ;;  %v2044_v32 = vmul.f32 %v6558_v52, %v7033_v57  ;;  %v1837_v4 = vadd.f32 %v1805_v46, %v1737_v53  ;;  %v7149_v13 = vld [vmem:[#allocation2 + $0x108] sm:$0xff]  ;;  %v2283_v34 = vmul.f32 %v6591_v58, %v7006_v5  ;;  %v7159_v46 = vpop.f32.mrf.mxu1 }
 0x27b   : > { %v2635_v25 = vadd.f32 1.0, %v5601_v14  ;;  %v2075_v60 = vadd.f32 %v2043_v41, %v2007_v61  ;;  %v7153_v41 = vld [vmem:[#allocation2 + $0xf1] sm:$0xff]  ;;  %v2008_v36 = vadd.f32 %v1976_v44, %v1904_v2  ;;  %5604 = vtanh.f32 %v2573_v49  ;;  %9489 = vst [vmem:[#allocation82_spill] sm:$0xff] %v7159_v46 }
 0x27c   : > { %v2446_v45 = vmul.f32 0.044715, %v7136_v7  ;;  %v2412_v2 = vmul.f32 0.5, %v7020_v26  ;;  %v2351_v49 = vmul.f32 %v6604_v35, %v7153_v41  ;;  %v2113_v26 = vmul.f32 %v6575_v1, %v7164_v8 }
 0x27d   : > { %v7140_v42 = vmul.f32 %v2635_v25, %v2411_v21  ;;  %v2143_v21 = vadd.f32 %v2111_v12, %v2075_v60  ;;  %v1873_v25 = vmul.f32 %v6545_v10, %v7138_v37  ;;  %v2076_v53 = vadd.f32 %v2044_v32, %v2008_v36 }
 0x27e   : > { %v2478_v61 = vmul.f32 %v2446_v45, %v7136_v7  ;;  %v2112_v60 = vmul.f32 %v6575_v1, %v7149_v13 }
 0x27f   : > { %v2769_v14 = vsel %vm589_vm0, %v7140_v42, 0.0  ;;  %v2247_v6 = vadd.f32 %v2215_v38, %v2143_v21  ;;  %v1905_v12 = vadd.f32 %v1873_v25, %v1837_v4  ;;  %v7173_v4 = vpop.f32.mrf.mxu1  ;;  %v1806_v25 = vmul.f32 %v6532_v54, %v7113_v22 }
 0x280   : > { %v2770_v30 = vadd.f32 %v2769_v14, %v2768_v17  ;;  %v2045_v17 = vmul.f32 %v6558_v52, %v7124_v16  ;;  %v2510_v14 = vmul.f32 %v2478_v61, %v7136_v7  ;;  %v2144_v32 = vadd.f32 %v2112_v60, %v2076_v53  ;;  %9490 = vst [vmem:[#allocation83_spill] sm:$0xff] %v7173_v4 }
 0x281   : > { %v5603_v44 = vpop.eup %5602  ;;  %v2315_v38 = vadd.f32 %v2283_v34, %v2247_v6  ;;  %v2009_v21 = vadd.f32 %v1977_v15, %v1905_v12  ;;  %v2284_v15 = vmul.f32 %v6591_v58, %v7101_v18  ;;  %v7187_v6 = vld [vmem:[#allocation2 + $0x127] sm:$0xff]  ;;  %v2217_v53 = vmul.f32 %v6579_v19, %v7006_v5 }
 0x282   : > { %v2636_v45 = vadd.f32 1.0, %v5603_v44  ;;  %v2542_v36 = vadd.f32 %v2510_v14, %v7136_v7  ;;  %v2248_v28 = vadd.f32 %v2216_v48, %v2144_v32  ;;  %v7183_v44 = vld [vmem:[#allocation2 + $0x109] sm:$0xff]  ;;  %v1738_v12 = vmul.f32 %v6529_v59, %v6994_v63 }
 0x283   : > { %v7181_v50 = vadd.f32 %v2351_v49, %v2315_v38  ;;  %v2077_v61 = vadd.f32 %v2045_v17, %v2009_v21  ;;  %v7197_v17 = vpop.f32.mrf.mxu1  ;;  %v7199_v49 = vld [vmem:[#allocation2 + $0x111] sm:$0xff]  ;;  %v2285_v5 = vmul.f32 %v6591_v58, %v7153_v41  ;;  %v1874_v63 = vmul.f32 %v6545_v10, %v7187_v6 }
 0x284   : > { %v7179_v47 = vmul.f32 %v2636_v45, %v2412_v2  ;;  %v2574_v34 = vmul.f32 0.7978846, %v2542_v36  ;;  %v2316_v14 = vadd.f32 %v2284_v15, %v2248_v28  ;;  %v2352_v45 = vmul.f32 %v6604_v35, %v7183_v44  ;;  %v7215_v15 = vld [vmem:[#allocation2 + $0x12f] sm:$0xff] }
 0x285   : > { %v2145_v2 = vadd.f32 %v2113_v26, %v2077_v61  ;;  %v1838_v38 = vadd.f32 %v1806_v25, %v1738_v12  ;;  %v1978_v36 = vmul.f32 %v6551_v29, %v7033_v57  ;;  %v2353_v26 = vmul.f32 %v6604_v35, %v7199_v49 }
 0x286   : > { %v2771_v60 = vsel %vm589_vm0, %v7179_v47, 0.0  ;;  %5606 = vtanh.f32 %v2574_v34  ;;  %v7209_v21 = vadd.f32 %v2352_v45, %v2316_v14  ;;  %v1739_v25 = vmul.f32 %v6529_v59, %v7088_v9  ;;  %v7219_v34 = vpop.f32.mrf.mxu1 }
 0x287   : > { %v7195_v48 = vadd.f32 %v2771_v60, %v2770_v30  ;;  %v2249_v32 = vadd.f32 %v2217_v53, %v2145_v2  ;;  %v1807_v30 = vmul.f32 %v6532_v54, %v7138_v37  ;;  %v1906_v61 = vadd.f32 %v1874_v63, %v1838_v38  ;;  %9491 = vst [vmem:[#allocation84_spill] sm:$0xff] %v7219_v34  ;;  %v7221_v53 = vld [vmem:[#allocation2 + $0x128] sm:$0xff]  ;;  %v1343_v60 = vpop.f32.mrf.mxu0 }
 0x288   : > { %v5605_v12 = vpop.eup %5604  ;;  %v2046_v2 = vmul.f32 %v6558_v52, %v7149_v13  ;;  %v2114_v9 = vmul.f32 %v6575_v1, %v7221_v53  ;;  %v1979_v63 = vmul.f32 %v6551_v29, %v7124_v16  ;;  %v7233_v34 = vpop.f32.mrf.mxu1  ;;  %v2286_v16 = vmul.f32 %v6591_v58, %v7183_v44 }
 0x289   : > { %v2317_v28 = vadd.f32 %v2285_v5, %v2249_v32  ;;  %v2010_v14 = vadd.f32 %v1978_v36, %v1906_v61  ;;  %v1839_v45 = vadd.f32 %v1807_v30, %v1739_v25  ;;  %v1875_v5 = vmul.f32 %v6545_v10, %v7215_v15  ;;  %v1345_v46 = vpop.f32.mrf.mxu0  ;;  %v7237_v30 = vld [vmem:[#allocation2 + $0x130] sm:$0xff] }
 0x28a   : > { %v2637_v32 = vadd.f32 1.0, %v5605_v12  ;;  %v2447_v61 = vmul.f32 0.044715, %v7181_v50  ;;  %v2047_v25 = vmul.f32 %v6558_v52, %v7164_v8 }
 0x28b   : > { %v7225_v57 = vadd.f32 %v2353_v26, %v2317_v28  ;;  %v2078_v38 = vadd.f32 %v2046_v2, %v2010_v14  ;;  %v1907_v4 = vadd.f32 %v1875_v5, %v1839_v45  ;;  %v2218_v28 = vmul.f32 %v6579_v19, %v7101_v18  ;;  %v7243_v2 = vld [vmem:[#allocation2 + $0x129] sm:$0xff]  ;;  %v7251_v5 = vpop.f32.mrf.mxu1 }
 0x28c   : > { %v2413_v26 = vmul.f32 0.5, %v7037_v0  ;;  %v2219_v18 = vmul.f32 %v6579_v19, %v7153_v41  ;;  %9492 = vst [vmem:[#allocation85_spill] sm:$0xff] %v7251_v5  ;;  %v2354_v33 = vmul.f32 %v6604_v35, %v7243_v2 }
 0x28d   : > { %v2146_v36 = vadd.f32 %v2114_v9, %v2078_v38  ;;  %v2011_v12 = vadd.f32 %v1979_v63, %v1907_v4  ;;  %v2115_v38 = vmul.f32 %v6575_v1, %v7237_v30  ;;  %v1347_v9 = vpop.f32.mrf.mxu0  ;;  %v2414_v4 = vmul.f32 0.5, %v7136_v7 }
 0x28e   : > { %v7247_v45 = vmul.f32 %v2637_v32, %v2413_v26  ;;  %v1344_v32 = vadd.f32 %v1343_v60, %v6497_v62  ;;  %v7261_v26 = vadd.f32 %v1345_v46, %v6369_v43  ;;  %v1348_v7 = vadd.f32 %v1347_v9, %v6497_v62  ;;  %v1524_v60 = vpop.f32.mrf.mxu1 }
 0x28f   : > { %v2250_v14 = vadd.f32 %v2218_v28, %v2146_v36  ;;  %v2079_v0 = vadd.f32 %v2047_v25, %v2011_v12  ;;  %v2479_v28 = vmul.f32 %v2447_v61, %v7181_v50  ;;  %v7263_v25 = vld [vmem:[#allocation2 + $0x131] sm:$0xff]  ;;  %v1469_v9 = vadd.f32 %v6748_v11, %v6373_v23 }
 0x290   : > { %9493 = vst [vmem:[#allocation86_spill] sm:$0xff] %v7261_v26  ;;  %1667 = vst.msk [vmem:[#allocation2 + $0x148] sm:$0xff] %vm589_vm0, %v1344_v32  ;;  %v2448_v32 = vmul.f32 0.044715, %v7209_v21  ;;  %v7348_v26 = vadd.f32 %v1524_v60, %v6373_v23  ;;  %v2048_v60 = vmul.f32 %v6558_v52, %v7221_v53 }
 0x291   : > { %v2318_v63 = vadd.f32 %v2286_v16, %v2250_v14  ;;  %v2147_v41 = vadd.f32 %v2115_v38, %v2079_v0  ;;  %v2773_v16 = vsel %vm589_vm0, %v7247_v45, 0.0  ;;  %1668 = vst.msk [vmem:[#allocation2 + $0x150] sm:$0xff] %vm589_vm0, %v1348_v7  ;;  %v2511_v46 = vmul.f32 %v2479_v28, %v7181_v50 }
 0x292   : > { %v2355_v0 = vmul.f32 %v6604_v35, %v7263_v25  ;;  %v1465_v38 = vadd.f32 %v6690_v31, %v6373_v23  ;;  %v1808_v28 = vmul.f32 %v6532_v54, %v7187_v6  ;;  %v1740_v7 = vmul.f32 %v6529_v59, %v7113_v22 }
 0x293   : > { %v5607_v20 = vpop.eup %5606  ;;  %v7265_v12 = vadd.f32 %v2354_v33, %v2318_v63  ;;  %v2251_v61 = vadd.f32 %v2219_v18, %v2147_v41  ;;  %v1475_v18 = vadd.f32 %v6791_v24, %v6373_v23  ;;  %v1809_v22 = vmul.f32 %v6532_v54, %v7215_v15 }
 0x294   : > { %v2638_v36 = vadd.f32 1.0, %v5607_v20  ;;  %v2287_v20 = vmul.f32 %v6591_v58, %v7199_v49  ;;  %v7298_v11 = vmul.f32 %v6986_v51, %v1465_v38  ;;  %v9498_v51 = vld [vmem:[#allocation62_spill] sm:$0xff]  ;;  %v1840_v38 = vadd.f32 %v1808_v28, %v1740_v7 }
 0x295   : > { %v1980_v7 = vmul.f32 %v6551_v29, %v7149_v13 }
 0x296   : > { %v7271_v14 = vmul.f32 %v2638_v36, %v2414_v4  ;;  %v2319_v33 = vadd.f32 %v2287_v20, %v2251_v61  ;;  %v2774_v4 = vadd.f32 %v2773_v16, %v7195_v48  ;;  %v7291_v36 = vpop.f32.mrf.mxu1  ;;  %9495 = vst [vmem:[#allocation88_spill] sm:$0xff] %v7298_v11  ;;  %v2543_v48 = vadd.f32 %v2511_v46, %v7181_v50 }
 0x297   : > { %9494 = vst [vmem:[#allocation87_spill] sm:$0xff] %v7291_v36  ;;  %v7303_v24 = vld [vmem:[#allocation2 + $0x147] sm:$0xff]  ;;  %v7306_v16 = vmul.f32 %v7028_v3, %v1469_v9  ;;  %v7309_v20 = vmul.f32 %v7095_v40, %v1475_v18  ;;  %v7313_v61 = vadd.f32 %v6838_v55, %v6373_v23  ;;  %v2449_v46 = vmul.f32 0.044715, %v7225_v57 }
 0x298   : > { %v2775_v63 = vsel %vm589_vm0, %v7271_v14, 0.0  ;;  %v7293_v41 = vadd.f32 %v2355_v0, %v2319_v33  ;;  %v7317_v33 = vadd.f32 %v9498_v51, %v6373_v23  ;;  %v9499_v0 = vld [vmem:[#allocation67_spill] sm:$0xff]  ;;  %v2480_v40 = vmul.f32 %v2448_v32, %v7209_v21  ;;  %v1528_v9 = vpop.f32.mrf.mxu1 }
 0x299   : > { %v7295_v31 = vadd.f32 %v2775_v63, %v2774_v4  ;;  %9496 = vst [vmem:[#allocation89_spill] sm:$0xff] %v7306_v16  ;;  %9497 = vst [vmem:[#allocation90_spill] sm:$0xff] %v7309_v20  ;;  %v7324_v3 = vadd.f32 %v9499_v0, %v6373_v23  ;;  %v1876_v55 = vmul.f32 %v6545_v10, %v7303_v24  ;;  %v7329_v4 = vld [vmem:[#allocation2 + $0x14f] sm:$0xff]  ;;  %v9500_v63 = vld [vmem:[#allocation70_spill] sm:$0xff]  ;;  %v2575_v28 = vmul.f32 0.7978846, %v2543_v48 }
 0x29a   : > { %v7333_v18 = vadd.f32 %v9500_v63, %v6373_v23  ;;  %v7337_v51 = vadd.f32 %v7197_v17, %v6373_v23  ;;  %v7341_v0 = vadd.f32 %v7233_v34, %v6373_v23  ;;  %v1741_v32 = vmul.f32 %v6529_v59, %v7138_v37  ;;  %9503 = vst [vmem:[#allocation70_spill] sm:$0xff] %v7348_v26  ;;  %v7354_v34 = vld [vmem:[#allocation2 + $0x148] sm:$0xff] }
 0x29b   : > { %v1908_v63 = vadd.f32 %v1876_v55, %v1840_v38  ;;  %v2481_v16 = vmul.f32 %v2449_v46, %v7225_v57  ;;  %v7352_v17 = vadd.f32 %v1528_v9, %v6373_v23  ;;  %v1877_v37 = vmul.f32 %v6545_v10, %v7329_v4 }
 0x29c   : > { %9501 = vst [vmem:[#allocation62_spill] sm:$0xff] %v7337_v51  ;;  %9502 = vst [vmem:[#allocation67_spill] sm:$0xff] %v7341_v0  ;;  %v1841_v11 = vadd.f32 %v1809_v22, %v1741_v32  ;;  %v1981_v48 = vmul.f32 %v6551_v29, %v7164_v8  ;;  %v2512_v13 = vmul.f32 %v2480_v40, %v7209_v21  ;;  %v7372_v8 = vmul.f32 0.5, %v7181_v50 }
 0x29d   : > { %9504 = vst [vmem:[#allocation91_spill] sm:$0xff] %v7352_v17  ;;  %v2012_v38 = vadd.f32 %v1980_v7, %v1908_v63  ;;  %v2220_v46 = vmul.f32 %v6579_v19, %v7183_v44  ;;  %v2221_v22 = vmul.f32 %v6579_v19, %v7199_v49  ;;  %v7369_v9 = vmul.f32 %v6529_v59, %v7187_v6  ;;  %v7376_v63 = vld [vmem:[#allocation2 + $0x150] sm:$0xff] }
 0x29e   : > { %v1909_v32 = vadd.f32 %v1877_v37, %v1841_v11  ;;  %5608 = vtanh.f32 %v2575_v28  ;;  %v2116_v7 = vmul.f32 %v6575_v1, %v7354_v34  ;;  %v2513_v44 = vmul.f32 %v2481_v16, %v7225_v57 }
 0x29f   : > { %v2080_v40 = vadd.f32 %v2048_v60, %v2012_v38  ;;  %v2049_v49 = vmul.f32 %v6558_v52, %v7237_v30  ;;  %v2544_v50 = vadd.f32 %v2512_v13, %v7209_v21  ;;  %v7391_v38 = vmul.f32 %v6551_v29, %v7221_v53 }
 0x2a0   : > { %v2013_v5 = vadd.f32 %v1981_v48, %v1909_v32  ;;  %v2117_v48 = vmul.f32 %v6575_v1, %v7376_v63  ;;  %v7395_v32 = vld [vmem:[#allocation2 + $0x149] sm:$0xff]  ;;  %v7399_v13 = vmul.f32 0.5, %v7209_v21 }
 0x2a1   : > { %v2148_v11 = vadd.f32 %v2116_v7, %v2080_v40  ;;  %v1743_v7 = vmul.f32 %v6529_v59, %v7215_v15  ;;  %v2289_v15 = vmul.f32 %v6591_v58, %v7263_v25 }
 0x2a2   : > { %v2081_v16 = vadd.f32 %v2049_v49, %v2013_v5  ;;  %v2545_v5 = vadd.f32 %v2513_v44, %v7225_v57  ;;  %v2356_v44 = vmul.f32 %v6604_v35, %v7395_v32 }
 0x2a3   : > { %v2252_v40 = vadd.f32 %v2220_v46, %v2148_v11  ;;  %v7416_v46 = vld [vmem:[#allocation2 + $0x151] sm:$0xff] }
 0x2a4   : > { %v2149_v49 = vadd.f32 %v2117_v48, %v2081_v16 }
 0x2a5   : > { %v1351_v20 = vpop.f32.mrf.mxu0 }
 0x2a6   : > { %v7382_v6 = vadd.f32 %v1351_v20, %v6369_v43  ;;  %v2253_v16 = vadd.f32 %v2221_v22, %v2149_v49  ;;  %v7436_v22 = vpop.f32.mrf.mxu1 }
 0x2a7   : > { %v1353_v55 = vpop.f32.mrf.mxu0  ;;  %9510 = vst [vmem:[#allocation97_spill] sm:$0xff] %v7436_v22  ;;  %v1984_v22 = vmul.f32 %v6551_v29, %v7354_v34 }
 0x2a8   : > { %9505 = vst [vmem:[#allocation92_spill] sm:$0xff] %v7382_v6  ;;  %v1354_v28 = vadd.f32 %v1353_v55, %v6497_v62  ;;  %v2450_v55 = vmul.f32 0.044715, %v7265_v12  ;;  %v2577_v6 = vmul.f32 0.7978846, %v2545_v5  ;;  %v2321_v49 = vadd.f32 %v2289_v15, %v2253_v16 }
 0x2a9   : > { %v1355_v36 = vpop.f32.mrf.mxu0  ;;  %v7454_v5 = vmul.f32 0.5, %v7225_v57  ;;  %v1811_v15 = vmul.f32 %v6532_v54, %v7329_v4 }
 0x2aa   : > { %v7387_v37 = vadd.f32 %v1355_v36, %v6369_v43  ;;  %v2288_v36 = vmul.f32 %v6591_v58, %v7243_v2  ;;  %1669 = vst.msk [vmem:[#allocation2 + $0x168] sm:$0xff] %vm589_vm0, %v1354_v28 }
 0x2ab   : > { %v1357_v60 = vpop.f32.mrf.mxu0 }
 0x2ac   : > { %9506 = vst [vmem:[#allocation93_spill] sm:$0xff] %v7387_v37  ;;  %v1358_v20 = vadd.f32 %v1357_v60, %v6497_v62  ;;  %v2576_v60 = vmul.f32 0.7978846, %v2544_v50  ;;  %v7414_v37 = vmul.f32 %v6551_v29, %v7237_v30  ;;  %v2320_v11 = vadd.f32 %v2288_v36, %v2252_v40 }
 0x2ad   : > { %v1361_v53 = vpop.f32.mrf.mxu0  ;;  %v7425_v50 = vmul.f32 %v7140_v42, %v7313_v61  ;;  %v2482_v30 = vmul.f32 %v2450_v55, %v7265_v12  ;;  %v2357_v42 = vmul.f32 %v6604_v35, %v7416_v46  ;;  %v2451_v55 = vmul.f32 0.044715, %v7293_v41 }
 0x2ae   : > { %1670 = vst.msk [vmem:[#allocation2 + $0x170] sm:$0xff] %vm589_vm0, %v1358_v20  ;;  %v7410_v21 = vadd.f32 %v1361_v53, %v6369_v43  ;;  %v1810_v20 = vmul.f32 %v6532_v54, %v7303_v24  ;;  %v7430_v36 = vadd.f32 %v2356_v44, %v2320_v11  ;;  %v7434_v53 = vmul.f32 %v7179_v47, %v7317_v33  ;;  %v1718_v44 = vld [vmem:[#allocation2 + $0x227] sm:$0xff] }
 0x2af   : > { %v1363_v28 = vpop.f32.mrf.mxu0  ;;  %9508 = vst [vmem:[#allocation95_spill] sm:$0xff] %v7425_v50  ;;  %5610 = vtanh.f32 %v2576_v60  ;;  %v7447_v47 = vmul.f32 %v7247_v45, %v7324_v3  ;;  %v7451_v33 = vmul.f32 %v7271_v14, %v7333_v18  ;;  %v7458_v60 = vadd.f32 %v2357_v42, %v2321_v49  ;;  %v2198_v49 = vld [vmem:[#allocation2 + $0x229] sm:$0xff]  ;;  %v5609_v42 = vpop.eup %5608 }
 0x2b0   : > { %9507 = vst [vmem:[#allocation94_spill] sm:$0xff] %v7410_v21  ;;  %v1364_v48 = vadd.f32 %v1363_v28, %v6497_v62  ;;  %9509 = vst [vmem:[#allocation96_spill] sm:$0xff] %v7434_v53  ;;  %v1719_v28 = vld [vmem:[#allocation2 + $0x22f] sm:$0xff]  ;;  %v2222_v45 = vmul.f32 %v6579_v19, %v7243_v2  ;;  %v2514_v14 = vmul.f32 %v2482_v30, %v7265_v12  ;;  %5612 = vtanh.f32 %v2577_v6  ;;  %v7475_v21 = vpop.f32.mrf.mxu1 }
 0x2b1   : > { %v1365_v40 = vpop.f32.mrf.mxu0  ;;  %9512 = vst [vmem:[#allocation99_spill] sm:$0xff] %v7447_v47  ;;  %9513 = vst [vmem:[#allocation100_spill] sm:$0xff] %v7451_v33  ;;  %v7460_v16 = vld [vmem:[#allocation2 + $0x167] sm:$0xff]  ;;  %v1842_v3 = vadd.f32 %v1810_v20, %v7369_v9  ;;  %v7481_v9 = vmul.f32 %v6545_v10, %v1718_v44  ;;  %v7484_v30 = vmul.f32 %v6545_v10, %v1719_v28  ;;  %v2199_v47 = vld [vmem:[#allocation2 + $0x231] sm:$0xff] }
 0x2b2   : > { %1671 = vst.msk [vmem:[#allocation2 + $0x188] sm:$0xff] %vm589_vm0, %v1364_v48  ;;  %v7442_v61 = vadd.f32 %v1365_v40, %v6369_v43  ;;  %v1958_v40 = vld [vmem:[#allocation2 + $0x228] sm:$0xff]  ;;  %v1878_v57 = vmul.f32 %v6545_v10, %v7460_v16  ;;  %9514 = vst [vmem:[#allocation101_spill] sm:$0xff] %v7475_v21  ;;  %v2483_v20 = vmul.f32 %v2451_v55, %v7293_v41  ;;  %v7514_v39 = vpop.f32.mrf.mxu1 }
 0x2b3   : > { %v1367_v11 = vpop.f32.mrf.mxu0  ;;  %v7488_v6 = vmul.f32 %v6575_v1, %v1958_v40  ;;  %v1843_v53 = vadd.f32 %v1811_v15, %v1743_v7  ;;  %v7495_v50 = vld [vmem:[#allocation2 + $0x168] sm:$0xff]  ;;  %v7502_v55 = vmul.f32 %v6604_v35, %v2198_v49  ;;  %v2639_v40 = vadd.f32 1.0, %v5609_v42  ;;  %9518 = vst [vmem:[#allocation105_spill] sm:$0xff] %v7514_v39 }
 0x2b4   : > { %9511 = vst [vmem:[#allocation98_spill] sm:$0xff] %v7442_v61  ;;  %v1368_v48 = vadd.f32 %v1367_v11, %v6497_v62  ;;  %v1959_v61 = vld [vmem:[#allocation2 + $0x230] sm:$0xff]  ;;  %v7473_v11 = vmul.f32 %v6579_v19, %v7263_v25  ;;  %v1910_v33 = vadd.f32 %v1878_v57, %v1842_v3  ;;  %v2546_v3 = vadd.f32 %v2514_v14, %v7265_v12  ;;  %v7542_v21 = vpop.f32.mrf.mxu1 }
 0x2b5   : > { %v7469_v18 = vld [vmem:[#allocation2 + $0x16f] sm:$0xff]  ;;  %9515 = vst [vmem:[#allocation102_spill] sm:$0xff] %v7488_v6  ;;  %v7491_v25 = vmul.f32 %v6575_v1, %v1959_v61  ;;  %9517 = vst [vmem:[#allocation104_spill] sm:$0xff] %v7502_v55  ;;  %v2050_v61 = vmul.f32 %v6558_v52, %v7354_v34  ;;  %v1744_v57 = vmul.f32 %v6529_v59, %v7303_v24 }
 0x2b6   : > { %1672 = vst.msk [vmem:[#allocation2 + $0x190] sm:$0xff] %vm589_vm0, %v1368_v48  ;;  %v7478_v2 = vpop.f32.mrf.mxu0  ;;  %v1812_v48 = vmul.f32 %v6532_v54, %v7460_v16  ;;  %v1879_v44 = vmul.f32 %v6545_v10, %v7469_v18  ;;  %v2014_v7 = vadd.f32 %v7391_v38, %v1910_v33  ;;  %v7519_v14 = vmul.f32 %v6604_v35, %v2199_v47  ;;  %v7526_v33 = vld [vmem:[#allocation2 + $0x170] sm:$0xff] }
 0x2b7   : > { %9516 = vst [vmem:[#allocation103_spill] sm:$0xff] %v7491_v25  ;;  %v2515_v42 = vmul.f32 %v2483_v20, %v7293_v41  ;;  %v2118_v38 = vmul.f32 %v6575_v1, %v7495_v50  ;;  %v1813_v24 = vmul.f32 %v6532_v54, %v7469_v18  ;;  %v2051_v34 = vmul.f32 %v6558_v52, %v7376_v63  ;;  %v7561_v51 = vld [vmem:[#allocation2 + $0x171] sm:$0xff] }
 0x2b8   : > { %v7499_v28 = vpop.f32.mrf.mxu0  ;;  %v1911_v49 = vadd.f32 %v1879_v44, %v1843_v53  ;;  %9519 = vst [vmem:[#allocation106_spill] sm:$0xff] %v7519_v14  ;;  %v2082_v27 = vadd.f32 %v2050_v61, %v2014_v7  ;;  %v1844_v53 = vadd.f32 %v1812_v48, %v1744_v57  ;;  %v7534_v20 = vmul.f32 %v2639_v40, %v7372_v8 }
 0x2b9   : > { %v7508_v15 = vld [vmem:[#allocation2 + $0x187] sm:$0xff]  ;;  %v7536_v61 = vmul.f32 0.7978846, %v2546_v3  ;;  %v1745_v7 = vmul.f32 %v6529_v59, %v7329_v4  ;;  %9521 = vst [vmem:[#allocation108_spill] sm:$0xff] %v7542_v21  ;;  %v2119_v57 = vmul.f32 %v6575_v1, %v7526_v33  ;;  %v2290_v3 = vmul.f32 %v6591_v58, %v7395_v32 }
 0x2ba   : > { %v7516_v56 = vpop.f32.mrf.mxu0  ;;  %v2015_v44 = vadd.f32 %v7414_v37, %v1911_v49  ;;  %v1880_v47 = vmul.f32 %v6545_v10, %v7508_v15  ;;  %9520 = vst [vmem:[#allocation107_spill] sm:$0xff] %v7534_v20  ;;  %v2150_v17 = vadd.f32 %v2118_v38, %v2082_v27  ;;  %v1985_v37 = vmul.f32 %v6551_v29, %v7376_v63  ;;  %v7548_v49 = vld [vmem:[#allocation2 + $0x169] sm:$0xff] }
 0x2bb   : > { %v1845_v27 = vadd.f32 %v1813_v24, %v1745_v7  ;;  %v7552_v38 = vld [vmem:[#allocation2 + $0x188] sm:$0xff]  ;;  %v2547_v63 = vadd.f32 %v2515_v42, %v7293_v41  ;;  %v2291_v7 = vmul.f32 %v6591_v58, %v7416_v46  ;;  %v7567_v42 = vpop.f32.mrf.mxu1  ;;  %v2225_v25 = vmul.f32 %v6579_v19, %v7416_v46 }
 0x2bc   : > { %v1377_v39 = vpop.f32.mrf.mxu0  ;;  %v2083_v48 = vadd.f32 %v2051_v34, %v2015_v44  ;;  %v1912_v8 = vadd.f32 %v1880_v47, %v1844_v53  ;;  %v2254_v4 = vadd.f32 %v2222_v45, %v2150_v17  ;;  %v5611_v23 = vpop.eup %5610  ;;  %v2052_v34 = vmul.f32 %v6558_v52, %v7495_v50  ;;  %9522 = vst [vmem:[#allocation109_spill] sm:$0xff] %v7567_v42 }
 0x2bd   : > { %v7540_v26 = vld [vmem:[#allocation2 + $0x18f] sm:$0xff]  ;;  %v2224_v47 = vmul.f32 %v6579_v19, %v7395_v32  ;;  %v2358_v45 = vmul.f32 %v6604_v35, %v7548_v49  ;;  %v7578_v55 = vpop.f32.mrf.mxu1  ;;  %5614 = vtanh.f32 %v7536_v61  ;;  %v1747_v61 = vmul.f32 %v6529_v59, %v7469_v18 }
 0x2be   : > { %v1381_v40 = vpop.f32.mrf.mxu0  ;;  %v1881_v21 = vmul.f32 %v6545_v10, %v7540_v26  ;;  %v2151_v44 = vadd.f32 %v2119_v57, %v2083_v48  ;;  %v2016_v0 = vadd.f32 %v1984_v22, %v1912_v8  ;;  %v2322_v17 = vadd.f32 %v2290_v3, %v2254_v4  ;;  %v7572_v57 = vld [vmem:[#allocation2 + $0x190] sm:$0xff]  ;;  %v5613_v8 = vpop.eup %5612  ;;  %9523 = vst [vmem:[#allocation110_spill] sm:$0xff] %v7578_v55 }
 0x2bf   : > { %v2120_v22 = vmul.f32 %v6575_v1, %v7552_v38  ;;  %v2053_v3 = vmul.f32 %v6558_v52, %v7526_v33  ;;  %v1986_v18 = vmul.f32 %v6551_v29, %v7495_v50  ;;  %v2054_v50 = vmul.f32 %v6558_v52, %v7552_v38 }
 0x2c0   : > { %v1383_v53 = vpop.f32.mrf.mxu0  ;;  %v1913_v24 = vadd.f32 %v1881_v21, %v1845_v27  ;;  %v2255_v14 = vadd.f32 %v7473_v11, %v2151_v44  ;;  %v2084_v48 = vadd.f32 %v2052_v34, %v2016_v0  ;;  %v7576_v4 = vadd.f32 %v2358_v45, %v2322_v17 }
 0x2c1   : > { %v2640_v27 = vadd.f32 1.0, %v5611_v23  ;;  %v2359_v0 = vmul.f32 %v6604_v35, %v7561_v51  ;;  %v7584_v34 = vadd.f32 %v7478_v2, %v6369_v43  ;;  %v7590_v23 = vld [vmem:[#allocation2 + $0x189] sm:$0xff]  ;;  %v2292_v17 = vmul.f32 %v6591_v58, %v7548_v49 }
 0x2c2   : > { %v1385_v32 = vpop.f32.mrf.mxu0  ;;  %v2017_v21 = vadd.f32 %v1985_v37, %v1913_v24  ;;  %v2323_v42 = vadd.f32 %v2291_v7, %v2255_v14  ;;  %v2152_v11 = vadd.f32 %v2120_v22, %v2084_v48  ;;  %v2121_v37 = vmul.f32 %v6575_v1, %v7572_v57 }
 0x2c3   : > { %9524 = vst [vmem:[#allocation111_spill] sm:$0xff] %v7584_v34  ;;  %v1374_v14 = vadd.f32 %v7499_v28, %v6497_v62  ;;  %v7600_v24 = vadd.f32 %v7516_v56, %v6369_v43  ;;  %v1378_v48 = vadd.f32 %v1377_v39, %v6497_v62  ;;  %v2641_v22 = vadd.f32 1.0, %v5613_v8  ;;  %v7607_v28 = vpop.f32.mrf.mxu1 }
 0x2c4   : > { %v1387_v44 = vpop.f32.mrf.mxu0  ;;  %v2085_v6 = vadd.f32 %v2053_v3, %v2017_v21  ;;  %v7596_v45 = vadd.f32 %v2359_v0, %v2323_v42  ;;  %v2256_v2 = vadd.f32 %v2224_v47, %v2152_v11  ;;  %v7605_v3 = vmul.f32 %v2640_v27, %v7399_v13  ;;  %9527 = vst [vmem:[#allocation114_spill] sm:$0xff] %v7607_v28  ;;  %v7609_v21 = vld [vmem:[#allocation2 + $0x191] sm:$0xff] }
 0x2c5   : > { %9525 = vst [vmem:[#allocation112_spill] sm:$0xff] %v7600_v24  ;;  %1673 = vst.msk [vmem:[#allocation2 + $0x1a8] sm:$0xff] %vm589_vm0, %v1374_v14  ;;  %v2360_v47 = vmul.f32 %v6604_v35, %v7590_v23  ;;  %v7614_v56 = vadd.f32 %v1381_v40, %v6369_v43  ;;  %v2579_v11 = vmul.f32 0.7978846, %v2547_v63  ;;  %v2293_v39 = vmul.f32 %v6591_v58, %v7561_v51 }
 0x2c6   : > { %v1391_v46 = vpop.f32.mrf.mxu0  ;;  %v2153_v7 = vadd.f32 %v2121_v37, %v2085_v6  ;;  %9526 = vst [vmem:[#allocation113_spill] sm:$0xff] %v7605_v3  ;;  %v2324_v42 = vadd.f32 %v2292_v17, %v2256_v2  ;;  %v1384_v6 = vadd.f32 %v1383_v53, %v6497_v62  ;;  %1674 = vst.msk [vmem:[#allocation2 + $0x1b0] sm:$0xff] %vm589_vm0, %v1378_v48  ;;  %v2777_v63 = vsel %vm589_vm0, %v7534_v20, 0.0 }
 0x2c7   : > { %9528 = vst [vmem:[#allocation115_spill] sm:$0xff] %v7614_v56  ;;  %v7621_v8 = vadd.f32 %v1385_v32, %v6369_v43  ;;  %v1388_v40 = vadd.f32 %v1387_v44, %v6497_v62  ;;  %v7628_v37 = vadd.f32 %v1391_v46, %v6369_v43  ;;  %v2361_v32 = vmul.f32 %v6604_v35, %v7609_v21 }
 0x2c8   : > { %v1393_v0 = vpop.f32.mrf.mxu0  ;;  %v2257_v13 = vadd.f32 %v2225_v25, %v2153_v7  ;;  %v7623_v27 = vadd.f32 %v2360_v47, %v2324_v42  ;;  %1675 = vst.msk [vmem:[#allocation2 + $0x1c8] sm:$0xff] %vm589_vm0, %v1384_v6  ;;  %v1814_v25 = vmul.f32 %v6532_v54, %v7508_v15  ;;  %v2452_v2 = vmul.f32 0.044715, %v7430_v36  ;;  %v7638_v7 = vpop.f32.mrf.mxu1 }
 0x2c9   : > { %9529 = vst [vmem:[#allocation116_spill] sm:$0xff] %v7621_v8  ;;  %9530 = vst [vmem:[#allocation117_spill] sm:$0xff] %v7628_v37  ;;  %v1394_v17 = vadd.f32 %v1393_v0, %v6497_v62  ;;  %v7645_v48 = vmul.f32 %v2641_v22, %v7454_v5  ;;  %v2779_v42 = vsel %vm589_vm0, %v7605_v3, 0.0  ;;  %v2453_v47 = vmul.f32 0.044715, %v7458_v60 }
 0x2ca   : > { %v1395_v53 = vpop.f32.mrf.mxu0  ;;  %v2325_v14 = vadd.f32 %v2293_v39, %v2257_v13  ;;  %9531 = vst [vmem:[#allocation118_spill] sm:$0xff] %v7638_v7  ;;  %1676 = vst.msk [vmem:[#allocation2 + $0x1d0] sm:$0xff] %vm589_vm0, %v1388_v40  ;;  %v1746_v6 = vmul.f32 %v6529_v59, %v7460_v16  ;;  %v1815_v5 = vmul.f32 %v6532_v54, %v7540_v26  ;;  %v7662_v40 = vmul.f32 0.5, %v7265_v12 }
 0x2cb   : > { %v7642_v44 = vadd.f32 %v1395_v53, %v6369_v43  ;;  %9533 = vst [vmem:[#allocation120_spill] sm:$0xff] %v7645_v48  ;;  %1677 = vst.msk [vmem:[#allocation2 + $0x1e8] sm:$0xff] %vm589_vm0, %v1394_v17  ;;  %v2778_v53 = vadd.f32 %v2777_v63, %v7295_v31  ;;  %5616 = vtanh.f32 %v2579_v11  ;;  %v7673_v17 = vpop.f32.mrf.mxu1  ;;  %v7684_v63 = vsel %vm589_vm0, %v7645_v48, 0.0 }
 0x2cc   : > { %v1397_v46 = vpop.f32.mrf.mxu0  ;;  %v7652_v0 = vadd.f32 %v2361_v32, %v2325_v14  ;;  %v7659_v22 = vld [vmem:[#allocation2 + $0x1a7] sm:$0xff]  ;;  %v1846_v16 = vadd.f32 %v1814_v25, %v1746_v6  ;;  %v7669_v32 = vmul.f32 0.5, %v7293_v41  ;;  %9535 = vst [vmem:[#allocation122_spill] sm:$0xff] %v7673_v17  ;;  %9538 = vst [vmem:[#allocation125_spill] sm:$0xff] %v7684_v63  ;;  %v7687_v41 = vmul.f32 %v2452_v2, %v7430_v36 }
 0x2cd   : > { %9532 = vst [vmem:[#allocation119_spill] sm:$0xff] %v7642_v44  ;;  %v1398_v39 = vadd.f32 %v1397_v46, %v6497_v62  ;;  %v1882_v14 = vmul.f32 %v6545_v10, %v7659_v22  ;;  %v7675_v46 = vld [vmem:[#allocation2 + $0x1af] sm:$0xff]  ;;  %v7680_v31 = vadd.f32 %v2779_v42, %v2778_v53  ;;  %v7690_v11 = vmul.f32 %v2453_v47, %v7458_v60 }
 0x2ce   : > { %v1401_v13 = vpop.f32.mrf.mxu0  ;;  %9534 = vst [vmem:[#allocation121_spill] sm:$0xff] %v7669_v32  ;;  %v1987_v6 = vmul.f32 %v6551_v29, %v7526_v33  ;;  %v1816_v42 = vmul.f32 %v6532_v54, %v7659_v22  ;;  %v1883_v2 = vmul.f32 %v6545_v10, %v7675_v46  ;;  %v2226_v47 = vmul.f32 %v6579_v19, %v7548_v49  ;;  %v7718_v37 = vld [vmem:[#allocation2 + $0x1b0] sm:$0xff] }
 0x2cf   : > { %1678 = vst.msk [vmem:[#allocation2 + $0x1f0] sm:$0xff] %vm589_vm0, %v1398_v39  ;;  %v7678_v12 = vadd.f32 %v1401_v13, %v6369_v43  ;;  %9537 = vst [vmem:[#allocation124_spill] sm:$0xff] %v7680_v31  ;;  %v1914_v25 = vadd.f32 %v1882_v14, %v1846_v16  ;;  %v1847_v39 = vadd.f32 %v1815_v5, %v1747_v61  ;;  %v7698_v13 = vld [vmem:[#allocation2 + $0x1a8] sm:$0xff]  ;;  %v7710_v5 = vpop.f32.mrf.mxu1 }
 0x2d0   : > { %v2227_v53 = vmul.f32 %v6579_v19, %v7561_v51  ;;  %v7708_v33 = vld [vmem:[#allocation2 + $0x1c7] sm:$0xff]  ;;  %9539 = vst [vmem:[#allocation126_spill] sm:$0xff] %v7710_v5  ;;  %v1748_v14 = vmul.f32 %v6529_v59, %v7508_v15  ;;  %v1988_v61 = vmul.f32 %v6551_v29, %v7552_v38  ;;  %v1817_v49 = vmul.f32 %v6532_v54, %v7675_v46 }
 0x2d1   : > { %9536 = vst [vmem:[#allocation123_spill] sm:$0xff] %v7678_v12  ;;  %v2018_v16 = vadd.f32 %v1986_v18, %v1914_v25  ;;  %v1915_v44 = vadd.f32 %v1883_v2, %v1847_v39  ;;  %v1749_v51 = vmul.f32 %v6529_v59, %v7540_v26  ;;  %v1989_v18 = vmul.f32 %v6551_v29, %v7572_v57  ;;  %v7726_v15 = vld [vmem:[#allocation2 + $0x1cf] sm:$0xff]  ;;  %v7738_v8 = vpop.f32.mrf.mxu1 }
 0x2d2   : > { %v2122_v12 = vmul.f32 %v6575_v1, %v7698_v13  ;;  %v2055_v38 = vmul.f32 %v6558_v52, %v7572_v57  ;;  %v1848_v24 = vadd.f32 %v1816_v42, %v1748_v14  ;;  %v1884_v39 = vmul.f32 %v6545_v10, %v7708_v33  ;;  %9540 = vst [vmem:[#allocation127_spill] sm:$0xff] %v7738_v8  ;;  %v7740_v57 = vld [vmem:[#allocation2 + $0x1a9] sm:$0xff]  ;;  %v1403_v8 = vpop.f32.mrf.mxu0 }
 0x2d3   : > { %v2086_v25 = vadd.f32 %v2054_v50, %v2018_v16  ;;  %v2019_v34 = vadd.f32 %v1987_v6, %v1915_v44  ;;  %v2228_v26 = vmul.f32 %v6579_v19, %v7590_v23  ;;  %v2229_v2 = vmul.f32 %v6579_v19, %v7609_v21  ;;  %v7751_v3 = vld [vmem:[#allocation2 + $0x1c8] sm:$0xff] }
 0x2d4   : > { %v2123_v16 = vmul.f32 %v6575_v1, %v7718_v37  ;;  %v1849_v56 = vadd.f32 %v1817_v49, %v1749_v51  ;;  %v1916_v44 = vadd.f32 %v1884_v39, %v1848_v24  ;;  %v1885_v6 = vmul.f32 %v6545_v10, %v7726_v15  ;;  %v7755_v24 = vld [vmem:[#allocation2 + $0x1b1] sm:$0xff]  ;;  %v7757_v39 = vpop.eup %5614 }
 0x2d5   : > { %v2154_v50 = vadd.f32 %v2122_v12, %v2086_v25  ;;  %v2087_v48 = vadd.f32 %v2055_v38, %v2019_v34  ;;  %v7745_v42 = vmul.f32 0.044715, %v7576_v4  ;;  %v2294_v14 = vmul.f32 %v6591_v58, %v7590_v23 }
 0x2d6   : > { %v2295_v12 = vmul.f32 %v6591_v58, %v7609_v21  ;;  %v2056_v34 = vmul.f32 %v6558_v52, %v7698_v13  ;;  %v2020_v51 = vadd.f32 %v1988_v61, %v1916_v44  ;;  %v1917_v38 = vadd.f32 %v1885_v6, %v1849_v56 }
 0x2d7   : > { %v2258_v25 = vadd.f32 %v2226_v47, %v2154_v50  ;;  %v2155_v49 = vadd.f32 %v2123_v16, %v2087_v48  ;;  %v2057_v20 = vmul.f32 %v6558_v52, %v7718_v37  ;;  %v2362_v21 = vmul.f32 %v6604_v35, %v7740_v57  ;;  %v7765_v50 = vld [vmem:[#allocation2 + $0x1d0] sm:$0xff]  ;;  %v7769_v16 = vpop.f32.mrf.mxu1 }
 0x2d8   : > { %v1818_v47 = vmul.f32 %v6532_v54, %v7708_v33  ;;  %v7767_v48 = vpop.eup %5616  ;;  %9541 = vst [vmem:[#allocation128_spill] sm:$0xff] %v7769_v16  ;;  %v2088_v61 = vadd.f32 %v2056_v34, %v2020_v51  ;;  %v2124_v44 = vmul.f32 %v6575_v1, %v7751_v3  ;;  %v2021_v6 = vadd.f32 %v1989_v18, %v1917_v38  ;;  %v7785_v18 = vld [vmem:[#allocation2 + $0x1ef] sm:$0xff] }
 0x2d9   : > { %v2326_v23 = vadd.f32 %v2294_v14, %v2258_v25  ;;  %v2259_v56 = vadd.f32 %v2227_v53, %v2155_v49  ;;  %v7773_v14 = vld [vmem:[#allocation2 + $0x1e7] sm:$0xff]  ;;  %v1750_v25 = vmul.f32 %v6529_v59, %v7659_v22  ;;  %v2363_v17 = vmul.f32 %v6604_v35, %v7755_v24 }
 0x2da   : > { %v1819_v5 = vmul.f32 %v6532_v54, %v7726_v15  ;;  %v2156_v53 = vadd.f32 %v2124_v44, %v2088_v61  ;;  %v2089_v34 = vadd.f32 %v2057_v20, %v2021_v6  ;;  %v2125_v49 = vmul.f32 %v6575_v1, %v7765_v50 }
 0x2db   : > { %v7779_v28 = vadd.f32 %v2362_v21, %v2326_v23  ;;  %v2327_v16 = vadd.f32 %v2295_v12, %v2259_v56  ;;  %v1990_v51 = vmul.f32 %v6551_v29, %v7698_v13  ;;  %v1751_v22 = vmul.f32 %v6529_v59, %v7675_v46  ;;  %v7791_v23 = vld [vmem:[#allocation2 + $0x1c9] sm:$0xff]  ;;  %v1405_v12 = vpop.f32.mrf.mxu0  ;;  %v7795_v56 = vpop.f32.mrf.mxu1 }
 0x2dc   : > { %v1850_v38 = vadd.f32 %v1818_v47, %v1750_v25  ;;  %v1886_v21 = vmul.f32 %v6545_v10, %v7773_v14  ;;  %9542 = vst [vmem:[#allocation129_spill] sm:$0xff] %v7795_v56  ;;  %v2296_v20 = vmul.f32 %v6591_v58, %v7740_v57  ;;  %v2260_v44 = vadd.f32 %v2228_v26, %v2156_v53  ;;  %v2193_v47 = vld [vmem:[#allocation2 + $0x1d1] sm:$0xff] }
 0x2dd   : > { %v7799_v61 = vadd.f32 %v2363_v17, %v2327_v16  ;;  %v2157_v6 = vadd.f32 %v2125_v49, %v2089_v34  ;;  %v1991_v13 = vmul.f32 %v6551_v29, %v7718_v37  ;;  %v1851_v46 = vadd.f32 %v1819_v5, %v1751_v22  ;;  %v1954_v16 = vld [vmem:[#allocation2 + $0x1e8] sm:$0xff]  ;;  %v1407_v34 = vpop.f32.mrf.mxu0  ;;  %v7813_v49 = vpop.f32.mrf.mxu1 }
 0x2de   : > { %v1918_v25 = vadd.f32 %v1886_v21, %v1850_v38  ;;  %v1887_v7 = vmul.f32 %v6545_v10, %v7785_v18  ;;  %v2297_v55 = vmul.f32 %v6591_v58, %v7755_v24  ;;  %v2328_v32 = vadd.f32 %v2296_v20, %v2260_v44  ;;  %v7818_v21 = vld [vmem:[#allocation2 + $0x1f0] sm:$0xff] }
 0x2df   : > { %v2261_v56 = vadd.f32 %v2229_v2, %v2157_v6  ;;  %v2364_v17 = vmul.f32 %v6604_v35, %v7791_v23  ;;  %v2058_v26 = vmul.f32 %v6558_v52, %v7751_v3  ;;  %v2059_v37 = vmul.f32 %v6558_v52, %v7765_v50 }
 0x2e0   : > { %v2022_v5 = vadd.f32 %v1990_v51, %v1918_v25  ;;  %v1919_v53 = vadd.f32 %v1887_v7, %v1851_v46  ;;  %v2365_v38 = vmul.f32 %v6604_v35, %v2193_v47  ;;  %v1404_v20 = vadd.f32 %v1403_v8, %v6497_v62  ;;  %v2194_v46 = vld [vmem:[#allocation2 + $0x1e9] sm:$0xff] }
 0x2e1   : > { %v2329_v22 = vadd.f32 %v2297_v55, %v2261_v56  ;;  %v7816_v2 = vadd.f32 %v2364_v17, %v2328_v32  ;;  %v2126_v6 = vmul.f32 %v6575_v1, %v1954_v16  ;;  %v7823_v31 = vadd.f32 %v1405_v12, %v6369_v43  ;;  %v7840_v12 = vpop.f32.mrf.mxu1 }
 0x2e2   : > { %v2090_v44 = vadd.f32 %v2058_v26, %v2022_v5  ;;  %v2023_v63 = vadd.f32 %v1991_v13, %v1919_v53  ;;  %v7827_v7 = vmul.f32 %v7687_v41, %v7430_v36  ;;  %1679 = vst.msk [vmem:[#allocation2 + $0x208] sm:$0xff] %vm589_vm0, %v1404_v20  ;;  %v1408_v32 = vadd.f32 %v1407_v34, %v6497_v62  ;;  %v2195_v5 = vld [vmem:[#allocation2 + $0x1f1] sm:$0xff] }
 0x2e3   : > { %9543 = vst [vmem:[#allocation130_spill] sm:$0xff] %v7823_v31  ;;  %v7829_v55 = vadd.f32 %v2365_v38, %v2329_v22  ;;  %v7834_v51 = vadd.f32 1.0, %v7757_v39  ;;  %v2230_v8 = vmul.f32 %v6579_v19, %v7740_v57  ;;  %v2127_v43 = vmul.f32 %v6575_v1, %v7818_v21  ;;  %v7870_v38 = vpop.f32.mrf.mxu1 }
 0x2e4   : > { %v2158_v56 = vadd.f32 %v2126_v6, %v2090_v44  ;;  %v2091_v13 = vadd.f32 %v2059_v37, %v2023_v63  ;;  %v2231_v41 = vmul.f32 %v6579_v19, %v7755_v24  ;;  %1680 = vst.msk [vmem:[#allocation2 + $0x210] sm:$0xff] %vm589_vm0, %v1408_v32  ;;  %v7846_v62 = vmul.f32 0.044715, %v7596_v45 }
 0x2e5   : > { %v7850_v39 = vmul.f32 %v7745_v42, %v7576_v4  ;;  %v7854_v63 = vmul.f32 %v7690_v11, %v7458_v60  ;;  %v1752_v57 = vmul.f32 %v6529_v59, %v7708_v33  ;;  %v2298_v24 = vmul.f32 %v6591_v58, %v7791_v23 }
 0x2e6   : > { %v2262_v25 = vadd.f32 %v2230_v8, %v2158_v56  ;;  %v2159_v17 = vadd.f32 %v2127_v43, %v2091_v13  ;;  %v1992_v26 = vmul.f32 %v6551_v29, %v7751_v3  ;;  %v1753_v37 = vmul.f32 %v6529_v59, %v7726_v15 }
 0x2e7   : > { %v2299_v42 = vmul.f32 %v6591_v58, %v2193_v47  ;;  %v1820_v11 = vmul.f32 %v6532_v54, %v7773_v14  ;;  %v1821_v33 = vmul.f32 %v6532_v54, %v7785_v18  ;;  %v2366_v34 = vmul.f32 %v6604_v35, %v2194_v46 }
 0x2e8   : > { %v2330_v53 = vadd.f32 %v2298_v24, %v2262_v25  ;;  %v2263_v22 = vadd.f32 %v2231_v41, %v2159_v17  ;;  %v1993_v3 = vmul.f32 %v6551_v29, %v7765_v50  ;;  %v2232_v15 = vmul.f32 %v6579_v19, %v7791_v23 }
 0x2e9   : > { %v7877_v20 = vmul.f32 %v6579_v19, %v2193_v47  ;;  %v1754_v44 = vmul.f32 %v6529_v59, %v7773_v14  ;;  %v1994_v6 = vmul.f32 %v6551_v29, %v1954_v16  ;;  %v1716_v8 = vld [vmem:[#allocation2 + $0x207] sm:$0xff]  ;;  %v2367_v13 = vmul.f32 %v6604_v35, %v2195_v5 }
 0x2ea   : > { %v7882_v32 = vadd.f32 %v2366_v34, %v2330_v53  ;;  %v2331_v56 = vadd.f32 %v2299_v42, %v2263_v22  ;;  %v1852_v43 = vadd.f32 %v1820_v11, %v1752_v57  ;;  %v2060_v50 = vmul.f32 %v6558_v52, %v1954_v16  ;;  %v5509_v47 = vld [vmem:[%s9331_s6] sm:$0xff]   ;;  %v7897_v57 = vpop.f32.mrf.mxu1  ;;  %v1956_v53 = vld [vmem:[#allocation2 + $0x208] sm:$0xff] }
 0x2eb   : > { %v1822_v41 = vmul.f32 %v6532_v54, %v1716_v8  ;;  %v1888_v23 = vmul.f32 %v6545_v10, %v1716_v8  ;;  %v1755_v14 = vmul.f32 %v6529_v59, %v7785_v18  ;;  %v1853_v24 = vadd.f32 %v1821_v33, %v1753_v37  ;;  %v1717_v17 = vld [vmem:[#allocation2 + $0x20f] sm:$0xff]  ;;  %5332 = vmatprep.subr.bf16.mxu0 %v5509_v47 }
 0x2ec   : > { %v2061_v25 = vmul.f32 %v6558_v52, %v7818_v21  ;;  %v7895_v42 = vadd.f32 %v2367_v13, %v2331_v56  ;;  %v1823_v34 = vmul.f32 %v6532_v54, %v1717_v17  ;;  %v1889_v22 = vmul.f32 %v6545_v10, %v1717_v17  ;;  %5333 = vmatpush3.bf16.msra.mxu0 %v5509_v47 }
 0x2ed   : > { %v1854_v16 = vadd.f32 %v1822_v41, %v1754_v44  ;;  %v1920_v11 = vadd.f32 %v1888_v23, %v1852_v43  ;;  %v2300_v8 = vmul.f32 %v6591_v58, %v2194_v46  ;;  %v1995_v59 = vmul.f32 %v6551_v29, %v7818_v21  ;;  %v1957_v43 = vld [vmem:[#allocation2 + $0x210] sm:$0xff]  ;;  %v7911_v29 = vpop.f32.mrf.mxu1 }
 0x2ee   : > { %v2234_v18 = vmul.f32 %v6579_v19, %v2194_v46  ;;  %v2235_v37 = vmul.f32 %v6579_v19, %v2195_v5  ;;  %v1921_v56 = vadd.f32 %v1889_v22, %v1853_v24  ;;  %v1855_v44 = vadd.f32 %v1823_v34, %v1755_v14  ;;  %v9544_v22 = vld [vmem:[#allocation102_spill] sm:$0xff] }
 0x2ef   : > { %v2024_v33 = vadd.f32 %v1992_v26, %v1920_v11  ;;  %v1922_v13 = vadd.f32 %v7481_v9, %v1854_v16  ;;  %v2062_v54 = vmul.f32 %v6558_v52, %v1956_v53  ;;  %v2128_v10 = vmul.f32 %v6575_v1, %v1956_v53  ;;  %v2196_v53 = vld [vmem:[#allocation2 + $0x209] sm:$0xff] }
 0x2f0   : > { %v2301_v41 = vmul.f32 %v6591_v58, %v2195_v5  ;;  %v2456_v23 = vmul.f32 0.044715, %v7623_v27  ;;  %v2025_v46 = vadd.f32 %v1993_v3, %v1921_v56  ;;  %v1923_v19 = vadd.f32 %v7484_v30, %v1855_v44  ;;  %v2197_v56 = vld [vmem:[#allocation2 + $0x211] sm:$0xff] }
 0x2f1   : > { %v2092_v21 = vadd.f32 %v2060_v50, %v2024_v33  ;;  %v2026_v26 = vadd.f32 %v1994_v6, %v1922_v13  ;;  %v2063_v47 = vmul.f32 %v6558_v52, %v1957_v43  ;;  %v2129_v9 = vmul.f32 %v6575_v1, %v1957_v43  ;;  %v7923_v6 = vpop.f32.mrf.mxu1 }
 0x2f2   : > { %v2457_v14 = vmul.f32 0.044715, %v7652_v0  ;;  %v2458_v24 = vmul.f32 0.044715, %v7779_v28  ;;  %v2027_v16 = vadd.f32 %v1995_v59, %v1923_v19  ;;  %v2093_v5 = vadd.f32 %v2061_v25, %v2025_v46 }
 0x2f3   : > { %v2160_v17 = vadd.f32 %v2128_v10, %v2092_v21  ;;  %v2094_v11 = vadd.f32 %v2062_v54, %v2026_v26  ;;  %v2459_v34 = vmul.f32 0.044715, %v7799_v61  ;;  %v2460_v3 = vmul.f32 0.044715, %v7816_v2  ;;  %v9545_v54 = vld [vmem:[#allocation103_spill] sm:$0xff] }
 0x2f4   : > { %v2461_v30 = vmul.f32 0.044715, %v7829_v55  ;;  %v2487_v52 = vmul.f32 %v7846_v62, %v7596_v45  ;;  %v2095_v1 = vadd.f32 %v2063_v47, %v2027_v16  ;;  %v2161_v50 = vadd.f32 %v2129_v9, %v2093_v5  ;;  %v7936_v9 = vpop.f32.mrf.mxu1 }
 0x2f5   : > { %v2162_v33 = vadd.f32 %v9544_v22, %v2094_v11  ;;  %v2264_v59 = vadd.f32 %v2232_v15, %v2160_v17  ;;  %v2302_v25 = vmul.f32 %v6591_v58, %v2196_v53  ;;  %v2368_v44 = vmul.f32 %v6604_v35, %v2196_v53  ;;  %v9546_v53 = vld [vmem:[#allocation104_spill] sm:$0xff] }
 0x2f6   : > { %v2462_v13 = vmul.f32 0.044715, %v7882_v32  ;;  %v2488_v43 = vmul.f32 %v2456_v23, %v7623_v27  ;;  %v2163_v10 = vadd.f32 %v9545_v54, %v2095_v1  ;;  %v2265_v62 = vadd.f32 %v7877_v20, %v2161_v50 }
 0x2f7   : > { %v2266_v21 = vadd.f32 %v2234_v18, %v2162_v33  ;;  %v2332_v46 = vadd.f32 %v2300_v8, %v2264_v59  ;;  %v2303_v19 = vmul.f32 %v6591_v58, %v2197_v56  ;;  %v2369_v26 = vmul.f32 %v6604_v35, %v2197_v56 }
 0x2f8   : > { %v2463_v15 = vmul.f32 0.044715, %v7895_v42  ;;  %v2489_v47 = vmul.f32 %v2457_v14, %v7652_v0  ;;  %v2267_v17 = vadd.f32 %v2235_v37, %v2163_v10  ;;  %v2333_v16 = vadd.f32 %v2301_v41, %v2265_v62 }
 0x2f9   : > { %v2334_v5 = vadd.f32 %v2302_v25, %v2266_v21  ;;  %v7938_v23 = vadd.f32 %v2368_v44, %v2332_v46  ;;  %v2490_v11 = vmul.f32 %v2458_v24, %v7779_v28  ;;  %v2491_v20 = vmul.f32 %v2459_v34, %v7799_v61 }
 0x2fa   : > { %v2492_v8 = vmul.f32 %v2460_v3, %v7816_v2  ;;  %v2493_v58 = vmul.f32 %v2461_v30, %v7829_v55  ;;  %v2335_v35 = vadd.f32 %v2303_v19, %v2267_v17  ;;  %v7944_v18 = vadd.f32 %v2369_v26, %v2333_v16  ;;  %v7955_v3 = vpop.f32.mrf.mxu1  ;;  %v9547_v30 = vld [vmem:[#allocation106_spill] sm:$0xff] }
 0x2fb   : > { %v7947_v14 = vadd.f32 %v9546_v53, %v2334_v5  ;;  %v2494_v37 = vmul.f32 %v2462_v13, %v7882_v32  ;;  %v2464_v41 = vmul.f32 0.044715, %v7938_v23  ;;  %v2495_v1 = vmul.f32 %v2463_v15, %v7895_v42 }
 0x2fc   : > { %v2518_v24 = vmul.f32 %v7850_v39, %v7576_v4  ;;  %v2519_v34 = vmul.f32 %v2487_v52, %v7596_v45  ;;  %v7958_v50 = vadd.f32 %v9547_v30, %v2335_v35  ;;  %v2465_v22 = vmul.f32 0.044715, %v7944_v18  ;;  %v7977_v19 = vpop.f32.mrf.mxu1 }
 0x2fd   : > { %v2520_v33 = vmul.f32 %v2488_v43, %v7623_v27  ;;  %v2521_v56 = vmul.f32 %v2489_v47, %v7652_v0  ;;  %v2466_v59 = vmul.f32 0.044715, %v7947_v14  ;;  %v2496_v25 = vmul.f32 %v2464_v41, %v7938_v23 }
 0x2fe   : > { %v2522_v44 = vmul.f32 %v2490_v11, %v7779_v28  ;;  %v2548_v39 = vadd.f32 %v7827_v7, %v7430_v36  ;;  %v2467_v52 = vmul.f32 0.044715, %v7958_v50  ;;  %v2523_v13 = vmul.f32 %v2491_v20, %v7799_v61 }
 0x2ff   : > { %v2524_v54 = vmul.f32 %v2492_v8, %v7816_v2  ;;  %v2549_v43 = vadd.f32 %v7854_v63, %v7458_v60  ;;  %v2525_v10 = vmul.f32 %v2493_v58, %v7829_v55  ;;  %v2526_v62 = vmul.f32 %v2494_v37, %v7882_v32 }
 0x300   : > { %v2527_v21 = vmul.f32 %v2495_v1, %v7895_v42  ;;  %v2550_v46 = vadd.f32 %v2518_v24, %v7576_v4  ;;  %v2497_v7 = vmul.f32 %v2465_v22, %v7944_v18  ;;  %v2498_v26 = vmul.f32 %v2466_v59, %v7947_v14  ;;  %v7992_v1 = vpop.f32.mrf.mxu1 }
 0x301   : > { %v2528_v15 = vmul.f32 %v2496_v25, %v7938_v23  ;;  %v2551_v47 = vadd.f32 %v2519_v34, %v7596_v45  ;;  %v2552_v63 = vadd.f32 %v2520_v33, %v7623_v27  ;;  %v2553_v17 = vadd.f32 %v2521_v56, %v7652_v0 }
 0x302   : > { %v2554_v16 = vadd.f32 %v2522_v44, %v7779_v28  ;;  %v2580_v5 = vmul.f32 0.7978846, %v2548_v39  ;;  %v2499_v11 = vmul.f32 %v2467_v52, %v7958_v50  ;;  %v2555_v20 = vadd.f32 %v2523_v13, %v7799_v61  ;;  %v9548_v39 = vld [vmem:[#allocation124_spill] sm:$0xff]  ;;  %v9549_v52 = vld [vmem:[#allocation125_spill] sm:$0xff] }
 0x303   : > { %v2556_v8 = vadd.f32 %v2524_v54, %v7816_v2  ;;  %v2581_v58 = vmul.f32 0.7978846, %v2549_v43  ;;  %v2557_v35 = vadd.f32 %v2525_v10, %v7829_v55  ;;  %v2558_v53 = vadd.f32 %v2526_v62, %v7882_v32  ;;  %v9550_v43 = vld [vmem:[#allocation121_spill] sm:$0xff] }
 0x304   : > { %v2559_v37 = vadd.f32 %v2527_v21, %v7895_v42  ;;  %v2582_v41 = vmul.f32 0.7978846, %v2550_v46  ;;  %v2529_v24 = vmul.f32 %v2497_v7, %v7944_v18  ;;  %v2530_v34 = vmul.f32 %v2498_v26, %v7947_v14  ;;  %v1588_v21 = vpop.f32.mrf.mxu1  ;;  %v9551_v7 = vld [vmem:[#allocation62_spill] sm:$0xff] }
 0x305   : > { %v2560_v30 = vadd.f32 %v2528_v15, %v7938_v23  ;;  %v2583_v22 = vmul.f32 0.7978846, %v2551_v47  ;;  %v2584_v33 = vmul.f32 0.7978846, %v2552_v63  ;;  %5618 = vtanh.f32 %v2580_v5  ;;  %v9552_v15 = vld [vmem:[#allocation67_spill] sm:$0xff] }
 0x306   : > { %v2643_v56 = vadd.f32 1.0, %v7767_v48  ;;  %v2674_v59 = vmul.f32 %v7834_v51, %v7662_v40  ;;  %v2531_v25 = vmul.f32 %v2499_v11, %v7958_v50  ;;  %v2585_v44 = vmul.f32 0.7978846, %v2553_v17  ;;  %v9553_v5 = vld [vmem:[#allocation35_spill] sm:$0xff]  ;;  %v9554_v11 = vld [vmem:[#allocation101_spill] sm:$0xff] }
 0x307   : > { %5620 = vtanh.f32 %v2581_v58  ;;  %v2782_v13 = vadd.f32 %v9549_v52, %v9548_v39  ;;  %v2586_v54 = vmul.f32 0.7978846, %v2554_v16  ;;  %v2587_v46 = vmul.f32 0.7978846, %v2555_v20 }
 0x308   : > { %5622 = vtanh.f32 %v2582_v41  ;;  %v2675_v10 = vmul.f32 %v2643_v56, %v9550_v43  ;;  %v2783_v62 = vsel %vm589_vm0, %v2674_v59, 0.0  ;;  %v8006_v26 = vmul.f32 %v2674_v59, %v9551_v7  ;;  %v9556_v56 = vld [vmem:[#allocation110_spill] sm:$0xff] }
 0x309   : > { %5624 = vtanh.f32 %v2583_v22  ;;  %v2784_v48 = vadd.f32 %v2783_v62, %v2782_v13  ;;  %v2588_v40 = vmul.f32 0.7978846, %v2556_v8  ;;  %v2561_v63 = vadd.f32 %v2529_v24, %v7944_v18  ;;  %v9555_v8 = vld [vmem:[#allocation108_spill] sm:$0xff] }
 0x30a   : > { %5626 = vtanh.f32 %v2584_v33  ;;  %v2785_v51 = vsel %vm589_vm0, %v2675_v10, 0.0  ;;  %v8010_v47 = vmul.f32 %v2675_v10, %v9552_v15  ;;  %v2589_v17 = vmul.f32 0.7978846, %v2557_v35  ;;  %v8024_v33 = vpop.f32.mrf.mxu1  ;;  %v9559_v13 = vld [vmem:[#allocation128_spill] sm:$0xff] }
 0x30b   : > { %5628 = vtanh.f32 %v2585_v44  ;;  %v8013_v16 = vadd.f32 %v2785_v51, %v2784_v48  ;;  %v8017_v20 = vadd.f32 %v9554_v11, %v9553_v5  ;;  %v2562_v58 = vadd.f32 %v2530_v34, %v7947_v14  ;;  %v9557_v44 = vld [vmem:[#allocation118_spill] sm:$0xff] }
 0x30c   : > { %v2590_v41 = vmul.f32 0.7978846, %v2558_v53  ;;  %5630 = vtanh.f32 %v2586_v54  ;;  %v8022_v22 = vadd.f32 %v9555_v8, %v9553_v5  ;;  %v2563_v24 = vadd.f32 %v2531_v25, %v7958_v50  ;;  %v9558_v34 = vld [vmem:[#allocation126_spill] sm:$0xff] }
 0x30d   : > { %v2591_v35 = vmul.f32 0.7978846, %v2559_v37  ;;  %5632 = vtanh.f32 %v2587_v46  ;;  %v8029_v59 = vadd.f32 %v9556_v56, %v9553_v5  ;;  %v8033_v39 = vadd.f32 %v9557_v44, %v9553_v5  ;;  %v1594_v46 = vpop.f32.mrf.mxu1 }
 0x30e   : > { %v2592_v53 = vmul.f32 0.7978846, %v2560_v30  ;;  %5634 = vtanh.f32 %v2588_v40  ;;  %v8037_v52 = vadd.f32 %v9558_v34, %v9553_v5  ;;  %v8041_v54 = vadd.f32 %v9559_v13, %v9553_v5  ;;  %v9560_v13 = vld [vmem:[#allocation70_spill] sm:$0xff] }
 0x30f   : > { %v2593_v37 = vmul.f32 0.7978846, %v2561_v63  ;;  %5636 = vtanh.f32 %v2589_v17  ;;  %v8045_v25 = vadd.f32 %v7813_v49, %v9553_v5  ;;  %v2420_v43 = vmul.f32 0.5, %v7430_v36 }
 0x310   : > { %v2594_v10 = vmul.f32 0.7978846, %v2562_v58  ;;  %5638 = vtanh.f32 %v2590_v41  ;;  %v8050_v30 = vadd.f32 %v7870_v38, %v9553_v5  ;;  %v8054_v62 = vadd.f32 %v7911_v29, %v9553_v5 }
 0x311   : > { %v2595_v48 = vmul.f32 0.7978846, %v2563_v24  ;;  %5640 = vtanh.f32 %v2591_v35  ;;  %v8058_v7 = vadd.f32 %v7936_v9, %v9553_v5  ;;  %v8062_v36 = vadd.f32 %v7977_v19, %v9553_v5 }
 0x312   : > { %v8065_v49 = vadd.f32 %v1588_v21, %v9553_v5  ;;  %5642 = vtanh.f32 %v2592_v53  ;;  %v5619_v38 = vpop.eup %5618  ;;  %v2421_v40 = vmul.f32 0.5, %v7458_v60  ;;  %v2422_v29 = vmul.f32 0.5, %v7576_v4 }
 0x313   : > { %v2423_v51 = vmul.f32 0.5, %v7596_v45  ;;  %5644 = vtanh.f32 %v2593_v37  ;;  %v8071_v9 = vadd.f32 %v1594_v46, %v9553_v5  ;;  %v2424_v63 = vmul.f32 0.5, %v7623_v27 }
 0x314   : > { %v5621_v15 = vpop.eup %5620  ;;  %5646 = vtanh.f32 %v2594_v10  ;;  %v2644_v19 = vadd.f32 1.0, %v5619_v38  ;;  %v2425_v21 = vmul.f32 0.5, %v7652_v0  ;;  %v2426_v11 = vmul.f32 0.5, %v7779_v28 }
 0x315   : > { %v5623_v17 = vpop.eup %5622  ;;  %5648 = vtanh.f32 %v2595_v48  ;;  %v2645_v60 = vadd.f32 1.0, %v5621_v15  ;;  %v2427_v4 = vmul.f32 0.5, %v7799_v61  ;;  %v2428_v45 = vmul.f32 0.5, %v7816_v2 }
 0x316   : > { %v5625_v58 = vpop.eup %5624  ;;  %v2646_v41 = vadd.f32 1.0, %v5623_v17  ;;  %v2676_v8 = vmul.f32 %v2644_v19, %v2420_v43  ;;  %v2429_v35 = vmul.f32 0.5, %v7829_v55  ;;  %v2430_v27 = vmul.f32 0.5, %v7882_v32 }
 0x317   : > { %v5627_v24 = vpop.eup %5626  ;;  %v2647_v56 = vadd.f32 1.0, %v5625_v58  ;;  %v2677_v44 = vmul.f32 %v2645_v60, %v2421_v40  ;;  %v9561_v40 = vld [vmem:[#allocation91_spill] sm:$0xff]  ;;  %v2431_v19 = vmul.f32 0.5, %v7895_v42  ;;  %v2432_v17 = vmul.f32 0.5, %v7938_v23  ;;  %v8097_v42 = vpop.f32.mrf.mxu1 }
 0x318   : > { %v5629_v53 = vpop.eup %5628  ;;  %v2648_v0 = vadd.f32 1.0, %v5627_v24  ;;  %v2678_v34 = vmul.f32 %v2646_v41, %v2422_v29  ;;  %v2787_v28 = vsel %vm589_vm0, %v2676_v8, 0.0  ;;  %v8082_v37 = vmul.f32 %v2676_v8, %v9560_v13 }
 0x319   : > { %v5631_v61 = vpop.eup %5630  ;;  %v2649_v10 = vadd.f32 1.0, %v5629_v53  ;;  %v2679_v2 = vmul.f32 %v2647_v56, %v2423_v51  ;;  %v2788_v43 = vadd.f32 %v2787_v28, %v8013_v16  ;;  %v2789_v46 = vsel %vm589_vm0, %v2677_v44, 0.0 }
 0x31a   : > { %v5633_v55 = vpop.eup %5632  ;;  %v2650_v48 = vadd.f32 1.0, %v5631_v61  ;;  %v2680_v32 = vmul.f32 %v2648_v0, %v2424_v63  ;;  %v2791_v38 = vsel %vm589_vm0, %v2678_v34, 0.0  ;;  %v8088_v15 = vmul.f32 %v2677_v44, %v9561_v40 }
 0x31b   : > { %v5635_v29 = vpop.eup %5634  ;;  %v2651_v60 = vadd.f32 1.0, %v5633_v55  ;;  %v2790_v58 = vadd.f32 %v2789_v46, %v2788_v43  ;;  %v2681_v16 = vmul.f32 %v2649_v10, %v2425_v21  ;;  %v2793_v8 = vsel %vm589_vm0, %v2679_v2, 0.0 }
 0x31c   : > { %9562 = vst [vmem:[#allocation102_spill] sm:$0xff] %v8088_v15  ;;  %v5637_v51 = vpop.eup %5636  ;;  %v2652_v41 = vadd.f32 1.0, %v5635_v29  ;;  %v8094_v24 = vmul.f32 %v2678_v34, %v8017_v20  ;;  %v2433_v56 = vmul.f32 0.5, %v7944_v18  ;;  %v2682_v53 = vmul.f32 %v2650_v48, %v2426_v11 }
 0x31d   : > { %v5639_v63 = vpop.eup %5638  ;;  %v2653_v44 = vadd.f32 1.0, %v5637_v51  ;;  %v2792_v0 = vadd.f32 %v2791_v38, %v2790_v58  ;;  %v2683_v13 = vmul.f32 %v2651_v60, %v2427_v4  ;;  %v2795_v61 = vsel %vm589_vm0, %v2680_v32, 0.0 }
 0x31e   : > { %9563 = vst [vmem:[#allocation103_spill] sm:$0xff] %v8094_v24  ;;  %v5641_v28 = vpop.eup %5640  ;;  %v2654_v23 = vadd.f32 1.0, %v5639_v63  ;;  %v8101_v21 = vmul.f32 %v2679_v2, %v8022_v22  ;;  %v2434_v20 = vmul.f32 0.5, %v7947_v14  ;;  %v2435_v34 = vmul.f32 0.5, %v7958_v50  ;;  %v1598_v14 = vpop.f32.mrf.mxu1 }
 0x31f   : > { %v5643_v10 = vpop.eup %5642  ;;  %v2655_v43 = vadd.f32 1.0, %v5641_v28  ;;  %v2794_v18 = vadd.f32 %v2793_v8, %v2792_v0  ;;  %v2684_v55 = vmul.f32 %v2652_v41, %v2428_v45  ;;  %v2797_v48 = vsel %vm589_vm0, %v2681_v16, 0.0 }
 0x320   : > { %9564 = vst [vmem:[#allocation104_spill] sm:$0xff] %v8101_v21  ;;  %v5645_v46 = vpop.eup %5644  ;;  %v2656_v11 = vadd.f32 1.0, %v5643_v10  ;;  %v8107_v38 = vmul.f32 %v2680_v32, %v8029_v59  ;;  %v2685_v29 = vmul.f32 %v2653_v44, %v2429_v35  ;;  %v2799_v2 = vsel %vm589_vm0, %v2682_v53, 0.0 }
 0x321   : > { %v5647_v4 = vpop.eup %5646  ;;  %v2657_v40 = vadd.f32 1.0, %v5645_v46  ;;  %v2796_v22 = vadd.f32 %v2795_v61, %v2794_v18  ;;  %v2686_v50 = vmul.f32 %v2654_v23, %v2430_v27  ;;  %v2801_v51 = vsel %vm589_vm0, %v2683_v13, 0.0 }
 0x322   : > { %9565 = vst [vmem:[#allocation106_spill] sm:$0xff] %v8107_v38  ;;  %v5649_v60 = vpop.eup %5648  ;;  %v2658_v58 = vadd.f32 1.0, %v5647_v4  ;;  %v8112_v8 = vmul.f32 %v2681_v16, %v8033_v39  ;;  %v2687_v41 = vmul.f32 %v2655_v43, %v2431_v19  ;;  %v2688_v63 = vmul.f32 %v2656_v11, %v2432_v17 }
 0x323   : > { %v2659_v45 = vadd.f32 1.0, %v5649_v60  ;;  %v2798_v59 = vadd.f32 %v2797_v48, %v2796_v22  ;;  %v2689_v32 = vmul.f32 %v2657_v40, %v2433_v56  ;;  %v8115_v35 = vmul.f32 %v2682_v53, %v8037_v52 }
 0x324   : > { %9566 = vst [vmem:[#allocation124_spill] sm:$0xff] %v8112_v8  ;;  %v2690_v0 = vmul.f32 %v2658_v58, %v2434_v20  ;;  %v8118_v44 = vmul.f32 %v2683_v13, %v8041_v54  ;;  %v1599_v28 = vadd.f32 %v1598_v14, %v9553_v5  ;;  %v8122_v61 = vmul.f32 %v2684_v55, %v8045_v25  ;;  %v9613_v8 = vld [vmem:[#allocation39_spill] sm:$0xff] }
 0x325   : > { %9567 = vst [vmem:[#allocation125_spill] sm:$0xff] %v8115_v35  ;;  %v2691_v27 = vmul.f32 %v2659_v45, %v2435_v34  ;;  %v2800_v23 = vadd.f32 %v2799_v2, %v2798_v59  ;;  %v2803_v19 = vsel %vm589_vm0, %v2684_v55, 0.0  ;;  %v8129_v17 = vmul.f32 %v2685_v29, %v8050_v30  ;;  %v5510_v30 = vld [vmem:[%s9333_s8 + $0x8] sm:$0xff]  }
 0x326   : > { %9568 = vst [vmem:[#allocation121_spill] sm:$0xff] %v8118_v44  ;;  %9569 = vst [vmem:[#allocation62_spill] sm:$0xff] %v8122_v61  ;;  %v8125_v39 = vmul.f32 %v2690_v0, %v8071_v9  ;;  %v8132_v52 = vmul.f32 %v2686_v50, %v8054_v62  ;;  %v8137_v56 = vmul.f32 %v2687_v41, %v8058_v7  ;;  %v2805_v25 = vsel %vm589_vm0, %v2685_v29, 0.0  ;;  %v5511_v62 = vld [vmem:[%s9333_s8] sm:$0xff]   ;;  %v9575_v59 = vld [vmem:[#allocation36_spill] sm:$0xff] }
 0x327   : > { %9570 = vst [vmem:[#allocation67_spill] sm:$0xff] %v8129_v17  ;;  %v8134_v54 = vmul.f32 %v2691_v27, %v1599_v28  ;;  %v2802_v16 = vadd.f32 %v2801_v51, %v2800_v23  ;;  %v8141_v53 = vmul.f32 %v2688_v63, %v8062_v36  ;;  %v8144_v9 = vmul.f32 %v2689_v32, %v8065_v49  ;;  %v9577_v28 = vld [vmem:[#allocation47_spill] sm:$0xff]  ;;  %v9578_v23 = vld [vmem:[#allocation48_spill] sm:$0xff] }
 0x328   : > { %9571 = vst [vmem:[#allocation35_spill] sm:$0xff] %v8132_v52  ;;  %9572 = vst [vmem:[#allocation101_spill] sm:$0xff] %v8137_v56  ;;  %v2807_v7 = vsel %vm589_vm0, %v2686_v50, 0.0  ;;  %5366 = vmatprep.subr.bf16.mxu1 %v5510_v30  ;;  %v2809_v20 = vsel %vm589_vm0, %v2687_v41, 0.0  ;;  %v2811_v49 = vsel %vm589_vm0, %v2688_v63, 0.0  ;;  %v2813_v43 = vsel %vm589_vm0, %v2689_v32, 0.0 }
 0x329   : > { %9573 = vst [vmem:[#allocation108_spill] sm:$0xff] %v8141_v53  ;;  %9574 = vst [vmem:[#allocation110_spill] sm:$0xff] %v8144_v9  ;;  %v2804_v13 = vadd.f32 %v2803_v19, %v2802_v16  ;;  %5367 = vmatpush3.bf16.msra.mxu1 %v5510_v30  ;;  %v2815_v11 = vsel %vm589_vm0, %v2690_v0, 0.0  ;;  %v2817_v48 = vsel %vm589_vm0, %v2691_v27, 0.0  ;;  %v9576_v32 = vld [vmem:[#allocation45_spill] sm:$0xff]  ;;  %v1455_v27 = vadd.f32 %v9577_v28, %v9553_v5  ;;  %v9579_v16 = vld [vmem:[#allocation50_spill] sm:$0xff] }
 0x32a   : > { %5368 = vmatprep.subr.bf16.mxu1 %v5511_v62  ;;  %v1451_v0 = vadd.f32 %v9576_v32, %v9575_v59  ;;  %v1457_v19 = vadd.f32 %v9578_v23, %v9575_v59  ;;  %v9594_v28 = vld [vmem:[#allocation84_spill] sm:$0xff]  ;;  %v9606_v53 = vld [vmem:[#allocation66_spill] sm:$0xff] }
 0x32b   : > { %v2806_v10 = vadd.f32 %v2805_v25, %v2804_v13  ;;  %v1459_v25 = vadd.f32 %v9579_v16, %v9553_v5  ;;  %v9580_v13 = vld [vmem:[#allocation51_spill] sm:$0xff]  ;;  %v1517_v23 = vadd.f32 %v9594_v28, %v9575_v59  ;;  %v9595_v16 = vld [vmem:[#allocation85_spill] sm:$0xff]  ;;  %v2694_v56 = vmul.f32 %v9606_v53, %v1455_v27 }
 0x32c   : > { %v1461_v30 = vadd.f32 %v9580_v13, %v9575_v59  ;;  %v1521_v13 = vadd.f32 %v9595_v16, %v9575_v59  ;;  %v9604_v16 = vld [vmem:[#allocation114_spill] sm:$0xff]  ;;  %v1581_v53 = vadd.f32 %v7955_v3, %v9575_v59  ;;  %v1587_v27 = vadd.f32 %v7992_v1, %v9575_v59 }
 0x32d   : > { %v2808_v36 = vadd.f32 %v2807_v7, %v2806_v10  ;;  %5369 = vmatpush3.bf16.msra.mxu1 %v5511_v62  ;;  %v9581_v62 = vld [vmem:[#allocation53_spill] sm:$0xff]  ;;  %v9582_v10 = vld [vmem:[#allocation56_spill] sm:$0xff]  ;;  %v1547_v31 = vadd.f32 %v9604_v16, %v9575_v59  ;;  %v1571_v16 = vadd.f32 %v7897_v57, %v9575_v59 }
 0x32e   : > { %v1467_v7 = vadd.f32 %v9581_v62, %v9575_v59  ;;  %v9596_v62 = vld [vmem:[#allocation87_spill] sm:$0xff] }
 0x32f   : > { %v2810_v34 = vadd.f32 %v2809_v20, %v2808_v36  ;;  %v1471_v20 = vadd.f32 %v9582_v10, %v9575_v59  ;;  %v9583_v36 = vld [vmem:[#allocation58_spill] sm:$0xff]  ;;  %v1527_v10 = vadd.f32 %v9596_v62, %v9575_v59 }
 0x330   : > { %v9605_v62 = vld [vmem:[#allocation122_spill] sm:$0xff] }
 0x331   : > { %v2812_v18 = vadd.f32 %v2811_v49, %v2810_v34  ;;  %v1477_v49 = vadd.f32 %v9583_v36, %v9575_v59  ;;  %v9584_v34 = vld [vmem:[#allocation61_spill] sm:$0xff]  ;;  %v1551_v9 = vadd.f32 %v9605_v62, %v9575_v59  ;;  %v1577_v62 = vadd.f32 %v7923_v6, %v9575_v59  ;;  %v9612_v6 = vld [vmem:[#allocation120_spill] sm:$0xff] }
 0x332   : > { %v9597_v36 = vld [vmem:[#allocation97_spill] sm:$0xff] }
 0x333   : > { %v2814_v46 = vadd.f32 %v2813_v43, %v2812_v18  ;;  %v1481_v43 = vadd.f32 %v9584_v34, %v9575_v59  ;;  %v9585_v18 = vld [vmem:[#allocation65_spill] sm:$0xff]  ;;  %v1531_v34 = vadd.f32 %v9597_v36, %v9575_v59  ;;  %v1600_v36 = vpop.f32.mrf.mxu1 }
 0x335   : > { %v2816_v55 = vadd.f32 %v2815_v11, %v2814_v46  ;;  %v1487_v46 = vadd.f32 %v9585_v18, %v9575_v59  ;;  %v9586_v11 = vld [vmem:[#allocation69_spill] sm:$0xff] }
 0x336   : > { %v9598_v18 = vld [vmem:[#allocation105_spill] sm:$0xff] }
 0x337   : > { %v2818_v4 = vadd.f32 %v2817_v48, %v2816_v55  ;;  %v1491_v55 = vadd.f32 %v9586_v11, %v9575_v59  ;;  %v9587_v48 = vld [vmem:[#allocation72_spill] sm:$0xff]  ;;  %v1537_v11 = vadd.f32 %v9598_v18, %v9575_v59 }
 0x338   : > { %v9607_v18 = vld [vmem:[#allocation68_spill] sm:$0xff] }
 0x339   : > { %v2819_v40 = vrot.slane %v2818_v4, 4  ;;  %v2695_v52 = vmul.f32 %v9607_v18, %v1459_v25  ;;  %v1597_v25 = vadd.f32 %v8097_v42, %v9575_v59  ;;  %v9610_v18 = vld [vmem:[#allocation107_spill] sm:$0xff] }
 0x33b   : > { %v2820_v29 = vadd.f32 %v2819_v40, %v2818_v4  ;;  %v1497_v4 = vadd.f32 %v9587_v48, %v9575_v59  ;;  %v9588_v40 = vld [vmem:[#allocation74_spill] sm:$0xff] }
 0x33d   : > { %v2821_v22 = vrot.slane %v2820_v29, 2 }
 0x33f   : > { %v2822_v2 = vadd.f32 %v2821_v22, %v2820_v29  ;;  %v1499_v29 = vadd.f32 %v9588_v40, %v9553_v5  ;;  %v9589_v22 = vld [vmem:[#allocation78_spill] sm:$0xff] }
 0x340   : > { %v9600_v40 = vld [vmem:[#allocation38_spill] sm:$0xff] }
 0x341   : > { %v2823_v60 = vrot.slane %v2822_v2, 1  ;;  %v2703_v57 = vmul.f32 %v9610_v18, %v1499_v29 }
 0x343   : > { %v2824_v14 = vadd.f32 %v2823_v60, %v2822_v2  ;;  %v1501_v2 = vadd.f32 %v9589_v22, %v9575_v59  ;;  %v9590_v60 = vld [vmem:[#allocation80_spill] sm:$0xff]  ;;  %v9601_v22 = vld [vmem:[#allocation63_spill] sm:$0xff] }
 0x345   : > { %v2826_v58 = vmul.f32 0.00390625, %v2824_v14  ;;  %v1505_v14 = vadd.f32 %v9590_v60, %v9553_v5  ;;  %v2692_v60 = vmul.f32 %v9601_v22, %v9600_v40  ;;  %v9609_v40 = vld [vmem:[#allocation129_spill] sm:$0xff] }
 0x346   : > { %v1561_v22 = vadd.f32 %v9609_v40, %v9575_v59 }
 0x347   : > { %v2828_v50 = vmul.f32 0.044715, %v2826_v58  ;;  %v2827_v61 = vmul.f32 0.5, %v2826_v58 }
 0x349   : > { %v2829_v51 = vmul.f32 %v2828_v50, %v2826_v58  ;;  %v9591_v50 = vld [vmem:[#allocation81_spill] sm:$0xff] }
 0x34b   : > { %v2830_v45 = vmul.f32 %v2829_v51, %v2826_v58  ;;  %v1507_v51 = vadd.f32 %v9591_v50, %v9575_v59  ;;  %v9602_v50 = vld [vmem:[#allocation41_spill] sm:$0xff] }
 0x34d   : > { %v2831_v41 = vadd.f32 %v2830_v45, %v2826_v58  ;;  %v9592_v45 = vld [vmem:[#allocation82_spill] sm:$0xff]  ;;  %v1601_v58 = vadd.f32 %v1600_v36, %v9575_v59 }
 0x34f   : > { %v2832_v63 = vmul.f32 0.7978846, %v2831_v41  ;;  %v1509_v41 = vadd.f32 %v9592_v45, %v9553_v5  ;;  %v9599_v5 = vld [vmem:[#allocation109_spill] sm:$0xff]  ;;  %v9603_v45 = vld [vmem:[#allocation64_spill] sm:$0xff] }
 0x350   : > { %v1541_v48 = vadd.f32 %v9599_v5, %v9575_v59  ;;  %v9608_v5 = vld [vmem:[#allocation127_spill] sm:$0xff] }
 0x351   : > { %5650 = vtanh.f32 %v2832_v63  ;;  %v9593_v63 = vld [vmem:[#allocation83_spill] sm:$0xff]  ;;  %v1557_v17 = vadd.f32 %v9608_v5, %v9575_v59  ;;  %v9611_v5 = vld [vmem:[#allocation113_spill] sm:$0xff]  ;;  %v2705_v44 = vmul.f32 %v9612_v6, %v1509_v41 }
 0x352   : > { %v1511_v32 = vadd.f32 %v9593_v63, %v9575_v59  ;;  %v2693_v63 = vmul.f32 %v9603_v45, %v9602_v50  ;;  %v1567_v45 = vadd.f32 %v7840_v12, %v9575_v59  ;;  %v1591_v12 = vadd.f32 %v8024_v33, %v9575_v59 }
 0x353   : > { %v2704_v40 = vmul.f32 %v9611_v5, %v1505_v14 }
 0x35e   : > { %v5651_v28 = vpop.eup %5650 }
 0x35f   : > { %v2834_v50 = vadd.f32 1.0, %v5651_v28 }
 0x361   : > { %v2835_v28 = vmul.f32 %v2834_v50, %v2827_v61 }
 0x363   : > { %v2866_v35 = vmul.f32 %v2835_v28, %v1597_v25  ;;  %v2867_v3 = vmul.f32 %v2835_v28, %v1601_v58  ;;  %v2836_v38 = vmul.f32 %v2835_v28, %v9613_v8  ;;  %v2837_v1 = vmul.f32 %v2835_v28, %v1451_v0 }
 0x364   : > { %v2838_v21 = vmul.f32 %v2835_v28, %v1457_v19  ;;  %v2839_v24 = vmul.f32 %v2835_v28, %v1461_v30  ;;  %v2840_v42 = vmul.f32 %v2835_v28, %v1467_v7  ;;  %v2841_v15 = vmul.f32 %v2835_v28, %v1471_v20 }
 0x365   : > { %v8240_v61 = vadd.f32 %v2866_v35, %v8125_v39  ;;  %v8243_v33 = vadd.f32 %v2867_v3, %v8134_v54  ;;  %v2842_v59 = vmul.f32 %v2835_v28, %v1477_v49  ;;  %v2843_v29 = vmul.f32 %v2835_v28, %v1481_v43 }
 0x366   : > { %v2844_v14 = vmul.f32 %v2835_v28, %v1487_v46  ;;  %v2845_v36 = vmul.f32 %v2835_v28, %v1491_v55  ;;  %v2846_v41 = vmul.f32 %v2835_v28, %v1497_v4  ;;  %v2847_v50 = vmul.f32 %v2835_v28, %v1501_v2 }
 0x367   : > { %v2915_v8 = vpack.c.bf16 %v8243_v33, %v8240_v61  ;;  %v2848_v0 = vmul.f32 %v2835_v28, %v1507_v51  ;;  %v2849_v19 = vmul.f32 %v2835_v28, %v1511_v32  ;;  %v2850_v30 = vmul.f32 %v2835_v28, %v1517_v23  ;;  %v9614_v23 = vld [vmem:[#allocation88_spill] sm:$0xff]  ;;  %v9635_v61 = vld [vmem:[#allocation43_spill] sm:$0xff] }
 0x368   : > { %v2851_v7 = vmul.f32 %v2835_v28, %v1521_v13  ;;  %v2852_v20 = vmul.f32 %v2835_v28, %v1527_v10  ;;  %v2853_v25 = vmul.f32 %v2835_v28, %v1531_v34  ;;  %v2854_v35 = vmul.f32 %v2835_v28, %v1537_v11  ;;  %v9615_v10 = vld [vmem:[#allocation89_spill] sm:$0xff]  ;;  %v9616_v11 = vld [vmem:[#allocation90_spill] sm:$0xff] }
 0x369   : > { %v2855_v39 = vmul.f32 %v2835_v28, %v1541_v48  ;;  %v2856_v58 = vmul.f32 %v2835_v28, %v1547_v31  ;;  %v2857_v54 = vmul.f32 %v2835_v28, %v1551_v9  ;;  %v2858_v18 = vmul.f32 %v2835_v28, %v1557_v17  ;;  %v9617_v31 = vld [vmem:[#allocation95_spill] sm:$0xff]  ;;  %v9618_v17 = vld [vmem:[#allocation96_spill] sm:$0xff] }
 0x36a   : > { %v2859_v49 = vmul.f32 %v2835_v28, %v1561_v22  ;;  %v2860_v43 = vmul.f32 %v2835_v28, %v1567_v45  ;;  %v2861_v46 = vmul.f32 %v2835_v28, %v1571_v16  ;;  %v2862_v55 = vmul.f32 %v2835_v28, %v1577_v62  ;;  %v9619_v62 = vld [vmem:[#allocation99_spill] sm:$0xff] }
 0x36b   : > { %v2863_v4 = vmul.f32 %v2835_v28, %v1581_v53  ;;  %v2864_v2 = vmul.f32 %v2835_v28, %v1587_v27  ;;  %v2865_v5 = vmul.f32 %v2835_v28, %v1591_v12  ;;  %v2868_v6 = vadd.f32 %v2836_v38, %v2692_v60  ;;  %v9620_v27 = vld [vmem:[#allocation100_spill] sm:$0xff] }
 0x36c   : > { %v2869_v3 = vadd.f32 %v2837_v1, %v2693_v63  ;;  %v2870_v51 = vadd.f32 %v2838_v21, %v2694_v56  ;;  %v2871_v32 = vadd.f32 %v2839_v24, %v2695_v52  ;;  %v2872_v13 = vadd.f32 %v2840_v42, %v9614_v23  ;;  %v9621_v42 = vld [vmem:[#allocation102_spill] sm:$0xff] }
 0x36d   : > { %v2873_v34 = vadd.f32 %v2841_v15, %v9615_v10  ;;  %v2874_v48 = vadd.f32 %v2842_v59, %v9616_v11  ;;  %v2875_v9 = vadd.f32 %v2843_v29, %v9617_v31  ;;  %v2876_v22 = vadd.f32 %v2844_v14, %v9618_v17  ;;  %v9622_v29 = vld [vmem:[#allocation103_spill] sm:$0xff]  ;;  %v9631_v10 = vld [vmem:[#allocation101_spill] sm:$0xff]  ;;  %v9634_v17 = vld [vmem:[#allocation42_spill] sm:$0xff] }
 0x36e   : > { %v2900_v45 = vpack.c.bf16 %v2869_v3, %v2868_v6  ;;  %v2901_v16 = vpack.c.bf16 %v2871_v32, %v2870_v51  ;;  %v2877_v53 = vadd.f32 %v2845_v36, %v9619_v62  ;;  %v2878_v28 = vadd.f32 %v2846_v41, %v9620_v27  ;;  %v9623_v36 = vld [vmem:[#allocation104_spill] sm:$0xff]  ;;  %v9629_v3 = vld [vmem:[#allocation67_spill] sm:$0xff] }
 0x36f   : > { %v2902_v38 = vpack.c.bf16 %v2873_v34, %v2872_v13  ;;  %v2903_v60 = vpack.c.bf16 %v2875_v9, %v2874_v48  ;;  %v2879_v21 = vadd.f32 %v2847_v50, %v2703_v57  ;;  %v2880_v24 = vadd.f32 %v2848_v0, %v2704_v40  ;;  %v9625_v0 = vld [vmem:[#allocation124_spill] sm:$0xff]  ;;  %v9630_v51 = vld [vmem:[#allocation35_spill] sm:$0xff]  ;;  %v9633_v48 = vld [vmem:[#allocation110_spill] sm:$0xff] }
 0x370   : > { %5334 = vmatprep.mubr.msk.bf16.mxu0 %vm589_vm0, %v2900_v45  ;;  %v2904_v52 = vpack.c.bf16 %v2877_v53, %v2876_v22  ;;  %v2881_v15 = vadd.f32 %v2849_v19, %v2705_v44  ;;  %v2882_v56 = vadd.f32 %v2850_v30, %v8006_v26  ;;  %v2883_v63 = vadd.f32 %v2851_v7, %v8010_v47  ;;  %v9624_v44 = vld [vmem:[#allocation106_spill] sm:$0xff]  ;;  %v9626_v19 = vld [vmem:[#allocation125_spill] sm:$0xff]  ;;  %v9632_v34 = vld [vmem:[#allocation108_spill] sm:$0xff] }
 0x371   : > { %5335 = vmatmul.mubr.msk.bf16.vlgmr.msra.gmra.mxu0 %vm589_vm0, %v2901_v16  ;;  %v2905_v12 = vpack.c.bf16 %v2879_v21, %v2878_v28  ;;  %v2884_v1 = vadd.f32 %v2852_v20, %v8082_v37  ;;  %v2885_v59 = vadd.f32 %v2853_v25, %v9621_v42  ;;  %v2886_v14 = vadd.f32 %v2854_v35, %v9622_v29  ;;  %v9627_v7 = vld [vmem:[#allocation121_spill] sm:$0xff]  ;;  %v9628_v20 = vld [vmem:[#allocation62_spill] sm:$0xff]  ;;  %v9637_v27 = vld [vmem:[#allocation40_spill] sm:$0xff] }
 0x372   : > { %5338 = vmatprep.mubr.msk.bf16.mxu0 %vm589_vm0, %v2902_v38  ;;  %v2906_v57 = vpack.c.bf16 %v2881_v15, %v2880_v24  ;;  %v2907_v40 = vpack.c.bf16 %v2883_v63, %v2882_v56  ;;  %v2887_v41 = vadd.f32 %v2855_v39, %v9623_v36  ;;  %v2888_v50 = vadd.f32 %v2856_v58, %v9624_v44  ;;  %v9636_v16 = vld [vmem:[#allocation37_spill] sm:$0xff]  ;;  %v9641_v36 = vld [vmem:[#allocation46_spill] sm:$0xff] }
 0x373   : > { %v2908_v26 = vpack.c.bf16 %v2885_v59, %v2884_v1  ;;  %v2889_v47 = vadd.f32 %v2857_v54, %v9625_v0  ;;  %v2890_v30 = vadd.f32 %v2858_v18, %v9626_v19  ;;  %v2891_v6 = vadd.f32 %v2859_v49, %v9627_v7  ;;  %v9638_v63 = vld [vmem:[#allocation49_spill] sm:$0xff]  ;;  %v9639_v1 = vld [vmem:[#allocation52_spill] sm:$0xff] }
 0x374   : > { %v2909_v37 = vpack.c.bf16 %v2887_v41, %v2886_v14  ;;  %v2892_v25 = vadd.f32 %v2860_v43, %v9628_v20  ;;  %v2893_v35 = vadd.f32 %v2861_v46, %v9629_v3  ;;  %v2894_v32 = vadd.f32 %v2862_v55, %v9630_v51  ;;  %v8292_v43 = vld [vmem:[%s9332_s7] ss:$0 sm:$0xff]  ;;  %v9640_v14 = vld [vmem:[#allocation44_spill] sm:$0xff]  ;;  %v9642_v7 = vld [vmem:[#allocation57_spill] sm:$0xff] }
 0x375   : > { %v2910_v23 = vpack.c.bf16 %v2889_v47, %v2888_v50  ;;  %v2911_v13 = vpack.c.bf16 %v2891_v6, %v2890_v30  ;;  %v2895_v39 = vadd.f32 %v2863_v4, %v9631_v10  ;;  %v2896_v58 = vadd.f32 %v2864_v2, %v9632_v34 }
 0x376   : > { %v2912_v11 = vpack.c.bf16 %v2893_v35, %v2892_v25  ;;  %v2897_v54 = vadd.f32 %v2865_v5, %v9633_v48  ;;  %v9644_v35 = vld [vmem:[#allocation54_spill] sm:$0xff] }
 0x377   : > { %v2913_v31 = vpack.c.bf16 %v2895_v39, %v2894_v32 }
 0x378   : > { %v2914_v18 = vpack.c.bf16 %v2897_v54, %v2896_v58 }
 0x379   : > { %5339 = vmatmul.mubr.msk.bf16.gmra.mxu0 %vm589_vm0, %v2903_v60 }
 0x37a   : > { %5342 = vmatprep.mubr.msk.bf16.mxu0 %vm589_vm0, %v2904_v52 }
 0x381   : > { %5343 = vmatmul.mubr.msk.bf16.gmra.mxu0 %vm589_vm0, %v2905_v12 }
 0x382   : > { %5346 = vmatprep.mubr.msk.bf16.mxu0 %vm589_vm0, %v2906_v57 }
 0x389   : > { %5347 = vmatmul.mubr.msk.bf16.gmra.mxu0 %vm589_vm0, %v2907_v40 }
 0x38a   : > { %5350 = vmatprep.mubr.msk.bf16.mxu0 %vm589_vm0, %v2908_v26 }
 0x391   : > { %5351 = vmatmul.mubr.msk.bf16.gmra.mxu0 %vm589_vm0, %v2909_v37  ;;  %v9643_v37 = vld [vmem:[#allocation59_spill] sm:$0xff] }
 0x392   : > { %5354 = vmatprep.mubr.msk.bf16.mxu0 %vm589_vm0, %v2910_v23  ;;  %v9645_v23 = vld [vmem:[#allocation55_spill] sm:$0xff] }
 0x399   : > { %5355 = vmatmul.mubr.msk.bf16.gmra.mxu0 %vm589_vm0, %v2911_v13 }
 0x39a   : > { %5358 = vmatprep.mubr.msk.bf16.mxu0 %vm589_vm0, %v2912_v11 }
 0x3a1   : > { %5359 = vmatmul.mubr.msk.bf16.gmra.mxu0 %vm589_vm0, %v2913_v31  ;;  %v9646_v31 = vld [vmem:[#allocation73_spill] sm:$0xff] }
 0x3a2   : > { %5362 = vmatprep.mubr.msk.bf16.mxu0 %vm589_vm0, %v2914_v18 }
 0x3a9   : > { %5363 = vmatmul.mubr.msk.bf16.gmra.mxu0 %vm589_vm0, %v2915_v8 }
 0x431   : > { %v5336_v49 = vpop.f32.mrf.mxu0 }
 0x432   : > { %v3030_v55 = vadd.f32 %v5336_v49, %v8292_v43  ;;  %v9647_v49 = vld [vmem:[#allocation75_spill] sm:$0xff] }
 0x433   : > { %v3021_v46 = vpop.f32.mrf.mxu0 }
 0x434   : > { %v3022_v2 = vadd.f32 %v8292_v43, %v3021_v46  ;;  %v3150_v22 = vmul.f32 %v3030_v55, %v9634_v17  ;;  %v9649_v17 = vld [vmem:[#allocation71_spill] sm:$0xff] }
 0x435   : > { %v5337_v4 = vpop.f32.mrf.mxu0 }
 0x436   : > { %v3033_v5 = vadd.f32 %v5337_v4, %v8292_v43  ;;  %v3148_v62 = vmul.f32 %v3022_v2, %v9636_v16  ;;  %v9648_v2 = vld [vmem:[#allocation60_spill] sm:$0xff] }
 0x437   : > { %v3024_v9 = vpop.f32.mrf.mxu0 }
 0x438   : > { %v3151_v33 = vmul.f32 %v3033_v5, %v9635_v61  ;;  %v3025_v8 = vadd.f32 %v8292_v43, %v3024_v9 }
 0x439   : > { %v5340_v45 = vpop.f32.mrf.mxu0 }
 0x43a   : > { %v3181_v53 = vpack.c.bf16 %v3151_v33, %v3150_v22  ;;  %v3149_v28 = vmul.f32 %v3025_v8, %v9637_v27  ;;  %v3046_v21 = vadd.f32 %v5340_v45, %v8292_v43  ;;  %v9650_v27 = vld [vmem:[#allocation79_spill] sm:$0xff] }
 0x43b   : > { %v3037_v38 = vpop.f32.mrf.mxu0 }
 0x43c   : > { %v3180_v60 = vpack.c.bf16 %v3149_v28, %v3148_v62  ;;  %v3038_v52 = vadd.f32 %v8292_v43, %v3037_v38  ;;  %v3154_v12 = vmul.f32 %v3046_v21, %v9638_v63  ;;  %v9651_v38 = vld [vmem:[#allocation86_spill] sm:$0xff]  ;;  %v9653_v63 = vld [vmem:[#allocation77_spill] sm:$0xff] }
 0x43d   : > { %v5341_v24 = vpop.f32.mrf.mxu0 }
 0x43e   : > { %v3049_v15 = vadd.f32 %v5341_v24, %v8292_v43  ;;  %5370 = vmatprep.mubr.msk.bf16.mxu1 %vm589_vm0, %v3180_v60  ;;  %v3152_v57 = vmul.f32 %v3038_v52, %v9640_v14  ;;  %v9652_v52 = vld [vmem:[#allocation76_spill] sm:$0xff] }
 0x43f   : > { %v3040_v56 = vpop.f32.mrf.mxu0  ;;  %5371 = vmatmul.mubr.msk.bf16.vlgmr.msra.gmra.mxu1 %vm589_vm0, %v3181_v53 }
 0x440   : > { %v3155_v42 = vmul.f32 %v3049_v15, %v9639_v1  ;;  %v3041_v59 = vadd.f32 %v8292_v43, %v3040_v56 }
 0x441   : > { %v5344_v29 = vpop.f32.mrf.mxu0 }
 0x442   : > { %v3183_v40 = vpack.c.bf16 %v3155_v42, %v3154_v12  ;;  %v3153_v41 = vmul.f32 %v3041_v59, %v9641_v36  ;;  %v3062_v26 = vadd.f32 %v5344_v29, %v8292_v43  ;;  %v9654_v36 = vld [vmem:[#allocation94_spill] sm:$0xff] }
 0x443   : > { %v3053_v44 = vpop.f32.mrf.mxu0 }
 0x444   : > { %v3182_v50 = vpack.c.bf16 %v3153_v41, %v3152_v57  ;;  %v3054_v47 = vadd.f32 %v8292_v43, %v3053_v44  ;;  %v3158_v6 = vmul.f32 %v3062_v26, %v9642_v7  ;;  %v9655_v44 = vld [vmem:[#allocation98_spill] sm:$0xff]  ;;  %v9657_v7 = vld [vmem:[#allocation93_spill] sm:$0xff] }
 0x445   : > { %v5345_v0 = vpop.f32.mrf.mxu0 }
 0x446   : > { %v3065_v19 = vadd.f32 %v5345_v0, %v8292_v43  ;;  %5374 = vmatprep.mubr.msk.bf16.mxu1 %vm589_vm0, %v3182_v50  ;;  %v3156_v51 = vmul.f32 %v3054_v47, %v9644_v35  ;;  %v9656_v47 = vld [vmem:[#allocation92_spill] sm:$0xff] }
 0x447   : > { %v3056_v30 = vpop.f32.mrf.mxu0  ;;  %5375 = vmatmul.mubr.msk.bf16.gmra.mxu1 %vm589_vm0, %v3183_v40 }
 0x448   : > { %v3159_v20 = vmul.f32 %v3065_v19, %v9643_v37  ;;  %v3057_v25 = vadd.f32 %v8292_v43, %v3056_v30 }
 0x449   : > { %v5348_v3 = vpop.f32.mrf.mxu0 }
 0x44a   : > { %v3185_v32 = vpack.c.bf16 %v3159_v20, %v3158_v6  ;;  %v3157_v13 = vmul.f32 %v3057_v25, %v9645_v23  ;;  %v3078_v34 = vadd.f32 %v5348_v3, %v8292_v43  ;;  %v9658_v23 = vld [vmem:[#allocation115_spill] sm:$0xff] }
 0x44b   : > { %v3069_v10 = vpop.f32.mrf.mxu0 }
 0x44c   : > { %v3184_v39 = vpack.c.bf16 %v3157_v13, %v3156_v51  ;;  %v3070_v11 = vadd.f32 %v8292_v43, %v3069_v10  ;;  %v3162_v18 = vmul.f32 %v3078_v34, %v9646_v31  ;;  %v9659_v10 = vld [vmem:[#allocation116_spill] sm:$0xff] }
 0x44d   : > { %v5349_v58 = vpop.f32.mrf.mxu0  ;;  %v9661_v31 = vld [vmem:[#allocation112_spill] sm:$0xff] }
 0x44e   : > { %v3081_v48 = vadd.f32 %v5349_v58, %v8292_v43  ;;  %5378 = vmatprep.mubr.msk.bf16.mxu1 %vm589_vm0, %v3184_v39  ;;  %v3160_v5 = vmul.f32 %v3070_v11, %v9648_v2  ;;  %v9660_v11 = vld [vmem:[#allocation111_spill] sm:$0xff] }
 0x44f   : > { %v3072_v54 = vpop.f32.mrf.mxu0  ;;  %5379 = vmatmul.mubr.msk.bf16.gmra.mxu1 %vm589_vm0, %v3185_v32 }
 0x450   : > { %v3163_v46 = vmul.f32 %v3081_v48, %v9647_v49  ;;  %v3073_v55 = vadd.f32 %v8292_v43, %v3072_v54 }
 0x451   : > { %v5352_v4 = vpop.f32.mrf.mxu0 }
 0x452   : > { %v3187_v9 = vpack.c.bf16 %v3163_v46, %v3162_v18  ;;  %v3161_v22 = vmul.f32 %v3073_v55, %v9649_v17  ;;  %v3094_v8 = vadd.f32 %v5352_v4, %v8292_v43  ;;  %v9662_v17 = vld [vmem:[#allocation123_spill] sm:$0xff] }
 0x453   : > { %v3085_v61 = vpop.f32.mrf.mxu0 }
 0x454   : > { %v3186_v33 = vpack.c.bf16 %v3161_v22, %v3160_v5  ;;  %v3086_v16 = vadd.f32 %v8292_v43, %v3085_v61  ;;  %v3166_v28 = vmul.f32 %v3094_v8, %v9650_v27  ;;  %v9663_v61 = vld [vmem:[#allocation130_spill] sm:$0xff] }
 0x455   : > { %v5353_v45 = vpop.f32.mrf.mxu0 }
 0x456   : > { %v3097_v62 = vadd.f32 %v5353_v45, %v8292_v43  ;;  %5382 = vmatprep.mubr.msk.bf16.mxu1 %vm589_vm0, %v3186_v33  ;;  %v3164_v15 = vmul.f32 %v3086_v16, %v9652_v52  ;;  %v9664_v45 = vld [vmem:[#allocation117_spill] sm:$0xff] }
 0x457   : > { %v3088_v53 = vpop.f32.mrf.mxu0  ;;  %5383 = vmatmul.mubr.msk.bf16.gmra.mxu1 %vm589_vm0, %v3187_v9 }
 0x458   : > { %v3167_v60 = vmul.f32 %v3097_v62, %v9651_v38  ;;  %v3089_v21 = vadd.f32 %v8292_v43, %v3088_v53  ;;  %v9665_v53 = vld [vmem:[#allocation119_spill] sm:$0xff] }
 0x459   : > { %v5356_v24 = vpop.f32.mrf.mxu0 }
 0x45a   : > { %v3189_v56 = vpack.c.bf16 %v3167_v60, %v3166_v28  ;;  %v3165_v12 = vmul.f32 %v3089_v21, %v9653_v63  ;;  %v3110_v59 = vadd.f32 %v5356_v24, %v8292_v43  ;;  %v8377_v60 = vld [vmem:[%s9334_s9] ss:$0 sm:$0xff] }
 0x45b   : > { %v3101_v1 = vpop.f32.mrf.mxu0 }
 0x45c   : > { %v3188_v42 = vpack.c.bf16 %v3165_v12, %v3164_v15  ;;  %v3102_v14 = vadd.f32 %v8292_v43, %v3101_v1  ;;  %v3170_v41 = vmul.f32 %v3110_v59, %v9654_v36  ;;  %v9666_v15 = vld [vmem:[#allocation3_spill] sm:$0xff]  ;;  %v9667_v1 = vld [vmem:[#allocation5_spill] sm:$0xff]  ;;  %v9669_v36 = vld [vmem:[#allocation6_spill] sm:$0xff] }
 0x45d   : > { %v5357_v29 = vpop.f32.mrf.mxu0 }
 0x45e   : > { %v3113_v57 = vadd.f32 %v5357_v29, %v8292_v43  ;;  %5386 = vmatprep.mubr.msk.bf16.mxu1 %vm589_vm0, %v3188_v42  ;;  %v3168_v19 = vmul.f32 %v3102_v14, %v9656_v47 }
 0x45f   : > { %v3104_v40 = vpop.f32.mrf.mxu0  ;;  %5387 = vmatmul.mubr.msk.bf16.gmra.mxu1 %vm589_vm0, %v3189_v56 }
 0x460   : > { %v3171_v50 = vmul.f32 %v3113_v57, %v9655_v44  ;;  %v3105_v26 = vadd.f32 %v8292_v43, %v3104_v40  ;;  %v9668_v57 = vld [vmem:[#allocation4_spill] sm:$0xff] }
 0x461   : > { %v5360_v0 = vpop.f32.mrf.mxu0 }
 0x462   : > { %v3191_v30 = vpack.c.bf16 %v3171_v50, %v3170_v41  ;;  %v3169_v6 = vmul.f32 %v3105_v26, %v9657_v7  ;;  %v3126_v25 = vadd.f32 %v5360_v0, %v8292_v43 }
 0x463   : > { %v3117_v37 = vpop.f32.mrf.mxu0 }
 0x464   : > { %v3190_v20 = vpack.c.bf16 %v3169_v6, %v3168_v19  ;;  %v3118_v35 = vadd.f32 %v8292_v43, %v3117_v37  ;;  %v3174_v13 = vmul.f32 %v3126_v25, %v9658_v23  ;;  %v9672_v23 = vld [vmem:[#allocation8_spill] sm:$0xff] }
 0x465   : > { %v5361_v3 = vpop.f32.mrf.mxu0 }
 0x466   : > { %v3129_v51 = vadd.f32 %v5361_v3, %v8292_v43  ;;  %5390 = vmatprep.mubr.msk.bf16.mxu1 %vm589_vm0, %v3190_v20  ;;  %v3172_v48 = vmul.f32 %v3118_v35, %v9660_v11  ;;  %v9671_v20 = vld [vmem:[#allocation9_spill] sm:$0xff] }
 0x467   : > { %v3120_v32 = vpop.f32.mrf.mxu0  ;;  %5391 = vmatmul.mubr.msk.bf16.gmra.mxu1 %vm589_vm0, %v3191_v30  ;;  %v9670_v30 = vld [vmem:[#allocation7_spill] sm:$0xff] }
 0x468   : > { %v3175_v39 = vmul.f32 %v3129_v51, %v9659_v10  ;;  %v3121_v34 = vadd.f32 %v8292_v43, %v3120_v32 }
 0x469   : > { %v5364_v58 = vpop.f32.mrf.mxu0 }
 0x46a   : > { %v3193_v54 = vpack.c.bf16 %v3175_v39, %v3174_v13  ;;  %v3173_v18 = vmul.f32 %v3121_v34, %v9661_v31  ;;  %v3142_v55 = vadd.f32 %v5364_v58, %v8292_v43  ;;  %v9673_v34 = vld [vmem:[#allocation10_spill] sm:$0xff] }
 0x46b   : > { %v3133_v49 = vpop.f32.mrf.mxu0 }
 0x46c   : > { %v3192_v46 = vpack.c.bf16 %v3173_v18, %v3172_v48  ;;  %v3134_v2 = vadd.f32 %v8292_v43, %v3133_v49  ;;  %v3178_v22 = vmul.f32 %v3142_v55, %v9662_v17  ;;  %v9674_v18 = vld [vmem:[#allocation11_spill] sm:$0xff] }
 0x46d   : > { %v5365_v4 = vpop.f32.mrf.mxu0 }
 0x46e   : > { %v3145_v5 = vadd.f32 %v5365_v4, %v8292_v43  ;;  %5394 = vmatprep.mubr.msk.bf16.mxu1 %vm589_vm0, %v3192_v46  ;;  %v3176_v16 = vmul.f32 %v3134_v2, %v9664_v45  ;;  %v9675_v46 = vld [vmem:[#allocation13_spill] sm:$0xff] }
 0x46f   : > { %v3136_v9 = vpop.f32.mrf.mxu0  ;;  %5395 = vmatmul.mubr.msk.bf16.gmra.mxu1 %vm589_vm0, %v3193_v54 }
 0x470   : > { %v3179_v33 = vmul.f32 %v3145_v5, %v9663_v61  ;;  %v3137_v8 = vadd.f32 %v8292_v43, %v3136_v9  ;;  %v9676_v61 = vld [vmem:[#allocation12_spill] sm:$0xff] }
 0x472   : > { %v3195_v62 = vpack.c.bf16 %v3179_v33, %v3178_v22  ;;  %v3177_v27 = vmul.f32 %v3137_v8, %v9665_v53 }
 0x474   : > { %v3194_v28 = vpack.c.bf16 %v3177_v27, %v3176_v16  ;;  %v9677_v16 = vld [vmem:[#allocation14_spill] sm:$0xff] }
 0x476   : > { %5398 = vmatprep.mubr.msk.bf16.mxu1 %vm589_vm0, %v3194_v28 }
 0x477   : > { %5399 = vmatmul.mubr.msk.bf16.gmra.mxu1 %vm589_vm0, %v3195_v62 }
 0x4ff   : > { %v5372_v38 = vpop.f32.mrf.mxu1 }
 0x500   : > { %v3310_v24 = vadd.f32 %v5372_v38, %v8377_v60 }
 0x501   : > { %v3301_v21 = vpop.f32.mrf.mxu1 }
 0x502   : > { %v3302_v43 = vadd.f32 %v8377_v60, %v3301_v21  ;;  %v8386_v42 = vadd.f32 %v9667_v1, %v3310_v24  ;;  %v9678_v21 = vld [vmem:[#allocation15_spill] sm:$0xff] }
 0x503   : > { %v5373_v52 = vpop.f32.mrf.mxu1 }
 0x504   : > { %v8382_v56 = vadd.f32 %v9666_v15, %v3302_v43  ;;  %v3313_v63 = vadd.f32 %v5373_v52, %v8377_v60  ;;  %v3468_v47 = vsel %vm589_vm0, %v8386_v42, 0.0  ;;  %v9680_v15 = vld [vmem:[#allocation17_spill] sm:$0xff] }
 0x505   : > { %v3304_v12 = vpop.f32.mrf.mxu1 }
 0x506   : > { %v3305_v59 = vadd.f32 %v8377_v60, %v3304_v12  ;;  %v3462_v29 = vsel %vm589_vm0, %v8382_v56, 0.0  ;;  %v8395_v41 = vadd.f32 %v9669_v36, %v3313_v63  ;;  %v9684_v36 = vld [vmem:[#allocation18_spill] sm:$0xff] }
 0x507   : > { %v5376_v14 = vpop.f32.mrf.mxu1  ;;  %3463 = vadd.xlane.f32.xlu0 %v3462_v29 }
 0x508   : > { %v8392_v40 = vadd.f32 %v9668_v57, %v3305_v59  ;;  %v3326_v50 = vadd.f32 %v5376_v14, %v8377_v60  ;;  %v3471_v37 = vsel %vm589_vm0, %v8395_v41, 0.0  ;;  %v9682_v14 = vld [vmem:[#allocation16_spill] sm:$0xff] }
 0x509   : > { %v3317_v44 = vpop.f32.mrf.mxu1 }
 0x50a   : > { %v3318_v26 = vadd.f32 %v8377_v60, %v3317_v44  ;;  %v3465_v0 = vsel %vm589_vm0, %v8392_v40, 0.0  ;;  %v8409_v25 = vadd.f32 %v9671_v20, %v3326_v50 }
 0x50b   : > { %v5377_v19 = vpop.f32.mrf.mxu1  ;;  %3466 = vadd.xlane.f32.xlu1 %v3465_v0  ;;  %3469 = vadd.xlane.f32.xlu0 %v3468_v47 }
 0x50c   : > { %v8404_v7 = vadd.f32 %v9670_v30, %v3318_v26  ;;  %v3329_v3 = vadd.f32 %v5377_v19, %v8377_v60  ;;  %v3480_v54 = vsel %vm589_vm0, %v8409_v25, 0.0 }
 0x50d   : > { %v3320_v6 = vpop.f32.mrf.mxu1 }
 0x50e   : > { %v3321_v35 = vadd.f32 %v8377_v60, %v3320_v6  ;;  %v3474_v51 = vsel %vm589_vm0, %v8404_v7, 0.0  ;;  %v8420_v58 = vadd.f32 %v9673_v34, %v3329_v3  ;;  %v9686_v6 = vld [vmem:[#allocation19_spill] sm:$0xff]  ;;  %v9690_v34 = vld [vmem:[#allocation20_spill] sm:$0xff] }
 0x50f   : > { %v5380_v32 = vpop.f32.mrf.mxu1  ;;  %3472 = vadd.xlane.f32.xlu1 %v3471_v37  ;;  %3475 = vadd.xlane.f32.xlu0 %v3474_v51 }
 0x510   : > { %v8416_v13 = vadd.f32 %v9672_v23, %v3321_v35  ;;  %v3342_v10 = vadd.f32 %v5380_v32, %v8377_v60  ;;  %v3483_v9 = vsel %vm589_vm0, %v8420_v58, 0.0  ;;  %v9688_v35 = vld [vmem:[#allocation21_spill] sm:$0xff] }
 0x511   : > { %v3333_v39 = vpop.f32.mrf.mxu1 }
 0x512   : > { %v3334_v11 = vadd.f32 %v8377_v60, %v3333_v39  ;;  %v3477_v48 = vsel %vm589_vm0, %v8416_v13, 0.0  ;;  %v8431_v55 = vadd.f32 %v9675_v46, %v3342_v10 }
 0x513   : > { %v5381_v31 = vpop.f32.mrf.mxu1  ;;  %3478 = vadd.xlane.f32.xlu1 %v3477_v48  ;;  %3481 = vadd.xlane.f32.xlu0 %v3480_v54 }
 0x514   : > { %v8428_v49 = vadd.f32 %v9674_v18, %v3334_v11  ;;  %v3345_v2 = vadd.f32 %v5381_v31, %v8377_v60  ;;  %v3492_v45 = vsel %vm589_vm0, %v8431_v55, 0.0  ;;  %v9692_v31 = vld [vmem:[#allocation22_spill] sm:$0xff] }
 0x515   : > { %v3336_v4 = vpop.f32.mrf.mxu1 }
 0x516   : > { %v3337_v5 = vadd.f32 %v8377_v60, %v3336_v4  ;;  %v3486_v17 = vsel %vm589_vm0, %v8428_v49, 0.0  ;;  %v8445_v62 = vadd.f32 %v9677_v16, %v3345_v2 }
 0x517   : > { %v5384_v22 = vpop.f32.mrf.mxu1  ;;  %3484 = vadd.xlane.f32.xlu1 %v3483_v9  ;;  %3487 = vadd.xlane.f32.xlu0 %v3486_v17  ;;  %v9694_v9 = vld [vmem:[#allocation23_spill] sm:$0xff] }
 0x518   : > { %v8440_v33 = vadd.f32 %v9676_v61, %v3337_v5  ;;  %v3358_v53 = vadd.f32 %v5384_v22, %v8377_v60  ;;  %v3495_v1 = vsel %vm589_vm0, %v8445_v62, 0.0  ;;  %v9696_v22 = vld [vmem:[#allocation25_spill] sm:$0xff] }
 0x519   : > { %v3349_v8 = vpop.f32.mrf.mxu1 }
 0x51a   : > { %v3350_v27 = vadd.f32 %v8377_v60, %v3349_v8  ;;  %v3489_v28 = vsel %vm589_vm0, %v8440_v33, 0.0  ;;  %v8456_v63 = vadd.f32 %v9680_v15, %v3358_v53  ;;  %v9700_v15 = vld [vmem:[#allocation26_spill] sm:$0xff] }
 0x51b   : > { %v5385_v38 = vpop.f32.mrf.mxu1  ;;  %3490 = vadd.xlane.f32.xlu1 %v3489_v28  ;;  %3493 = vadd.xlane.f32.xlu0 %v3492_v45 }
 0x51c   : > { %v8452_v24 = vadd.f32 %v9678_v21, %v3350_v27  ;;  %v3361_v43 = vadd.f32 %v5385_v38, %v8377_v60  ;;  %9681 = vst [vmem:[#allocation126_spill] sm:$0xff] %v8456_v63  ;;  %v3504_v19 = vsel %vm589_vm0, %v8456_v63, 0.0  ;;  %v9698_v38 = vld [vmem:[#allocation24_spill] sm:$0xff] }
 0x51d   : > { %v3352_v52 = vpop.f32.mrf.mxu1 }
 0x51e   : > { %9679 = vst [vmem:[#allocation118_spill] sm:$0xff] %v8452_v24  ;;  %v3353_v12 = vadd.f32 %v8377_v60, %v3352_v52  ;;  %v3498_v59 = vsel %vm589_vm0, %v8452_v24, 0.0  ;;  %v8467_v44 = vadd.f32 %v9684_v36, %v3361_v43  ;;  %v9702_v36 = vld [vmem:[#allocation27_spill] sm:$0xff] }
 0x51f   : > { %v5388_v29 = vpop.f32.mrf.mxu1  ;;  %3496 = vadd.xlane.f32.xlu1 %v3495_v1  ;;  %3499 = vadd.xlane.f32.xlu0 %v3498_v59 }
 0x520   : > { %v8464_v57 = vadd.f32 %v9682_v14, %v3353_v12  ;;  %9685 = vst [vmem:[#allocation70_spill] sm:$0xff] %v8467_v44  ;;  %v3374_v26 = vadd.f32 %v5388_v29, %v8377_v60  ;;  %v3507_v3 = vsel %vm589_vm0, %v8467_v44, 0.0 }
 0x521   : > { %v3365_v50 = vpop.f32.mrf.mxu1 }
 0x522   : > { %9683 = vst [vmem:[#allocation128_spill] sm:$0xff] %v8464_v57  ;;  %v3366_v0 = vadd.f32 %v8377_v60, %v3365_v50  ;;  %v3501_v47 = vsel %vm589_vm0, %v8464_v57, 0.0  ;;  %v8481_v51 = vadd.f32 %v9688_v35, %v3374_v26  ;;  %v9706_v35 = vld [vmem:[#allocation28_spill] sm:$0xff] }
 0x523   : > { %v5389_v30 = vpop.f32.mrf.mxu1  ;;  %3502 = vadd.xlane.f32.xlu1 %v3501_v47  ;;  %3505 = vadd.xlane.f32.xlu0 %v3504_v19  ;;  %v9704_v47 = vld [vmem:[#allocation29_spill] sm:$0xff] }
 0x524   : > { %v8476_v37 = vadd.f32 %v9686_v6, %v3366_v0  ;;  %9689 = vst [vmem:[#allocation36_spill] sm:$0xff] %v8481_v51  ;;  %v3377_v32 = vadd.f32 %v5389_v30, %v8377_v60  ;;  %v3516_v2 = vsel %vm589_vm0, %v8481_v51, 0.0 }
 0x525   : > { %v3368_v20 = vpop.f32.mrf.mxu1 }
 0x526   : > { %9687 = vst [vmem:[#allocation91_spill] sm:$0xff] %v8476_v37  ;;  %v3369_v23 = vadd.f32 %v8377_v60, %v3368_v20  ;;  %v3510_v10 = vsel %vm589_vm0, %v8476_v37, 0.0  ;;  %v8492_v18 = vadd.f32 %v9692_v31, %v3377_v32 }
 0x527   : > { %v5392_v39 = vpop.f32.mrf.mxu1  ;;  %3508 = vadd.xlane.f32.xlu1 %v3507_v3  ;;  %3511 = vadd.xlane.f32.xlu0 %v3510_v10 }
 0x528   : > { %v8488_v11 = vadd.f32 %v9690_v34, %v3369_v23  ;;  %v3390_v48 = vadd.f32 %v5392_v39, %v8377_v60  ;;  %9693 = vst [vmem:[#allocation47_spill] sm:$0xff] %v8492_v18  ;;  %v3519_v53 = vsel %vm589_vm0, %v8492_v18, 0.0  ;;  %v9708_v23 = vld [vmem:[#allocation30_spill] sm:$0xff] }
 0x529   : > { %v3381_v54 = vpop.f32.mrf.mxu1 }
 0x52a   : > { %9691 = vst [vmem:[#allocation45_spill] sm:$0xff] %v8488_v11  ;;  %v3382_v46 = vadd.f32 %v8377_v60, %v3381_v54  ;;  %v3513_v4 = vsel %vm589_vm0, %v8488_v11, 0.0  ;;  %v8503_v61 = vadd.f32 %v9696_v22, %v3390_v48  ;;  %v9712_v22 = vld [vmem:[#allocation33_spill] sm:$0xff] }
 0x52b   : > { %v5393_v5 = vpop.f32.mrf.mxu1  ;;  %3514 = vadd.xlane.f32.xlu1 %v3513_v4  ;;  %3517 = vadd.xlane.f32.xlu0 %v3516_v2  ;;  %v9710_v4 = vld [vmem:[#allocation31_spill] sm:$0xff] }
 0x52c   : > { %v8500_v17 = vadd.f32 %v9694_v9, %v3382_v46  ;;  %9697 = vst [vmem:[#allocation50_spill] sm:$0xff] %v8503_v61  ;;  %v3393_v45 = vadd.f32 %v5393_v5, %v8377_v60  ;;  %v3528_v52 = vsel %vm589_vm0, %v8503_v61, 0.0 }
 0x52d   : > { %v3384_v8 = vpop.f32.mrf.mxu1 }
 0x52e   : > { %9695 = vst [vmem:[#allocation48_spill] sm:$0xff] %v8500_v17  ;;  %v3385_v16 = vadd.f32 %v8377_v60, %v3384_v8  ;;  %v3522_v27 = vsel %vm589_vm0, %v8500_v17, 0.0  ;;  %v8517_v12 = vadd.f32 %v9700_v15, %v3393_v45 }
 0x52f   : > { %v5396_v28 = vpop.f32.mrf.mxu1  ;;  %3520 = vadd.xlane.f32.xlu1 %v3519_v53  ;;  %3523 = vadd.xlane.f32.xlu0 %v3522_v27  ;;  %v9714_v27 = vld [vmem:[#allocation32_spill] sm:$0xff] }
 0x530   : > { %v8512_v21 = vadd.f32 %v9698_v38, %v3385_v16  ;;  %9701 = vst [vmem:[#allocation53_spill] sm:$0xff] %v8517_v12  ;;  %v3406_v1 = vadd.f32 %v5396_v28, %v8377_v60  ;;  %v3531_v6 = vsel %vm589_vm0, %v8517_v12, 0.0  ;;  %v9716_v38 = vld [vmem:[#allocation34_spill] sm:$0xff] }
 0x531   : > { %v3397_v43 = vpop.f32.mrf.mxu1 }
 0x532   : > { %9699 = vst [vmem:[#allocation51_spill] sm:$0xff] %v8512_v21  ;;  %v3398_v59 = vadd.f32 %v8377_v60, %v3397_v43  ;;  %v3525_v29 = vsel %vm589_vm0, %v8512_v21, 0.0  ;;  %v8528_v19 = vadd.f32 %v9704_v47, %v3406_v1  ;;  %v5512_v1 = vld [vmem:[%s9337_s12 + $0x8] sm:$0xff]  }
 0x533   : > { %v5397_v14 = vpop.f32.mrf.mxu1  ;;  %3526 = vadd.xlane.f32.xlu1 %v3525_v29  ;;  %3529 = vadd.xlane.f32.xlu0 %v3528_v52 }
 0x534   : > { %v8524_v50 = vadd.f32 %v9702_v36, %v3398_v59  ;;  %v3409_v26 = vadd.f32 %v5397_v14, %v8377_v60  ;;  %9705 = vst [vmem:[#allocation58_spill] sm:$0xff] %v8528_v19  ;;  %v3540_v31 = vsel %vm589_vm0, %v8528_v19, 0.0  ;;  %5402 = vmatprep.subr.bf16.mxu0 %v5512_v1 }
 0x535   : > { %v3400_v0 = vpop.f32.mrf.mxu1  ;;  %5403 = vmatpush3.bf16.msra.mxu0 %v5512_v1 }
 0x536   : > { %9703 = vst [vmem:[#allocation56_spill] sm:$0xff] %v8524_v50  ;;  %v3401_v30 = vadd.f32 %v8377_v60, %v3400_v0  ;;  %v3534_v20 = vsel %vm589_vm0, %v8524_v50, 0.0  ;;  %v8539_v10 = vadd.f32 %v9708_v23, %v3409_v26 }
 0x537   : > { %3532 = vadd.xlane.f32.xlu1 %v3531_v6  ;;  %3535 = vadd.xlane.f32.xlu0 %v3534_v20  ;;  %v5400_v3 = vpop.f32.mrf.mxu1 }
 0x538   : > { %v8536_v32 = vadd.f32 %v9706_v35, %v3401_v30  ;;  %9709 = vst [vmem:[#allocation65_spill] sm:$0xff] %v8539_v10  ;;  %v3422_v34 = vadd.f32 %v5400_v3, %v8377_v60  ;;  %v3543_v9 = vsel %vm589_vm0, %v8539_v10, 0.0 }
 0x539   : > { %v3413_v39 = vpop.f32.mrf.mxu1 }
 0x53a   : > { %9707 = vst [vmem:[#allocation61_spill] sm:$0xff] %v8536_v32  ;;  %v3414_v48 = vadd.f32 %v8377_v60, %v3413_v39  ;;  %v3537_v54 = vsel %vm589_vm0, %v8536_v32, 0.0  ;;  %v8553_v8 = vadd.f32 %v9712_v22, %v3422_v34 }
 0x53b   : > { %3538 = vadd.xlane.f32.xlu1 %v3537_v54  ;;  %3541 = vadd.xlane.f32.xlu0 %v3540_v31  ;;  %v5401_v46 = vpop.f32.mrf.mxu1 }
 0x53c   : > { %v8548_v2 = vadd.f32 %v9710_v4, %v3414_v48  ;;  %9713 = vst [vmem:[#allocation72_spill] sm:$0xff] %v8553_v8  ;;  %v3425_v45 = vadd.f32 %v5401_v46, %v8377_v60  ;;  %v3552_v15 = vsel %vm589_vm0, %v8553_v8, 0.0 }
 0x53d   : > { %v3416_v5 = vpop.f32.mrf.mxu1 }
 0x53e   : > { %9711 = vst [vmem:[#allocation69_spill] sm:$0xff] %v8548_v2  ;;  %v3417_v16 = vadd.f32 %v8377_v60, %v3416_v5  ;;  %v3546_v53 = vsel %vm589_vm0, %v8548_v2, 0.0  ;;  %v8563_v43 = vadd.f32 %v9716_v38, %v3425_v45 }
 0x53f   : > { %3544 = vadd.xlane.f32.xlu1 %v3543_v9  ;;  %3547 = vadd.xlane.f32.xlu0 %v3546_v53 }
 0x540   : > { %v8560_v28 = vadd.f32 %v9714_v27, %v3417_v16  ;;  %9717 = vst [vmem:[#allocation78_spill] sm:$0xff] %v8563_v43  ;;  %v3555_v60 = vsel %vm589_vm0, %v8563_v43, 0.0 }
 0x542   : > { %9715 = vst [vmem:[#allocation74_spill] sm:$0xff] %v8560_v28  ;;  %v3549_v52 = vsel %vm589_vm0, %v8560_v28, 0.0 }
 0x543   : > { %3550 = vadd.xlane.f32.xlu1 %v3549_v52  ;;  %3553 = vadd.xlane.f32.xlu0 %v3552_v15 }
 0x547   : > { %3556 = vadd.xlane.f32.xlu1 %v3555_v60 }
 0x590   : > { %v3464_v59 = vpop.xlane.xlu0 %3463 }
 0x591   : > { %v3558_v29 = vmul.f32 0.03125, %v3464_v59 }
 0x593   : > { %v8575_v14 = vsub.f32 %v8382_v56, %v3558_v29 }
 0x594   : > { %v3467_v36 = vpop.xlane.xlu1 %3466  ;;  %v3470_v26 = vpop.xlane.xlu0 %3469 }
 0x595   : > { %v3559_v0 = vmul.f32 0.03125, %v3467_v36  ;;  %v3560_v47 = vmul.f32 0.03125, %v3470_v26  ;;  %v3622_v30 = vmul.f32 %v8575_v14, %v8575_v14 }
 0x597   : > { %v8580_v6 = vsub.f32 %v8392_v40, %v3559_v0  ;;  %v8583_v20 = vsub.f32 %v8386_v42, %v3560_v47  ;;  %v3654_v3 = vsel %vm589_vm0, %v3622_v30, 0.0 }
 0x598   : > { %v3473_v35 = vpop.xlane.xlu1 %3472  ;;  %v3476_v23 = vpop.xlane.xlu0 %3475  ;;  %3655 = vadd.xlane.f32.xlu0 %v3654_v3 }
 0x599   : > { %v3561_v39 = vmul.f32 0.03125, %v3473_v35  ;;  %v3562_v34 = vmul.f32 0.03125, %v3476_v23  ;;  %v3623_v48 = vmul.f32 %v8580_v6, %v8580_v6  ;;  %v3624_v54 = vmul.f32 %v8583_v20, %v8583_v20 }
 0x59b   : > { %v8591_v31 = vsub.f32 %v8395_v41, %v3561_v39  ;;  %v8594_v46 = vsub.f32 %v8404_v7, %v3562_v34  ;;  %v3657_v4 = vsel %vm589_vm0, %v3623_v48, 0.0  ;;  %v3660_v5 = vsel %vm589_vm0, %v3624_v54, 0.0 }
 0x59c   : > { %v3479_v9 = vpop.xlane.xlu1 %3478  ;;  %v3482_v22 = vpop.xlane.xlu0 %3481  ;;  %3658 = vadd.xlane.f32.xlu1 %v3657_v4  ;;  %3661 = vadd.xlane.f32.xlu0 %v3660_v5  ;;  %v5513_v5 = vld [vmem:[%s9337_s12] sm:$0xff]  }
 0x59d   : > { %v3563_v45 = vmul.f32 0.03125, %v3479_v9  ;;  %v3564_v16 = vmul.f32 0.03125, %v3482_v22  ;;  %v3625_v53 = vmul.f32 %v8591_v31, %v8591_v31  ;;  %v3626_v27 = vmul.f32 %v8594_v46, %v8594_v46  ;;  %5404 = vmatprep.subr.bf16.mxu0 %v5513_v5 }
 0x59e   : > { %5405 = vmatpush3.bf16.msra.mxu0 %v5513_v5 }
 0x59f   : > { %v8603_v38 = vsub.f32 %v8416_v13, %v3563_v45  ;;  %v8606_v52 = vsub.f32 %v8409_v25, %v3564_v16  ;;  %v3663_v15 = vsel %vm589_vm0, %v3625_v53, 0.0  ;;  %v3666_v60 = vsel %vm589_vm0, %v3626_v27, 0.0 }
 0x5a0   : > { %v3485_v1 = vpop.xlane.xlu1 %3484  ;;  %v3488_v59 = vpop.xlane.xlu0 %3487  ;;  %3664 = vadd.xlane.f32.xlu1 %v3663_v15  ;;  %3667 = vadd.xlane.f32.xlu0 %v3666_v60 }
 0x5a1   : > { %v3565_v29 = vmul.f32 0.03125, %v3485_v1  ;;  %v3566_v36 = vmul.f32 0.03125, %v3488_v59  ;;  %v3627_v26 = vmul.f32 %v8603_v38, %v8603_v38  ;;  %v3628_v0 = vmul.f32 %v8606_v52, %v8606_v52 }
 0x5a3   : > { %v8615_v47 = vsub.f32 %v8420_v58, %v3565_v29  ;;  %v8618_v30 = vsub.f32 %v8428_v49, %v3566_v36  ;;  %v3669_v3 = vsel %vm589_vm0, %v3627_v26, 0.0  ;;  %v3672_v35 = vsel %vm589_vm0, %v3628_v0, 0.0 }
 0x5a4   : > { %v3491_v23 = vpop.xlane.xlu1 %3490  ;;  %v3494_v39 = vpop.xlane.xlu0 %3493  ;;  %3670 = vadd.xlane.f32.xlu1 %v3669_v3  ;;  %3673 = vadd.xlane.f32.xlu0 %v3672_v35 }
 0x5a5   : > { %v3567_v34 = vmul.f32 0.03125, %v3491_v23  ;;  %v3568_v48 = vmul.f32 0.03125, %v3494_v39  ;;  %v3629_v54 = vmul.f32 %v8615_v47, %v8615_v47  ;;  %v3630_v4 = vmul.f32 %v8618_v30, %v8618_v30 }
 0x5a7   : > { %v8630_v9 = vsub.f32 %v8440_v33, %v3567_v34  ;;  %v8633_v22 = vsub.f32 %v8431_v55, %v3568_v48  ;;  %v3675_v45 = vsel %vm589_vm0, %v3629_v54, 0.0  ;;  %v3678_v16 = vsel %vm589_vm0, %v3630_v4, 0.0 }
 0x5a8   : > { %v3497_v53 = vpop.xlane.xlu1 %3496  ;;  %v3500_v27 = vpop.xlane.xlu0 %3499  ;;  %3676 = vadd.xlane.f32.xlu1 %v3675_v45  ;;  %3679 = vadd.xlane.f32.xlu0 %v3678_v16 }
 0x5a9   : > { %v3569_v15 = vmul.f32 0.03125, %v3497_v53  ;;  %v3570_v60 = vmul.f32 0.03125, %v3500_v27  ;;  %v3631_v1 = vmul.f32 %v8630_v9, %v8630_v9  ;;  %v3632_v59 = vmul.f32 %v8633_v22, %v8633_v22 }
 0x5ab   : > { %v8642_v29 = vsub.f32 %v8445_v62, %v3569_v15  ;;  %v8645_v36 = vsub.f32 %v8452_v24, %v3570_v60  ;;  %v3681_v26 = vsel %vm589_vm0, %v3631_v1, 0.0  ;;  %v3684_v0 = vsel %vm589_vm0, %v3632_v59, 0.0 }
 0x5ac   : > { %v3503_v3 = vpop.xlane.xlu1 %3502  ;;  %v3506_v35 = vpop.xlane.xlu0 %3505  ;;  %3682 = vadd.xlane.f32.xlu1 %v3681_v26  ;;  %3685 = vadd.xlane.f32.xlu0 %v3684_v0 }
 0x5ad   : > { %v3571_v23 = vmul.f32 0.03125, %v3503_v3  ;;  %v3572_v39 = vmul.f32 0.03125, %v3506_v35  ;;  %v3633_v34 = vmul.f32 %v8642_v29, %v8642_v29  ;;  %v3634_v48 = vmul.f32 %v8645_v36, %v8645_v36 }
 0x5af   : > { %v8654_v54 = vsub.f32 %v8464_v57, %v3571_v23  ;;  %v8657_v4 = vsub.f32 %v8456_v63, %v3572_v39  ;;  %v3687_v5 = vsel %vm589_vm0, %v3633_v34, 0.0  ;;  %v3690_v45 = vsel %vm589_vm0, %v3634_v48, 0.0 }
 0x5b0   : > { %v3509_v16 = vpop.xlane.xlu1 %3508  ;;  %v3512_v53 = vpop.xlane.xlu0 %3511  ;;  %3688 = vadd.xlane.f32.xlu1 %v3687_v5  ;;  %3691 = vadd.xlane.f32.xlu0 %v3690_v45 }
 0x5b1   : > { %v3573_v27 = vmul.f32 0.03125, %v3509_v16  ;;  %v3574_v15 = vmul.f32 0.03125, %v3512_v53  ;;  %v3635_v60 = vmul.f32 %v8654_v54, %v8654_v54  ;;  %v3636_v1 = vmul.f32 %v8657_v4, %v8657_v4 }
 0x5b3   : > { %v8666_v59 = vsub.f32 %v8467_v44, %v3573_v27  ;;  %v8669_v26 = vsub.f32 %v8476_v37, %v3574_v15  ;;  %v3693_v0 = vsel %vm589_vm0, %v3635_v60, 0.0  ;;  %v3696_v3 = vsel %vm589_vm0, %v3636_v1, 0.0 }
 0x5b4   : > { %v3515_v35 = vpop.xlane.xlu1 %3514  ;;  %v3518_v23 = vpop.xlane.xlu0 %3517  ;;  %3694 = vadd.xlane.f32.xlu1 %v3693_v0  ;;  %3697 = vadd.xlane.f32.xlu0 %v3696_v3 }
 0x5b5   : > { %v3575_v39 = vmul.f32 0.03125, %v3515_v35  ;;  %v3576_v34 = vmul.f32 0.03125, %v3518_v23  ;;  %v3637_v48 = vmul.f32 %v8666_v59, %v8666_v59  ;;  %v3638_v5 = vmul.f32 %v8669_v26, %v8669_v26 }
 0x5b7   : > { %v8678_v45 = vsub.f32 %v8488_v11, %v3575_v39  ;;  %v8681_v16 = vsub.f32 %v8481_v51, %v3576_v34  ;;  %v3699_v53 = vsel %vm589_vm0, %v3637_v48, 0.0  ;;  %v3702_v27 = vsel %vm589_vm0, %v3638_v5, 0.0 }
 0x5b8   : > { %v3521_v15 = vpop.xlane.xlu1 %3520  ;;  %v3524_v60 = vpop.xlane.xlu0 %3523  ;;  %3700 = vadd.xlane.f32.xlu1 %v3699_v53  ;;  %3703 = vadd.xlane.f32.xlu0 %v3702_v27 }
 0x5b9   : > { %v3577_v1 = vmul.f32 0.03125, %v3521_v15  ;;  %v3578_v0 = vmul.f32 0.03125, %v3524_v60  ;;  %v3639_v3 = vmul.f32 %v8678_v45, %v8678_v45  ;;  %v3640_v35 = vmul.f32 %v8681_v16, %v8681_v16 }
 0x5bb   : > { %v8690_v23 = vsub.f32 %v8492_v18, %v3577_v1  ;;  %v8693_v39 = vsub.f32 %v8500_v17, %v3578_v0  ;;  %v3705_v34 = vsel %vm589_vm0, %v3639_v3, 0.0  ;;  %v3708_v48 = vsel %vm589_vm0, %v3640_v35, 0.0 }
 0x5bc   : > { %v3527_v5 = vpop.xlane.xlu1 %3526  ;;  %v3530_v53 = vpop.xlane.xlu0 %3529  ;;  %3706 = vadd.xlane.f32.xlu1 %v3705_v34  ;;  %3709 = vadd.xlane.f32.xlu0 %v3708_v48 }
 0x5bd   : > { %v3579_v27 = vmul.f32 0.03125, %v3527_v5  ;;  %v3580_v15 = vmul.f32 0.03125, %v3530_v53  ;;  %v3641_v60 = vmul.f32 %v8690_v23, %v8690_v23  ;;  %v3642_v1 = vmul.f32 %v8693_v39, %v8693_v39 }
 0x5bf   : > { %v8702_v11 = vsub.f32 %v8512_v21, %v3579_v27  ;;  %v8705_v0 = vsub.f32 %v8503_v61, %v3580_v15  ;;  %v3711_v3 = vsel %vm589_vm0, %v3641_v60, 0.0  ;;  %v3714_v35 = vsel %vm589_vm0, %v3642_v1, 0.0 }
 0x5c0   : > { %v3533_v34 = vpop.xlane.xlu1 %3532  ;;  %v3536_v48 = vpop.xlane.xlu0 %3535  ;;  %3712 = vadd.xlane.f32.xlu1 %v3711_v3  ;;  %3715 = vadd.xlane.f32.xlu0 %v3714_v35 }
 0x5c1   : > { %v3581_v5 = vmul.f32 0.03125, %v3533_v34  ;;  %v3582_v53 = vmul.f32 0.03125, %v3536_v48  ;;  %v3643_v17 = vmul.f32 %v8702_v11, %v8702_v11  ;;  %v3644_v27 = vmul.f32 %v8705_v0, %v8705_v0 }
 0x5c3   : > { %v8714_v21 = vsub.f32 %v8517_v12, %v3581_v5  ;;  %v8717_v15 = vsub.f32 %v8524_v50, %v3582_v53  ;;  %v3717_v60 = vsel %vm589_vm0, %v3643_v17, 0.0  ;;  %v3720_v1 = vsel %vm589_vm0, %v3644_v27, 0.0 }
 0x5c4   : > { %v3539_v3 = vpop.xlane.xlu1 %3538  ;;  %v3542_v35 = vpop.xlane.xlu0 %3541  ;;  %3718 = vadd.xlane.f32.xlu1 %v3717_v60  ;;  %3721 = vadd.xlane.f32.xlu0 %v3720_v1 }
 0x5c5   : > { %v3583_v34 = vmul.f32 0.03125, %v3539_v3  ;;  %v3584_v48 = vmul.f32 0.03125, %v3542_v35  ;;  %v3645_v61 = vmul.f32 %v8714_v21, %v8714_v21  ;;  %v3646_v5 = vmul.f32 %v8717_v15, %v8717_v15 }
 0x5c7   : > { %v8726_v12 = vsub.f32 %v8536_v32, %v3583_v34  ;;  %v8729_v53 = vsub.f32 %v8528_v19, %v3584_v48  ;;  %v3723_v17 = vsel %vm589_vm0, %v3645_v61, 0.0  ;;  %v3726_v27 = vsel %vm589_vm0, %v3646_v5, 0.0 }
 0x5c8   : > { %v3545_v60 = vpop.xlane.xlu1 %3544  ;;  %3724 = vadd.xlane.f32.xlu1 %v3723_v17  ;;  %3727 = vadd.xlane.f32.xlu0 %v3726_v27  ;;  %v3548_v1 = vpop.xlane.xlu0 %3547 }
 0x5c9   : > { %v3585_v3 = vmul.f32 0.03125, %v3545_v60  ;;  %v3586_v35 = vmul.f32 0.03125, %v3548_v1  ;;  %v3647_v50 = vmul.f32 %v8726_v12, %v8726_v12  ;;  %v3648_v34 = vmul.f32 %v8729_v53, %v8729_v53 }
 0x5cb   : > { %v8738_v32 = vsub.f32 %v8539_v10, %v3585_v3  ;;  %v8741_v48 = vsub.f32 %v8548_v2, %v3586_v35  ;;  %v3729_v61 = vsel %vm589_vm0, %v3647_v50, 0.0  ;;  %v3732_v5 = vsel %vm589_vm0, %v3648_v34, 0.0 }
 0x5cc   : > { %3730 = vadd.xlane.f32.xlu1 %v3729_v61  ;;  %v3551_v17 = vpop.xlane.xlu1 %3550  ;;  %3733 = vadd.xlane.f32.xlu0 %v3732_v5  ;;  %v3554_v27 = vpop.xlane.xlu0 %3553 }
 0x5cd   : > { %v3587_v60 = vmul.f32 0.03125, %v3551_v17  ;;  %v3588_v1 = vmul.f32 0.03125, %v3554_v27  ;;  %v3649_v19 = vmul.f32 %v8738_v32, %v8738_v32  ;;  %v3650_v3 = vmul.f32 %v8741_v48, %v8741_v48 }
 0x5cf   : > { %v8750_v10 = vsub.f32 %v8560_v28, %v3587_v60  ;;  %v8753_v35 = vsub.f32 %v8553_v8, %v3588_v1  ;;  %v3735_v50 = vsel %vm589_vm0, %v3649_v19, 0.0  ;;  %v3738_v34 = vsel %vm589_vm0, %v3650_v3, 0.0 }
 0x5d0   : > { %3736 = vadd.xlane.f32.xlu1 %v3735_v50  ;;  %v3557_v61 = vpop.xlane.xlu1 %3556  ;;  %3739 = vadd.xlane.f32.xlu0 %v3738_v34  ;;  %v5514_v50 = vld [vmem:[%s9339_s14 + $0x38] sm:$0xff]   ;;  %v5515_v34 = vld [vmem:[%s9339_s14 + $0x30] sm:$0xff]  }
 0x5d1   : > { %v3589_v5 = vmul.f32 0.03125, %v3557_v61  ;;  %v3651_v17 = vmul.f32 %v8750_v10, %v8750_v10  ;;  %v3652_v27 = vmul.f32 %v8753_v35, %v8753_v35  ;;  %5438 = vmatprep.subr.bf16.mxu1 %v5514_v50  ;;  %v5517_v61 = vld [vmem:[%s9339_s14 + $0x20] sm:$0xff]  }
 0x5d2   : > { %5439 = vmatpush3.bf16.msra.mxu1 %v5514_v50 }
 0x5d3   : > { %v8762_v60 = vsub.f32 %v8563_v43, %v3589_v5  ;;  %v3741_v1 = vsel %vm589_vm0, %v3651_v17, 0.0  ;;  %v3744_v28 = vsel %vm589_vm0, %v3652_v27, 0.0  ;;  %5440 = vmatprep.subr.bf16.mxu1 %v5515_v34 }
 0x5d4   : > { %3742 = vadd.xlane.f32.xlu1 %v3741_v1  ;;  %3745 = vadd.xlane.f32.xlu0 %v3744_v28  ;;  %v5516_v28 = vld [vmem:[%s9339_s14 + $0x28] sm:$0xff]  }
 0x5d5   : > { %v3653_v19 = vmul.f32 %v8762_v60, %v8762_v60 }
 0x5d6   : > { %5441 = vmatpush3.bf16.msra.mxu1 %v5515_v34 }
 0x5d7   : > { %v3747_v3 = vsel %vm589_vm0, %v3653_v19, 0.0  ;;  %5442 = vmatprep.subr.bf16.mxu1 %v5516_v28 }
 0x5d8   : > { %3748 = vadd.xlane.f32.xlu1 %v3747_v3 }
 0x5da   : > { %5443 = vmatpush3.bf16.msra.mxu1 %v5516_v28 }
 0x5db   : > { %5444 = vmatprep.subr.bf16.mxu1 %v5517_v61 }
 0x5de   : > { %5445 = vmatpush3.bf16.msra.mxu1 %v5517_v61 }
 0x621   : > { %v3656_v5 = vpop.xlane.xlu0 %3655 }
 0x622   : > { %v3750_v17 = vmul.f32 0.03125, %v3656_v5 }
 0x624   : > { %v3782_v27 = vadd.f32 1e-05, %v3750_v17 }
 0x625   : > { %v3659_v1 = vpop.xlane.xlu1 %3658  ;;  %v3662_v19 = vpop.xlane.xlu0 %3661 }
 0x626   : > { %5652 = vrsqrt.f32 %v3782_v27  ;;  %v3751_v3 = vmul.f32 0.03125, %v3659_v1  ;;  %v3752_v50 = vmul.f32 0.03125, %v3662_v19 }
 0x628   : > { %v3783_v43 = vadd.f32 1e-05, %v3751_v3  ;;  %v3784_v2 = vadd.f32 1e-05, %v3752_v50 }
 0x629   : > { %v3665_v8 = vpop.xlane.xlu1 %3664  ;;  %v3668_v34 = vpop.xlane.xlu0 %3667 }
 0x62a   : > { %5654 = vrsqrt.f32 %v3783_v43  ;;  %v3753_v18 = vmul.f32 0.03125, %v3665_v8  ;;  %v3754_v37 = vmul.f32 0.03125, %v3668_v34 }
 0x62b   : > { %5656 = vrsqrt.f32 %v3784_v2 }
 0x62c   : > { %v3785_v51 = vadd.f32 1e-05, %v3753_v18  ;;  %v3786_v28 = vadd.f32 1e-05, %v3754_v37 }
 0x62d   : > { %v3671_v57 = vpop.xlane.xlu1 %3670  ;;  %v3674_v61 = vpop.xlane.xlu0 %3673 }
 0x62e   : > { %5658 = vrsqrt.f32 %v3785_v51  ;;  %v3755_v5 = vmul.f32 0.03125, %v3671_v57  ;;  %v3756_v17 = vmul.f32 0.03125, %v3674_v61  ;;  %v8785_v57 = vld [vmem:[%s9335_s10] ss:$0 sm:$0xff] }
 0x62f   : > { %5660 = vrsqrt.f32 %v3786_v28 }
 0x630   : > { %v3787_v44 = vadd.f32 1e-05, %v3755_v5  ;;  %v3788_v27 = vadd.f32 1e-05, %v3756_v17 }
 0x631   : > { %v3677_v1 = vpop.xlane.xlu1 %3676  ;;  %v3680_v19 = vpop.xlane.xlu0 %3679 }
 0x632   : > { %5662 = vrsqrt.f32 %v3787_v44  ;;  %v3757_v3 = vmul.f32 0.03125, %v3677_v1  ;;  %v3758_v50 = vmul.f32 0.03125, %v3680_v19 }
 0x633   : > { %v5653_v24 = vpop.eup %5652  ;;  %5664 = vrsqrt.f32 %v3788_v27 }
 0x634   : > { %v3789_v8 = vadd.f32 1e-05, %v3757_v3  ;;  %v3790_v43 = vadd.f32 1e-05, %v3758_v50  ;;  %v3846_v37 = vmul.f32 %v5653_v24, %v8575_v14  ;;  %v8793_v50 = vld [vmem:[%s9336_s11] ss:$0 sm:$0xff] }
 0x635   : > { %v3683_v2 = vpop.xlane.xlu1 %3682  ;;  %v3686_v18 = vpop.xlane.xlu0 %3685 }
 0x636   : > { %5666 = vrsqrt.f32 %v3789_v8  ;;  %v3759_v51 = vmul.f32 0.03125, %v3683_v2  ;;  %v3760_v34 = vmul.f32 0.03125, %v3686_v18  ;;  %v3884_v24 = vmul.f32 %v8785_v57, %v3846_v37 }
 0x637   : > { %v5655_v28 = vpop.eup %5654  ;;  %5668 = vrsqrt.f32 %v3790_v43 }
 0x638   : > { %v5657_v44 = vpop.eup %5656  ;;  %v3791_v61 = vadd.f32 1e-05, %v3759_v51  ;;  %v3792_v5 = vadd.f32 1e-05, %v3760_v34  ;;  %v3847_v17 = vmul.f32 %v5655_v28, %v8580_v6 }
 0x639   : > { %v3848_v27 = vmul.f32 %v5657_v44, %v8583_v20  ;;  %v3689_v1 = vpop.xlane.xlu1 %3688  ;;  %v3692_v19 = vpop.xlane.xlu0 %3691  ;;  %v3922_v44 = vadd.f32 %v8793_v50, %v3884_v24 }
 0x63a   : > { %5670 = vrsqrt.f32 %v3791_v61  ;;  %v3761_v14 = vmul.f32 0.03125, %v3689_v1  ;;  %v3762_v3 = vmul.f32 0.03125, %v3692_v19  ;;  %v3885_v8 = vmul.f32 %v8785_v57, %v3847_v17 }
 0x63b   : > { %v5659_v43 = vpop.eup %5658  ;;  %v3886_v2 = vmul.f32 %v8785_v57, %v3848_v27  ;;  %5672 = vrsqrt.f32 %v3792_v5 }
 0x63c   : > { %v5661_v6 = vpop.eup %5660  ;;  %v3849_v20 = vmul.f32 %v5659_v43, %v8591_v31  ;;  %v3793_v18 = vadd.f32 1e-05, %v3761_v14  ;;  %v3794_v51 = vadd.f32 1e-05, %v3762_v3  ;;  %v3923_v37 = vadd.f32 %v8793_v50, %v3885_v8 }
 0x63d   : > { %v3695_v34 = vpop.xlane.xlu1 %3694  ;;  %v3698_v28 = vpop.xlane.xlu0 %3697  ;;  %v3850_v61 = vmul.f32 %v5661_v6, %v8594_v46  ;;  %v3924_v31 = vadd.f32 %v8793_v50, %v3886_v2 }
 0x63e   : > { %v3887_v1 = vmul.f32 %v8785_v57, %v3849_v20  ;;  %5674 = vrsqrt.f32 %v3793_v18  ;;  %v3763_v17 = vmul.f32 0.03125, %v3695_v34  ;;  %v3764_v19 = vmul.f32 0.03125, %v3698_v28 }
 0x63f   : > { %v5663_v27 = vpop.eup %5662  ;;  %5676 = vrsqrt.f32 %v3794_v51  ;;  %v3954_v5 = vpack.c.bf16 %v3923_v37, %v3922_v44  ;;  %v3888_v6 = vmul.f32 %v8785_v57, %v3850_v61 }
 0x640   : > { %v5665_v14 = vpop.eup %5664  ;;  %v3795_v3 = vadd.f32 1e-05, %v3763_v17  ;;  %v3796_v43 = vadd.f32 1e-05, %v3764_v19  ;;  %v3925_v8 = vadd.f32 %v8793_v50, %v3887_v1  ;;  %v3851_v63 = vmul.f32 %v5663_v27, %v8603_v38 }
 0x641   : > { %5406 = vmatprep.mubr.msk.bf16.mxu0 %vm589_vm0, %v3954_v5  ;;  %v3701_v46 = vpop.xlane.xlu1 %3700  ;;  %v3704_v24 = vpop.xlane.xlu0 %3703  ;;  %v3852_v20 = vmul.f32 %v5665_v14, %v8606_v52  ;;  %v3926_v52 = vadd.f32 %v8793_v50, %v3888_v6 }
 0x642   : > { %5678 = vrsqrt.f32 %v3795_v3  ;;  %v3765_v18 = vmul.f32 0.03125, %v3701_v46  ;;  %v3766_v51 = vmul.f32 0.03125, %v3704_v24  ;;  %v3955_v37 = vpack.c.bf16 %v3925_v8, %v3924_v31 }
 0x643   : > { %v5667_v2 = vpop.eup %5666  ;;  %5680 = vrsqrt.f32 %v3796_v43  ;;  %v3889_v34 = vmul.f32 %v8785_v57, %v3851_v63  ;;  %v3890_v28 = vmul.f32 %v8785_v57, %v3852_v20 }
 0x644   : > { %v5669_v44 = vpop.eup %5668  ;;  %v3797_v38 = vadd.f32 1e-05, %v3765_v18  ;;  %v3798_v1 = vadd.f32 1e-05, %v3766_v51  ;;  %5407 = vmatmul.mubr.msk.bf16.vlgmr.msra.gmra.mxu0 %vm589_vm0, %v3955_v37  ;;  %v3853_v17 = vmul.f32 %v5667_v2, %v8615_v47 }
 0x645   : > { %v3707_v61 = vpop.xlane.xlu1 %3706  ;;  %v3710_v19 = vpop.xlane.xlu0 %3709  ;;  %v3927_v27 = vadd.f32 %v8793_v50, %v3889_v34  ;;  %v3854_v5 = vmul.f32 %v5669_v44, %v8618_v30  ;;  %v3928_v8 = vadd.f32 %v8793_v50, %v3890_v28 }
 0x646   : > { %5682 = vrsqrt.f32 %v3797_v38  ;;  %v3767_v31 = vmul.f32 0.03125, %v3707_v61  ;;  %v3768_v63 = vmul.f32 0.03125, %v3710_v19  ;;  %v3891_v14 = vmul.f32 %v8785_v57, %v3853_v17 }
 0x647   : > { %v5671_v3 = vpop.eup %5670  ;;  %5684 = vrsqrt.f32 %v3798_v1  ;;  %v3956_v43 = vpack.c.bf16 %v3927_v27, %v3926_v52  ;;  %v3892_v51 = vmul.f32 %v8785_v57, %v3854_v5 }
 0x648   : > { %v5673_v46 = vpop.eup %5672  ;;  %v3799_v47 = vadd.f32 1e-05, %v3767_v31  ;;  %v3800_v24 = vadd.f32 1e-05, %v3768_v63  ;;  %v3929_v20 = vadd.f32 %v8793_v50, %v3891_v14  ;;  %v3855_v6 = vmul.f32 %v5671_v3, %v8630_v9 }
 0x649   : > { %5410 = vmatprep.mubr.msk.bf16.mxu0 %vm589_vm0, %v3956_v43  ;;  %v3713_v30 = vpop.xlane.xlu1 %3712  ;;  %v3716_v18 = vpop.xlane.xlu0 %3715  ;;  %v3856_v37 = vmul.f32 %v5673_v46, %v8633_v22  ;;  %v3930_v22 = vadd.f32 %v8793_v50, %v3892_v51 }
 0x64a   : > { %5686 = vrsqrt.f32 %v3799_v47  ;;  %v3769_v2 = vmul.f32 0.03125, %v3713_v30  ;;  %v3770_v34 = vmul.f32 0.03125, %v3716_v18  ;;  %v3957_v44 = vpack.c.bf16 %v3929_v20, %v3928_v8 }
 0x64b   : > { %v5675_v28 = vpop.eup %5674  ;;  %5688 = vrsqrt.f32 %v3800_v24  ;;  %v3893_v38 = vmul.f32 %v8785_v57, %v3855_v6  ;;  %v3894_v1 = vmul.f32 %v8785_v57, %v3856_v37 }
 0x64c   : > { %v5677_v17 = vpop.eup %5676  ;;  %v3801_v9 = vadd.f32 1e-05, %v3769_v2  ;;  %v3802_v61 = vadd.f32 1e-05, %v3770_v34  ;;  %5411 = vmatmul.mubr.msk.bf16.gmra.mxu0 %vm589_vm0, %v3957_v44  ;;  %v3857_v19 = vmul.f32 %v5675_v28, %v8642_v29 }
 0x64d   : > { %v3719_v52 = vpop.xlane.xlu1 %3718  ;;  %v3722_v27 = vpop.xlane.xlu0 %3721  ;;  %v3931_v5 = vadd.f32 %v8793_v50, %v3893_v38  ;;  %v3858_v31 = vmul.f32 %v5677_v17, %v8645_v36  ;;  %v3932_v46 = vadd.f32 %v8793_v50, %v3894_v1 }
 0x64e   : > { %5690 = vrsqrt.f32 %v3801_v9  ;;  %v3771_v63 = vmul.f32 0.03125, %v3719_v52  ;;  %v3772_v14 = vmul.f32 0.03125, %v3722_v27  ;;  %v3895_v3 = vmul.f32 %v8785_v57, %v3857_v19 }
 0x64f   : > { %v5679_v43 = vpop.eup %5678  ;;  %5692 = vrsqrt.f32 %v3802_v61  ;;  %v3958_v8 = vpack.c.bf16 %v3931_v5, %v3930_v22  ;;  %v3896_v18 = vmul.f32 %v8785_v57, %v3858_v31 }
 0x650   : > { %v5681_v47 = vpop.eup %5680  ;;  %v3803_v29 = vadd.f32 1e-05, %v3771_v63  ;;  %v3804_v24 = vadd.f32 1e-05, %v3772_v14  ;;  %v3933_v20 = vadd.f32 %v8793_v50, %v3895_v3  ;;  %v3859_v6 = vmul.f32 %v5679_v43, %v8654_v54 }
 0x651   : > { %5414 = vmatprep.mubr.msk.bf16.mxu0 %vm589_vm0, %v3958_v8  ;;  %v3725_v36 = vpop.xlane.xlu1 %3724  ;;  %v3728_v30 = vpop.xlane.xlu0 %3727  ;;  %v3860_v51 = vmul.f32 %v5681_v47, %v8657_v4  ;;  %v3934_v4 = vadd.f32 %v8793_v50, %v3896_v18 }
 0x652   : > { %5694 = vrsqrt.f32 %v3803_v29  ;;  %v3773_v37 = vmul.f32 0.03125, %v3725_v36  ;;  %v3774_v2 = vmul.f32 0.03125, %v3728_v30  ;;  %v3959_v34 = vpack.c.bf16 %v3933_v20, %v3932_v46 }
 0x653   : > { %v5683_v44 = vpop.eup %5682  ;;  %5696 = vrsqrt.f32 %v3804_v24  ;;  %v3897_v28 = vmul.f32 %v8785_v57, %v3859_v6  ;;  %v3898_v38 = vmul.f32 %v8785_v57, %v3860_v51 }
 0x654   : > { %v5685_v1 = vpop.eup %5684  ;;  %v3805_v54 = vadd.f32 1e-05, %v3773_v37  ;;  %v3806_v17 = vadd.f32 1e-05, %v3774_v2  ;;  %5415 = vmatmul.mubr.msk.bf16.gmra.mxu0 %vm589_vm0, %v3959_v34  ;;  %v3861_v9 = vmul.f32 %v5683_v44, %v8666_v59 }
 0x655   : > { %v3731_v61 = vpop.xlane.xlu1 %3730  ;;  %v3734_v19 = vpop.xlane.xlu0 %3733  ;;  %v3935_v52 = vadd.f32 %v8793_v50, %v3897_v28  ;;  %v3862_v27 = vmul.f32 %v5685_v1, %v8669_v26  ;;  %v3936_v3 = vadd.f32 %v8793_v50, %v3898_v38 }
 0x656   : > { %5698 = vrsqrt.f32 %v3805_v54  ;;  %v3775_v22 = vmul.f32 0.03125, %v3731_v61  ;;  %v3776_v5 = vmul.f32 0.03125, %v3734_v19  ;;  %v3899_v31 = vmul.f32 %v8785_v57, %v3861_v9 }
 0x657   : > { %v5687_v63 = vpop.eup %5686  ;;  %5700 = vrsqrt.f32 %v3806_v17  ;;  %v3960_v14 = vpack.c.bf16 %v3935_v52, %v3934_v4  ;;  %v3900_v20 = vmul.f32 %v8785_v57, %v3862_v27 }
 0x658   : > { %v5689_v43 = vpop.eup %5688  ;;  %v3807_v59 = vadd.f32 1e-05, %v3775_v22  ;;  %v3808_v8 = vadd.f32 1e-05, %v3776_v5  ;;  %v3937_v46 = vadd.f32 %v8793_v50, %v3899_v31  ;;  %v3863_v47 = vmul.f32 %v5687_v63, %v8678_v45 }
 0x659   : > { %v3864_v29 = vmul.f32 %v5689_v43, %v8681_v16  ;;  %5418 = vmatprep.mubr.msk.bf16.mxu0 %vm589_vm0, %v3960_v14  ;;  %v3737_v26 = vpop.xlane.xlu1 %3736  ;;  %v3740_v24 = vpop.xlane.xlu0 %3739  ;;  %v3938_v38 = vadd.f32 %v8793_v50, %v3900_v20 }
 0x65a   : > { %5702 = vrsqrt.f32 %v3807_v59  ;;  %v3777_v6 = vmul.f32 0.03125, %v3737_v26  ;;  %v3778_v36 = vmul.f32 0.03125, %v3740_v24  ;;  %v3961_v30 = vpack.c.bf16 %v3937_v46, %v3936_v3 }
 0x65b   : > { %v5691_v18 = vpop.eup %5690  ;;  %5704 = vrsqrt.f32 %v3808_v8  ;;  %v3901_v51 = vmul.f32 %v8785_v57, %v3863_v47  ;;  %v3902_v37 = vmul.f32 %v8785_v57, %v3864_v29 }
 0x65c   : > { %v5693_v2 = vpop.eup %5692  ;;  %v3865_v45 = vmul.f32 %v5691_v18, %v8690_v23  ;;  %v3809_v16 = vadd.f32 1e-05, %v3777_v6  ;;  %v3810_v34 = vadd.f32 1e-05, %v3778_v36  ;;  %5419 = vmatmul.mubr.msk.bf16.gmra.mxu0 %vm589_vm0, %v3961_v30 }
 0x65d   : > { %v3743_v44 = vpop.xlane.xlu1 %3742  ;;  %v3746_v28 = vpop.xlane.xlu0 %3745  ;;  %v3939_v1 = vadd.f32 %v8793_v50, %v3901_v51  ;;  %v3866_v54 = vmul.f32 %v5693_v2, %v8693_v39  ;;  %v3940_v4 = vadd.f32 %v8793_v50, %v3902_v37 }
 0x65e   : > { %5706 = vrsqrt.f32 %v3809_v16  ;;  %v3779_v17 = vmul.f32 0.03125, %v3743_v44  ;;  %v3780_v9 = vmul.f32 0.03125, %v3746_v28  ;;  %v3903_v61 = vmul.f32 %v8785_v57, %v3865_v45 }
 0x65f   : > { %v5695_v19 = vpop.eup %5694  ;;  %5708 = vrsqrt.f32 %v3810_v34  ;;  %v3962_v23 = vpack.c.bf16 %v3939_v1, %v3938_v38  ;;  %v3904_v52 = vmul.f32 %v8785_v57, %v3866_v54 }
 0x660   : > { %v5697_v27 = vpop.eup %5696  ;;  %v3811_v22 = vadd.f32 1e-05, %v3779_v17  ;;  %v3812_v5 = vadd.f32 1e-05, %v3780_v9  ;;  %v3941_v31 = vadd.f32 %v8793_v50, %v3903_v61  ;;  %v3867_v63 = vmul.f32 %v5695_v19, %v8702_v11 }
 0x661   : > { %v3868_v39 = vmul.f32 %v5697_v27, %v8705_v0  ;;  %5422 = vmatprep.mubr.msk.bf16.mxu0 %vm589_vm0, %v3962_v23  ;;  %v3749_v14 = vpop.xlane.xlu1 %3748  ;;  %v3942_v46 = vadd.f32 %v8793_v50, %v3904_v52 }
 0x662   : > { %5710 = vrsqrt.f32 %v3811_v22  ;;  %v3781_v3 = vmul.f32 0.03125, %v3749_v14  ;;  %v3963_v43 = vpack.c.bf16 %v3941_v31, %v3940_v4  ;;  %v3905_v59 = vmul.f32 %v8785_v57, %v3867_v63 }
 0x663   : > { %v5699_v8 = vpop.eup %5698  ;;  %5712 = vrsqrt.f32 %v3812_v5  ;;  %v3906_v0 = vmul.f32 %v8785_v57, %v3868_v39 }
 0x664   : > { %v5701_v47 = vpop.eup %5700  ;;  %v3869_v29 = vmul.f32 %v5699_v8, %v8714_v21  ;;  %v3813_v26 = vadd.f32 1e-05, %v3781_v3  ;;  %5423 = vmatmul.mubr.msk.bf16.gmra.mxu0 %vm589_vm0, %v3963_v43  ;;  %v3943_v11 = vadd.f32 %v8793_v50, %v3905_v59  ;;  %v5519_v43 = vld [vmem:[%s9339_s14 + $0x10] sm:$0xff]   ;;  %v8918_v59 = vld [vmem:[%s9338_s13] ss:$0 sm:$0xff] }
 0x665   : > { %v3870_v24 = vmul.f32 %v5701_v47, %v8717_v15  ;;  %v3944_v18 = vadd.f32 %v8793_v50, %v3906_v0 }
 0x666   : > { %5714 = vrsqrt.f32 %v3813_v26  ;;  %v3964_v20 = vpack.c.bf16 %v3943_v11, %v3942_v46  ;;  %v3907_v6 = vmul.f32 %v8785_v57, %v3869_v29 }
 0x667   : > { %v5703_v36 = vpop.eup %5702  ;;  %v3908_v37 = vmul.f32 %v8785_v57, %v3870_v24 }
 0x668   : > { %v5705_v30 = vpop.eup %5704  ;;  %5426 = vmatprep.mubr.msk.bf16.mxu0 %vm589_vm0, %v3964_v20  ;;  %v3945_v21 = vadd.f32 %v8793_v50, %v3907_v6  ;;  %v3871_v51 = vmul.f32 %v5703_v36, %v8726_v12 }
 0x669   : > { %v3872_v2 = vmul.f32 %v5705_v30, %v8729_v53  ;;  %v3946_v28 = vadd.f32 %v8793_v50, %v3908_v37 }
 0x66a   : > { %v3965_v45 = vpack.c.bf16 %v3945_v21, %v3944_v18  ;;  %v3909_v15 = vmul.f32 %v8785_v57, %v3871_v51 }
 0x66b   : > { %v5707_v16 = vpop.eup %5706  ;;  %v3910_v1 = vmul.f32 %v8785_v57, %v3872_v2 }
 0x66c   : > { %v5709_v34 = vpop.eup %5708  ;;  %v3873_v44 = vmul.f32 %v5707_v16, %v8738_v32  ;;  %5427 = vmatmul.mubr.msk.bf16.gmra.mxu0 %vm589_vm0, %v3965_v45  ;;  %v3947_v38 = vadd.f32 %v8793_v50, %v3909_v15 }
 0x66d   : > { %v3874_v12 = vmul.f32 %v5709_v34, %v8741_v48  ;;  %v3948_v61 = vadd.f32 %v8793_v50, %v3910_v1 }
 0x66e   : > { %v3966_v54 = vpack.c.bf16 %v3947_v38, %v3946_v28  ;;  %v3911_v53 = vmul.f32 %v8785_v57, %v3873_v44 }
 0x66f   : > { %v5711_v17 = vpop.eup %5710  ;;  %v3912_v23 = vmul.f32 %v8785_v57, %v3874_v12 }
 0x670   : > { %v5713_v9 = vpop.eup %5712  ;;  %5430 = vmatprep.mubr.msk.bf16.mxu0 %vm589_vm0, %v3966_v54  ;;  %v3949_v32 = vadd.f32 %v8793_v50, %v3911_v53  ;;  %v3875_v19 = vmul.f32 %v5711_v17, %v8750_v10 }
 0x671   : > { %v3876_v4 = vmul.f32 %v5713_v9, %v8753_v35  ;;  %v3950_v5 = vadd.f32 %v8793_v50, %v3912_v23 }
 0x672   : > { %v3967_v52 = vpack.c.bf16 %v3949_v32, %v3948_v61  ;;  %v3913_v48 = vmul.f32 %v8785_v57, %v3875_v19 }
 0x673   : > { %v5715_v27 = vpop.eup %5714  ;;  %v3914_v63 = vmul.f32 %v8785_v57, %v3876_v4 }
 0x674   : > { %v3877_v22 = vmul.f32 %v5715_v27, %v8762_v60  ;;  %5431 = vmatmul.mubr.msk.bf16.gmra.mxu0 %vm589_vm0, %v3967_v52  ;;  %v3951_v31 = vadd.f32 %v8793_v50, %v3913_v48  ;;  %v5518_v60 = vld [vmem:[%s9339_s14 + $0x18] sm:$0xff]  }
 0x675   : > { %v3952_v35 = vadd.f32 %v8793_v50, %v3914_v63  ;;  %5446 = vmatprep.subr.bf16.mxu1 %v5518_v60 }
 0x676   : > { %v3968_v39 = vpack.c.bf16 %v3951_v31, %v3950_v5  ;;  %v3915_v10 = vmul.f32 %v8785_v57, %v3877_v22  ;;  %5447 = vmatpush3.bf16.msra.mxu1 %v5518_v60  ;;  %v5520_v57 = vld [vmem:[%s9339_s14 + $0x8] sm:$0xff]  }
 0x677   : > { %5448 = vmatprep.subr.bf16.mxu1 %v5519_v43 }
 0x678   : > { %5434 = vmatprep.mubr.msk.bf16.mxu0 %vm589_vm0, %v3968_v39  ;;  %v3953_v14 = vadd.f32 %v8793_v50, %v3915_v10  ;;  %v5521_v50 = vld [vmem:[%s9339_s14] sm:$0xff]  }
 0x67a   : > { %v3969_v3 = vpack.c.bf16 %v3953_v14, %v3952_v35  ;;  %5449 = vmatpush3.bf16.msra.mxu1 %v5519_v43 }
 0x67b   : > { %5450 = vmatprep.subr.bf16.mxu1 %v5520_v57 }
 0x67c   : > { %5435 = vmatmul.mubr.msk.bf16.gmra.mxu0 %vm589_vm0, %v3969_v3 }
 0x67e   : > { %5451 = vmatpush3.bf16.msra.mxu1 %v5520_v57 }
 0x67f   : > { %5452 = vmatprep.subr.bf16.mxu1 %v5521_v50 }
 0x682   : > { %5453 = vmatpush3.bf16.msra.mxu1 %v5521_v50 }
 0x704   : > { %v5408_v8 = vpop.f32.mrf.mxu0 }
 0x705   : > { %v8921_v46 = vadd.f32 %v5408_v8, %v8918_v59 }
 0x706   : > { %v4075_v47 = vpop.f32.mrf.mxu0 }
 0x707   : > { %v4236_v29 = vmul.f32 0.044715, %v8921_v46  ;;  %v8925_v26 = vadd.f32 %v8918_v59, %v4075_v47 }
 0x708   : > { %v5409_v11 = vpop.f32.mrf.mxu0 }
 0x709   : > { %v4268_v0 = vmul.f32 %v4236_v29, %v8921_v46  ;;  %v4234_v24 = vmul.f32 0.044715, %v8925_v26  ;;  %v8930_v20 = vadd.f32 %v5409_v11, %v8918_v59 }
 0x70a   : > { %v4078_v6 = vpop.f32.mrf.mxu0 }
 0x70b   : > { %v4300_v36 = vmul.f32 %v4268_v0, %v8921_v46  ;;  %v4266_v30 = vmul.f32 %v4234_v24, %v8925_v26  ;;  %v4237_v18 = vmul.f32 0.044715, %v8930_v20  ;;  %v8936_v21 = vadd.f32 %v8918_v59, %v4078_v6 }
 0x70c   : > { %v5412_v51 = vpop.f32.mrf.mxu0 }
 0x70d   : > { %v4332_v37 = vadd.f32 %v4300_v36, %v8921_v46  ;;  %v4298_v2 = vmul.f32 %v4266_v30, %v8925_v26  ;;  %v4269_v45 = vmul.f32 %v4237_v18, %v8930_v20  ;;  %v8942_v15 = vadd.f32 %v5412_v51, %v8918_v59 }
 0x70e   : > { %v4235_v16 = vmul.f32 0.044715, %v8936_v21  ;;  %v4091_v34 = vpop.f32.mrf.mxu0 }
 0x70f   : > { %v4364_v44 = vmul.f32 0.7978846, %v4332_v37  ;;  %v4301_v28 = vmul.f32 %v4269_v45, %v8930_v20  ;;  %v4240_v38 = vmul.f32 0.044715, %v8942_v15  ;;  %v8948_v1 = vadd.f32 %v8918_v59, %v4091_v34 }
 0x710   : > { %v4267_v12 = vmul.f32 %v4235_v16, %v8936_v21  ;;  %v5413_v54 = vpop.f32.mrf.mxu0  ;;  %v4330_v53 = vadd.f32 %v4298_v2, %v8925_v26 }
 0x711   : > { %v4333_v17 = vadd.f32 %v4301_v28, %v8930_v20  ;;  %v4272_v9 = vmul.f32 %v4240_v38, %v8942_v15  ;;  %v4238_v61 = vmul.f32 0.044715, %v8948_v1  ;;  %5716 = vtanh.f32 %v4364_v44 }
 0x712   : > { %v4299_v32 = vmul.f32 %v4267_v12, %v8936_v21  ;;  %v8957_v19 = vadd.f32 %v5413_v54, %v8918_v59  ;;  %v4094_v23 = vpop.f32.mrf.mxu0  ;;  %v4362_v4 = vmul.f32 0.7978846, %v4330_v53 }
 0x713   : > { %v4365_v52 = vmul.f32 0.7978846, %v4333_v17  ;;  %v4304_v48 = vmul.f32 %v4272_v9, %v8942_v15  ;;  %v4270_v27 = vmul.f32 %v4238_v61, %v8948_v1  ;;  %v8962_v22 = vadd.f32 %v8918_v59, %v4094_v23 }
 0x714   : > { %v4241_v5 = vmul.f32 0.044715, %v8957_v19  ;;  %v5416_v31 = vpop.f32.mrf.mxu0  ;;  %v4331_v63 = vadd.f32 %v4299_v32, %v8936_v21  ;;  %5718 = vtanh.f32 %v4362_v4 }
 0x715   : > { %5720 = vtanh.f32 %v4365_v52  ;;  %v4302_v39 = vmul.f32 %v4270_v27, %v8948_v1  ;;  %v4239_v10 = vmul.f32 0.044715, %v8962_v22  ;;  %v8969_v35 = vadd.f32 %v5416_v31, %v8918_v59 }
 0x716   : > { %v4273_v14 = vmul.f32 %v4241_v5, %v8957_v19  ;;  %v4107_v3 = vpop.f32.mrf.mxu0  ;;  %v4363_v60 = vmul.f32 0.7978846, %v4331_v63  ;;  %v4336_v43 = vadd.f32 %v4304_v48, %v8942_v15 }
 0x717   : > { %v4271_v57 = vmul.f32 %v4239_v10, %v8962_v22  ;;  %v4244_v50 = vmul.f32 0.044715, %v8969_v35  ;;  %v8976_v8 = vadd.f32 %v8918_v59, %v4107_v3  ;;  %v4334_v47 = vadd.f32 %v4302_v39, %v8948_v1 }
 0x718   : > { %v4305_v29 = vmul.f32 %v4273_v14, %v8957_v19  ;;  %v5417_v11 = vpop.f32.mrf.mxu0  ;;  %5722 = vtanh.f32 %v4363_v60  ;;  %v4368_v36 = vmul.f32 0.7978846, %v4336_v43 }
 0x719   : > { %v4303_v0 = vmul.f32 %v4271_v57, %v8962_v22  ;;  %v4242_v24 = vmul.f32 0.044715, %v8976_v8  ;;  %v8983_v6 = vadd.f32 %v5417_v11, %v8918_v59  ;;  %v4276_v30 = vmul.f32 %v4244_v50, %v8969_v35 }
 0x71a   : > { %v4110_v18 = vpop.f32.mrf.mxu0  ;;  %v4366_v51 = vmul.f32 0.7978846, %v4334_v47  ;;  %v4337_v37 = vadd.f32 %v4305_v29, %v8957_v19  ;;  %v4205_v11 = vmul.f32 0.5, %v8930_v20 }
 0x71b   : > { %v4274_v2 = vmul.f32 %v4242_v24, %v8976_v8  ;;  %v4245_v45 = vmul.f32 0.044715, %v8983_v6  ;;  %v8990_v16 = vadd.f32 %v8918_v59, %v4110_v18  ;;  %v4335_v44 = vadd.f32 %v4303_v0, %v8962_v22 }
 0x71c   : > { %v8992_v34 = vpop.f32.mrf.mxu0  ;;  %5724 = vtanh.f32 %v4366_v51  ;;  %v4369_v28 = vmul.f32 0.7978846, %v4337_v37  ;;  %v4308_v53 = vmul.f32 %v4276_v30, %v8969_v35  ;;  %v4202_v0 = vmul.f32 0.5, %v8925_v26 }
 0x71d   : > { %v4306_v38 = vmul.f32 %v4274_v2, %v8976_v8  ;;  %v4277_v12 = vmul.f32 %v4245_v45, %v8983_v6  ;;  %v4243_v54 = vmul.f32 0.044715, %v8990_v16  ;;  %5726 = vtanh.f32 %v4368_v36 }
 0x71e   : > { %v4123_v17 = vpop.f32.mrf.mxu0  ;;  %v4367_v9 = vmul.f32 0.7978846, %v4335_v44  ;;  %5728 = vtanh.f32 %v4369_v28  ;;  %v5717_v61 = vpop.eup %5716  ;;  %v4340_v10 = vadd.f32 %v4308_v53, %v8969_v35  ;;  %v4203_v30 = vmul.f32 0.5, %v8936_v21 }
 0x71f   : > { %v4309_v32 = vmul.f32 %v4277_v12, %v8983_v6  ;;  %v4275_v23 = vmul.f32 %v4243_v54, %v8990_v16  ;;  %v9002_v4 = vadd.f32 %v8918_v59, %v4123_v17  ;;  %v4338_v48 = vadd.f32 %v4306_v38, %v8976_v8 }
 0x720   : > { %v5421_v52 = vpop.f32.mrf.mxu0  ;;  %5730 = vtanh.f32 %v4367_v9  ;;  %v4428_v24 = vadd.f32 1.0, %v5717_v61  ;;  %v4372_v37 = vmul.f32 0.7978846, %v4340_v10  ;;  %v4204_v2 = vmul.f32 0.5, %v8921_v46 }
 0x721   : > { %v5719_v27 = vpop.eup %5718  ;;  %v4307_v5 = vmul.f32 %v4275_v23, %v8990_v16  ;;  %v4370_v39 = vmul.f32 0.7978846, %v4338_v48  ;;  %v4246_v14 = vmul.f32 0.044715, %v9002_v4  ;;  %v4341_v60 = vadd.f32 %v4309_v32, %v8983_v6 }
 0x722   : > { %v5721_v31 = vpop.eup %5720  ;;  %v4126_v63 = vpop.f32.mrf.mxu0  ;;  %v4426_v3 = vadd.f32 1.0, %v5719_v27  ;;  %v4460_v21 = vmul.f32 %v4428_v24, %v4204_v2  ;;  %v4208_v24 = vmul.f32 0.5, %v8942_v15 }
 0x723   : > { %v9010_v43 = vadd.f32 %v8918_v59, %v4126_v63  ;;  %v4429_v50 = vadd.f32 1.0, %v5721_v31  ;;  %v4339_v47 = vadd.f32 %v4307_v5, %v8990_v16  ;;  %5732 = vtanh.f32 %v4370_v39 }
 0x724   : > { %v5424_v57 = vpop.f32.mrf.mxu0  ;;  %v4278_v45 = vmul.f32 %v4246_v14, %v9002_v4  ;;  %v4458_v44 = vmul.f32 %v4426_v3, %v4202_v0  ;;  %v4373_v26 = vmul.f32 0.7978846, %v4341_v60  ;;  %v4206_v14 = vmul.f32 0.5, %v8948_v1 }
 0x725   : > { %v5723_v29 = vpop.eup %5722  ;;  %v4371_v51 = vmul.f32 0.7978846, %v4339_v47  ;;  %v4461_v28 = vmul.f32 %v4429_v50, %v4205_v11  ;;  %v4247_v38 = vmul.f32 0.044715, %v9010_v43  ;;  %v9022_v53 = vadd.f32 %v5424_v57, %v8918_v59 }
 0x726   : > { %v9015_v36 = vpop.f32.mrf.mxu0  ;;  %v4427_v18 = vadd.f32 1.0, %v5723_v29  ;;  %v4310_v32 = vmul.f32 %v4278_v45, %v9002_v4  ;;  %v4209_v3 = vmul.f32 0.5, %v8957_v19  ;;  %v9034_v57 = vadd.f32 %v8992_v34, %v8918_v59 }
 0x727   : > { %5734 = vtanh.f32 %v4371_v51  ;;  %v4491_v48 = vpack.c.bf16 %v4461_v28, %v4460_v21  ;;  %v4279_v27 = vmul.f32 %v4247_v38, %v9010_v43  ;;  %v4252_v10 = vmul.f32 0.044715, %v9022_v53 }
 0x728   : > { %v5425_v12 = vpop.f32.mrf.mxu0  ;;  %v4459_v20 = vmul.f32 %v4427_v18, %v4203_v30  ;;  %5736 = vtanh.f32 %v4372_v37  ;;  %v9037_v50 = vadd.f32 %v5421_v52, %v8918_v59  ;;  %v4207_v29 = vmul.f32 0.5, %v8962_v22 }
 0x729   : > { %v5725_v54 = vpop.eup %5724  ;;  %v9026_v23 = vadd.f32 %v5425_v12, %v8918_v59  ;;  %5738 = vtanh.f32 %v4373_v26  ;;  %v4311_v1 = vmul.f32 %v4279_v27, %v9010_v43  ;;  %v4342_v34 = vadd.f32 %v4310_v32, %v9002_v4 }
 0x72a   : > { %v5727_v17 = vpop.eup %5726  ;;  %v4142_v9 = vpop.f32.mrf.mxu0  ;;  %v4490_v61 = vpack.c.bf16 %v4459_v20, %v4458_v44  ;;  %v4430_v31 = vadd.f32 1.0, %v5725_v54  ;;  %v4284_v52 = vmul.f32 %v4252_v10, %v9022_v53  ;;  %v4248_v45 = vmul.f32 0.044715, %v9034_v57 }
 0x72b   : > { %v5729_v46 = vpop.eup %5728  ;;  %v4432_v60 = vadd.f32 1.0, %v5727_v17  ;;  %v4253_v0 = vmul.f32 0.044715, %v9026_v23  ;;  %v4249_v22 = vmul.f32 0.044715, %v9037_v50  ;;  %v4212_v26 = vmul.f32 0.5, %v8969_v35 }
 0x72c   : > { %5454 = vmatprep.mubr.bf16.mxu1 %v4490_v61  ;;  %v5428_v5 = vpop.f32.mrf.mxu0  ;;  %v4433_v63 = vadd.f32 1.0, %v5729_v46  ;;  %v4462_v18 = vmul.f32 %v4430_v31, %v4206_v14  ;;  %v4343_v54 = vadd.f32 %v4311_v1, %v9010_v43  ;;  %v4374_v21 = vmul.f32 0.7978846, %v4342_v34 }
 0x72d   : > { %v5731_v39 = vpop.eup %5730  ;;  %5455 = vmatmul.mubr.bf16.vlgmr.msra.gmra.mxu1 %v4491_v48  ;;  %v4464_v2 = vmul.f32 %v4432_v60, %v4208_v24  ;;  %v4285_v15 = vmul.f32 %v4253_v0, %v9026_v23  ;;  %v4316_v61 = vmul.f32 %v4284_v52, %v9022_v53  ;;  %v9053_v46 = vadd.f32 %v8918_v59, %v9015_v36 }
 0x72e   : > { %v4155_v47 = vpop.f32.mrf.mxu0  ;;  %v4431_v11 = vadd.f32 1.0, %v5731_v39  ;;  %v4465_v30 = vmul.f32 %v4433_v63, %v4209_v3  ;;  %v4210_v32 = vmul.f32 0.5, %v8976_v8  ;;  %v4211_v48 = vmul.f32 0.5, %v8990_v16 }
 0x72f   : > { %v4280_v27 = vmul.f32 %v4248_v45, %v9034_v57  ;;  %v4281_v31 = vmul.f32 %v4249_v22, %v9037_v50  ;;  %v4317_v14 = vmul.f32 %v4285_v15, %v9026_v23  ;;  %v9064_v36 = vadd.f32 %v8918_v59, %v4142_v9 }
 0x730   : > { %v5429_v19 = vpop.f32.mrf.mxu0  ;;  %v4463_v51 = vmul.f32 %v4431_v11, %v4207_v29  ;;  %v5733_v37 = vpop.eup %5732  ;;  %v4493_v38 = vpack.c.bf16 %v4465_v30, %v4464_v2  ;;  %v9067_v3 = vadd.f32 %v5428_v5, %v8918_v59  ;;  %v4375_v11 = vmul.f32 0.7978846, %v4343_v54 }
 0x731   : > { %v4434_v12 = vadd.f32 1.0, %v5733_v37  ;;  %v9060_v35 = vadd.f32 %v5429_v19, %v8918_v59  ;;  %5740 = vtanh.f32 %v4374_v21  ;;  %v4348_v24 = vadd.f32 %v4316_v61, %v9022_v53 }
 0x732   : > { %v4158_v44 = vpop.f32.mrf.mxu0  ;;  %v4492_v28 = vpack.c.bf16 %v4463_v51, %v4462_v18  ;;  %v4250_v30 = vmul.f32 0.044715, %v9053_v46  ;;  %v9072_v1 = vadd.f32 %v8918_v59, %v4155_v47  ;;  %v4213_v9 = vmul.f32 0.5, %v8983_v6 }
 0x733   : > { %v4466_v8 = vmul.f32 %v4434_v12, %v4210_v32  ;;  %v4312_v19 = vmul.f32 %v4280_v27, %v9034_v57  ;;  %v4257_v5 = vmul.f32 0.044715, %v9060_v35  ;;  %v4313_v37 = vmul.f32 %v4281_v31, %v9037_v50 }
 0x734   : > { %5458 = vmatprep.mubr.bf16.mxu1 %v4492_v28  ;;  %v5432_v20 = vpop.f32.mrf.mxu0  ;;  %v5735_v17 = vpop.eup %5734  ;;  %v4349_v52 = vadd.f32 %v4317_v14, %v9026_v23  ;;  %v4251_v2 = vmul.f32 0.044715, %v9064_v36  ;;  %v4256_v45 = vmul.f32 0.044715, %v9067_v3  ;;  %v9082_v47 = vadd.f32 %v8918_v59, %v4158_v44 }
 0x735   : > { %5459 = vmatmul.mubr.bf16.gmra.mxu1 %v4493_v38  ;;  %v4435_v39 = vadd.f32 1.0, %v5735_v17  ;;  %v5737_v10 = vpop.eup %5736  ;;  %5742 = vtanh.f32 %v4375_v11  ;;  %v4380_v15 = vmul.f32 0.7978846, %v4348_v24  ;;  %v4282_v38 = vmul.f32 %v4250_v30, %v9053_v46 }
 0x736   : > { %v4171_v63 = vpop.f32.mrf.mxu0  ;;  %v4436_v29 = vadd.f32 1.0, %v5737_v10  ;;  %v5739_v0 = vpop.eup %5738  ;;  %v4254_v12 = vmul.f32 0.044715, %v9072_v1  ;;  %v9087_v54 = vadd.f32 %v5432_v20, %v8918_v59  ;;  %v4289_v21 = vmul.f32 %v4257_v5, %v9060_v35 }
 0x737   : > { %v4467_v60 = vmul.f32 %v4435_v39, %v4211_v48  ;;  %v4437_v34 = vadd.f32 1.0, %v5739_v0  ;;  %v9091_v17 = vadd.f32 %v8918_v59, %v4171_v63  ;;  %v4214_v32 = vmul.f32 0.5, %v9002_v4 }
 0x738   : > { %v5433_v16 = vpop.f32.mrf.mxu0  ;;  %v4468_v22 = vmul.f32 %v4436_v29, %v4212_v26  ;;  %v4381_v26 = vmul.f32 0.7978846, %v4349_v52  ;;  %v4283_v48 = vmul.f32 %v4251_v2, %v9064_v36  ;;  %v4288_v20 = vmul.f32 %v4256_v45, %v9067_v3 }
 0x739   : > { %v4494_v51 = vpack.c.bf16 %v4467_v60, %v4466_v8  ;;  %v4469_v28 = vmul.f32 %v4437_v34, %v4213_v9  ;;  %v9096_v27 = vadd.f32 %v5433_v16, %v8918_v59  ;;  %v4255_v39 = vmul.f32 0.044715, %v9082_v47 }
 0x73a   : > { %v4174_v18 = vpop.f32.mrf.mxu0  ;;  %v4344_v10 = vadd.f32 %v4312_v19, %v9034_v57  ;;  %v4345_v14 = vadd.f32 %v4313_v37, %v9037_v50  ;;  %5744 = vtanh.f32 %v4380_v15  ;;  %v4314_v4 = vmul.f32 %v4282_v38, %v9053_v46 }
 0x73b   : > { %5462 = vmatprep.mubr.bf16.mxu1 %v4494_v51  ;;  %v4495_v44 = vpack.c.bf16 %v4469_v28, %v4468_v22  ;;  %v9099_v31 = vadd.f32 %v8918_v59, %v4174_v18  ;;  %v4286_v8 = vmul.f32 %v4254_v12, %v9072_v1  ;;  %v4260_v16 = vmul.f32 0.044715, %v9087_v54 }
 0x73c   : > { %v5436_v6 = vpop.f32.mrf.mxu0  ;;  %v4321_v60 = vmul.f32 %v4289_v21, %v9060_v35  ;;  %v4258_v29 = vmul.f32 0.044715, %v9091_v17  ;;  %v4376_v0 = vmul.f32 0.7978846, %v4344_v10  ;;  %v4377_v24 = vmul.f32 0.7978846, %v4345_v14 }
 0x73d   : > { %5463 = vmatmul.mubr.bf16.gmra.mxu1 %v4495_v44  ;;  %5746 = vtanh.f32 %v4381_v26  ;;  %v4315_v30 = vmul.f32 %v4283_v48, %v9064_v36  ;;  %v4261_v9 = vmul.f32 0.044715, %v9096_v27  ;;  %v4259_v19 = vmul.f32 0.044715, %v9099_v31 }
 0x73e   : > { %v4187_v61 = vpop.f32.mrf.mxu0  ;;  %v4320_v5 = vmul.f32 %v4288_v20, %v9067_v3  ;;  %v4287_v18 = vmul.f32 %v4255_v39, %v9082_v47  ;;  %v4215_v51 = vmul.f32 0.5, %v9010_v43  ;;  %5748 = vtanh.f32 %v4376_v0  ;;  %v5741_v34 = vpop.eup %5740 }
 0x73f   : > { %v4318_v37 = vmul.f32 %v4286_v8, %v9072_v1  ;;  %v4292_v52 = vmul.f32 %v4260_v16, %v9087_v54  ;;  %v9119_v2 = vadd.f32 %v8918_v59, %v4187_v61  ;;  %v4353_v22 = vadd.f32 %v4321_v60, %v9060_v35 }
 0x740   : > { %v5437_v63 = vpop.f32.mrf.mxu0  ;;  %v4290_v28 = vmul.f32 %v4258_v29, %v9091_v17  ;;  %5750 = vtanh.f32 %v4377_v24  ;;  %v4346_v15 = vadd.f32 %v4314_v4, %v9053_v46  ;;  %v4293_v43 = vmul.f32 %v4261_v9, %v9096_v27 }
 0x741   : > { %v4291_v38 = vmul.f32 %v4259_v19, %v9099_v31  ;;  %v9130_v12 = vadd.f32 %v5437_v63, %v8918_v59  ;;  %v4347_v21 = vadd.f32 %v4315_v30, %v9064_v36  ;;  %v4352_v44 = vadd.f32 %v4320_v5, %v9067_v3 }
 0x742   : > { %v4190_v11 = vpop.f32.mrf.mxu0  ;;  %v4319_v61 = vmul.f32 %v4287_v18, %v9082_v47  ;;  %v4438_v26 = vadd.f32 1.0, %v5741_v34  ;;  %v4378_v48 = vmul.f32 0.7978846, %v4346_v15  ;;  %v5743_v20 = vpop.eup %5742  ;;  %v9136_v39 = vadd.f32 %v5436_v6, %v8918_v59 }
 0x743   : > { %v9122_v45 = vadd.f32 %v8918_v59, %v4190_v11  ;;  %v4262_v10 = vmul.f32 0.044715, %v9119_v2  ;;  %v4379_v4 = vmul.f32 0.7978846, %v4347_v21  ;;  %v4385_v8 = vmul.f32 0.7978846, %v4353_v22 }
 0x744   : > { %v4324_v63 = vmul.f32 %v4292_v52, %v9087_v54  ;;  %v4322_v16 = vmul.f32 %v4290_v28, %v9091_v17  ;;  %v4439_v60 = vadd.f32 1.0, %v5743_v20  ;;  %v4325_v29 = vmul.f32 %v4293_v43, %v9096_v27 }
 0x745   : > { %v4263_v14 = vmul.f32 0.044715, %v9122_v45  ;;  %v4323_v11 = vmul.f32 %v4291_v38, %v9099_v31  ;;  %v4265_v0 = vmul.f32 0.044715, %v9130_v12  ;;  %5752 = vtanh.f32 %v4378_v48 }
 0x746   : > { %v4470_v59 = vmul.f32 %v4438_v26, %v4214_v32  ;;  %v4471_v6 = vmul.f32 %v4439_v60, %v4215_v51  ;;  %5754 = vtanh.f32 %v4379_v4  ;;  %v4350_v24 = vadd.f32 %v4318_v37, %v9072_v1 }
 0x747   : > { %v4264_v30 = vmul.f32 0.044715, %v9136_v39  ;;  %v4294_v9 = vmul.f32 %v4262_v10, %v9119_v2  ;;  %v4295_v19 = vmul.f32 %v4263_v14, %v9122_v45  ;;  %v4351_v5 = vadd.f32 %v4319_v61, %v9082_v47  ;;  %v5745_v18 = vpop.eup %5744 }
 0x748   : > { %v4384_v34 = vmul.f32 0.7978846, %v4352_v44  ;;  %v4496_v52 = vpack.c.bf16 %v4471_v6, %v4470_v59  ;;  %v4382_v22 = vmul.f32 0.7978846, %v4350_v24  ;;  %5756 = vtanh.f32 %v4385_v8 }
 0x749   : > { %v4356_v28 = vadd.f32 %v4324_v63, %v9087_v54  ;;  %v4357_v32 = vadd.f32 %v4325_v29, %v9096_v27  ;;  %v4383_v51 = vmul.f32 0.7978846, %v4351_v5  ;;  %v4297_v37 = vmul.f32 %v4265_v0, %v9130_v12 }
 0x74a   : > { %v5747_v15 = vpop.eup %5746  ;;  %5466 = vmatprep.mubr.bf16.mxu1 %v4496_v52  ;;  %5758 = vtanh.f32 %v4382_v22  ;;  %v4354_v43 = vadd.f32 %v4322_v16, %v9091_v17  ;;  %v4355_v38 = vadd.f32 %v4323_v11, %v9099_v31  ;;  %v4296_v44 = vmul.f32 %v4264_v30, %v9136_v39 }
 0x74b   : > { %v5749_v21 = vpop.eup %5748  ;;  %v4326_v61 = vmul.f32 %v4294_v9, %v9119_v2  ;;  %v4327_v26 = vmul.f32 %v4295_v19, %v9122_v45  ;;  %5760 = vtanh.f32 %v4383_v51  ;;  %v4388_v4 = vmul.f32 0.7978846, %v4356_v28 }
 0x74c   : > { %5762 = vtanh.f32 %v4384_v34  ;;  %v4440_v48 = vadd.f32 1.0, %v5749_v21  ;;  %v4386_v20 = vmul.f32 0.7978846, %v4354_v43  ;;  %v4387_v10 = vmul.f32 0.7978846, %v4355_v38 }
 0x74d   : > { %v5751_v14 = vpop.eup %5750  ;;  %v4216_v8 = vmul.f32 0.5, %v9034_v57  ;;  %v4217_v63 = vmul.f32 0.5, %v9037_v50  ;;  %v4389_v16 = vmul.f32 0.7978846, %v4357_v32  ;;  %v4329_v60 = vmul.f32 %v4297_v37, %v9130_v12 }
 0x74e   : > { %v4441_v29 = vadd.f32 1.0, %v5751_v14  ;;  %5764 = vtanh.f32 %v4386_v20  ;;  %v4328_v11 = vmul.f32 %v4296_v44, %v9136_v39  ;;  %v4358_v0 = vadd.f32 %v4326_v61, %v9119_v2 }
 0x74f   : > { %5766 = vtanh.f32 %v4387_v10  ;;  %v4359_v59 = vadd.f32 %v4327_v26, %v9122_v45  ;;  %v4472_v6 = vmul.f32 %v4440_v48, %v4216_v8  ;;  %v4218_v30 = vmul.f32 0.5, %v9053_v46 }
 0x750   : > { %v4473_v24 = vmul.f32 %v4441_v29, %v4217_v63  ;;  %5768 = vtanh.f32 %v4388_v4  ;;  %v4390_v57 = vmul.f32 0.7978846, %v4358_v0  ;;  %v4361_v19 = vadd.f32 %v4329_v60, %v9130_v12 }
 0x751   : > { %v4391_v9 = vmul.f32 0.7978846, %v4359_v59  ;;  %5770 = vtanh.f32 %v4389_v16  ;;  %v4445_v34 = vadd.f32 1.0, %v5747_v15  ;;  %v4360_v22 = vadd.f32 %v4328_v11, %v9136_v39 }
 0x752   : > { %v5753_v50 = vpop.eup %5752  ;;  %v4497_v5 = vpack.c.bf16 %v4473_v24, %v4472_v6  ;;  %v4219_v28 = vmul.f32 0.5, %v9064_v36  ;;  %5772 = vtanh.f32 %v4390_v57  ;;  %v4221_v37 = vmul.f32 0.5, %v9026_v23 }
 0x753   : > { %v5755_v52 = vpop.eup %5754  ;;  %v4442_v32 = vadd.f32 1.0, %v5753_v50  ;;  %v4444_v46 = vadd.f32 1.0, %v5745_v18  ;;  %5774 = vtanh.f32 %v4391_v9  ;;  %v4220_v43 = vmul.f32 0.5, %v9022_v53 }
 0x754   : > { %5467 = vmatmul.mubr.bf16.gmra.mxu1 %v4497_v5  ;;  %v4443_v51 = vadd.f32 1.0, %v5755_v52  ;;  %v4393_v21 = vmul.f32 0.7978846, %v4361_v19  ;;  %v4477_v15 = vmul.f32 %v4445_v34, %v4221_v37  ;;  %v4392_v20 = vmul.f32 0.7978846, %v4360_v22 }
 0x755   : > { %v5757_v38 = vpop.eup %5756  ;;  %v4474_v44 = vmul.f32 %v4442_v32, %v4218_v30  ;;  %v4476_v36 = vmul.f32 %v4444_v46, %v4220_v43  ;;  %v4222_v8 = vmul.f32 0.5, %v9072_v1  ;;  %v4223_v23 = vmul.f32 0.5, %v9082_v47 }
 0x756   : > { %v4475_v61 = vmul.f32 %v4443_v51, %v4219_v28  ;;  %5776 = vtanh.f32 %v4393_v21  ;;  %v4449_v63 = vadd.f32 1.0, %v5757_v38  ;;  %v4225_v0 = vmul.f32 0.5, %v9060_v35 }
 0x757   : > { %v5759_v26 = vpop.eup %5758  ;;  %v4499_v53 = vpack.c.bf16 %v4477_v15, %v4476_v36  ;;  %5778 = vtanh.f32 %v4392_v20  ;;  %v4226_v1 = vmul.f32 0.5, %v9091_v17  ;;  %v4227_v47 = vmul.f32 0.5, %v9099_v31 }
 0x758   : > { %v5761_v48 = vpop.eup %5760  ;;  %v4498_v10 = vpack.c.bf16 %v4475_v61, %v4474_v44  ;;  %v4446_v14 = vadd.f32 1.0, %v5759_v26  ;;  %v4224_v9 = vmul.f32 0.5, %v9067_v3  ;;  %v4481_v50 = vmul.f32 %v4449_v63, %v4225_v0 }
 0x759   : > { %v5763_v4 = vpop.eup %5762  ;;  %v4447_v18 = vadd.f32 1.0, %v5761_v48  ;;  %v4231_v17 = vmul.f32 0.5, %v9122_v45  ;;  %v4229_v31 = vmul.f32 0.5, %v9096_v27  ;;  %v4230_v3 = vmul.f32 0.5, %v9119_v2 }
 0x75a   : > { %5470 = vmatprep.mubr.bf16.mxu1 %v4498_v10  ;;  %v4478_v60 = vmul.f32 %v4446_v14, %v4222_v8  ;;  %v4448_v59 = vadd.f32 1.0, %v5763_v4  ;;  %v4228_v21 = vmul.f32 0.5, %v9087_v54  ;;  %v4233_v45 = vmul.f32 0.5, %v9130_v12  ;;  %v9185_v54 = vld [vmem:[%s9340_s15] ss:$0 sm:$0xff] }
 0x75b   : > { %v5765_v16 = vpop.eup %5764  ;;  %v4479_v29 = vmul.f32 %v4447_v18, %v4223_v23  ;;  %v4232_v14 = vmul.f32 0.5, %v9136_v39 }
 0x75c   : > { %v5767_v11 = vpop.eup %5766  ;;  %5471 = vmatmul.mubr.bf16.gmra.mxu1 %v4499_v53  ;;  %v4450_v6 = vadd.f32 1.0, %v5765_v16  ;;  %v4480_v22 = vmul.f32 %v4448_v59, %v4224_v9 }
 0x75d   : > { %v4500_v24 = vpack.c.bf16 %v4479_v29, %v4478_v60  ;;  %v4451_v30 = vadd.f32 1.0, %v5767_v11  ;;  %v5769_v57 = vpop.eup %5768 }
 0x75e   : > { %v5771_v19 = vpop.eup %5770  ;;  %v4482_v5 = vmul.f32 %v4450_v6, %v4226_v1  ;;  %v4501_v32 = vpack.c.bf16 %v4481_v50, %v4480_v22  ;;  %v4452_v43 = vadd.f32 1.0, %v5769_v57 }
 0x75f   : > { %5474 = vmatprep.mubr.bf16.mxu1 %v4500_v24  ;;  %v4483_v34 = vmul.f32 %v4451_v30, %v4227_v47  ;;  %v5773_v52 = vpop.eup %5772  ;;  %v4453_v51 = vadd.f32 1.0, %v5771_v19 }
 0x760   : > { %v5775_v28 = vpop.eup %5774  ;;  %v4454_v46 = vadd.f32 1.0, %v5773_v52  ;;  %v4484_v26 = vmul.f32 %v4452_v43, %v4228_v21 }
 0x761   : > { %v4502_v35 = vpack.c.bf16 %v4483_v34, %v4482_v5  ;;  %v4455_v37 = vadd.f32 1.0, %v5775_v28  ;;  %v4485_v44 = vmul.f32 %v4453_v51, %v4229_v31 }
 0x762   : > { %v4486_v15 = vmul.f32 %v4454_v46, %v4230_v3 }
 0x763   : > { %v4487_v38 = vmul.f32 %v4455_v37, %v4231_v17  ;;  %v5777_v61 = vpop.eup %5776  ;;  %v4503_v10 = vpack.c.bf16 %v4485_v44, %v4484_v26 }
 0x764   : > { %5475 = vmatmul.mubr.bf16.gmra.mxu1 %v4501_v32  ;;  %v5779_v48 = vpop.eup %5778  ;;  %v4457_v36 = vadd.f32 1.0, %v5777_v61 }
 0x765   : > { %5478 = vmatprep.mubr.bf16.mxu1 %v4502_v35  ;;  %v4504_v20 = vpack.c.bf16 %v4487_v38, %v4486_v15  ;;  %v4456_v27 = vadd.f32 1.0, %v5779_v48  ;;  %v9718_v48 = vld [vmem:[#allocation126_spill] sm:$0xff] }
 0x766   : > { %v4489_v2 = vmul.f32 %v4457_v36, %v4233_v45  ;;  %v9719_v45 = vld [vmem:[#allocation118_spill] sm:$0xff] }
 0x767   : > { %v4488_v4 = vmul.f32 %v4456_v27, %v4232_v14 }
 0x769   : > { %v4505_v8 = vpack.c.bf16 %v4489_v2, %v4488_v4  ;;  %v9720_v4 = vld [vmem:[#allocation70_spill] sm:$0xff] }
 0x76c   : > { %5479 = vmatmul.mubr.bf16.gmra.mxu1 %v4503_v10 }
 0x76d   : > { %5482 = vmatprep.mubr.bf16.mxu1 %v4504_v20 }
 0x774   : > { %5483 = vmatmul.mubr.bf16.gmra.mxu1 %v4505_v8 }
 0x7ed   : > { %v5456_v23 = vpop.f32.mrf.mxu1 }
 0x7ee   : > { %v4620_v18 = vadd.f32 %v5456_v23, %v9185_v54 }
 0x7ef   : > { %v4611_v53 = vpop.f32.mrf.mxu1 }
 0x7f0   : > { %v4740_v63 = vadd.f32 %v4620_v18, %v8386_v42  ;;  %v4612_v12 = vadd.f32 %v9185_v54, %v4611_v53 }
 0x7f1   : > { %v5457_v39 = vpop.f32.mrf.mxu1 }
 0x7f2   : > { %v5143_v16 = vpack.c.bf16 %v4740_v63, %v4740_v63  ;;  %v4738_v60 = vadd.f32 %v4612_v12, %v8382_v56  ;;  %v4623_v29 = vadd.f32 %v5457_v39, %v9185_v54  ;;  %v9721_v63 = vld [vmem:[#allocation128_spill] sm:$0xff] }
 0x7f3   : > { %v4614_v11 = vpop.f32.mrf.mxu1 }
 0x7f4   : > { %4901 = vst.msk [vmem:[%s9195_s26 + $0x8] sm:$0xf] %vm4898_vm1, %v5143_v16  ;;  %v5141_v42 = vpack.c.bf16 %v4738_v60, %v4738_v60  ;;  %v4741_v0 = vadd.f32 %v4623_v29, %v8395_v41  ;;  %v4615_v59 = vadd.f32 %v9185_v54, %v4614_v11  ;;  %v9722_v29 = vld [vmem:[#allocation36_spill] sm:$0xff] }
 0x7f5   : > { %v5460_v6 = vpop.f32.mrf.mxu1 }
 0x7f6   : > { %4899 = vst.msk [vmem:[%s9195_s26] sm:$0xf] %vm4898_vm1, %v5141_v42  ;;  %v5144_v24 = vpack.c.bf16 %v4741_v0, %v4741_v0  ;;  %v4739_v1 = vadd.f32 %v4615_v59, %v8392_v40  ;;  %v4636_v56 = vadd.f32 %v5460_v6, %v9185_v54  ;;  %v9723_v6 = vld [vmem:[#allocation91_spill] sm:$0xff] }
 0x7f7   : > { %v4627_v47 = vpop.f32.mrf.mxu1 }
 0x7f8   : > { %4902 = vst.msk [vmem:[%s9195_s26 + $0xc] sm:$0xf] %vm4898_vm1, %v5144_v24  ;;  %v5142_v30 = vpack.c.bf16 %v4739_v1, %v4739_v1  ;;  %v4744_v57 = vadd.f32 %v4636_v56, %v8409_v25  ;;  %v4628_v41 = vadd.f32 %v9185_v54, %v4627_v47 }
 0x7f9   : > { %v5461_v9 = vpop.f32.mrf.mxu1 }
 0x7fa   : > { %4900 = vst.msk [vmem:[%s9195_s26 + $0x4] sm:$0xf] %vm4898_vm1, %v5142_v30  ;;  %v5147_v50 = vpack.c.bf16 %v4744_v57, %v4744_v57  ;;  %v4742_v19 = vadd.f32 %v4628_v41, %v8404_v7  ;;  %v4639_v40 = vadd.f32 %v5461_v9, %v9185_v54  ;;  %v9724_v30 = vld [vmem:[#allocation47_spill] sm:$0xff] }
 0x7fb   : > { %v4630_v5 = vpop.f32.mrf.mxu1 }
 0x7fc   : > { %4905 = vst.msk [vmem:[%s9195_s26 + $0x18] sm:$0xf] %vm4898_vm1, %v5147_v50  ;;  %v5145_v34 = vpack.c.bf16 %v4742_v19, %v4742_v19  ;;  %v4745_v52 = vadd.f32 %v4639_v40, %v8420_v58  ;;  %v4631_v22 = vadd.f32 %v9185_v54, %v4630_v5  ;;  %v9725_v19 = vld [vmem:[#allocation45_spill] sm:$0xff] }
 0x7fd   : > { %v5464_v7 = vpop.f32.mrf.mxu1 }
 0x7fe   : > { %4903 = vst.msk [vmem:[%s9195_s26 + $0x10] sm:$0xf] %vm4898_vm1, %v5145_v34  ;;  %v5148_v25 = vpack.c.bf16 %v4745_v52, %v4745_v52  ;;  %v4743_v28 = vadd.f32 %v4631_v22, %v8416_v13  ;;  %v4652_v32 = vadd.f32 %v5464_v7, %v9185_v54  ;;  %v9726_v22 = vld [vmem:[#allocation50_spill] sm:$0xff] }
 0x7ff   : > { %v4643_v51 = vpop.f32.mrf.mxu1 }
 0x800   : > { %4906 = vst.msk [vmem:[%s9195_s26 + $0x1c] sm:$0xf] %vm4898_vm1, %v5148_v25  ;;  %v5146_v35 = vpack.c.bf16 %v4743_v28, %v4743_v28  ;;  %v4748_v58 = vadd.f32 %v4652_v32, %v8431_v55  ;;  %v4644_v37 = vadd.f32 %v9185_v54, %v4643_v51  ;;  %v9727_v32 = vld [vmem:[#allocation48_spill] sm:$0xff] }
 0x801   : > { %v5465_v17 = vpop.f32.mrf.mxu1 }
 0x802   : > { %4904 = vst.msk [vmem:[%s9195_s26 + $0x14] sm:$0xf] %vm4898_vm1, %v5146_v35  ;;  %v5151_v46 = vpack.c.bf16 %v4748_v58, %v4748_v58  ;;  %v4746_v13 = vadd.f32 %v4644_v37, %v8428_v49  ;;  %v4655_v31 = vadd.f32 %v5465_v17, %v9185_v54 }
 0x803   : > { %v4646_v43 = vpop.f32.mrf.mxu1 }
 0x804   : > { %4909 = vst.msk [vmem:[%s9195_s26 + $0x28] sm:$0xf] %vm4898_vm1, %v5151_v46  ;;  %v5149_v3 = vpack.c.bf16 %v4746_v13, %v4746_v13  ;;  %v4749_v38 = vadd.f32 %v4655_v31, %v8445_v62  ;;  %v4647_v21 = vadd.f32 %v9185_v54, %v4646_v43  ;;  %v9728_v46 = vld [vmem:[#allocation53_spill] sm:$0xff] }
 0x806   : > { %4907 = vst.msk [vmem:[%s9195_s26 + $0x20] sm:$0xf] %vm4898_vm1, %v5149_v3  ;;  %v5152_v55 = vpack.c.bf16 %v4749_v38, %v4749_v38  ;;  %v4747_v44 = vadd.f32 %v4647_v21, %v8440_v33  ;;  %v9729_v38 = vld [vmem:[#allocation51_spill] sm:$0xff] }
 0x808   : > { %4910 = vst.msk [vmem:[%s9195_s26 + $0x2c] sm:$0xf] %vm4898_vm1, %v5152_v55  ;;  %v5150_v61 = vpack.c.bf16 %v4747_v44, %v4747_v44 }
 0x80a   : > { %4908 = vst.msk [vmem:[%s9195_s26 + $0x24] sm:$0xf] %vm4898_vm1, %v5150_v61 }
 0x814   : > { %v5468_v49 = vpop.f32.mrf.mxu1 }
 0x815   : > { %v4668_v15 = vadd.f32 %v5468_v49, %v9185_v54  ;;  %v9730_v49 = vld [vmem:[#allocation58_spill] sm:$0xff] }
 0x816   : > { %v4659_v26 = vpop.f32.mrf.mxu1 }
 0x817   : > { %v4752_v62 = vadd.f32 %v4668_v15, %v9718_v48  ;;  %v4660_v20 = vadd.f32 %v9185_v54, %v4659_v26 }
 0x818   : > { %v5469_v10 = vpop.f32.mrf.mxu1 }
 0x819   : > { %v5155_v36 = vpack.c.bf16 %v4752_v62, %v4752_v62  ;;  %v4750_v27 = vadd.f32 %v4660_v20, %v9719_v45  ;;  %v4671_v33 = vadd.f32 %v5469_v10, %v9185_v54  ;;  %v9731_v20 = vld [vmem:[#allocation56_spill] sm:$0xff] }
 0x81a   : > { %v4662_v14 = vpop.f32.mrf.mxu1 }
 0x81b   : > { %4913 = vst.msk [vmem:[%s9195_s26 + $0x38] sm:$0xf] %vm4898_vm1, %v5155_v36  ;;  %v5153_v2 = vpack.c.bf16 %v4750_v27, %v4750_v27  ;;  %v4753_v8 = vadd.f32 %v4671_v33, %v9720_v4  ;;  %v4663_v23 = vadd.f32 %v9185_v54, %v4662_v14  ;;  %v9732_v33 = vld [vmem:[#allocation65_spill] sm:$0xff] }
 0x81c   : > { %v5472_v18 = vpop.f32.mrf.mxu1 }
 0x81d   : > { %4911 = vst.msk [vmem:[%s9195_s26 + $0x30] sm:$0xf] %vm4898_vm1, %v5153_v2  ;;  %v5156_v53 = vpack.c.bf16 %v4753_v8, %v4753_v8  ;;  %v4751_v12 = vadd.f32 %v4663_v23, %v9721_v63  ;;  %v4684_v39 = vadd.f32 %v5472_v18, %v9185_v54  ;;  %v9733_v23 = vld [vmem:[#allocation61_spill] sm:$0xff] }
 0x81e   : > { %v4675_v16 = vpop.f32.mrf.mxu1 }
 0x81f   : > { %4914 = vst.msk [vmem:[%s9195_s26 + $0x3c] sm:$0xf] %vm4898_vm1, %v5156_v53  ;;  %v5154_v60 = vpack.c.bf16 %v4751_v12, %v4751_v12  ;;  %v4756_v11 = vadd.f32 %v4684_v39, %v9722_v29  ;;  %v4676_v42 = vadd.f32 %v9185_v54, %v4675_v16  ;;  %v9734_v39 = vld [vmem:[#allocation72_spill] sm:$0xff] }
 0x820   : > { %v5473_v0 = vpop.f32.mrf.mxu1 }
 0x821   : > { %4912 = vst.msk [vmem:[%s9195_s26 + $0x34] sm:$0xf] %vm4898_vm1, %v5154_v60  ;;  %v5159_v59 = vpack.c.bf16 %v4756_v11, %v4756_v11  ;;  %v4754_v24 = vadd.f32 %v4676_v42, %v9723_v6  ;;  %v4687_v1 = vadd.f32 %v5473_v0, %v9185_v54  ;;  %v9735_v42 = vld [vmem:[#allocation69_spill] sm:$0xff] }
 0x822   : > { %v4678_v56 = vpop.f32.mrf.mxu1 }
 0x823   : > { %4917 = vst.msk [vmem:[%s9195_s26 + $0x48] sm:$0xf] %vm4898_vm1, %v5159_v59  ;;  %v5157_v47 = vpack.c.bf16 %v4754_v24, %v4754_v24  ;;  %v4757_v57 = vadd.f32 %v4687_v1, %v9724_v30  ;;  %v4679_v41 = vadd.f32 %v9185_v54, %v4678_v56  ;;  %v9736_v1 = vld [vmem:[#allocation78_spill] sm:$0xff] }
 0x824   : > { %v5476_v9 = vpop.f32.mrf.mxu1 }
 0x825   : > { %4915 = vst.msk [vmem:[%s9195_s26 + $0x40] sm:$0xf] %vm4898_vm1, %v5157_v47  ;;  %v5160_v50 = vpack.c.bf16 %v4757_v57, %v4757_v57  ;;  %v4755_v40 = vadd.f32 %v4679_v41, %v9725_v19  ;;  %v4700_v5 = vadd.f32 %v5476_v9, %v9185_v54  ;;  %v9737_v57 = vld [vmem:[#allocation74_spill] sm:$0xff] }
 0x826   : > { %v4691_v34 = vpop.f32.mrf.mxu1 }
 0x827   : > { %4918 = vst.msk [vmem:[%s9195_s26 + $0x4c] sm:$0xf] %vm4898_vm1, %v5160_v50  ;;  %v5158_v52 = vpack.c.bf16 %v4755_v40, %v4755_v40  ;;  %v4760_v25 = vadd.f32 %v4700_v5, %v9726_v22  ;;  %v4692_v28 = vadd.f32 %v9185_v54, %v4691_v34 }
 0x828   : > { %v5477_v35 = vpop.f32.mrf.mxu1 }
 0x829   : > { %4916 = vst.msk [vmem:[%s9195_s26 + $0x44] sm:$0xf] %vm4898_vm1, %v5158_v52  ;;  %v5163_v7 = vpack.c.bf16 %v4760_v25, %v4760_v25  ;;  %v4758_v51 = vadd.f32 %v4692_v28, %v9727_v32  ;;  %v4703_v58 = vadd.f32 %v5477_v35, %v9185_v54 }
 0x82a   : > { %v4694_v37 = vpop.f32.mrf.mxu1 }
 0x82b   : > { %4921 = vst.msk [vmem:[%s9195_s26 + $0x58] sm:$0xf] %vm4898_vm1, %v5163_v7  ;;  %v5161_v17 = vpack.c.bf16 %v4758_v51, %v4758_v51  ;;  %v4761_v13 = vadd.f32 %v4703_v58, %v9728_v46  ;;  %v4695_v31 = vadd.f32 %v9185_v54, %v4694_v37 }
 0x82c   : > { %v5480_v43 = vpop.f32.mrf.mxu1 }
 0x82d   : > { %4919 = vst.msk [vmem:[%s9195_s26 + $0x50] sm:$0xf] %vm4898_vm1, %v5161_v17  ;;  %v5164_v3 = vpack.c.bf16 %v4761_v13, %v4761_v13  ;;  %v4759_v21 = vadd.f32 %v4695_v31, %v9729_v38  ;;  %v4716_v55 = vadd.f32 %v5480_v43, %v9185_v54 }
 0x82e   : > { %v4707_v44 = vpop.f32.mrf.mxu1 }
 0x82f   : > { %4922 = vst.msk [vmem:[%s9195_s26 + $0x5c] sm:$0xf] %vm4898_vm1, %v5164_v3  ;;  %v5162_v61 = vpack.c.bf16 %v4759_v21, %v4759_v21  ;;  %v4764_v15 = vadd.f32 %v4716_v55, %v9730_v49  ;;  %v4708_v26 = vadd.f32 %v9185_v54, %v4707_v44 }
 0x830   : > { %v5481_v48 = vpop.f32.mrf.mxu1 }
 0x831   : > { %4920 = vst.msk [vmem:[%s9195_s26 + $0x54] sm:$0xf] %vm4898_vm1, %v5162_v61  ;;  %v5167_v62 = vpack.c.bf16 %v4764_v15, %v4764_v15  ;;  %v4762_v10 = vadd.f32 %v4708_v26, %v9731_v20  ;;  %v4719_v36 = vadd.f32 %v5481_v48, %v9185_v54 }
 0x832   : > { %v4710_v45 = vpop.f32.mrf.mxu1 }
 0x833   : > { %4925 = vst.msk [vmem:[%s9195_s26 + $0x68] sm:$0xf] %vm4898_vm1, %v5167_v62  ;;  %v5165_v27 = vpack.c.bf16 %v4762_v10, %v4762_v10  ;;  %v4765_v14 = vadd.f32 %v4719_v36, %v9732_v33  ;;  %v4711_v2 = vadd.f32 %v9185_v54, %v4710_v45 }
 0x834   : > { %v5484_v4 = vpop.f32.mrf.mxu1 }
 0x835   : > { %4923 = vst.msk [vmem:[%s9195_s26 + $0x60] sm:$0xf] %vm4898_vm1, %v5165_v27  ;;  %v5168_v8 = vpack.c.bf16 %v4765_v14, %v4765_v14  ;;  %v4763_v18 = vadd.f32 %v4711_v2, %v9733_v23  ;;  %v4732_v53 = vadd.f32 %v5484_v4, %v9185_v54 }
 0x836   : > { %v4723_v63 = vpop.f32.mrf.mxu1 }
 0x837   : > { %4926 = vst.msk [vmem:[%s9195_s26 + $0x6c] sm:$0xf] %vm4898_vm1, %v5168_v8  ;;  %v5166_v12 = vpack.c.bf16 %v4763_v18, %v4763_v18  ;;  %v4768_v16 = vadd.f32 %v4732_v53, %v9734_v39  ;;  %v4724_v60 = vadd.f32 %v9185_v54, %v4723_v63 }
 0x838   : > { %v5485_v29 = vpop.f32.mrf.mxu1 }
 0x839   : > { %4924 = vst.msk [vmem:[%s9195_s26 + $0x64] sm:$0xf] %vm4898_vm1, %v5166_v12  ;;  %v5171_v11 = vpack.c.bf16 %v4768_v16, %v4768_v16  ;;  %v4766_v0 = vadd.f32 %v4724_v60, %v9735_v42  ;;  %v4735_v59 = vadd.f32 %v5485_v29, %v9185_v54 }
 0x83a   : > { %v4726_v6 = vpop.f32.mrf.mxu1 }
 0x83b   : > { %4929 = vst.msk [vmem:[%s9195_s26 + $0x78] sm:$0xf] %vm4898_vm1, %v5171_v11  ;;  %v5169_v24 = vpack.c.bf16 %v4766_v0, %v4766_v0  ;;  %v4769_v56 = vadd.f32 %v4735_v59, %v9736_v1  ;;  %v4727_v47 = vadd.f32 %v9185_v54, %v4726_v6 }
 0x83d   : > { %4927 = vst.msk [vmem:[%s9195_s26 + $0x70] sm:$0xf] %vm4898_vm1, %v5169_v24  ;;  %v5172_v30 = vpack.c.bf16 %v4769_v56, %v4769_v56  ;;  %v4767_v41 = vadd.f32 %v4727_v47, %v9737_v57 }
 0x83f   : > { %4930 = vst.msk [vmem:[%s9195_s26 + $0x7c] sm:$0xf] %vm4898_vm1, %v5172_v30  ;;  %v5170_v9 = vpack.c.bf16 %v4767_v41, %v4767_v41 }
 0x841   : > { %4928 = vst.msk [vmem:[%s9195_s26 + $0x74] sm:$0xf] %vm4898_vm1, %v5170_v9 }
 0x842 PF: > { %s26_s21 = sadd.s32 1, %s5786_s21  }
 0x843   : > { %p23_p4 = scmp.ge.s32.totalorder %s26_s21, 4  }
 0x845   :  { %25 = sbr.rel (!%p23_p4) target bundleno = 2 (0x2), region = 116 }

</bundles_post_ra>
